<compile_context>
chip_gen: v5e
topology: v5e:2x2
jax: 0.10.0
libtpu: 0.0.40
codegen_flags: <defaults>
</compile_context>

<pallas_src>
import functools

import jax
import jax.numpy as jnp
from jax.experimental import pallas as pl
from jax.experimental.pallas import tpu as pltpu


def _round_up(x, m):
    return ((x + m - 1) // m) * m


def _pad_axis_to(arr, axis, size):
    if arr.shape[axis] == size:
        return arr
    pads = [(0, 0)] * arr.ndim
    pads[axis] = (0, size - arr.shape[axis])
    return jnp.pad(arr, pads)


# -----------------------------------------------------------------------------
# Pallas kernel: fused 3x3 conv (single K=9*Cin matmul) + BN shift (+res) + ReLU
# -----------------------------------------------------------------------------
def _conv3x3_bn_act_kernel(*refs, h, w, cin, with_relu, add_residual):
    if add_residual:
        x_ref, w_ref, shift_ref, res_ref, o_ref, xpad_ref, patch_ref = refs
    else:
        x_ref, w_ref, shift_ref, o_ref, xpad_ref, patch_ref = refs
        res_ref = None

    oh, ow = h, w                      # stride=1, padding=1, kernel=3
    m = oh * ow
    cb = pl.program_id(1)              # Cout-tile axis (inner, sequential)

    # Build the (M, 9*Cin) patch matrix once per input slab; the input slab and
    # the patch are invariant over the Cout-tile axis, and both scratches
    # persist across grid steps, so cb > 0 reuses them for free.
    @pl.when(cb == 0)
    def _build_patch():
        # In-kernel spatial halo (padding=1): zero the padded slab scratch and
        # copy the unpadded tile into its interior.
        xpad_ref[...] = jnp.zeros_like(xpad_ref)
        xpad_ref[1:1 + h, 1:1 + w, :] = x_ref[0, :, :, :cin]
        for t in range(9):
            i, j = divmod(t, 3)
            patch_ref[:, t * cin:(t + 1) * cin] = (
                xpad_ref[i:i + oh, j:j + ow, :].reshape(m, cin))

    # Single fused matmul, f32 accumulation held in a local value (no VMEM
    # accumulator round-trips); the output ref is written exactly once.
    y = jnp.dot(patch_ref[...], w_ref[...],
                preferred_element_type=jnp.float32)            # (M, TCo) f32
    y = y + shift_ref[...]              # folded BN shift (beta - mean*scale)
    if add_residual:
        y = y + res_ref[0].astype(jnp.float32)   # bf16 identity residual
    if with_relu:
        y = jnp.maximum(y, 0.0)
    o_ref[0] = y.astype(o_ref.dtype)


def _conv3x3_bn_act(x_4d, w_flat, shift, *, cin, with_relu=True,
                    residual=None, out_dtype=jnp.float32):
    """Fused 3x3 conv (padding=1, stride=1, bias=False) + BN + (res) + ReLU.

    x_4d    : (N, H, W, Cx) bf16 NHWC  (Cx >= cin; only [:cin] channels used)
    w_flat  : (9*cin, Co)   bf16       (BN scale folded, Co % 128 == 0)
    shift   : (1, Co)       f32
    residual: (N, H*W, Co)  bf16 or None
    returns : (N, H*W, Co)  in out_dtype (flat spatial, NHWC channel order)
    """
    n, h, w, c_x = x_4d.shape
    k9cin, co = w_flat.shape
    assert k9cin == 9 * cin and co % 128 == 0 and cin <= c_x
    oh, ow = h, w
    m = oh * ow

    tco = 256 if co % 256 == 0 else 128      # MXU / lane aligned Cout tile
    n_co = co // tco

    kernel = functools.partial(
        _conv3x3_bn_act_kernel, h=h, w=w, cin=cin,
        with_relu=with_relu, add_residual=residual is not None)

    in_specs = [
        # One image slab per batch step (block index invariant over cb, so it
        # is only DMA'd when the batch index changes).
        pl.BlockSpec((1, h, w, c_x), lambda nb, cb: (nb, 0, 0, 0)),
        pl.BlockSpec((9 * cin, tco), lambda nb, cb: (0, cb)),
        pl.BlockSpec((1, tco), lambda nb, cb: (0, cb)),
    ]
    args = [x_4d, w_flat, shift]
    if residual is not None:
        in_specs.append(pl.BlockSpec((1, m, tco), lambda nb, cb: (nb, 0, cb)))
        args.append(residual)

    return pl.pallas_call(
        kernel,
        out_shape=jax.ShapeDtypeStruct((n, m, co), out_dtype),
        grid_spec=pltpu.PrefetchScalarGridSpec(
            num_scalar_prefetch=0,
            grid=(n, n_co),
            in_specs=in_specs,
            out_specs=pl.BlockSpec((1, m, tco), lambda nb, cb: (nb, 0, cb)),
            scratch_shapes=[
                pltpu.VMEM((h + 2, w + 2, cin), jnp.bfloat16),  # padded slab
                pltpu.VMEM((m, 9 * cin), jnp.bfloat16),         # patch matrix
            ]),
        compiler_params=pltpu.CompilerParams(
            dimension_semantics=("parallel", "arbitrary")),
    )(*args)


# -----------------------------------------------------------------------------
# BasicBlock forward (inference-mode BN, downsample=None)
# -----------------------------------------------------------------------------
def basic_block_forward(x_nchw, w1, gamma1, beta1, mean1, var1,
                        w2, gamma2, beta2, mean2, var2,
                        *, stride=1, eps=1e-5):
    n, cin, h, w = x_nchw.shape
    planes = w1.shape[0]
    if stride != 1 or cin != planes:
        raise NotImplementedError(
            "BasicBlock with downsample (stride != 1 or inplanes != planes) "
            "is not supported")  # TODO(synk): add 1x1-conv+BN downsample path

    co_pad = _round_up(planes, 128)          # lane-dense output channels

    # --- fold eval-mode BN into weights / per-channel shift (bias=False) -----
    def fold(w_oihw, gamma, beta, mean, var):
        scale = gamma / jnp.sqrt(var + eps)                     # (Cout,)
        shift = beta - mean * scale                             # (Cout,)
        wt = jnp.transpose(w_oihw, (2, 3, 1, 0)) * scale        # (3,3,I,O)
        wt = wt.reshape(9 * w_oihw.shape[1], w_oihw.shape[0])   # (9*I, O)
        wt = _pad_axis_to(wt, 1, co_pad)
        sh = _pad_axis_to(shift.reshape(1, -1), 1, co_pad)
        return wt.astype(jnp.bfloat16), sh.astype(jnp.float32)

    w1t, shift1 = fold(w1, gamma1, beta1, mean1, var1)
    w2t, shift2 = fold(w2, gamma2, beta2, mean2, var2)

    # --- single fused entry pass: NCHW->NHWC + bf16 cast + channel pad -------
    # (pad is a no-op when planes % 128 == 0, i.e. every real mattingnet layer)
    x_p = jnp.transpose(x_nchw, (0, 2, 3, 1)).astype(jnp.bfloat16)
    x_p = _pad_axis_to(x_p, 3, co_pad)              # (N, H, W, co_pad) bf16

    # conv1 -> bn1 -> relu   (intermediate kept bf16 / NHWC / channel-padded)
    h1 = _conv3x3_bn_act(x_p, w1t, shift1, cin=cin, with_relu=True,
                         residual=None, out_dtype=jnp.bfloat16)  # (N, H*W, Cp)
    h1_4d = h1.reshape(n, h, w, co_pad)             # contiguous -> bitcast

    # conv2 -> bn2 -> (+identity residual, bf16 reuse of x_p) -> relu
    res = x_p.reshape(n, h * w, co_pad)             # contiguous -> bitcast
    out = _conv3x3_bn_act(h1_4d, w2t, shift2, cin=planes, with_relu=True,
                          residual=res, out_dtype=x_nchw.dtype)

    out = out.reshape(n, h, w, co_pad)[..., :planes]
    return jnp.transpose(out, (0, 3, 1, 2))         # single exit pass to NCHW


# -----------------------------------------------------------------------------
# Pure-JAX f32 reference for correctness checking
# -----------------------------------------------------------------------------
def _reference_basic_block(x, w1, g1, b1, m1, v1, w2, g2, b2, m2, v2,
                           *, stride=1, eps=1e-5):
    def conv_bn(z, wgt, g, b, m, v, s):
        y = jax.lax.conv_general_dilated(
            z, wgt, window_strides=(s, s), padding=[(1, 1), (1, 1)],
            dimension_numbers=("NCHW", "OIHW", "NCHW"))
        inv = (g / jnp.sqrt(v + eps)).reshape(1, -1, 1, 1)
        return y * inv + (b.reshape(1, -1, 1, 1) - m.reshape(1, -1, 1, 1) * inv)

    out = jnp.maximum(conv_bn(x, w1, g1, b1, m1, v1, stride), 0.0)
    out = conv_bn(out, w2, g2, b2, m2, v2, 1)
    out = out + x                           # downsample=None -> identity
    return jnp.maximum(out, 0.0)


if __name__ == "__main__":
    # BasicBlock(inplanes=8, planes=8, stride=1, downsample=None)
    N, C, H, W = 2, 8, 16, 16

    key = jax.random.PRNGKey(0)
    ks = jax.random.split(key, 11)
    x = jax.random.normal(ks[0], (N, C, H, W), jnp.float32)
    w1 = jax.random.normal(ks[1], (C, C, 3, 3), jnp.float32) * 0.1
    g1 = jax.random.uniform(ks[2], (C,), jnp.float32, 0.5, 1.5)
    b1 = jax.random.normal(ks[3], (C,), jnp.float32) * 0.1
    m1 = jax.random.normal(ks[4], (C,), jnp.float32) * 0.1
    v1 = jax.random.uniform(ks[5], (C,), jnp.float32, 0.5, 1.5)
    w2 = jax.random.normal(ks[6], (C, C, 3, 3), jnp.float32) * 0.1
    g2 = jax.random.uniform(ks[7], (C,), jnp.float32, 0.5, 1.5)
    b2 = jax.random.normal(ks[8], (C,), jnp.float32) * 0.1
    m2 = jax.random.normal(ks[9], (C,), jnp.float32) * 0.1
    v2 = jax.random.uniform(ks[10], (C,), jnp.float32, 0.5, 1.5)

    fwd = jax.jit(basic_block_forward)
    out = fwd(x, w1, g1, b1, m1, v1, w2, g2, b2, m2, v2)
    out = jax.block_until_ready(out)

    ref = _reference_basic_block(x, w1, g1, b1, m1, v1, w2, g2, b2, m2, v2)
    assert out.shape == (N, C, H, W)
    # bf16 matmul inputs + bf16 residual -> looser tolerance than pure f32.
    rel = jnp.linalg.norm(out - ref) / jnp.linalg.norm(ref)
    max_abs = jnp.max(jnp.abs(out - ref))
    assert rel < 2e-2 and max_abs < 1.5e-1, (float(rel), float(max_abs))

    print("KERNEL_OK")
</pallas_src>

<mosaic_0001>
module attributes {stable_mosaic.version = 11 : i64} {
  func.func @_conv3x3_bn_act_kernel(%arg0: i32, %arg1: i32, %arg2: memref<1x16x16x128xbf16, #tpu.memory_space<vmem>>, %arg3: memref<72x128xbf16, #tpu.memory_space<vmem>>, %arg4: memref<1x128xf32, #tpu.memory_space<vmem>>, %arg5: memref<1x256x128xbf16, #tpu.memory_space<vmem>>, %arg6: memref<18x18x8xbf16, #tpu.memory_space<vmem>>, %arg7: memref<256x72xbf16, #tpu.memory_space<vmem>>) attributes {dimension_semantics = [#tpu.dimension_semantics<parallel>, #tpu.dimension_semantics<arbitrary>], iteration_bounds = array<i64: 2, 1>, scalar_prefetch = 0 : i64, scratch_operands = 2 : i64, tpu.core_type = #tpu.core_type<tc>, window_params = [{transform_indices = @transform_0, window_bounds = array<i64: 1, 16, 16, 128>}, {transform_indices = @transform_1, window_bounds = array<i64: 72, 128>}, {transform_indices = @transform_2, window_bounds = array<i64: 1, 128>}, {transform_indices = @transform_3, window_bounds = array<i64: 1, 256, 128>}]} {
    %c0_i32 = arith.constant 0 : i32
    %0 = arith.cmpi eq, %arg1, %c0_i32 : i32
    %1 = arith.extui %0 : i1 to i32
    %c0_i32_0 = arith.constant 0 : i32
    %2 = arith.cmpi ne, %1, %c0_i32_0 : i32
    scf.if %2 {
      %cst_10 = arith.constant 0.000000e+00 : bf16
      %15 = vector.broadcast %cst_10 : bf16 to vector<18x18x8xbf16>
      %c0_11 = arith.constant 0 : index
      %c0_12 = arith.constant 0 : index
      %c0_13 = arith.constant 0 : index
      %16 = vector.load %arg6[%c0_11, %c0_12, %c0_13] : memref<18x18x8xbf16, #tpu.memory_space<vmem>>, vector<18x18x8xbf16>
      tpu.vector_store %arg6[%c0_11, %c0_12, %c0_13], %15 {strides = array<i32>} : memref<18x18x8xbf16, #tpu.memory_space<vmem>>, vector<18x18x8xbf16>,
      %c0_14 = arith.constant 0 : index
      %c0_15 = arith.constant 0 : index
      %c0_16 = arith.constant 0 : index
      %c0_17 = arith.constant 0 : index
      %17 = vector.load %arg2[%c0_14, %c0_15, %c0_16, %c0_17] : memref<1x16x16x128xbf16, #tpu.memory_space<vmem>>, vector<1x16x16x8xbf16>
      %18 = vector.shape_cast %17 : vector<1x16x16x8xbf16> to vector<16x16x8xbf16>
      %c1 = arith.constant 1 : index
      %c1_18 = arith.constant 1 : index
      %c0_19 = arith.constant 0 : index
      %19 = vector.load %arg6[%c1, %c1_18, %c0_19] : memref<18x18x8xbf16, #tpu.memory_space<vmem>>, vector<16x16x8xbf16>
      tpu.vector_store %arg6[%c1, %c1_18, %c0_19], %18 {strides = array<i32>} : memref<18x18x8xbf16, #tpu.memory_space<vmem>>, vector<16x16x8xbf16>,
      %c0_20 = arith.constant 0 : index
      %c0_21 = arith.constant 0 : index
      %c0_22 = arith.constant 0 : index
      %20 = vector.load %arg6[%c0_20, %c0_21, %c0_22] : memref<18x18x8xbf16, #tpu.memory_space<vmem>>, vector<16x16x8xbf16>
      %21 = vector.shape_cast %20 : vector<16x16x8xbf16> to vector<256x8xbf16>
      %c0_23 = arith.constant 0 : index
      %c0_24 = arith.constant 0 : index
      %22 = vector.load %arg7[%c0_23, %c0_24] : memref<256x72xbf16, #tpu.memory_space<vmem>>, vector<256x8xbf16>
      tpu.vector_store %arg7[%c0_23, %c0_24], %21 {strides = array<i32>} : memref<256x72xbf16, #tpu.memory_space<vmem>>, vector<256x8xbf16>,
      %c0_25 = arith.constant 0 : index
      %c1_26 = arith.constant 1 : index
      %c0_27 = arith.constant 0 : index
      %23 = vector.load %arg6[%c0_25, %c1_26, %c0_27] : memref<18x18x8xbf16, #tpu.memory_space<vmem>>, vector<16x16x8xbf16>
      %24 = vector.shape_cast %23 : vector<16x16x8xbf16> to vector<256x8xbf16>
      %c0_28 = arith.constant 0 : index
      %c8 = arith.constant 8 : index
      %25 = vector.load %arg7[%c0_28, %c8] : memref<256x72xbf16, #tpu.memory_space<vmem>>, vector<256x8xbf16>
      tpu.vector_store %arg7[%c0_28, %c8], %24 {strides = array<i32>} : memref<256x72xbf16, #tpu.memory_space<vmem>>, vector<256x8xbf16>,
      %c0_29 = arith.constant 0 : index
      %c2 = arith.constant 2 : index
      %c0_30 = arith.constant 0 : index
      %26 = vector.load %arg6[%c0_29, %c2, %c0_30] : memref<18x18x8xbf16, #tpu.memory_space<vmem>>, vector<16x16x8xbf16>
      %27 = vector.shape_cast %26 : vector<16x16x8xbf16> to vector<256x8xbf16>
      %c0_31 = arith.constant 0 : index
      %c16 = arith.constant 16 : index
      %28 = vector.load %arg7[%c0_31, %c16] : memref<256x72xbf16, #tpu.memory_space<vmem>>, vector<256x8xbf16>
      tpu.vector_store %arg7[%c0_31, %c16], %27 {strides = array<i32>} : memref<256x72xbf16, #tpu.memory_space<vmem>>, vector<256x8xbf16>,
      %c1_32 = arith.constant 1 : index
      %c0_33 = arith.constant 0 : index
      %c0_34 = arith.constant 0 : index
      %29 = vector.load %arg6[%c1_32, %c0_33, %c0_34] : memref<18x18x8xbf16, #tpu.memory_space<vmem>>, vector<16x16x8xbf16>
      %30 = vector.shape_cast %29 : vector<16x16x8xbf16> to vector<256x8xbf16>
      %c0_35 = arith.constant 0 : index
      %c24 = arith.constant 24 : index
      %31 = vector.load %arg7[%c0_35, %c24] : memref<256x72xbf16, #tpu.memory_space<vmem>>, vector<256x8xbf16>
      tpu.vector_store %arg7[%c0_35, %c24], %30 {strides = array<i32>} : memref<256x72xbf16, #tpu.memory_space<vmem>>, vector<256x8xbf16>,
      %c1_36 = arith.constant 1 : index
      %c1_37 = arith.constant 1 : index
      %c0_38 = arith.constant 0 : index
      %32 = vector.load %arg6[%c1_36, %c1_37, %c0_38] : memref<18x18x8xbf16, #tpu.memory_space<vmem>>, vector<16x16x8xbf16>
      %33 = vector.shape_cast %32 : vector<16x16x8xbf16> to vector<256x8xbf16>
      %c0_39 = arith.constant 0 : index
      %c32 = arith.constant 32 : index
      %34 = vector.load %arg7[%c0_39, %c32] : memref<256x72xbf16, #tpu.memory_space<vmem>>, vector<256x8xbf16>
      tpu.vector_store %arg7[%c0_39, %c32], %33 {strides = array<i32>} : memref<256x72xbf16, #tpu.memory_space<vmem>>, vector<256x8xbf16>,
      %c1_40 = arith.constant 1 : index
      %c2_41 = arith.constant 2 : index
      %c0_42 = arith.constant 0 : index
      %35 = vector.load %arg6[%c1_40, %c2_41, %c0_42] : memref<18x18x8xbf16, #tpu.memory_space<vmem>>, vector<16x16x8xbf16>
      %36 = vector.shape_cast %35 : vector<16x16x8xbf16> to vector<256x8xbf16>
      %c0_43 = arith.constant 0 : index
      %c40 = arith.constant 40 : index
      %37 = vector.load %arg7[%c0_43, %c40] : memref<256x72xbf16, #tpu.memory_space<vmem>>, vector<256x8xbf16>
      tpu.vector_store %arg7[%c0_43, %c40], %36 {strides = array<i32>} : memref<256x72xbf16, #tpu.memory_space<vmem>>, vector<256x8xbf16>,
      %c2_44 = arith.constant 2 : index
      %c0_45 = arith.constant 0 : index
      %c0_46 = arith.constant 0 : index
      %38 = vector.load %arg6[%c2_44, %c0_45, %c0_46] : memref<18x18x8xbf16, #tpu.memory_space<vmem>>, vector<16x16x8xbf16>
      %39 = vector.shape_cast %38 : vector<16x16x8xbf16> to vector<256x8xbf16>
      %c0_47 = arith.constant 0 : index
      %c48 = arith.constant 48 : index
      %40 = vector.load %arg7[%c0_47, %c48] : memref<256x72xbf16, #tpu.memory_space<vmem>>, vector<256x8xbf16>
      tpu.vector_store %arg7[%c0_47, %c48], %39 {strides = array<i32>} : memref<256x72xbf16, #tpu.memory_space<vmem>>, vector<256x8xbf16>,
      %c2_48 = arith.constant 2 : index
      %c1_49 = arith.constant 1 : index
      %c0_50 = arith.constant 0 : index
      %41 = vector.load %arg6[%c2_48, %c1_49, %c0_50] : memref<18x18x8xbf16, #tpu.memory_space<vmem>>, vector<16x16x8xbf16>
      %42 = vector.shape_cast %41 : vector<16x16x8xbf16> to vector<256x8xbf16>
      %c0_51 = arith.constant 0 : index
      %c56 = arith.constant 56 : index
      %43 = vector.load %arg7[%c0_51, %c56] : memref<256x72xbf16, #tpu.memory_space<vmem>>, vector<256x8xbf16>
      tpu.vector_store %arg7[%c0_51, %c56], %42 {strides = array<i32>} : memref<256x72xbf16, #tpu.memory_space<vmem>>, vector<256x8xbf16>,
      %c2_52 = arith.constant 2 : index
      %c2_53 = arith.constant 2 : index
      %c0_54 = arith.constant 0 : index
      %44 = vector.load %arg6[%c2_52, %c2_53, %c0_54] : memref<18x18x8xbf16, #tpu.memory_space<vmem>>, vector<16x16x8xbf16>
      %45 = vector.shape_cast %44 : vector<16x16x8xbf16> to vector<256x8xbf16>
      %c0_55 = arith.constant 0 : index
      %c64 = arith.constant 64 : index
      %46 = vector.load %arg7[%c0_55, %c64] : memref<256x72xbf16, #tpu.memory_space<vmem>>, vector<256x8xbf16>
      tpu.vector_store %arg7[%c0_55, %c64], %45 {strides = array<i32>} : memref<256x72xbf16, #tpu.memory_space<vmem>>, vector<256x8xbf16>,
    } else {
    }
    %c0 = arith.constant 0 : index
    %c0_1 = arith.constant 0 : index
    %3 = vector.load %arg7[%c0, %c0_1] : memref<256x72xbf16, #tpu.memory_space<vmem>>, vector<256x72xbf16>
    %c0_2 = arith.constant 0 : index
    %c0_3 = arith.constant 0 : index
    %4 = vector.load %arg3[%c0_2, %c0_3] : memref<72x128xbf16, #tpu.memory_space<vmem>>, vector<72x128xbf16>
    %cst = arith.constant dense<0.000000e+00> : vector<256x128xf32>
    %5 = tpu.matmul %3, %4, %cst {dimension_numbers = #tpu.dot_dimension_numbers<[1], [0], [0], [1], [0, 0, 1, 1], [], []>} : vector<256x72xbf16>, vector<72x128xbf16>, vector<256x128xf32> -> vector<256x128xf32>
    %c0_4 = arith.constant 0 : index
    %c0_5 = arith.constant 0 : index
    %6 = vector.load %arg4[%c0_4, %c0_5] : memref<1x128xf32, #tpu.memory_space<vmem>>, vector<1x128xf32>
    %7 = vector.broadcast %6 : vector<1x128xf32> to vector<256x128xf32>
    %8 = arith.addf %5, %7 : vector<256x128xf32>
    %cst_6 = arith.constant 0.000000e+00 : f32
    %9 = vector.broadcast %cst_6 : f32 to vector<256x128xf32>
    %10 = arith.maximumf %8, %9 : vector<256x128xf32>
    %11 = arith.truncf %10 : vector<256x128xf32> to vector<256x128xbf16>
    %c0_7 = arith.constant 0 : index
    %c0_8 = arith.constant 0 : index
    %c0_9 = arith.constant 0 : index
    %12 = vector.load %arg5[%c0_7, %c0_8, %c0_9] : memref<1x256x128xbf16, #tpu.memory_space<vmem>>, vector<1x256x128xbf16>
    %13 = vector.shape_cast %12 : vector<1x256x128xbf16> to vector<256x128xbf16>
    %14 = vector.shape_cast %11 : vector<256x128xbf16> to vector<1x256x128xbf16>
    tpu.vector_store %arg5[%c0_7, %c0_8, %c0_9], %14 {strides = array<i32>} : memref<1x256x128xbf16, #tpu.memory_space<vmem>>, vector<1x256x128xbf16>,
    return
  }
  func.func @transform_0(%arg0: i32, %arg1: i32) -> (i32, i32, i32, i32) {
    %c0_i32 = arith.constant 0 : i32
    %c0_i32_0 = arith.constant 0 : i32
    %c0_i32_1 = arith.constant 0 : i32
    %c0_i32_2 = arith.constant 0 : i32
    return %arg0, %c0_i32, %c0_i32_0, %c0_i32_1 : i32, i32, i32, i32
  }
  func.func @transform_1(%arg0: i32, %arg1: i32) -> (i32, i32) {
    %c0_i32 = arith.constant 0 : i32
    %c0_i32_0 = arith.constant 0 : i32
    return %c0_i32, %arg1 : i32, i32
  }
  func.func @transform_2(%arg0: i32, %arg1: i32) -> (i32, i32) {
    %c0_i32 = arith.constant 0 : i32
    %c0_i32_0 = arith.constant 0 : i32
    return %c0_i32, %arg1 : i32, i32
  }
  func.func @transform_3(%arg0: i32, %arg1: i32) -> (i32, i32, i32) {
    %c0_i32 = arith.constant 0 : i32
    %c0_i32_0 = arith.constant 0 : i32
    return %arg0, %c0_i32, %arg1 : i32, i32, i32
  }
}

module attributes {stable_mosaic.version = 11 : i64} {
  func.func @_conv3x3_bn_act_kernel(%arg0: i32, %arg1: i32, %arg2: memref<1x16x16x128xbf16, #tpu.memory_space<vmem>>, %arg3: memref<72x128xbf16, #tpu.memory_space<vmem>>, %arg4: memref<1x128xf32, #tpu.memory_space<vmem>>, %arg5: memref<1x256x128xbf16, #tpu.memory_space<vmem>>, %arg6: memref<1x256x128xf32, #tpu.memory_space<vmem>>, %arg7: memref<18x18x8xbf16, #tpu.memory_space<vmem>>, %arg8: memref<256x72xbf16, #tpu.memory_space<vmem>>) attributes {dimension_semantics = [#tpu.dimension_semantics<parallel>, #tpu.dimension_semantics<arbitrary>], iteration_bounds = array<i64: 2, 1>, scalar_prefetch = 0 : i64, scratch_operands = 2 : i64, tpu.core_type = #tpu.core_type<tc>, window_params = [{transform_indices = @transform_0, window_bounds = array<i64: 1, 16, 16, 128>}, {transform_indices = @transform_1, window_bounds = array<i64: 72, 128>}, {transform_indices = @transform_2, window_bounds = array<i64: 1, 128>}, {transform_indices = @transform_3, window_bounds = array<i64: 1, 256, 128>}, {transform_indices = @transform_4, window_bounds = array<i64: 1, 256, 128>}]} {
    %c0_i32 = arith.constant 0 : i32
    %0 = arith.cmpi eq, %arg1, %c0_i32 : i32
    %1 = arith.extui %0 : i1 to i32
    %c0_i32_0 = arith.constant 0 : i32
    %2 = arith.cmpi ne, %1, %c0_i32_0 : i32
    scf.if %2 {
      %cst_13 = arith.constant 0.000000e+00 : bf16
      %18 = vector.broadcast %cst_13 : bf16 to vector<18x18x8xbf16>
      %c0_14 = arith.constant 0 : index
      %c0_15 = arith.constant 0 : index
      %c0_16 = arith.constant 0 : index
      %19 = vector.load %arg7[%c0_14, %c0_15, %c0_16] : memref<18x18x8xbf16, #tpu.memory_space<vmem>>, vector<18x18x8xbf16>
      tpu.vector_store %arg7[%c0_14, %c0_15, %c0_16], %18 {strides = array<i32>} : memref<18x18x8xbf16, #tpu.memory_space<vmem>>, vector<18x18x8xbf16>,
      %c0_17 = arith.constant 0 : index
      %c0_18 = arith.constant 0 : index
      %c0_19 = arith.constant 0 : index
      %c0_20 = arith.constant 0 : index
      %20 = vector.load %arg2[%c0_17, %c0_18, %c0_19, %c0_20] : memref<1x16x16x128xbf16, #tpu.memory_space<vmem>>, vector<1x16x16x8xbf16>
      %21 = vector.shape_cast %20 : vector<1x16x16x8xbf16> to vector<16x16x8xbf16>
      %c1 = arith.constant 1 : index
      %c1_21 = arith.constant 1 : index
      %c0_22 = arith.constant 0 : index
      %22 = vector.load %arg7[%c1, %c1_21, %c0_22] : memref<18x18x8xbf16, #tpu.memory_space<vmem>>, vector<16x16x8xbf16>
      tpu.vector_store %arg7[%c1, %c1_21, %c0_22], %21 {strides = array<i32>} : memref<18x18x8xbf16, #tpu.memory_space<vmem>>, vector<16x16x8xbf16>,
      %c0_23 = arith.constant 0 : index
      %c0_24 = arith.constant 0 : index
      %c0_25 = arith.constant 0 : index
      %23 = vector.load %arg7[%c0_23, %c0_24, %c0_25] : memref<18x18x8xbf16, #tpu.memory_space<vmem>>, vector<16x16x8xbf16>
      %24 = vector.shape_cast %23 : vector<16x16x8xbf16> to vector<256x8xbf16>
      %c0_26 = arith.constant 0 : index
      %c0_27 = arith.constant 0 : index
      %25 = vector.load %arg8[%c0_26, %c0_27] : memref<256x72xbf16, #tpu.memory_space<vmem>>, vector<256x8xbf16>
      tpu.vector_store %arg8[%c0_26, %c0_27], %24 {strides = array<i32>} : memref<256x72xbf16, #tpu.memory_space<vmem>>, vector<256x8xbf16>,
      %c0_28 = arith.constant 0 : index
      %c1_29 = arith.constant 1 : index
      %c0_30 = arith.constant 0 : index
      %26 = vector.load %arg7[%c0_28, %c1_29, %c0_30] : memref<18x18x8xbf16, #tpu.memory_space<vmem>>, vector<16x16x8xbf16>
      %27 = vector.shape_cast %26 : vector<16x16x8xbf16> to vector<256x8xbf16>
      %c0_31 = arith.constant 0 : index
      %c8 = arith.constant 8 : index
      %28 = vector.load %arg8[%c0_31, %c8] : memref<256x72xbf16, #tpu.memory_space<vmem>>, vector<256x8xbf16>
      tpu.vector_store %arg8[%c0_31, %c8], %27 {strides = array<i32>} : memref<256x72xbf16, #tpu.memory_space<vmem>>, vector<256x8xbf16>,
      %c0_32 = arith.constant 0 : index
      %c2 = arith.constant 2 : index
      %c0_33 = arith.constant 0 : index
      %29 = vector.load %arg7[%c0_32, %c2, %c0_33] : memref<18x18x8xbf16, #tpu.memory_space<vmem>>, vector<16x16x8xbf16>
      %30 = vector.shape_cast %29 : vector<16x16x8xbf16> to vector<256x8xbf16>
      %c0_34 = arith.constant 0 : index
      %c16 = arith.constant 16 : index
      %31 = vector.load %arg8[%c0_34, %c16] : memref<256x72xbf16, #tpu.memory_space<vmem>>, vector<256x8xbf16>
      tpu.vector_store %arg8[%c0_34, %c16], %30 {strides = array<i32>} : memref<256x72xbf16, #tpu.memory_space<vmem>>, vector<256x8xbf16>,
      %c1_35 = arith.constant 1 : index
      %c0_36 = arith.constant 0 : index
      %c0_37 = arith.constant 0 : index
      %32 = vector.load %arg7[%c1_35, %c0_36, %c0_37] : memref<18x18x8xbf16, #tpu.memory_space<vmem>>, vector<16x16x8xbf16>
      %33 = vector.shape_cast %32 : vector<16x16x8xbf16> to vector<256x8xbf16>
      %c0_38 = arith.constant 0 : index
      %c24 = arith.constant 24 : index
      %34 = vector.load %arg8[%c0_38, %c24] : memref<256x72xbf16, #tpu.memory_space<vmem>>, vector<256x8xbf16>
      tpu.vector_store %arg8[%c0_38, %c24], %33 {strides = array<i32>} : memref<256x72xbf16, #tpu.memory_space<vmem>>, vector<256x8xbf16>,
      %c1_39 = arith.constant 1 : index
      %c1_40 = arith.constant 1 : index
      %c0_41 = arith.constant 0 : index
      %35 = vector.load %arg7[%c1_39, %c1_40, %c0_41] : memref<18x18x8xbf16, #tpu.memory_space<vmem>>, vector<16x16x8xbf16>
      %36 = vector.shape_cast %35 : vector<16x16x8xbf16> to vector<256x8xbf16>
      %c0_42 = arith.constant 0 : index
      %c32 = arith.constant 32 : index
      %37 = vector.load %arg8[%c0_42, %c32] : memref<256x72xbf16, #tpu.memory_space<vmem>>, vector<256x8xbf16>
      tpu.vector_store %arg8[%c0_42, %c32], %36 {strides = array<i32>} : memref<256x72xbf16, #tpu.memory_space<vmem>>, vector<256x8xbf16>,
      %c1_43 = arith.constant 1 : index
      %c2_44 = arith.constant 2 : index
      %c0_45 = arith.constant 0 : index
      %38 = vector.load %arg7[%c1_43, %c2_44, %c0_45] : memref<18x18x8xbf16, #tpu.memory_space<vmem>>, vector<16x16x8xbf16>
      %39 = vector.shape_cast %38 : vector<16x16x8xbf16> to vector<256x8xbf16>
      %c0_46 = arith.constant 0 : index
      %c40 = arith.constant 40 : index
      %40 = vector.load %arg8[%c0_46, %c40] : memref<256x72xbf16, #tpu.memory_space<vmem>>, vector<256x8xbf16>
      tpu.vector_store %arg8[%c0_46, %c40], %39 {strides = array<i32>} : memref<256x72xbf16, #tpu.memory_space<vmem>>, vector<256x8xbf16>,
      %c2_47 = arith.constant 2 : index
      %c0_48 = arith.constant 0 : index
      %c0_49 = arith.constant 0 : index
      %41 = vector.load %arg7[%c2_47, %c0_48, %c0_49] : memref<18x18x8xbf16, #tpu.memory_space<vmem>>, vector<16x16x8xbf16>
      %42 = vector.shape_cast %41 : vector<16x16x8xbf16> to vector<256x8xbf16>
      %c0_50 = arith.constant 0 : index
      %c48 = arith.constant 48 : index
      %43 = vector.load %arg8[%c0_50, %c48] : memref<256x72xbf16, #tpu.memory_space<vmem>>, vector<256x8xbf16>
      tpu.vector_store %arg8[%c0_50, %c48], %42 {strides = array<i32>} : memref<256x72xbf16, #tpu.memory_space<vmem>>, vector<256x8xbf16>,
      %c2_51 = arith.constant 2 : index
      %c1_52 = arith.constant 1 : index
      %c0_53 = arith.constant 0 : index
      %44 = vector.load %arg7[%c2_51, %c1_52, %c0_53] : memref<18x18x8xbf16, #tpu.memory_space<vmem>>, vector<16x16x8xbf16>
      %45 = vector.shape_cast %44 : vector<16x16x8xbf16> to vector<256x8xbf16>
      %c0_54 = arith.constant 0 : index
      %c56 = arith.constant 56 : index
      %46 = vector.load %arg8[%c0_54, %c56] : memref<256x72xbf16, #tpu.memory_space<vmem>>, vector<256x8xbf16>
      tpu.vector_store %arg8[%c0_54, %c56], %45 {strides = array<i32>} : memref<256x72xbf16, #tpu.memory_space<vmem>>, vector<256x8xbf16>,
      %c2_55 = arith.constant 2 : index
      %c2_56 = arith.constant 2 : index
      %c0_57 = arith.constant 0 : index
      %47 = vector.load %arg7[%c2_55, %c2_56, %c0_57] : memref<18x18x8xbf16, #tpu.memory_space<vmem>>, vector<16x16x8xbf16>
      %48 = vector.shape_cast %47 : vector<16x16x8xbf16> to vector<256x8xbf16>
      %c0_58 = arith.constant 0 : index
      %c64 = arith.constant 64 : index
      %49 = vector.load %arg8[%c0_58, %c64] : memref<256x72xbf16, #tpu.memory_space<vmem>>, vector<256x8xbf16>
      tpu.vector_store %arg8[%c0_58, %c64], %48 {strides = array<i32>} : memref<256x72xbf16, #tpu.memory_space<vmem>>, vector<256x8xbf16>,
    } else {
    }
    %c0 = arith.constant 0 : index
    %c0_1 = arith.constant 0 : index
    %3 = vector.load %arg8[%c0, %c0_1] : memref<256x72xbf16, #tpu.memory_space<vmem>>, vector<256x72xbf16>
    %c0_2 = arith.constant 0 : index
    %c0_3 = arith.constant 0 : index
    %4 = vector.load %arg3[%c0_2, %c0_3] : memref<72x128xbf16, #tpu.memory_space<vmem>>, vector<72x128xbf16>
    %cst = arith.constant dense<0.000000e+00> : vector<256x128xf32>
    %5 = tpu.matmul %3, %4, %cst {dimension_numbers = #tpu.dot_dimension_numbers<[1], [0], [0], [1], [0, 0, 1, 1], [], []>} : vector<256x72xbf16>, vector<72x128xbf16>, vector<256x128xf32> -> vector<256x128xf32>
    %c0_4 = arith.constant 0 : index
    %c0_5 = arith.constant 0 : index
    %6 = vector.load %arg4[%c0_4, %c0_5] : memref<1x128xf32, #tpu.memory_space<vmem>>, vector<1x128xf32>
    %7 = vector.broadcast %6 : vector<1x128xf32> to vector<256x128xf32>
    %8 = arith.addf %5, %7 : vector<256x128xf32>
    %c0_6 = arith.constant 0 : index
    %c0_7 = arith.constant 0 : index
    %c0_8 = arith.constant 0 : index
    %9 = vector.load %arg5[%c0_6, %c0_7, %c0_8] : memref<1x256x128xbf16, #tpu.memory_space<vmem>>, vector<1x256x128xbf16>
    %10 = vector.shape_cast %9 : vector<1x256x128xbf16> to vector<256x128xbf16>
    %11 = arith.extf %10 : vector<256x128xbf16> to vector<256x128xf32>
    %12 = arith.addf %8, %11 : vector<256x128xf32>
    %cst_9 = arith.constant 0.000000e+00 : f32
    %13 = vector.broadcast %cst_9 : f32 to vector<256x128xf32>
    %14 = arith.maximumf %12, %13 : vector<256x128xf32>
    %c0_10 = arith.constant 0 : index
    %c0_11 = arith.constant 0 : index
    %c0_12 = arith.constant 0 : index
    %15 = vector.load %arg6[%c0_10, %c0_11, %c0_12] : memref<1x256x128xf32, #tpu.memory_space<vmem>>, vector<1x256x128xf32>
    %16 = vector.shape_cast %15 : vector<1x256x128xf32> to vector<256x128xf32>
    %17 = vector.shape_cast %14 : vector<256x128xf32> to vector<1x256x128xf32>
    tpu.vector_store %arg6[%c0_10, %c0_11, %c0_12], %17 {strides = array<i32>} : memref<1x256x128xf32, #tpu.memory_space<vmem>>, vector<1x256x128xf32>,
    return
  }
  func.func @transform_0(%arg0: i32, %arg1: i32) -> (i32, i32, i32, i32) {
    %c0_i32 = arith.constant 0 : i32
    %c0_i32_0 = arith.constant 0 : i32
    %c0_i32_1 = arith.constant 0 : i32
    %c0_i32_2 = arith.constant 0 : i32
    return %arg0, %c0_i32, %c0_i32_0, %c0_i32_1 : i32, i32, i32, i32
  }
  func.func @transform_1(%arg0: i32, %arg1: i32) -> (i32, i32) {
    %c0_i32 = arith.constant 0 : i32
    %c0_i32_0 = arith.constant 0 : i32
    return %c0_i32, %arg1 : i32, i32
  }
  func.func @transform_2(%arg0: i32, %arg1: i32) -> (i32, i32) {
    %c0_i32 = arith.constant 0 : i32
    %c0_i32_0 = arith.constant 0 : i32
    return %c0_i32, %arg1 : i32, i32
  }
  func.func @transform_3(%arg0: i32, %arg1: i32) -> (i32, i32, i32) {
    %c0_i32 = arith.constant 0 : i32
    %c0_i32_0 = arith.constant 0 : i32
    return %arg0, %c0_i32, %arg1 : i32, i32, i32
  }
  func.func @transform_4(%arg0: i32, %arg1: i32) -> (i32, i32, i32) {
    %c0_i32 = arith.constant 0 : i32
    %c0_i32_0 = arith.constant 0 : i32
    return %arg0, %c0_i32, %arg1 : i32, i32, i32
  }
}

</mosaic_0001>

<bundles_post_ra>
// kernel: basic_block_forward.2
= control target key start
LH: loop header
LB: loop body
LE: loop exit
PB: predicated region body
PF: predicated region fallthrough
CT: control target
= control target key end

     0   :  { %s4778_s12 = smov 0   ;;  %s4780_s13 = smov 0   ;;  %s6815_s0 = inlined_call_operand.vmem [shape: bf16[2,16,16,128], index: 0, kind: input, shape index: {}]   ;;  %s6816_s1 = inlined_call_operand.vmem [shape: bf16[72,128], index: 1, kind: input, shape index: {}]   ;;  %s6817_s2 = inlined_call_operand.vmem [shape: f32[1,128], index: 2, kind: input, shape index: {}]   ;;  %s6818_s3 = inlined_call_operand.vmem [shape: bf16[2,256,128], index: 3, kind: output, shape index: {}]  }
   0x1   :  { %s4782_s14 = smov 0  }
   0x2 LB: > { %s25_s15 = sadd.s32 1, %s4743_s13  ;;  %p4408_p0 = scmp.ge.s32.totalorder %s4747_s14, 1  ;;  %s4747_s14 = sphi %s4782_s14, %s13_s14   ;;  %s4743_s13 = sphi %s4780_s13, %s6830_s13   ;;  %s4739_s12 = sphi %s4778_s12, %s6829_s12  }
   0x3   : > { %p27_p1 = scmp.ge.s32.totalorder %s25_s15, 2  ;;  %p168_p2 = scmp.lt.s32.totalorder %s4747_s14, 3 }
   0x5   : > { %s6832_s15 = smov (%p27_p1, %s25_s15), 0  ;;  %p169_p3 = pnand %p4408_p0, %p168_p2 }
   0x6   : > { %p202_p4 = scmp.lt.s32.totalorder (!%p169_p3), %s4739_s12, 1  ;;  %s4750_s16 = smov (!%p169_p3), 8  }
   0x7   : > { %172 = sbr.rel (%p169_p3) target bundleno = 1027 (0x403), region = 32  ;;  %s4751_s21 = smov (!%p169_p3), 16  }
   0x8   : > { %s4752_s22 = smov (!%p169_p3), 24   ;;  %s4753_s23 = smov (!%p169_p3), 32  }
   0x9   : > { %s4754_s24 = smov (!%p169_p3), 40   ;;  %s4755_s25 = smov (!%p169_p3), 48  }
   0xa   : > { %s4756_s26 = smov (!%p169_p3), 56   ;;  %s4757_s27 = smov (!%p169_p3), 64  }
   0xc   : > { %vm227_vm0 = vcmask 60416   ;;  %v4749_v0 = vmov 0   ;;  %vm868_vm1 = vsmask.f32 3328  ;;  %vm869_vm2 = vsmask.f32 7440 }
   0xd   : > { %228 = vst.msk [vmem:[#allocation2] sm:$0xf] %vm227_vm0, %v4749_v0  ;;  %vm4826_vm3 = vmor %vm868_vm1, %vm869_vm2  ;;  %s6834_s12 = smov (!%p202_p4, %s4739_s12), 1  ;;  %vm230_vm4 = vcmask 57344   ;;  %vm640_vm5 = vsmask.f32 7938 }
   0xe   : > { %229 = vst.msk [vmem:[#allocation2 + $0x4] sm:$0xf] %vm227_vm0, %v4749_v0  ;;  %s4559_s17 = sshll.u32 %s6834_s12, 7  ;;  %vm315_vm6 = vsmask.f32 256  ;;  %vm4972_vm8 = vmand %vm227_vm0, %vm640_vm5  ;;  %vm1480_vm11 = vcmask 1042432  }
   0xf   : > { %232 = vst.msk [vmem:[#allocation2 + $0xc] sm:$0xf] %vm227_vm0, %v4749_v0  ;;  %s4870_s20 = scalar_lea.vmem %s6815_s0, %s4559_s17  ;;  %vm316_vm7 = vsmask.f32 4368  ;;  %vm5046_vm10 = vmand %vm230_vm4, %vm315_vm6  ;;  %vm1481_vm12 = vcmask 1046532   ;;  %vm1351_vm14 = vcmask 126016  }
  0x10   : > { %233 = vst.msk [vmem:[#allocation2 + $0x10] sm:$0xf] %vm227_vm0, %v4749_v0  ;;  %v283_v14 = vld [vmem:[%s4870_s20] sm:$0xf]  ;;  %v284_v15 = vld [vmem:[%s4870_s20 + $0x4] sm:$0xf]  ;;  %vm4986_vm9 = vmor %vm315_vm6, %vm316_vm7 }
  0x11   : > { %235 = vst.msk [vmem:[#allocation2 + $0x18] sm:$0xf] %vm227_vm0, %v4749_v0  ;;  %v287_v16 = vld [vmem:[%s4870_s20 + $0x10] sm:$0xf]  ;;  %v4886_v17 = vld [vmem:[%s4870_s20 + $0x14] sm:$0xf]  ;;  %vm5489_vm13 = vmor %vm1480_vm11, %vm1481_vm12 }
  0x12   : > { %236 = vst.msk [vmem:[#allocation2 + $0x1c] sm:$0xf] %vm227_vm0, %v4749_v0  ;;  %v319_v18 = vshrl.u32 %v283_v14, 16  ;;  %v4891_v19 = vld [vmem:[%s4870_s20 + $0x18] sm:$0xf]  ;;  %v327_v21 = vshrl.u32 %v284_v15, 16 }
  0x13   : > { %238 = vst.msk [vmem:[#allocation2 + $0x24] sm:$0xf] %vm227_vm0, %v4749_v0  ;;  %v290_v22 = vld [vmem:[%s4870_s20 + $0x1c] sm:$0xf]  ;;  %v353_v23 = vshrl.u32 %v287_v16, 16  ;;  %v361_v24 = vshrl.u32 %v4886_v17, 16 }
  0x14   : > { %v820_v1 = vld [vmem:[#allocation2] sm:$0xf]  ;;  %239 = vst.msk [vmem:[#allocation2 + $0x28] sm:$0xf] %vm227_vm0, %v4749_v0  ;;  %v370_v25 = vshrl.u32 %v4891_v19, 16  ;;  %v322_v26 = vshll.u32 %v283_v14, 16 }
  0x15   : > { %v821_v2 = vld [vmem:[#allocation2 + $0x4] sm:$0xf]  ;;  %v872_v3 = vshrl.u32 %v820_v1, 16  ;;  %v875_v4 = vshll.u32 %v820_v1, 16  ;;  %241 = vst.msk [vmem:[#allocation2 + $0x30] sm:$0xf] %vm227_vm0, %v4749_v0 }
  0x16   : > { %v881_v5 = vshll.u32 %v821_v2, 16  ;;  %242 = vst.msk [vmem:[#allocation2 + $0x34] sm:$0xf] %vm227_vm0, %v4749_v0  ;;  %v885_v13 = vshrl.u32 %v821_v2, 16  ;;  %v378_v27 = vshrl.u32 %v290_v22, 16  ;;  %v4910_v30 = vrot.slane %v319_v18, 7 }
  0x17   : > { %v874_v6 = vrot.slane %v872_v3, 4  ;;  %v877_v7 = vrot.slane %v875_v4, 5  ;;  %244 = vst.msk [vmem:[#allocation2 + $0x3c] sm:$0xf] %vm227_vm0, %v4749_v0  ;;  %v4905_v28 = vld [vmem:[%s4870_s20 + $0x28] sm:$0xf] }
  0x18   : > { %245 = vst.msk [vmem:[#allocation2 + $0x40] sm:$0xf] %vm227_vm0, %v4749_v0  ;;  %v4822_v9 = vrot.slane %v881_v5, 5  ;;  %v887_v20 = vrot.slane %v885_v13, 4  ;;  %v4912_v31 = vrot.slane %v327_v21, 7  ;;  %v330_v32 = vshll.u32 %v284_v15, 16 }
  0x19   : > { %v878_v8 = vor.u32 %v877_v7, %v874_v6  ;;  %247 = vst.msk [vmem:[#allocation2 + $0x48] sm:$0xf] %vm227_vm0, %v4749_v0  ;;  %v4916_v33 = vrot.slane %v353_v23, 7  ;;  %v356_v34 = vshll.u32 %v287_v16, 16  ;;  %v4918_v35 = vrot.slane %v361_v24, 7 }
  0x1a   : > { %248 = vst.msk [vmem:[#allocation2 + $0x4c] sm:$0xf] %vm227_vm0, %v4749_v0  ;;  %v888_v29 = vor.u32 %v887_v20, %v4822_v9  ;;  %v364_v36 = vshll.u32 %v4886_v17, 16  ;;  %v4923_v37 = vrot.slane %v370_v25, 7  ;;  %v404_v38 = vshrl.u32 %v4905_v28, 16 }
  0x1b   : > { %v879_v11 = vrot.slane %v878_v8, 4  ;;  %250 = vst.msk [vmem:[#allocation2 + $0x54] sm:$0xf] %vm227_vm0, %v4749_v0  ;;  %v4927_v39 = vld [vmem:[%s4870_s20 + $0x8] sm:$0xf]  ;;  %v4931_v40 = vrot.slane %v378_v27, 7  ;;  %v4947_v46 = vor.u32 %v322_v26, %v4910_v30  ;;  %v332_v54 = vor.u32 %v330_v32, %v4912_v31 }
  0x1c   : > { %251 = vst.msk [vmem:[#allocation2 + $0x58] sm:$0xf] %vm227_vm0, %v4749_v0  ;;  %v381_v41 = vshll.u32 %v290_v22, 16  ;;  %v4934_v42 = vld [vmem:[%s4870_s20 + $0x2c] sm:$0xf]  ;;  %v889_v45 = vrot.slane %v888_v29, 4  ;;  %v4964_v56 = vor.u32 %v356_v34, %v4916_v33  ;;  %v366_v61 = vor.u32 %v364_v36, %v4918_v35 }
  0x1d   : > { %v884_v12 = vsel %vm4826_vm3, %v879_v11, %v4822_v9  ;;  %253 = vst.msk [vmem:[#allocation2 + $0x60] sm:$0xf] %vm227_vm0, %v4749_v0  ;;  %v4939_v43 = vld [vmem:[%s4870_s20 + $0xc] sm:$0xf]  ;;  %v4942_v44 = vld [vmem:[%s4870_s20 + $0x20] sm:$0xf] }
  0x1e   : > { %1255 = vrot.lane.b32.xlu0 %v884_v12, %s4750_s16  ;;  %254 = vst.msk [vmem:[#allocation2 + $0x64] sm:$0xf] %vm227_vm0, %v4749_v0  ;;  %v325_v47 = vrot.slane %v4910_v30, 4  ;;  %v336_v48 = vshrl.u32 %v4927_v39, 16  ;;  %v359_v49 = vrot.slane %v4916_v33, 4  ;;  %v376_v50 = vrot.slane %v4923_v37, 4 }
  0x1f   : > { %256 = vst.msk [vmem:[#allocation2 + $0x6c] sm:$0xf] %vm227_vm0, %v4749_v0  ;;  %v4955_v51 = vrot.slane %v404_v38, 7  ;;  %v412_v52 = vshrl.u32 %v4934_v42, 16  ;;  %v4961_v55 = vld [vmem:[#allocation2 + $0xc] sm:$0xf]  ;;  %v383_v62 = vor.u32 %v381_v41, %v4931_v40 }
  0x20   : > { %257 = vst.msk [vmem:[#allocation2 + $0x70] sm:$0xf] %vm227_vm0, %v4749_v0  ;;  %v344_v57 = vshrl.u32 %v4939_v43, 16  ;;  %v387_v58 = vshrl.u32 %v4942_v44, 16  ;;  %v407_v63 = vshll.u32 %v4905_v28, 16  ;;  %v334_v4 = vrot.slane %v4912_v31, 4 }
  0x21   : > { %259 = vst.msk [vmem:[#allocation2 + $0x78] sm:$0xf] %vm227_vm0, %v4749_v0  ;;  %v4980_v1 = vld [vmem:[%s4870_s20 + $0x24] sm:$0xf]  ;;  %v385_v5 = vrot.slane %v4931_v40, 4  ;;  %v4994_v6 = vrot.slane %v336_v48, 7  ;;  %v333_v20 = vsel %vm4986_vm9, %v325_v47, %v332_v54  ;;  %v643_v21 = vsel %vm4972_vm8, %v4947_v46, %v4961_v55 }
  0x22   : > { %260 = vst.msk [vmem:[#allocation2 + $0x7c] sm:$0xf] %vm227_vm0, %v4749_v0  ;;  %v4990_v3 = vld [vmem:[#allocation2 + $0x24] sm:$0xf]  ;;  %v339_v7 = vshll.u32 %v4927_v39, 16  ;;  %v368_v9 = vrot.slane %v4918_v35, 4  ;;  %v5024_v22 = vor.u32 %v407_v63, %v4955_v51  ;;  %v367_v29 = vsel %vm4986_vm9, %v359_v49, %v366_v61 }
  0x23   : > { %262 = vst.msk [vmem:[#allocation2 + $0x84] sm:$0xf] %vm227_vm0, %v4749_v0  ;;  %v5000_v11 = vrot.slane %v412_v52, 7  ;;  %v415_v12 = vshll.u32 %v4934_v42, 16  ;;  %v5005_v13 = vld [vmem:[#allocation2 + $0x48] sm:$0xf]  ;;  %v659_v30 = vsel %vm4972_vm8, %v4964_v56, %v4990_v3  ;;  %v384_v33 = vsel %vm4986_vm9, %v376_v50, %v383_v62 }
  0x24   : > { %263 = vst.msk [vmem:[#allocation2 + $0x88] sm:$0xf] %vm227_vm0, %v4749_v0  ;;  %v5007_v14 = vrot.slane %v344_v57, 7  ;;  %v347_v15 = vshll.u32 %v4939_v43, 16  ;;  %v5010_v16 = vrot.slane %v387_v58, 7  ;;  %v395_v17 = vshrl.u32 %v4980_v1, 16 }
  0x25   : > { %265 = vst.msk [vmem:[#allocation2 + $0x90] sm:$0xf] %vm227_vm0, %v4749_v0  ;;  %v5027_v23 = vld [vmem:[%s4870_s20 + $0x30] sm:$0xf]  ;;  %v296_v24 = vld [vmem:[%s4870_s20 + $0x34] sm:$0xf]  ;;  %v5053_v34 = vor.u32 %v339_v7, %v4994_v6  ;;  %v680_v46 = vsel %vm4972_vm8, %v5024_v22, %v5005_v13 }
  0x26   : > { %266 = vst.msk [vmem:[#allocation2 + $0x94] sm:$0xf] %vm227_vm0, %v4749_v0  ;;  %v410_v25 = vrot.slane %v4955_v51, 4  ;;  %v342_v26 = vrot.slane %v4994_v6, 4  ;;  %v421_v27 = vshrl.u32 %v5027_v23, 16  ;;  %v429_v28 = vshrl.u32 %v296_v24, 16 }
  0x27   : > { %268 = vst.msk [vmem:[#allocation2 + $0x9c] sm:$0xf] %vm227_vm0, %v4749_v0  ;;  %v299_v36 = vld [vmem:[%s4870_s20 + $0x40] sm:$0xf]  ;;  %v390_v38 = vshll.u32 %v4942_v44, 16  ;;  %v5059_v39 = vrot.slane %v395_v17, 7  ;;  %v349_v51 = vor.u32 %v347_v15, %v5007_v14 }
  0x28   : > { %269 = vst.msk [vmem:[#allocation2 + $0xa0] sm:$0xf] %vm227_vm0, %v4749_v0  ;;  %v398_v41 = vshll.u32 %v4980_v1, 16  ;;  %v5062_v42 = vrot.slane %v421_v27, 7  ;;  %v5071_v47 = vld [vmem:[#allocation2 + $0x18] sm:$0xf] }
  0x29   : > { %271 = vst.msk [vmem:[#allocation2 + $0xa8] sm:$0xf] %vm227_vm0, %v4749_v0  ;;  %v393_v44 = vrot.slane %v5010_v16, 4  ;;  %v455_v48 = vshrl.u32 %v299_v36, 16  ;;  %v431_v52 = vrot.slane %v429_v28, 7  ;;  %v458_v56 = vshll.u32 %v299_v36, 16 }
  0x2a   : > { %272 = vst.msk [vmem:[#allocation2 + $0xac] sm:$0xf] %vm227_vm0, %v4749_v0  ;;  %v300_v54 = vld [vmem:[%s4870_s20 + $0x44] sm:$0xf]  ;;  %v373_v58 = vshll.u32 %v4891_v19, 16  ;;  %v427_v62 = vrot.slane %v5062_v42, 4  ;;  %v652_v13 = vsel %vm4972_vm8, %v5053_v34, %v5071_v47 }
  0x2b   : > { %274 = vst.msk [vmem:[#allocation2 + $0xb4] sm:$0xf] %vm227_vm0, %v4749_v0  ;;  %v457_v55 = vrot.slane %v455_v48, 7  ;;  %v463_v57 = vshrl.u32 %v300_v54, 16  ;;  %v5086_v61 = vld [vmem:[#allocation2 + $0x3c] sm:$0xf] }
  0x2c   : > { %275 = vst.msk [vmem:[#allocation2 + $0xb8] sm:$0xf] %vm227_vm0, %v4749_v0  ;;  %v351_v63 = vrot.slane %v5007_v14, 4  ;;  %v436_v3 = vrot.slane %v431_v52, 4  ;;  %v419_v19 = vrot.slane %v5000_v11, 4  ;;  %v466_v7 = vshll.u32 %v300_v54, 16 }
  0x2d   : > { %277 = vst.msk [vmem:[#allocation2 + $0xc0] sm:$0xf] %vm227_vm0, %v4749_v0  ;;  %v5091_v6 = vrot.slane %v463_v57, 7  ;;  %v5104_v14 = vld [vmem:[#allocation2 + $0x6c] sm:$0xf]  ;;  %v5115_v17 = vor.u32 %v458_v56, %v457_v55  ;;  %vm1691_vm15 = vcmask 191616  }
  0x2e   : > { %278 = vst.msk [vmem:[#allocation2 + $0xc4] sm:$0xf] %vm227_vm0, %v4749_v0  ;;  %v297_v15 = vld [vmem:[%s4870_s20 + $0x38] sm:$0xf]  ;;  %vm2445_vm1 = vcmask 322816   ;;  %vm2782_vm2 = vcmask 388416  }
  0x2f   : > { %280 = vst.msk [vmem:[#allocation2 + $0xcc] sm:$0xf] %vm227_vm0, %v4749_v0  ;;  %v468_v35 = vor.u32 %v466_v7, %v5091_v6  ;;  %v438_v22 = vshrl.u32 %v297_v15, 16  ;;  %v441_v27 = vshll.u32 %v297_v15, 16  ;;  %vm4108_vm5 = vcmask 1043456  }
  0x30   : > { %281 = vst.msk [vmem:[#allocation2 + $0xd0] sm:$0xf] %vm227_vm0, %v4749_v0  ;;  %vm3537_vm6 = vcmask 519616   ;;  %vm3874_vm7 = vcmask 585216  }
  0x31   : > { %231 = vst.msk [vmem:[#allocation2 + $0x8] sm:$0x1] %vm230_vm4, %v4749_v0 }
  0x32   : > { %234 = vst.msk [vmem:[#allocation2 + $0x14] sm:$0x1] %vm230_vm4, %v4749_v0 }
  0x33   : > { %237 = vst.msk [vmem:[#allocation2 + $0x20] sm:$0x1] %vm230_vm4, %v4749_v0 }
  0x34   : > { %240 = vst.msk [vmem:[#allocation2 + $0x2c] sm:$0x1] %vm230_vm4, %v4749_v0 }
  0x35   : > { %243 = vst.msk [vmem:[#allocation2 + $0x38] sm:$0x1] %vm230_vm4, %v4749_v0 }
  0x36   : > { %246 = vst.msk [vmem:[#allocation2 + $0x44] sm:$0x1] %vm230_vm4, %v4749_v0 }
  0x37   : > { %249 = vst.msk [vmem:[#allocation2 + $0x50] sm:$0x1] %vm230_vm4, %v4749_v0 }
  0x38   : > { %v822_v53 = vld [vmem:[#allocation2 + $0x8] sm:$0x1]  ;;  %252 = vst.msk [vmem:[#allocation2 + $0x5c] sm:$0x1] %vm230_vm4, %v4749_v0 }
  0x39   : > { %v891_v59 = vshll.u32 %v822_v53, 16  ;;  %255 = vst.msk [vmem:[#allocation2 + $0x68] sm:$0x1] %vm230_vm4, %v4749_v0  ;;  %v648_v32 = vld [vmem:[#allocation2 + $0x14] sm:$0x1]  ;;  %v432_v53 = vshll.u32 %v296_v24, 16 }
  0x3a   : > { %258 = vst.msk [vmem:[#allocation2 + $0x74] sm:$0x1] %vm230_vm4, %v4749_v0  ;;  %v649_v49 = vsel %vm5046_vm10, %v334_v4, %v648_v32  ;;  %v655_v1 = vld [vmem:[#allocation2 + $0x20] sm:$0x1]  ;;  %v5148_v32 = vrot.slane %v438_v22, 7 }
  0x3b   : > { %v893_v8 = vrot.slane %v891_v59, 5  ;;  %261 = vst.msk [vmem:[#allocation2 + $0x80] sm:$0x1] %vm230_vm4, %v4749_v0  ;;  %v662_v50 = vld [vmem:[#allocation2 + $0x2c] sm:$0x1]  ;;  %v5083_v59 = vor.u32 %v390_v38, %v5010_v16 }
  0x3c   : > { %264 = vst.msk [vmem:[#allocation2 + $0x8c] sm:$0x1] %vm230_vm4, %v4749_v0  ;;  %v669_v43 = vld [vmem:[#allocation2 + $0x38] sm:$0x1]  ;;  %v663_v40 = vsel %vm5046_vm10, %v368_v9, %v662_v50  ;;  %v5170_v15 = vor.u32 %v441_v27, %v5148_v32 }
  0x3d   : > { %v894_v18 = vsel %vm4826_vm3, %v889_v45, %v893_v8  ;;  %267 = vst.msk [vmem:[#allocation2 + $0x98] sm:$0x1] %vm230_vm4, %v4749_v0  ;;  %v417_v45 = vor.u32 %v415_v12, %v5000_v11  ;;  %v670_v8 = vsel %vm5046_vm10, %v385_v5, %v669_v43  ;;  %v434_v11 = vor.u32 %v432_v53, %v431_v52 }
  0x3e   : > { %1257 = vrot.lane.b32.xlu0 %v894_v18, %s4750_s16  ;;  %270 = vst.msk [vmem:[#allocation2 + $0xa4] sm:$0x1] %vm230_vm4, %v4749_v0  ;;  %v5113_v5 = vsel %vm4986_vm9, %v342_v26, %v349_v51  ;;  %v683_v16 = vld [vmem:[#allocation2 + $0x50] sm:$0x1]  ;;  %v5118_v18 = vor.u32 %v373_v58, %v4923_v37  ;;  %v673_v37 = vsel %vm4972_vm8, %v5083_v59, %v5086_v61 }
  0x3f   : > { %273 = vst.msk [vmem:[#allocation2 + $0xb0] sm:$0x1] %vm230_vm4, %v4749_v0  ;;  %v690_v4 = vld [vmem:[#allocation2 + $0x5c] sm:$0x1]  ;;  %v418_v12 = vsel %vm4986_vm9, %v410_v25, %v417_v45  ;;  %v5136_v25 = vsel %vm5046_vm10, %v351_v63, %v655_v1  ;;  %v5138_v26 = vld [vmem:[#allocation2 + $0x30] sm:$0xf]  ;;  %v5154_v43 = vsel %vm5046_vm10, %v419_v19, %v683_v16  ;;  %v701_v45 = vsel %vm4972_vm8, %v5115_v17, %v5104_v14 }
  0x40   : > { %276 = vst.msk [vmem:[#allocation2 + $0xbc] sm:$0x1] %vm230_vm4, %v4749_v0 }
  0x41   : > { %279 = vst.msk [vmem:[#allocation2 + $0xc8] sm:$0x1] %vm230_vm4, %v4749_v0 }
  0x42   : > { %282 = vst.msk [vmem:[#allocation2 + $0xd4] sm:$0x1] %vm230_vm4, %v4749_v0  ;;  %v400_v0 = vor.u32 %v398_v41, %v5059_v39  ;;  %vm2976_vm4 = vcmask 454016  }
  0x43   : > { %644 = vst [vmem:[#allocation2 + $0xc] sm:$0xf] %v643_v21  ;;  %v461_v21 = vrot.slane %v457_v55, 4 }
  0x44   : > { %645 = vst.msk [vmem:[#allocation2 + $0x10] sm:$0xf] %vm227_vm0, %v333_v20  ;;  %v5121_v20 = vld [vmem:[%s4870_s20 + $0x3c] sm:$0xf]  ;;  %v5128_v24 = vsel %vm4986_vm9, %v393_v44, %v400_v0 }
  0x45   : > { %660 = vst [vmem:[#allocation2 + $0x24] sm:$0xf] %v659_v30  ;;  %v446_v9 = vshrl.u32 %v5121_v20, 16  ;;  %v5146_v30 = vsel %vm5046_vm10, %v436_v3, %v690_v4  ;;  %v5163_v50 = vsel %vm4986_vm9, %v461_v21, %v468_v35 }
  0x46   : > { %661 = vst.msk [vmem:[#allocation2 + $0x28] sm:$0xf] %vm227_vm0, %v367_v29  ;;  %v5142_v29 = vsel %vm4986_vm9, %v427_v62, %v434_v11 }
  0x47   : > { %650 = vst [vmem:[#allocation2 + $0x14] sm:$0x1] %v649_v49 }
  0x48   : > { %668 = vst.msk [vmem:[#allocation2 + $0x34] sm:$0xf] %vm227_vm0, %v384_v33  ;;  %v5150_v33 = vrot.slane %v446_v9, 7 }
  0x49   : > { %671 = vst [vmem:[#allocation2 + $0x38] sm:$0x1] %v670_v8 }
  0x4a   : > { %v823_v28 = vld [vmem:[#allocation2 + $0xc] sm:$0xf]  ;;  %664 = vst [vmem:[#allocation2 + $0x2c] sm:$0x1] %v663_v40 }
  0x4b   : > { %v824_v36 = vld [vmem:[#allocation2 + $0x10] sm:$0xf]  ;;  %v896_v38 = vshrl.u32 %v823_v28, 16  ;;  %v899_v41 = vshll.u32 %v823_v28, 16  ;;  %681 = vst [vmem:[#allocation2 + $0x48] sm:$0xf] %v680_v46  ;;  %v666_v46 = vsel %vm4972_vm8, %v5118_v18, %v5138_v26 }
  0x4c   : > { %v905_v44 = vshll.u32 %v824_v36, 16  ;;  %v909_v48 = vshrl.u32 %v824_v36, 16  ;;  %v829_v49 = vld [vmem:[#allocation2 + $0x24] sm:$0xf]  ;;  %682 = vst.msk [vmem:[#allocation2 + $0x4c] sm:$0xf] %vm227_vm0, %v418_v12 }
  0x4d   : > { %v898_v51 = vrot.slane %v896_v38, 4  ;;  %v901_v52 = vrot.slane %v899_v41, 5  ;;  %v830_v53 = vld [vmem:[#allocation2 + $0x28] sm:$0xf]  ;;  %v944_v54 = vshrl.u32 %v829_v49, 16  ;;  %v947_v55 = vshll.u32 %v829_v49, 16 }
  0x4e   : > { %v907_v56 = vrot.slane %v905_v44, 5  ;;  %v911_v57 = vrot.slane %v909_v48, 4  ;;  %v953_v58 = vshll.u32 %v830_v53, 16  ;;  %v957_v0 = vshrl.u32 %v830_v53, 16  ;;  %v825_v62 = vld [vmem:[#allocation2 + $0x14] sm:$0x1] }
  0x4f   : > { %v902_v63 = vor.u32 %v901_v52, %v898_v51  ;;  %v946_v1 = vrot.slane %v944_v54, 4  ;;  %v949_v3 = vrot.slane %v947_v55, 5  ;;  %v915_v4 = vshll.u32 %v825_v62, 16  ;;  %v833_v19 = vld [vmem:[#allocation2 + $0x34] sm:$0xf] }
  0x50   : > { %v912_v7 = vor.u32 %v911_v57, %v907_v56  ;;  %v834_v8 = vld [vmem:[#allocation2 + $0x38] sm:$0x1]  ;;  %v977_v12 = vshll.u32 %v833_v19, 16  ;;  %v981_v11 = vshrl.u32 %v833_v19, 16  ;;  %v955_v21 = vrot.slane %v953_v58, 5 }
  0x51   : > { %v903_v40 = vrot.slane %v902_v63, 4  ;;  %v950_v16 = vor.u32 %v949_v3, %v946_v1  ;;  %v987_v35 = vshll.u32 %v834_v8, 16  ;;  %v831_v22 = vld [vmem:[#allocation2 + $0x2c] sm:$0x1]  ;;  %v917_v9 = vrot.slane %v915_v4, 5 }
  0x52   : > { %v5172_v28 = vrot.slane %v977_v12, 5  ;;  %v983_v36 = vrot.slane %v981_v11, 4  ;;  %v959_v38 = vrot.slane %v957_v0, 4  ;;  %v838_v41 = vld [vmem:[#allocation2 + $0x48] sm:$0xf]  ;;  %v913_v49 = vrot.slane %v912_v7, 4 }
  0x53   : > { %v908_v44 = vsel %vm4826_vm3, %v903_v40, %v907_v56  ;;  %v951_v48 = vrot.slane %v950_v16, 4  ;;  %v963_v27 = vshll.u32 %v831_v22, 16  ;;  %v839_v51 = vld [vmem:[#allocation2 + $0x4c] sm:$0xf]  ;;  %v989_v53 = vrot.slane %v987_v35, 5 }
  0x54   : > { %1259 = vrot.lane.b32.xlu1 %v908_v44, %s4750_s16  ;;  %v984_v52 = vor.u32 %v983_v36, %v5172_v28  ;;  %v960_v54 = vor.u32 %v959_v38, %v955_v21  ;;  %v1016_v55 = vshrl.u32 %v838_v41, 16  ;;  %653 = vst [vmem:[#allocation2 + $0x18] sm:$0xf] %v652_v13  ;;  %v5184_v57 = vld [vmem:[%s4870_s20 + $0x48] sm:$0xf]  ;;  %v1019_v62 = vshll.u32 %v838_v41, 16 }
  0x55   : > { %v5187_v56 = vld [vmem:[%s4870_s20 + $0x4c] sm:$0xf]  ;;  %v956_v58 = vsel %vm4826_vm3, %v951_v48, %v955_v21  ;;  %v5191_v0 = vrot.slane %v963_v27, 5  ;;  %v1025_v63 = vshll.u32 %v839_v51, 16  ;;  %654 = vst.msk [vmem:[#allocation2 + $0x1c] sm:$0xf] %vm227_vm0, %v5113_v5  ;;  %v918_v13 = vsel %vm4826_vm3, %v913_v49, %v917_v9 }
  0x56   : > { %1267 = vrot.lane.b32.xlu0 %v956_v58, %s4750_s16  ;;  %v985_v1 = vrot.slane %v984_v52, 4  ;;  %v5196_v3 = vrot.slane %v960_v54, 4  ;;  %v1018_v34 = vrot.slane %v1016_v55, 4  ;;  %v1029_v47 = vshrl.u32 %v839_v51, 16  ;;  %674 = vst [vmem:[#allocation2 + $0x3c] sm:$0xf] %v673_v37 }
  0x57   : > { %v1021_v4 = vrot.slane %v1019_v62, 5  ;;  %675 = vst.msk [vmem:[#allocation2 + $0x40] sm:$0xf] %vm227_vm0, %v5128_v24  ;;  %v444_v5 = vrot.slane %v5148_v32, 4  ;;  %v449_v19 = vshll.u32 %v5121_v20, 16  ;;  %v5215_v61 = vrot.slane %v1025_v63, 5 }
  0x58   : > { %v990_v7 = vsel %vm4826_vm3, %v985_v1, %v989_v53  ;;  %v966_v59 = vsel %vm4826_vm3, %v5196_v3, %v5191_v0  ;;  %689 = vst.msk [vmem:[#allocation2 + $0x58] sm:$0xf] %vm227_vm0, %v5142_v29  ;;  %v1031_v37 = vrot.slane %v1029_v47, 4  ;;  %v5219_v8 = vld [vmem:[#allocation2 + $0x60] sm:$0xf]  ;;  %v472_v32 = vshrl.u32 %v5184_v57, 16 }
  0x59   : > { %v1022_v24 = vor.u32 %v1021_v4, %v1018_v34  ;;  %692 = vst [vmem:[#allocation2 + $0x5c] sm:$0x1] %v5146_v30  ;;  %v451_v20 = vor.u32 %v449_v19, %v5150_v33  ;;  %v480_v12 = vshrl.u32 %v5187_v56, 16  ;;  %v676_v11 = vld [vmem:[#allocation2 + $0x44] sm:$0x1]  ;;  %v483_v16 = vshll.u32 %v5187_v56, 16 }
  0x5a   : > { %657 = vst [vmem:[#allocation2 + $0x20] sm:$0x1] %v5136_v25  ;;  %v1032_v40 = vor.u32 %v1031_v37, %v5215_v61  ;;  %v402_v29 = vrot.slane %v5059_v39, 4  ;;  %v470_v21 = vrot.slane %v5091_v6, 4  ;;  %v694_v25 = vsel %vm4972_vm8, %v5170_v15, %v5219_v8 }
  0x5b   : > { %v5230_v35 = vrot.slane %v1022_v24, 4  ;;  %v826_v30 = vld [vmem:[#allocation2 + $0x18] sm:$0xf]  ;;  %685 = vst [vmem:[#allocation2 + $0x50] sm:$0x1] %v5154_v43  ;;  %v452_v22 = vsel %vm4986_vm9, %v444_v5, %v451_v20  ;;  %v5239_v9 = vrot.slane %v472_v32, 7 }
  0x5c   : > { %1261 = vrot.lane.b32.xlu1 %v918_v13, %s4750_s16  ;;  %v827_v39 = vld [vmem:[#allocation2 + $0x1c] sm:$0xf]  ;;  %v920_v36 = vshrl.u32 %v826_v30, 16  ;;  %v923_v38 = vshll.u32 %v826_v30, 16  ;;  %v5242_v41 = vrot.slane %v1032_v40, 4  ;;  %v5244_v44 = vrot.slane %v480_v12, 7 }
  0x5d   : > { %v1028_v43 = vsel %vm4826_vm3, %v5230_v35, %v5215_v61  ;;  %v929_v48 = vshll.u32 %v827_v39, 16  ;;  %v933_v49 = vshrl.u32 %v827_v39, 16  ;;  %v835_v27 = vld [vmem:[#allocation2 + $0x3c] sm:$0xf]  ;;  %702 = vst [vmem:[#allocation2 + $0x6c] sm:$0xf] %v701_v45  ;;  %v677_v15 = vsel %vm5046_vm10, %v402_v29, %v676_v11 }
  0x5e   : > { %1273 = vrot.lane.b32.xlu0 %v990_v7, %s4750_s16  ;;  %v922_v51 = vrot.slane %v920_v36, 4  ;;  %v925_v52 = vrot.slane %v923_v38, 5  ;;  %v836_v53 = vld [vmem:[#allocation2 + $0x40] sm:$0xf]  ;;  %v992_v54 = vshrl.u32 %v835_v27, 16  ;;  %v995_v55 = vshll.u32 %v835_v27, 16 }
  0x5f   : > { %v931_v56 = vrot.slane %v929_v48, 5  ;;  %v935_v58 = vrot.slane %v933_v49, 4  ;;  %v1001_v62 = vshll.u32 %v836_v53, 16  ;;  %v1005_v63 = vshrl.u32 %v836_v53, 16  ;;  %v842_v1 = vld [vmem:[#allocation2 + $0x58] sm:$0xf] }
  0x60   : > { %v926_v34 = vor.u32 %v925_v52, %v922_v51  ;;  %v994_v47 = vrot.slane %v992_v54, 4  ;;  %v997_v13 = vrot.slane %v995_v55, 5  ;;  %v843_v14 = vld [vmem:[#allocation2 + $0x5c] sm:$0x1]  ;;  %v1049_v17 = vshll.u32 %v842_v1, 16 }
  0x61   : > { %v5258_v45 = vrot.slane %v1001_v62, 5  ;;  %v1053_v4 = vshrl.u32 %v842_v1, 16  ;;  %v1059_v5 = vshll.u32 %v843_v14, 16  ;;  %v828_v19 = vld [vmem:[#allocation2 + $0x20] sm:$0x1]  ;;  %v936_v7 = vor.u32 %v935_v58, %v931_v56 }
  0x62   : > { %v927_v61 = vrot.slane %v926_v34, 4  ;;  %v998_v37 = vor.u32 %v997_v13, %v994_v47  ;;  %v5260_v8 = vrot.slane %v1049_v17, 5  ;;  %v939_v24 = vshll.u32 %v828_v19, 16  ;;  %v840_v20 = vld [vmem:[#allocation2 + $0x50] sm:$0x1] }
  0x63   : > { %v1055_v32 = vrot.slane %v1053_v4, 4  ;;  %v1061_v12 = vrot.slane %v1059_v5, 5  ;;  %v937_v11 = vrot.slane %v936_v7, 4  ;;  %v1035_v40 = vshll.u32 %v840_v20, 16  ;;  %703 = vst.msk [vmem:[#allocation2 + $0x70] sm:$0xf] %vm227_vm0, %v5163_v50 }
  0x64   : > { %v711_v29 = vld [vmem:[#allocation2 + $0x80] sm:$0x1]  ;;  %1269 = vrot.lane.b32.xlu1 %v966_v59, %s4750_s16  ;;  %v932_v35 = vsel %vm4826_vm3, %v927_v61, %v931_v56  ;;  %v999_v30 = vrot.slane %v998_v37, 4  ;;  %v941_v39 = vrot.slane %v939_v24, 5  ;;  %v847_v36 = vld [vmem:[#allocation2 + $0x6c] sm:$0xf]  ;;  %v485_v50 = vor.u32 %v483_v16, %v5244_v44 }
  0x65   : > { %667 = vst [vmem:[#allocation2 + $0x30] sm:$0xf] %v666_v46  ;;  %1263 = vrot.lane.b32.xlu2 %v932_v35, %s4750_s16  ;;  %v1056_v38 = vor.u32 %v1055_v32, %v5260_v8  ;;  %v5280_v0 = vrot.slane %v1035_v40, 5  ;;  %v1088_v3 = vshrl.u32 %v847_v36, 16  ;;  %v1091_v59 = vshll.u32 %v847_v36, 16 }
  0x66   : > { %695 = vst [vmem:[#allocation2 + $0x60] sm:$0xf] %v694_v25  ;;  %1279 = vrot.lane.b32.xlu0 %v1028_v43, %s4750_s16  ;;  %v478_v18 = vrot.slane %v5239_v9, 4  ;;  %v487_v26 = vrot.slane %v5244_v44, 4  ;;  %v704_v46 = vld [vmem:[#allocation2 + $0x74] sm:$0x1]  ;;  %v1004_v16 = vsel %vm4826_vm3, %v999_v30, %v5258_v45  ;;  %v942_v25 = vsel %vm4826_vm3, %v937_v11, %v941_v39 }
  0x67   : > { %696 = vst.msk [vmem:[#allocation2 + $0x64] sm:$0xf] %vm227_vm0, %v452_v22  ;;  %v1057_v48 = vrot.slane %v1056_v38, 4  ;;  %v1090_v49 = vrot.slane %v1088_v3, 4  ;;  %v1093_v27 = vrot.slane %v1091_v59, 5  ;;  %v1007_v51 = vrot.slane %v1005_v63, 4 }
  0x68   : > { %678 = vst [vmem:[#allocation2 + $0x44] sm:$0x1] %v677_v15  ;;  %v486_v43 = vsel %vm4986_vm9, %v478_v18, %v485_v50  ;;  %v712_v22 = vsel %vm5046_vm10, %v487_v26, %v711_v29  ;;  %v305_v44 = vld [vmem:[%s4870_s20 + $0x58] sm:$0xf]  ;;  %v5297_v52 = vld [vmem:[%s4870_s20 + $0x5c] sm:$0xf]  ;;  %v1038_v53 = vsel %vm4826_vm3, %v5242_v41, %v5280_v0  ;;  %v705_v15 = vsel %vm5046_vm10, %v470_v21, %v704_v46 }
  0x69   : > { %v1094_v54 = vor.u32 %v1093_v27, %v1090_v49  ;;  %710 = vst.msk [vmem:[#allocation2 + $0x7c] sm:$0xf] %vm227_vm0, %v486_v43  ;;  %v506_v55 = vshrl.u32 %v305_v44, 16  ;;  %v1062_v56 = vsel %vm4826_vm3, %v1057_v48, %v1061_v12  ;;  %v1008_v62 = vor.u32 %v1007_v51, %v5258_v45  ;;  %v721_v3 = vld [vmem:[#allocation2 + $0x90] sm:$0xf] }
  0x6a   : > { %v848_v58 = vld [vmem:[#allocation2 + $0x70] sm:$0xf]  ;;  %713 = vst [vmem:[#allocation2 + $0x80] sm:$0x1] %v712_v22  ;;  %v509_v63 = vshll.u32 %v305_v44, 16  ;;  %v514_v1 = vshrl.u32 %v5297_v52, 16 }
  0x6b   : > { %v5312_v41 = vrot.slane %v1094_v54, 4  ;;  %v1097_v34 = vshll.u32 %v848_v58, 16  ;;  %v1101_v47 = vshrl.u32 %v848_v58, 16  ;;  %v517_v6 = vshll.u32 %v5297_v52, 16  ;;  %706 = vst [vmem:[#allocation2 + $0x74] sm:$0x1] %v705_v15 }
  0x6c   : > { %v832_v13 = vld [vmem:[#allocation2 + $0x30] sm:$0xf]  ;;  %1275 = vrot.lane.b32.xlu1 %v1004_v16, %s4750_s16  ;;  %v5316_v4 = vrot.slane %v1008_v62, 4  ;;  %v508_v5 = vrot.slane %v506_v55, 7  ;;  %v5323_v11 = vrot.slane %v514_v1, 7 }
  0x6d   : > { %v968_v21 = vshrl.u32 %v832_v13, 16  ;;  %v971_v14 = vshll.u32 %v832_v13, 16  ;;  %v844_v17 = vld [vmem:[#allocation2 + $0x60] sm:$0xf]  ;;  %1265 = vrot.lane.b32.xlu2 %v942_v25, %s4750_s16  ;;  %v1099_v45 = vrot.slane %v1097_v34, 5  ;;  %v1103_v37 = vrot.slane %v1101_v47, 4 }
  0x6e   : > { %v5319_v19 = vld [vmem:[#allocation2 + $0x64] sm:$0xf]  ;;  %v1064_v7 = vshrl.u32 %v844_v17, 16  ;;  %v1067_v61 = vshll.u32 %v844_v17, 16  ;;  %1285 = vrot.lane.b32.xlu0 %v1062_v56, %s4750_s16  ;;  %v511_v0 = vor.u32 %v509_v63, %v508_v5  ;;  %v512_v25 = vrot.slane %v508_v5, 4 }
  0x6f   : > { %v970_v24 = vrot.slane %v968_v21, 4  ;;  %v973_v20 = vrot.slane %v971_v14, 5  ;;  %v1073_v32 = vshll.u32 %v5319_v19, 16  ;;  %v837_v12 = vld [vmem:[#allocation2 + $0x44] sm:$0x1]  ;;  %v1077_v35 = vshrl.u32 %v5319_v19, 16 }
  0x70   : > { %v1066_v40 = vrot.slane %v1064_v7, 4  ;;  %v1069_v29 = vrot.slane %v1067_v61, 5  ;;  %v1011_v30 = vshll.u32 %v837_v12, 16  ;;  %v1100_v39 = vsel %vm4826_vm3, %v5312_v41, %v1099_v45  ;;  %v851_v50 = vld [vmem:[#allocation2 + $0x7c] sm:$0xf] }
  0x71   : > { %v974_v36 = vor.u32 %v973_v20, %v970_v24  ;;  %v1104_v38 = vor.u32 %v1103_v37, %v1099_v45  ;;  %v852_v18 = vld [vmem:[#allocation2 + $0x80] sm:$0x1]  ;;  %v1121_v26 = vshll.u32 %v851_v50, 16  ;;  %v1125_v46 = vshrl.u32 %v851_v50, 16  ;;  %v303_v43 = vld [vmem:[%s4870_s20 + $0x50] sm:$0xf] }
  0x72   : > { %v1070_v59 = vor.u32 %v1069_v29, %v1066_v40  ;;  %v5329_v16 = vrot.slane %v1011_v30, 5  ;;  %v5331_v49 = vrot.slane %v1073_v32, 5  ;;  %v1131_v27 = vshll.u32 %v852_v18, 16  ;;  %v304_v54 = vld [vmem:[%s4870_s20 + $0x54] sm:$0xf] }
  0x73   : > { %v975_v48 = vrot.slane %v974_v36, 4  ;;  %v5334_v51 = vrot.slane %v1121_v26, 5  ;;  %v1127_v44 = vrot.slane %v1125_v46, 4  ;;  %v5336_v52 = vrot.slane %v1104_v38, 4  ;;  %v686_v62 = vld [vmem:[#allocation2 + $0x54] sm:$0xf] }
  0x74   : > { %v1071_v22 = vrot.slane %v1070_v59, 4  ;;  %1281 = vrot.lane.b32.xlu1 %v1038_v53, %s4750_s16  ;;  %v1133_v55 = vrot.slane %v1131_v27, 5  ;;  %v519_v56 = vor.u32 %v517_v6, %v5323_v11  ;;  %v722_v58 = vsel %vm4972_vm8, %v511_v0, %v721_v3  ;;  %v5347_v63 = vld [vmem:[%s4870_s20 + $0x60] sm:$0xf]  ;;  %v308_v34 = vld [vmem:[%s4870_s20 + $0x64] sm:$0xf] }
  0x75   : > { %v980_v15 = vsel %vm4826_vm3, %v975_v48, %v5172_v28  ;;  %v1128_v1 = vor.u32 %v1127_v44, %v5334_v51  ;;  %v1014_v53 = vsel %vm4826_vm3, %v5316_v4, %v5329_v16  ;;  %723 = vst [vmem:[#allocation2 + $0x90] sm:$0xf] %v722_v58  ;;  %v424_v28 = vshll.u32 %v5027_v23, 16  ;;  %v849_v47 = vld [vmem:[#allocation2 + $0x74] sm:$0x1] }
  0x76   : > { %1271 = vrot.lane.b32.xlu2 %v980_v15, %s4750_s16  ;;  %v489_v41 = vshrl.u32 %v303_v43, 16  ;;  %1291 = vrot.lane.b32.xlu0 %v1100_v39, %s4750_s16  ;;  %v520_v13 = vsel %vm4986_vm9, %v512_v25, %v519_v56  ;;  %v492_v6 = vshll.u32 %v303_v43, 16  ;;  %v497_v21 = vshrl.u32 %v304_v54, 16  ;;  %v714_v23 = vld [vmem:[#allocation2 + $0x84] sm:$0xf] }
  0x77   : > { %v500_v14 = vshll.u32 %v304_v54, 16  ;;  %v1129_v17 = vrot.slane %v1128_v1, 4  ;;  %v1107_v5 = vshll.u32 %v849_v47, 16  ;;  %724 = vst.msk [vmem:[#allocation2 + $0x94] sm:$0xf] %vm227_vm0, %v520_v13  ;;  %v426_v4 = vor.u32 %v424_v28, %v5062_v42 }
  0x78   : > { %v491_v45 = vrot.slane %v489_v41, 7  ;;  %v5362_v7 = vrot.slane %v497_v21, 7  ;;  %v523_v61 = vshrl.u32 %v5347_v63, 16  ;;  %v531_v37 = vshrl.u32 %v308_v34, 16  ;;  %v732_v40 = vld [vmem:[#allocation2 + $0xa4] sm:$0x1] }
  0x79   : > { %v534_v24 = vshll.u32 %v308_v34, 16  ;;  %v1076_v20 = vsel %vm4826_vm3, %v1071_v22, %v5331_v49  ;;  %v1134_v32 = vsel %vm4826_vm3, %v1129_v17, %v1133_v55  ;;  %v687_v12 = vsel %vm4972_vm8, %v426_v4, %v686_v62  ;;  %v697_v29 = vld [vmem:[#allocation2 + $0x68] sm:$0x1]  ;;  %v311_v18 = vld [vmem:[%s4870_s20 + $0x70] sm:$0xf] }
  0x7a   : > { %v494_v42 = vor.u32 %v492_v6, %v491_v45  ;;  %688 = vst [vmem:[#allocation2 + $0x54] sm:$0xf] %v687_v12  ;;  %v495_v30 = vrot.slane %v491_v45, 4  ;;  %v502_v39 = vor.u32 %v500_v14, %v5362_v7  ;;  %v5373_v36 = vrot.slane %v523_v61, 7  ;;  %v1737_v60 = vld [vmem:[#allocation2 + $0x58] sm:$0xf] }
  0x7b   : > { %v533_v50 = vrot.slane %v531_v37, 7  ;;  %v1109_v38 = vrot.slane %v1107_v5, 5  ;;  %v453_v3 = vrot.slane %v5150_v33, 4  ;;  %v1079_v59 = vrot.slane %v1077_v35, 4  ;;  %v725_v35 = vld [vmem:[#allocation2 + $0x98] sm:$0x1] }
  0x7c   : > { %v715_v0 = vsel %vm4972_vm8, %v494_v42, %v714_v23  ;;  %1287 = vrot.lane.b32.xlu1 %v1076_v20, %s4750_s16  ;;  %v856_v26 = vld [vmem:[#allocation2 + $0x90] sm:$0xf]  ;;  %v503_v46 = vsel %vm4986_vm9, %v495_v30, %v502_v39  ;;  %v529_v16 = vrot.slane %v5373_v36, 4  ;;  %v521_v15 = vrot.slane %v5323_v11, 4 }
  0x7d   : > { %716 = vst [vmem:[#allocation2 + $0x84] sm:$0xf] %v715_v0  ;;  %v536_v48 = vor.u32 %v534_v24, %v533_v50  ;;  %v538_v27 = vrot.slane %v533_v50, 4  ;;  %v1160_v25 = vshrl.u32 %v856_v26, 16  ;;  %v1163_v43 = vshll.u32 %v856_v26, 16 }
  0x7e   : > { %1277 = vrot.lane.b32.xlu2 %v1014_v53, %s4750_s16  ;;  %717 = vst.msk [vmem:[#allocation2 + $0x88] sm:$0xf] %vm227_vm0, %v503_v46  ;;  %v698_v33 = vsel %vm5046_vm10, %v453_v3, %v697_v29  ;;  %v1080_v19 = vor.u32 %v1079_v59, %v5331_v49  ;;  %1297 = vrot.lane.b32.xlu0 %v1134_v32, %s4750_s16  ;;  %v857_v22 = vld [vmem:[#allocation2 + $0x94] sm:$0xf]  ;;  %v557_v55 = vshrl.u32 %v311_v18, 16  ;;  %v560_v13 = vshll.u32 %v311_v18, 16 }
  0x7f   : > { %v537_v44 = vsel %vm4986_vm9, %v529_v16, %v536_v48  ;;  %v733_v54 = vsel %vm5046_vm10, %v538_v27, %v732_v40  ;;  %699 = vst [vmem:[#allocation2 + $0x68] sm:$0x1] %v698_v33  ;;  %v1162_v56 = vrot.slane %v1160_v25, 4  ;;  %v1165_v58 = vrot.slane %v1163_v43, 5  ;;  %v312_v53 = vld [vmem:[%s4870_s20 + $0x74] sm:$0xf] }
  0x80   : > { %v1169_v62 = vshll.u32 %v857_v22, 16  ;;  %v1173_v1 = vshrl.u32 %v857_v22, 16  ;;  %731 = vst.msk [vmem:[#allocation2 + $0xa0] sm:$0xf] %vm227_vm0, %v537_v44  ;;  %v726_v49 = vsel %vm5046_vm10, %v521_v15, %v725_v35  ;;  %v559_v28 = vrot.slane %v557_v55, 7 }
  0x81   : > { %734 = vst [vmem:[#allocation2 + $0xa4] sm:$0x1] %v733_v54  ;;  %v1110_v41 = vsel %vm4826_vm3, %v5336_v52, %v1109_v38  ;;  %v1166_v34 = vor.u32 %v1165_v58, %v1162_v56  ;;  %v841_v11 = vld [vmem:[#allocation2 + $0x54] sm:$0xf]  ;;  %v5405_v5 = vrot.slane %v1080_v19, 4  ;;  %v565_v45 = vshrl.u32 %v312_v53, 16 }
  0x82   : > { %v5403_v47 = vrot.slane %v1169_v62, 5  ;;  %727 = vst [vmem:[#allocation2 + $0x98] sm:$0x1] %v726_v49  ;;  %v1040_v6 = vshrl.u32 %v841_v11, 16  ;;  %v1043_v21 = vshll.u32 %v841_v11, 16  ;;  %v1175_v4 = vrot.slane %v1173_v1, 4 }
  0x83   : > { %v1167_v14 = vrot.slane %v1166_v34, 4  ;;  %v562_v42 = vor.u32 %v560_v13, %v559_v28  ;;  %v568_v40 = vshll.u32 %v312_v53, 16  ;;  %v742_v0 = vld [vmem:[#allocation2 + $0xb4] sm:$0xf]  ;;  %v563_v26 = vrot.slane %v559_v28, 4 }
  0x84   : > { %v853_v17 = vld [vmem:[#allocation2 + $0x84] sm:$0xf]  ;;  %1293 = vrot.lane.b32.xlu1 %v1110_v41, %s4750_s16  ;;  %v1042_v23 = vrot.slane %v1040_v6, 4  ;;  %v1045_v61 = vrot.slane %v1043_v21, 5  ;;  %v5415_v46 = vrot.slane %v565_v45, 7  ;;  %v1176_v35 = vor.u32 %v1175_v4, %v5403_v47 }
  0x85   : > { %v5408_v37 = vld [vmem:[#allocation2 + $0x88] sm:$0xf]  ;;  %v1136_v52 = vshrl.u32 %v853_v17, 16  ;;  %v1139_v24 = vshll.u32 %v853_v17, 16  ;;  %v1172_v20 = vsel %vm4826_vm3, %v1167_v14, %v5403_v47  ;;  %v310_v58 = vld [vmem:[%s4870_s20 + $0x6c] sm:$0xf]  ;;  %v743_v53 = vsel %vm4972_vm8, %v562_v42, %v742_v0 }
  0x86   : > { %v1145_v32 = vshll.u32 %v5408_v37, 16  ;;  %v846_v12 = vld [vmem:[#allocation2 + $0x68] sm:$0x1]  ;;  %1303 = vrot.lane.b32.xlu0 %v1172_v20, %s4750_s16  ;;  %v1046_v29 = vor.u32 %v1045_v61, %v1042_v23  ;;  %v570_v22 = vor.u32 %v568_v40, %v5415_v46  ;;  %v707_v28 = vld [vmem:[#allocation2 + $0x78] sm:$0xf]  ;;  %v475_v41 = vshll.u32 %v5184_v57, 16 }
  0x87   : > { %v1138_v30 = vrot.slane %v1136_v52, 4  ;;  %v1141_v39 = vrot.slane %v1139_v24, 5  ;;  %v860_v50 = vld [vmem:[#allocation2 + $0xa0] sm:$0xf]  ;;  %v1083_v38 = vshll.u32 %v846_v12, 16  ;;  %v548_v13 = vshrl.u32 %v310_v58, 16 }
  0x88   : > { %v861_v3 = vld [vmem:[#allocation2 + $0xa4] sm:$0x1]  ;;  %v1193_v59 = vshll.u32 %v860_v50, 16  ;;  %v1197_v18 = vshrl.u32 %v860_v50, 16  ;;  %v1047_v16 = vrot.slane %v1046_v29, 4  ;;  %v5417_v27 = vrot.slane %v1145_v32, 5 }
  0x89   : > { %v1142_v48 = vor.u32 %v1141_v39, %v1138_v30  ;;  %v1203_v25 = vshll.u32 %v861_v3, 16  ;;  %v858_v43 = vld [vmem:[#allocation2 + $0x98] sm:$0x1]  ;;  %v309_v44 = vld [vmem:[%s4870_s20 + $0x68] sm:$0xf]  ;;  %v1085_v55 = vrot.slane %v1083_v38, 5  ;;  %v571_v49 = vsel %vm4986_vm9, %v563_v26, %v570_v22 }
  0x8a   : > { %v5419_v33 = vrot.slane %v1193_v59, 5  ;;  %v1199_v19 = vrot.slane %v1197_v18, 4  ;;  %v1052_v54 = vsel %vm4826_vm3, %v1047_v16, %v5260_v8  ;;  %v1179_v56 = vshll.u32 %v858_v43, 16  ;;  %744 = vst [vmem:[#allocation2 + $0xb4] sm:$0xf] %v743_v53 }
  0x8b   : > { %v1143_v15 = vrot.slane %v1142_v48, 4  ;;  %1283 = vrot.lane.b32.xlu2 %v1052_v54, %s4750_s16  ;;  %v1205_v1 = vrot.slane %v1203_v25, 5  ;;  %v540_v34 = vshrl.u32 %v309_v44, 16  ;;  %v543_v47 = vshll.u32 %v309_v44, 16  ;;  %745 = vst.msk [vmem:[#allocation2 + $0xb8] sm:$0xf] %vm227_vm0, %v571_v49 }
  0x8c   : > { %v1200_v62 = vor.u32 %v1199_v19, %v5419_v33  ;;  %v551_v6 = vshll.u32 %v310_v58, 16  ;;  %v1177_v21 = vrot.slane %v1176_v35, 4  ;;  %v1181_v14 = vrot.slane %v1179_v56, 5  ;;  %v735_v61 = vld [vmem:[#allocation2 + $0xa8] sm:$0xf] }
  0x8d   : > { %v1148_v8 = vsel %vm4826_vm3, %v1143_v15, %v5417_v27  ;;  %v477_v17 = vor.u32 %v475_v41, %v5239_v9  ;;  %v542_v4 = vrot.slane %v540_v34, 7  ;;  %v1086_v57 = vsel %vm4826_vm3, %v5405_v5, %v1085_v55  ;;  %v718_v52 = vld [vmem:[#allocation2 + $0x8c] sm:$0x1]  ;;  %v746_v40 = vld [vmem:[#allocation2 + $0xbc] sm:$0x1] }
  0x8e   : > { %1299 = vrot.lane.b32.xlu1 %v1148_v8, %s4750_s16  ;;  %v1201_v11 = vrot.slane %v1200_v62, 4  ;;  %v5446_v23 = vrot.slane %v548_v13, 7  ;;  %v504_v9 = vrot.slane %v5362_v7, 4  ;;  %v572_v42 = vrot.slane %v5415_v46, 4  ;;  %v728_v39 = vld [vmem:[#allocation2 + $0x9c] sm:$0xf] }
  0x8f   : > { %v708_v24 = vsel %vm4972_vm8, %v477_v17, %v707_v28  ;;  %v545_v20 = vor.u32 %v543_v47, %v542_v4  ;;  %v546_v32 = vrot.slane %v542_v4, 4  ;;  %v1182_v5 = vsel %vm4826_vm3, %v1177_v21, %v1181_v14  ;;  %v1386_v55 = vld [vmem:[#allocation2 + $0x8] sm:$0x1] }
  0x90   : > { %v1206_v45 = vsel %vm4826_vm3, %v1201_v11, %v1205_v1  ;;  %709 = vst [vmem:[#allocation2 + $0x78] sm:$0xf] %v708_v24  ;;  %v553_v12 = vor.u32 %v551_v6, %v5446_v23  ;;  %v719_v30 = vsel %vm5046_vm10, %v504_v9, %v718_v52  ;;  %v526_v38 = vshll.u32 %v5347_v63, 16  ;;  %v5470_v63 = vld [vmem:[#allocation2 + $0x4] sm:$0xf] }
  0x91   : > { %1309 = vrot.lane.b32.xlu0 %v1206_v45, %s4750_s16  ;;  %v736_v29 = vsel %vm4972_vm8, %v545_v20, %v735_v61  ;;  %v865_v50 = vld [vmem:[#allocation2 + $0xb4] sm:$0xf]  ;;  %v747_v18 = vsel %vm5046_vm10, %v572_v42, %v746_v40  ;;  %720 = vst [vmem:[#allocation2 + $0x8c] sm:$0x1] %v719_v30  ;;  %v1149_v16 = vshrl.u32 %v5408_v37, 16  ;;  %v1485_v37 = vrot.slane %v5470_v63, 5 }
  0x92   : > { %v554_v7 = vsel %vm4986_vm9, %v546_v32, %v553_v12  ;;  %737 = vst [vmem:[#allocation2 + $0xa8] sm:$0xf] %v736_v29  ;;  %v866_v0 = vld [vmem:[#allocation2 + $0xb8] sm:$0xf]  ;;  %v1232_v3 = vshrl.u32 %v865_v50, 16  ;;  %v1235_v59 = vshll.u32 %v865_v50, 16  ;;  %v528_v46 = vor.u32 %v526_v38, %v5373_v36 }
  0x93   : > { %1289 = vrot.lane.b32.xlu2 %v1086_v57, %s4750_s16  ;;  %738 = vst.msk [vmem:[#allocation2 + $0xac] sm:$0xf] %vm227_vm0, %v554_v7  ;;  %v1241_v26 = vshll.u32 %v866_v0, 16  ;;  %v1245_v44 = vshrl.u32 %v866_v0, 16  ;;  %v1151_v58 = vrot.slane %v1149_v16, 4  ;;  %v555_v62 = vrot.slane %v5446_v23, 4 }
  0x94   : > { %v1234_v48 = vrot.slane %v1232_v3, 4  ;;  %v1237_v25 = vrot.slane %v1235_v59, 5  ;;  %748 = vst [vmem:[#allocation2 + $0xbc] sm:$0x1] %v747_v18  ;;  %v729_v43 = vsel %vm4972_vm8, %v528_v46, %v728_v39  ;;  %v1488_v47 = vrot.slane %v1386_v55, 5  ;;  %v1256_v18 = vpop.permute.xlu0 %1255 }
  0x95   : > { %v1243_v35 = vrot.slane %v1241_v26, 5  ;;  %730 = vst [vmem:[#allocation2 + $0x9c] sm:$0xf] %v729_v43  ;;  %v1247_v14 = vrot.slane %v1245_v44, 4  ;;  %v1487_v17 = vrot.slane %v1485_v37, 4  ;;  %v1152_v4 = vor.u32 %v1151_v58, %v5417_v27 }
  0x96   : > { %1305 = vrot.lane.b32.xlu1 %v1182_v5, %s4750_s16  ;;  %v1238_v19 = vor.u32 %v1237_v25, %v1234_v48  ;;  %v739_v23 = vld [vmem:[#allocation2 + $0xb0] sm:$0x1]  ;;  %v1390_v50 = vld [vmem:[#allocation2 + $0x18] sm:$0xe]  ;;  %v5501_v7 = vld [vmem:[#allocation2 + $0x1c] sm:$0xf] }
  0x97   : > { %v850_v22 = vld [vmem:[#allocation2 + $0x78] sm:$0xf]  ;;  %v740_v9 = vsel %vm5046_vm10, %v555_v62, %v739_v23  ;;  %v1248_v5 = vor.u32 %v1247_v14, %v1243_v35  ;;  %v1489_v30 = vsel %vm5489_vm13, %v1487_v17, %v1488_v47  ;;  %v1153_v39 = vrot.slane %v1152_v4, 4  ;;  %v1387_v44 = vld [vmem:[#allocation2 + $0xc] sm:$0xe] }
  0x98   : > { %v1112_v54 = vshrl.u32 %v850_v22, 16  ;;  %v1115_v15 = vshll.u32 %v850_v22, 16  ;;  %v1239_v36 = vrot.slane %v1238_v19, 4  ;;  %v855_v11 = vld [vmem:[#allocation2 + $0x8c] sm:$0x1]  ;;  %v4415_v16 = vrot.slane %v1390_v50, 9 }
  0x99   : > { %v862_v56 = vld [vmem:[#allocation2 + $0xa8] sm:$0xf]  ;;  %v1155_v45 = vshll.u32 %v855_v11, 16  ;;  %741 = vst [vmem:[#allocation2 + $0xb0] sm:$0x1] %v740_v9  ;;  %v1249_v26 = vrot.slane %v1248_v5, 4 }
  0x9a   : > { %v1114_v1 = vrot.slane %v1112_v54, 4  ;;  %v1117_v49 = vrot.slane %v1115_v15, 5  ;;  %v5476_v53 = vld [vmem:[#allocation2 + $0xac] sm:$0xf]  ;;  %v1208_v28 = vshrl.u32 %v862_v56, 16  ;;  %v1211_v8 = vshll.u32 %v862_v56, 16 }
  0x9b   : > { %v1244_v41 = vsel %vm4826_vm3, %v1239_v36, %v1243_v35  ;;  %v1217_v34 = vshll.u32 %v5476_v53, 16  ;;  %v867_v57 = vld [vmem:[#allocation2 + $0xbc] sm:$0x1]  ;;  %v1157_v0 = vrot.slane %v1155_v45, 5  ;;  %v1499_v48 = vrot.slane %v5501_v7, 5 }
  0x9c   : > { %1315 = vrot.lane.b32.xlu0 %v1244_v41, %s4750_s16  ;;  %v1118_v13 = vor.u32 %v1117_v49, %v1114_v1  ;;  %v1210_v6 = vrot.slane %v1208_v28, 4  ;;  %v1213_v21 = vrot.slane %v1211_v8, 5  ;;  %v859_v32 = vld [vmem:[#allocation2 + $0x9c] sm:$0xf]  ;;  %v1251_v29 = vshll.u32 %v867_v57, 16 }
  0x9d   : > { %v5485_v24 = vrot.slane %v1217_v34, 5  ;;  %v1184_v12 = vshrl.u32 %v859_v32, 16  ;;  %v1187_v42 = vshll.u32 %v859_v32, 16  ;;  %v1221_v25 = vshrl.u32 %v5476_v53, 16  ;;  %v5514_v35 = vld [vmem:[#allocation2 + $0x28] sm:$0xf] }
  0x9e   : > { %v1119_v61 = vrot.slane %v1118_v13, 4  ;;  %v1214_v52 = vor.u32 %v1213_v21, %v1210_v6  ;;  %v1253_v46 = vrot.slane %v1251_v29, 5  ;;  %v1158_v43 = vsel %vm4826_vm3, %v1153_v39, %v1157_v0  ;;  %v5518_v54 = vld [vmem:[#allocation2 + $0x10] sm:$0xf]  ;;  %v757_v36 = vld [vmem:[#allocation2 + $0x4] sm:$0xf] }
  0x9f   : > { %v1186_v3 = vrot.slane %v1184_v12, 4  ;;  %v1189_v59 = vrot.slane %v1187_v42, 5  ;;  %v1500_v15 = vsel %vm5489_vm13, %v4415_v16, %v1499_v48  ;;  %v1506_v55 = vrot.slane %v5514_v35, 5  ;;  %v760_v56 = vld [vmem:[#allocation2 + $0x18] sm:$0xf] }
  0xa0   : > { %v1124_v27 = vsel %vm4826_vm3, %v1119_v61, %v5334_v51  ;;  %v1215_v40 = vrot.slane %v1214_v52, 4  ;;  %v756_v51 = vld [vmem:[#allocation2] sm:$0xf]  ;;  %v1254_v22 = vsel %vm4826_vm3, %v1249_v26, %v1253_v46  ;;  %v1395_v62 = vld [vmem:[#allocation2 + $0x2c] sm:$0x1]  ;;  %v1223_v1 = vrot.slane %v1221_v25, 4 }
  0xa1   : > { %1295 = vrot.lane.b32.xlu2 %v1124_v27, %s4750_s16  ;;  %788 = vst.msk [vmem:[#allocation3] sm:$0xf] %vm227_vm0, %v756_v51  ;;  %v1190_v19 = vor.u32 %v1189_v59, %v1186_v3  ;;  %v864_v49 = vld [vmem:[#allocation2 + $0xb0] sm:$0x1]  ;;  %v758_v53 = vld [vmem:[#allocation2 + $0xc] sm:$0xf] }
  0xa2   : > { %v1220_v38 = vsel %vm4826_vm3, %v1215_v40, %v5485_v24  ;;  %1352 = vst.msk [vmem:[#allocation3] sm:$0xf] %vm1351_vm14, %v1256_v18  ;;  %v4414_v28 = vrot.slane %v1387_v44, 9  ;;  %v1492_v8 = vrot.slane %v5518_v54, 5  ;;  %v1508_v41 = vrot.slane %v1506_v55, 4 }
  0xa3   : > { %1311 = vrot.lane.b32.xlu1 %v1220_v38, %s4750_s16  ;;  %v1191_v58 = vrot.slane %v1190_v19, 4  ;;  %789 = vst.msk [vmem:[#allocation3 + $0x4] sm:$0xf] %vm227_vm0, %v757_v36  ;;  %v1509_v34 = vrot.slane %v1395_v62, 5  ;;  %v1224_v11 = vor.u32 %v1223_v1, %v5485_v24  ;;  %v1227_v13 = vshll.u32 %v864_v49, 16 }
  0xa4   : > { %1597 = vrot.lane.b32.xlu0 %v1489_v30, %s4751_s21  ;;  %792 = vst.msk [vmem:[#allocation3 + $0x10] sm:$0xf] %vm227_vm0, %v760_v56  ;;  %v1493_v21 = vsel %vm5489_vm13, %v4414_v28, %v1492_v8  ;;  %v1392_v14 = vld [vmem:[#allocation2 + $0x20] sm:$0x1]  ;;  %v1399_v4 = vld [vmem:[#allocation2 + $0x3c] sm:$0xe] }
  0xa5   : > { %790 = vst.msk [vmem:[#allocation3 + $0x8] sm:$0xf] %vm227_vm0, %v758_v53  ;;  %v1196_v47 = vsel %vm4826_vm3, %v1191_v58, %v5419_v33  ;;  %v1510_v17 = vsel %vm5489_vm13, %v1508_v41, %v1509_v34  ;;  %v762_v45 = vld [vmem:[#allocation2 + $0x24] sm:$0xf]  ;;  %v761_v57 = vld [vmem:[#allocation2 + $0x1c] sm:$0xf] }
  0xa6   : > { %v1225_v23 = vrot.slane %v1224_v11, 4  ;;  %v1229_v33 = vrot.slane %v1227_v13, 5  ;;  %v1400_v61 = vld [vmem:[#allocation2 + $0x40] sm:$0xf]  ;;  %794 = vst.msk [vmem:[#allocation3 + $0x18] sm:$0xf] %vm227_vm0, %v762_v45 }
  0xa7   : > { %793 = vst.msk [vmem:[#allocation3 + $0x14] sm:$0xf] %vm227_vm0, %v761_v57  ;;  %v759_v52 = vld [vmem:[#allocation2 + $0x10] sm:$0xf]  ;;  %v1501_v24 = vrot.slane %v1499_v48, 4  ;;  %v1502_v32 = vrot.slane %v1392_v14, 5 }
  0xa8   : > { %791 = vst.msk [vmem:[#allocation3 + $0xc] sm:$0xf] %vm227_vm0, %v759_v52  ;;  %v4418_v9 = vrot.slane %v1399_v4, 9  ;;  %v1520_v12 = vrot.slane %v1400_v61, 5  ;;  %v1230_v42 = vsel %vm4826_vm3, %v1225_v23, %v1229_v33  ;;  %v5549_v27 = vld [vmem:[#allocation2 + $0x4c] sm:$0xf] }
  0xa9   : > { %1301 = vrot.lane.b32.xlu2 %v1158_v43, %s4750_s16  ;;  %v1384_v40 = vld [vmem:[#allocation2] sm:$0xe]  ;;  %v1503_v5 = vsel %vm5489_vm13, %v1501_v24, %v1502_v32  ;;  %v1396_v29 = vld [vmem:[#allocation2 + $0x30] sm:$0xe]  ;;  %v5553_v30 = vld [vmem:[#allocation2 + $0x34] sm:$0xf] }
  0xaa   : > { %v1521_v39 = vsel %vm5489_vm13, %v4418_v9, %v1520_v12  ;;  %v1527_v50 = vrot.slane %v5549_v27, 5  ;;  %v765_v7 = vld [vmem:[#allocation2 + $0x34] sm:$0xf]  ;;  %v764_v38 = vld [vmem:[#allocation2 + $0x30] sm:$0xf]  ;;  %v4413_v0 = vrot.slane %v1384_v40, 9 }
  0xab   : > { %1317 = vrot.lane.b32.xlu1 %v1254_v22, %s4750_s16  ;;  %v1404_v3 = vld [vmem:[#allocation2 + $0x50] sm:$0x1]  ;;  %797 = vst.msk [vmem:[#allocation3 + $0x24] sm:$0xf] %vm227_vm0, %v765_v7  ;;  %v763_v59 = vld [vmem:[#allocation2 + $0x28] sm:$0xf] }
  0xac   : > { %1603 = vrot.lane.b32.xlu0 %v1500_v15, %s4751_s21  ;;  %796 = vst.msk [vmem:[#allocation3 + $0x20] sm:$0xf] %vm227_vm0, %v764_v38  ;;  %v4417_v51 = vrot.slane %v1396_v29, 9  ;;  %v1513_v18 = vrot.slane %v5553_v30, 5  ;;  %v1529_v26 = vrot.slane %v1527_v50, 4  ;;  %v1530_v46 = vrot.slane %v1404_v3, 5 }
  0xad   : > { %795 = vst.msk [vmem:[#allocation3 + $0x1c] sm:$0xf] %vm227_vm0, %v763_v59  ;;  %v1389_v16 = vld [vmem:[#allocation2 + $0x14] sm:$0x1]  ;;  %v1486_v48 = vsel %vm5489_vm13, %v4413_v0, %v1485_v37  ;;  %v1494_v19 = vrot.slane %v1492_v8, 4  ;;  %v1522_v58 = vrot.slane %v1520_v12, 4 }
  0xae   : > { %v1514_v43 = vsel %vm5489_vm13, %v4417_v51, %v1513_v18  ;;  %v1495_v22 = vrot.slane %v1389_v16, 5  ;;  %v1531_v44 = vsel %vm5489_vm13, %v1529_v26, %v1530_v46  ;;  %v1401_v54 = vld [vmem:[#allocation2 + $0x44] sm:$0x1]  ;;  %v768_v63 = vld [vmem:[#allocation2 + $0x48] sm:$0xf]  ;;  %v1515_v29 = vrot.slane %v1513_v18, 4 }
  0xaf   : > { %v767_v15 = vld [vmem:[#allocation2 + $0x40] sm:$0xf]  ;;  %v5579_v37 = vld [vmem:[#allocation2 + $0x64] sm:$0xf]  ;;  %800 = vst.msk [vmem:[#allocation3 + $0x30] sm:$0xf] %vm227_vm0, %v768_v63 }
  0xb0   : > { %v1258_v6 = vpop.permute.xlu0 %1257  ;;  %v1408_v36 = vld [vmem:[#allocation2 + $0x60] sm:$0xe]  ;;  %799 = vst.msk [vmem:[#allocation3 + $0x2c] sm:$0xf] %vm227_vm0, %v767_v15  ;;  %v766_v56 = vld [vmem:[#allocation2 + $0x3c] sm:$0xf]  ;;  %v1496_v28 = vsel %vm5489_vm13, %v1494_v19, %v1495_v22 }
  0xb1   : > { %1353 = vst.msk [vmem:[#allocation3 + $0x4] sm:$0xf] %vm1351_vm14, %v1258_v6  ;;  %1307 = vrot.lane.b32.xlu2 %v1196_v47, %s4750_s16  ;;  %v1523_v62 = vrot.slane %v1401_v54, 5  ;;  %v4421_v49 = vrot.slane %v1408_v36, 9  ;;  %v1541_v53 = vrot.slane %v5579_v37, 5 }
  0xb2   : > { %798 = vst.msk [vmem:[#allocation3 + $0x28] sm:$0xf] %vm227_vm0, %v766_v56  ;;  %v5590_v41 = vld [vmem:[#allocation2 + $0x70] sm:$0xf]  ;;  %v1393_v34 = vld [vmem:[#allocation2 + $0x24] sm:$0xe] }
  0xb3   : > { %1599 = vrot.lane.b32.xlu1 %v1493_v21, %s4751_s21  ;;  %v1524_v11 = vsel %vm5489_vm13, %v1522_v58, %v1523_v62  ;;  %v1405_v13 = vld [vmem:[#allocation2 + $0x54] sm:$0xe]  ;;  %v5596_v6 = vld [vmem:[#allocation2 + $0x58] sm:$0xf]  ;;  %v1542_v21 = vsel %vm5489_vm13, %v4421_v49, %v1541_v53  ;;  %v1548_v14 = vrot.slane %v5590_v41, 5  ;;  %v4416_v45 = vrot.slane %v1393_v34, 9 }
  0xb4   : > { %1609 = vrot.lane.b32.xlu0 %v1510_v17, %s4751_s21  ;;  %v771_v17 = vld [vmem:[#allocation2 + $0x58] sm:$0xf]  ;;  %v770_v4 = vld [vmem:[#allocation2 + $0x54] sm:$0xf]  ;;  %v769_v23 = vld [vmem:[#allocation2 + $0x4c] sm:$0xf] }
  0xb5   : > { %v1413_v57 = vld [vmem:[#allocation2 + $0x74] sm:$0x1]  ;;  %803 = vst.msk [vmem:[#allocation3 + $0x3c] sm:$0xf] %vm227_vm0, %v771_v17  ;;  %v4420_v33 = vrot.slane %v1405_v13, 9  ;;  %v1534_v61 = vrot.slane %v5596_v6, 5  ;;  %v1507_v12 = vsel %vm5489_vm13, %v4416_v45, %v1506_v55 }
  0xb6   : > { %802 = vst.msk [vmem:[#allocation3 + $0x38] sm:$0xf] %vm227_vm0, %v770_v4  ;;  %v1550_v24 = vrot.slane %v1548_v14, 4  ;;  %v1551_v32 = vrot.slane %v1413_v57, 5  ;;  %v1398_v9 = vld [vmem:[#allocation2 + $0x38] sm:$0x1] }
  0xb7   : > { %801 = vst.msk [vmem:[#allocation3 + $0x34] sm:$0xf] %vm227_vm0, %v769_v23  ;;  %v1410_v55 = vld [vmem:[#allocation2 + $0x68] sm:$0x1]  ;;  %v774_v7 = vld [vmem:[#allocation2 + $0x6c] sm:$0xf] }
  0xb8   : > { %v1552_v35 = vsel %vm5489_vm13, %v1550_v24, %v1551_v32  ;;  %v773_v38 = vld [vmem:[#allocation2 + $0x64] sm:$0xf]  ;;  %v1418_v3 = vld [vmem:[#allocation2 + $0x88] sm:$0xf]  ;;  %806 = vst.msk [vmem:[#allocation3 + $0x48] sm:$0xf] %vm227_vm0, %v774_v7 }
  0xb9   : > { %1313 = vrot.lane.b32.xlu2 %v1230_v42, %s4750_s16  ;;  %v1417_v0 = vld [vmem:[#allocation2 + $0x84] sm:$0xe]  ;;  %805 = vst.msk [vmem:[#allocation3 + $0x44] sm:$0xf] %vm227_vm0, %v773_v38  ;;  %v772_v30 = vld [vmem:[#allocation2 + $0x60] sm:$0xf] }
  0xba   : > { %v1543_v59 = vrot.slane %v1541_v53, 4  ;;  %v1544_v51 = vrot.slane %v1410_v55, 5  ;;  %804 = vst.msk [vmem:[#allocation3 + $0x40] sm:$0xf] %vm227_vm0, %v772_v30  ;;  %v4424_v26 = vrot.slane %v1417_v0, 9  ;;  %v1562_v46 = vrot.slane %v1418_v3, 5 }
  0xbb   : > { %1605 = vrot.lane.b32.xlu1 %v1503_v5, %s4751_s21  ;;  %v1535_v5 = vsel %vm5489_vm13, %v4420_v33, %v1534_v61  ;;  %v5640_v54 = vld [vmem:[#allocation2 + $0x7c] sm:$0xf]  ;;  %v776_v37 = vld [vmem:[#allocation2 + $0x78] sm:$0xf]  ;;  %v775_v49 = vld [vmem:[#allocation2 + $0x70] sm:$0xf] }
  0xbc   : > { %1615 = vrot.lane.b32.xlu0 %v1521_v39, %s4751_s21  ;;  %v1516_v39 = vrot.slane %v1398_v9, 5  ;;  %v1545_v22 = vsel %vm5489_vm13, %v1543_v59, %v1544_v51  ;;  %v1563_v63 = vsel %vm5489_vm13, %v4424_v26, %v1562_v46  ;;  %v777_v36 = vld [vmem:[#allocation2 + $0x7c] sm:$0xf]  ;;  %v1422_v58 = vld [vmem:[#allocation2 + $0x98] sm:$0x1]  ;;  %v1564_v33 = vrot.slane %v1562_v46, 4 }
  0xbd   : > { %809 = vst.msk [vmem:[#allocation3 + $0x54] sm:$0xf] %vm227_vm0, %v777_v36  ;;  %v1407_v34 = vld [vmem:[#allocation2 + $0x5c] sm:$0x1]  ;;  %v780_v4 = vld [vmem:[#allocation2 + $0x90] sm:$0xf] }
  0xbe   : > { %v1517_v16 = vsel %vm5489_vm13, %v1515_v29, %v1516_v39  ;;  %808 = vst.msk [vmem:[#allocation3 + $0x50] sm:$0xf] %vm227_vm0, %v776_v37  ;;  %v1537_v17 = vrot.slane %v1407_v34, 5  ;;  %v779_v45 = vld [vmem:[#allocation2 + $0x88] sm:$0xf] }
  0xbf   : > { %v1264_v25 = vpop.permute.xlu2 %1263  ;;  %807 = vst.msk [vmem:[#allocation3 + $0x4c] sm:$0xf] %vm227_vm0, %v775_v49  ;;  %v1426_v57 = vld [vmem:[#allocation2 + $0xa8] sm:$0xe]  ;;  %v1427_v23 = vld [vmem:[#allocation2 + $0xac] sm:$0xf] }
  0xc0   : > { %1356 = vst.msk [vmem:[#allocation3 + $0x10] sm:$0xf] %vm1351_vm14, %v1264_v25  ;;  %v5634_v25 = vld [vmem:[#allocation2 + $0x94] sm:$0xf]  ;;  %v4427_v32 = vrot.slane %v1426_v57, 9  ;;  %v1583_v9 = vrot.slane %v1427_v23, 5 }
  0xc1   : > { %1595 = vrot.lane.b32.xlu2 %v1486_v48, %s4751_s21  ;;  %v1569_v15 = vrot.slane %v5634_v25, 5  ;;  %812 = vst.msk [vmem:[#allocation3 + $0x60] sm:$0xf] %vm227_vm0, %v780_v4  ;;  %v1423_v39 = vld [vmem:[#allocation2 + $0x9c] sm:$0xe] }
  0xc2   : > { %811 = vst.msk [vmem:[#allocation3 + $0x5c] sm:$0xf] %vm227_vm0, %v779_v45  ;;  %v1584_v55 = vsel %vm5489_vm13, %v4427_v32, %v1583_v9  ;;  %v783_v38 = vld [vmem:[#allocation2 + $0xa0] sm:$0xf]  ;;  %v782_v0 = vld [vmem:[#allocation2 + $0x9c] sm:$0xf] }
  0xc3   : > { %1611 = vrot.lane.b32.xlu1 %v1514_v43, %s4751_s21  ;;  %v1402_v43 = vld [vmem:[#allocation2 + $0x48] sm:$0xe]  ;;  %v1431_v30 = vld [vmem:[#allocation2 + $0xbc] sm:$0x1]  ;;  %815 = vst.msk [vmem:[#allocation3 + $0x6c] sm:$0xf] %vm227_vm0, %v783_v38 }
  0xc4   : > { %1621 = vrot.lane.b32.xlu0 %v1531_v44, %s4751_s21  ;;  %v1414_v44 = vld [vmem:[#allocation2 + $0x78] sm:$0xe]  ;;  %v4419_v56 = vrot.slane %v1402_v43, 9  ;;  %814 = vst.msk [vmem:[#allocation3 + $0x68] sm:$0xf] %vm227_vm0, %v782_v0  ;;  %v4426_v51 = vrot.slane %v1423_v39, 9 }
  0xc5   : > { %v4423_v62 = vrot.slane %v1414_v44, 9  ;;  %v781_v26 = vld [vmem:[#allocation2 + $0x94] sm:$0xf]  ;;  %v1428_v41 = vld [vmem:[#allocation2 + $0xb0] sm:$0x1] }
  0xc6   : > { %v1260_v1 = vpop.permute.xlu1 %1259  ;;  %813 = vst.msk [vmem:[#allocation3 + $0x64] sm:$0xf] %vm227_vm0, %v781_v26  ;;  %v786_v36 = vld [vmem:[#allocation2 + $0xb4] sm:$0xf]  ;;  %v785_v37 = vld [vmem:[#allocation2 + $0xac] sm:$0xf] }
  0xc7   : > { %1354 = vst.msk [vmem:[#allocation3 + $0x8] sm:$0xf] %vm1351_vm14, %v1260_v1  ;;  %v1266_v8 = vpop.permute.xlu2 %1265  ;;  %v1555_v1 = vrot.slane %v5640_v54, 5  ;;  %v784_v49 = vld [vmem:[#allocation2 + $0xa8] sm:$0xf] }
  0xc8   : > { %v1268_v47 = vpop.permute.xlu0 %1267  ;;  %1357 = vst.msk [vmem:[#allocation3 + $0x14] sm:$0xf] %vm1351_vm14, %v1266_v8  ;;  %v1572_v8 = vrot.slane %v1422_v58, 5  ;;  %v1585_v58 = vrot.slane %v1583_v9, 4  ;;  %v1420_v54 = vld [vmem:[#allocation2 + $0x90] sm:$0xe] }
  0xc9   : > { %1358 = vst.msk [vmem:[#allocation3 + $0x18] sm:$0xf] %vm1351_vm14, %v1268_v47  ;;  %1601 = vrot.lane.b32.xlu2 %v1496_v28, %s4751_s21  ;;  %v1571_v28 = vrot.slane %v1569_v15, 4  ;;  %v1528_v47 = vsel %vm5489_vm13, %v4419_v56, %v1527_v50  ;;  %v1556_v13 = vsel %vm5489_vm13, %v4423_v62, %v1555_v1  ;;  %v1419_v50 = vld [vmem:[#allocation2 + $0x8c] sm:$0x1]  ;;  %v1586_v62 = vrot.slane %v1428_v41, 5 }
  0xca   : > { %818 = vst.msk [vmem:[#allocation3 + $0x78] sm:$0xf] %vm227_vm0, %v786_v36  ;;  %v1726_v34 = vld [vmem:[#allocation2 + $0x18] sm:$0xf]  ;;  %v1729_v4 = vld [vmem:[#allocation2 + $0x28] sm:$0xf] }
  0xcb   : > { %1617 = vrot.lane.b32.xlu1 %v1524_v11, %s4751_s21  ;;  %v1573_v27 = vsel %vm5489_vm13, %v1571_v28, %v1572_v8  ;;  %817 = vst.msk [vmem:[#allocation3 + $0x74] sm:$0xf] %vm227_vm0, %v785_v37  ;;  %v1587_v8 = vsel %vm5489_vm13, %v1585_v58, %v1586_v62 }
  0xcc   : > { %1627 = vrot.lane.b32.xlu0 %v1542_v21, %s4751_s21  ;;  %v1536_v21 = vrot.slane %v1534_v61, 4  ;;  %v1565_v61 = vrot.slane %v1419_v50, 5  ;;  %816 = vst.msk [vmem:[#allocation3 + $0x70] sm:$0xf] %vm227_vm0, %v784_v49  ;;  %v1724_v50 = vld [vmem:[#allocation2 + $0xc] sm:$0xf] }
  0xcd   : > { %v1742_v49 = vld [vmem:[#allocation2 + $0x78] sm:$0xf] }
  0xce   : > { %v1262_v52 = vpop.permute.xlu1 %1261  ;;  %v1566_v29 = vsel %vm5489_vm13, %v1564_v33, %v1565_v61  ;;  %v1429_v33 = vld [vmem:[#allocation2 + $0xb4] sm:$0xe]  ;;  %v1727_v61 = vld [vmem:[#allocation2 + $0x1c] sm:$0xf] }
  0xcf   : > { %1355 = vst.msk [vmem:[#allocation3 + $0xc] sm:$0xf] %vm1351_vm14, %v1262_v52  ;;  %v778_v52 = vld [vmem:[#allocation2 + $0x84] sm:$0xf] }
  0xd0   : > { %v1272_v42 = vpop.permute.xlu2 %1271  ;;  %v1274_v40 = vpop.permute.xlu0 %1273  ;;  %810 = vst.msk [vmem:[#allocation3 + $0x58] sm:$0xf] %vm227_vm0, %v778_v52  ;;  %v1732_v52 = vld [vmem:[#allocation2 + $0x3c] sm:$0xf] }
  0xd1   : > { %1360 = vst.msk [vmem:[#allocation3 + $0x20] sm:$0xf] %vm1351_vm14, %v1272_v42  ;;  %1607 = vrot.lane.b32.xlu2 %v1507_v12, %s4751_s21  ;;  %v1538_v12 = vsel %vm5489_vm13, %v1536_v21, %v1537_v17  ;;  %v5677_v42 = vld [vmem:[#allocation2 + $0xb8] sm:$0xf] }
  0xd2   : > { %1361 = vst.msk [vmem:[#allocation3 + $0x24] sm:$0xf] %vm1351_vm14, %v1274_v40  ;;  %v1411_v40 = vld [vmem:[#allocation2 + $0x6c] sm:$0xe]  ;;  %v1590_v7 = vrot.slane %v5677_v42, 5 }
  0xd3   : > { %1623 = vrot.lane.b32.xlu1 %v1535_v5, %s4751_s21  ;;  %v4422_v3 = vrot.slane %v1411_v40, 9  ;;  %v1730_v40 = vld [vmem:[#allocation2 + $0x30] sm:$0xf] }
  0xd4   : > { %1633 = vrot.lane.b32.xlu0 %v1552_v35, %s4751_s21  ;;  %v5683_v35 = vld [vmem:[#allocation2 + $0xa0] sm:$0xf]  ;;  %v1725_v42 = vld [vmem:[#allocation2 + $0x10] sm:$0xf] }
  0xd5   : > { %v1549_v43 = vsel %vm5489_vm13, %v4422_v3, %v1548_v14  ;;  %v1557_v14 = vrot.slane %v1555_v1, 4  ;;  %v1728_v3 = vld [vmem:[#allocation2 + $0x24] sm:$0xf] }
  0xd6   : > { %v1270_v18 = vpop.permute.xlu1 %1269 }
  0xd7   : > { %1359 = vst.msk [vmem:[#allocation3 + $0x1c] sm:$0xf] %vm1351_vm14, %v1270_v18  ;;  %v1576_v18 = vrot.slane %v5683_v35, 5 }
  0xd8   : > { %v1278_v48 = vpop.permute.xlu2 %1277  ;;  %v1280_v19 = vpop.permute.xlu0 %1279 }
  0xd9   : > { %1363 = vst.msk [vmem:[#allocation3 + $0x2c] sm:$0xf] %vm1351_vm14, %v1278_v48  ;;  %1613 = vrot.lane.b32.xlu2 %v1517_v16, %s4751_s21  ;;  %v1592_v16 = vrot.slane %v1590_v7, 4  ;;  %v1593_v48 = vrot.slane %v1431_v30, 5  ;;  %v1577_v44 = vsel %vm5489_vm13, %v4426_v51, %v1576_v18  ;;  %v1578_v57 = vrot.slane %v1576_v18, 4 }
  0xda   : > { %1364 = vst.msk [vmem:[#allocation3 + $0x30] sm:$0xf] %vm1351_vm14, %v1280_v19  ;;  %v1416_v19 = vld [vmem:[#allocation2 + $0x80] sm:$0x1]  ;;  %v1741_v51 = vld [vmem:[#allocation2 + $0x70] sm:$0xf] }
  0xdb   : > { %1629 = vrot.lane.b32.xlu1 %v1545_v22, %s4751_s21  ;;  %v1558_v56 = vrot.slane %v1416_v19, 5 }
  0xdc   : > { %1639 = vrot.lane.b32.xlu0 %v1563_v63, %s4751_s21  ;;  %v1594_v63 = vsel %vm5489_vm13, %v1592_v16, %v1593_v48  ;;  %v313_v48 = vld [vmem:[%s4870_s20 + $0x78] sm:$0xf] }
  0xdd   : > { %v1559_v28 = vsel %vm5489_vm13, %v1557_v14, %v1558_v56  ;;  %v574_v19 = vshrl.u32 %v313_v48, 16  ;;  %v749_v14 = vld [vmem:[#allocation2 + $0xc0] sm:$0xf]  ;;  %v1734_v56 = vld [vmem:[#allocation2 + $0x48] sm:$0xf] }
  0xde   : > { %v1276_v53 = vpop.permute.xlu1 %1275 }
  0xdf   : > { %1362 = vst.msk [vmem:[#allocation3 + $0x28] sm:$0xf] %vm1351_vm14, %v1276_v53 }
  0xe0   : > { %v1286_v11 = vpop.permute.xlu0 %1285 }
  0xe1   : > { %1367 = vst.msk [vmem:[#allocation3 + $0x3c] sm:$0xf] %vm1351_vm14, %v1286_v11  ;;  %1619 = vrot.lane.b32.xlu2 %v1528_v47, %s4751_s21  ;;  %v4425_v47 = vrot.slane %v1420_v54, 9 }
  0xe3   : > { %1635 = vrot.lane.b32.xlu1 %v1556_v13, %s4751_s21  ;;  %v787_v13 = vld [vmem:[#allocation2 + $0xb8] sm:$0xf]  ;;  %v1570_v21 = vsel %vm5489_vm13, %v4425_v47, %v1569_v15  ;;  %v1750_v47 = vld [vmem:[#allocation2 + $0xa8] sm:$0xf] }
  0xe4   : > { %1645 = vrot.lane.b32.xlu0 %v1573_v27, %s4751_s21  ;;  %819 = vst.msk [vmem:[#allocation3 + $0x7c] sm:$0xf] %vm227_vm0, %v787_v13  ;;  %v1425_v27 = vld [vmem:[#allocation2 + $0xa4] sm:$0x1] }
  0xe5   : > { %v1284_v6 = vpop.permute.xlu2 %1283  ;;  %v1579_v23 = vrot.slane %v1425_v27, 5 }
  0xe6   : > { %1366 = vst.msk [vmem:[#allocation3 + $0x38] sm:$0xf] %vm1351_vm14, %v1284_v6  ;;  %v1282_v24 = vpop.permute.xlu1 %1281 }
  0xe7   : > { %1365 = vst.msk [vmem:[#allocation3 + $0x34] sm:$0xf] %vm1351_vm14, %v1282_v24  ;;  %v1580_v25 = vsel %vm5489_vm13, %v1578_v57, %v1579_v23  ;;  %v4428_v24 = vrot.slane %v1429_v33, 9  ;;  %v1921_v23 = vld [vmem:[#allocation2 + $0x1c] sm:$0xf] }
  0xe8   : > { %v1292_v5 = vpop.permute.xlu0 %1291 }
  0xe9   : > { %1370 = vst.msk [vmem:[#allocation3 + $0x48] sm:$0xf] %vm1351_vm14, %v1292_v5  ;;  %1625 = vrot.lane.b32.xlu2 %v1538_v12, %s4751_s21  ;;  %v1591_v9 = vsel %vm5489_vm13, %v4428_v24, %v1590_v7  ;;  %v1735_v5 = vld [vmem:[#allocation2 + $0x4c] sm:$0xf]  ;;  %v1738_v7 = vld [vmem:[#allocation2 + $0x60] sm:$0xf] }
  0xea   : > { %v2003_v24 = vshrl.u32 %v1921_v23, 16 }
  0xeb   : > { %1641 = vrot.lane.b32.xlu1 %v1566_v29, %s4751_s21 }
  0xec   : > { %1651 = vrot.lane.b32.xlu0 %v1584_v55, %s4751_s21  ;;  %v1733_v55 = vld [vmem:[#allocation2 + $0x40] sm:$0xf] }
  0xed   : > { %v1290_v59 = vpop.permute.xlu2 %1289 }
  0xee   : > { %1369 = vst.msk [vmem:[#allocation3 + $0x44] sm:$0xf] %vm1351_vm14, %v1290_v59  ;;  %v1288_v46 = vpop.permute.xlu1 %1287  ;;  %v1736_v59 = vld [vmem:[#allocation2 + $0x54] sm:$0xf] }
  0xef   : > { %1368 = vst.msk [vmem:[#allocation3 + $0x40] sm:$0xf] %vm1351_vm14, %v1288_v46  ;;  %v1731_v46 = vld [vmem:[#allocation2 + $0x34] sm:$0xf] }
  0xf0   : > { %v1298_v22 = vpop.permute.xlu0 %1297 }
  0xf1   : > { %1373 = vst.msk [vmem:[#allocation3 + $0x54] sm:$0xf] %vm1351_vm14, %v1298_v22  ;;  %1631 = vrot.lane.b32.xlu2 %v1549_v43, %s4751_s21  ;;  %v1739_v43 = vld [vmem:[#allocation2 + $0x64] sm:$0xf] }
  0xf2   : > { %v1744_v22 = vld [vmem:[#allocation2 + $0x84] sm:$0xf] }
  0xf3   : > { %1647 = vrot.lane.b32.xlu1 %v1577_v44, %s4751_s21  ;;  %v577_v44 = vshll.u32 %v313_v48, 16 }
  0xf4   : > { %1657 = vrot.lane.b32.xlu0 %v1594_v63, %s4751_s21  ;;  %v5769_v63 = vrot.slane %v574_v19, 7  ;;  %v1923_v19 = vld [vmem:[#allocation2 + $0x24] sm:$0xf] }
  0xf6   : > { %v1294_v53 = vpop.permute.xlu1 %1293  ;;  %v579_v36 = vor.u32 %v577_v44, %v5769_v63 }
  0xf7   : > { %1371 = vst.msk [vmem:[#allocation3 + $0x4c] sm:$0xf] %vm1351_vm14, %v1294_v53  ;;  %v1747_v53 = vld [vmem:[#allocation2 + $0x94] sm:$0xf] }
  0xf8   : > { %v1304_v1 = vpop.permute.xlu0 %1303  ;;  %v750_v62 = vsel %vm4972_vm8, %v579_v36, %v749_v14  ;;  %v1927_v14 = vld [vmem:[#allocation2 + $0x34] sm:$0xf]  ;;  %vm4059_vm8 = vcmask 588800  }
  0xf9   : > { %1376 = vst.msk [vmem:[#allocation3 + $0x60] sm:$0xf] %vm1351_vm14, %v1304_v1  ;;  %1637 = vrot.lane.b32.xlu2 %v1559_v28, %s4751_s21 }
  0xfa   : > { %751 = vst [vmem:[#allocation2 + $0xc0] sm:$0xf] %v750_v62 }
  0xfb   : > { %v1296_v11 = vpop.permute.xlu2 %1295  ;;  %1653 = vrot.lane.b32.xlu1 %v1587_v8, %s4751_s21  ;;  %v1917_v8 = vld [vmem:[#allocation2 + $0xc] sm:$0xf] }
  0xfc   : > { %1372 = vst.msk [vmem:[#allocation3 + $0x50] sm:$0xf] %vm1351_vm14, %v1296_v11  ;;  %1792 = vrot.lane.b32.xlu0 %v1726_v34, %s4752_s22  ;;  %v1745_v34 = vld [vmem:[#allocation2 + $0x88] sm:$0xf]  ;;  %v1966_v11 = vshrl.u32 %v1917_v8, 16  ;;  %v1969_v13 = vshll.u32 %v1917_v8, 16 }
  0xfe   : > { %v1971_v57 = vrot.slane %v1969_v13, 5 }
 0x100   : > { %v1300_v17 = vpop.permute.xlu1 %1299 }
 0x101   : > { %1374 = vst.msk [vmem:[#allocation3 + $0x58] sm:$0xf] %vm1351_vm14, %v1300_v17  ;;  %1643 = vrot.lane.b32.xlu2 %v1570_v21, %s4751_s21  ;;  %v314_v21 = vld [vmem:[%s4870_s20 + $0x7c] sm:$0xf]  ;;  %s6742_s20 = scalar_lea.vmem %s6818_s3, %s4559_s17 }
 0x102   : > { %v582_v17 = vshrl.u32 %v314_v21, 16  ;;  %v585_v33 = vshll.u32 %v314_v21, 16 }
 0x103   : > { %v1310_v45 = vpop.permute.xlu0 %1309  ;;  %v1302_v6 = vpop.permute.xlu2 %1301  ;;  %1788 = vrot.lane.b32.xlu1 %v1724_v50, %s4752_s22 }
 0x104   : > { %1379 = vst.msk [vmem:[#allocation3 + $0x6c] sm:$0xf] %vm1351_vm14, %v1310_v45  ;;  %1798 = vrot.lane.b32.xlu0 %v1729_v4, %s4752_s22  ;;  %v1740_v4 = vld [vmem:[#allocation2 + $0x6c] sm:$0xf]  ;;  %v1968_v45 = vrot.slane %v1966_v11, 4 }
 0x105   : > { %1375 = vst.msk [vmem:[#allocation3 + $0x5c] sm:$0xf] %vm1351_vm14, %v1302_v6 }
 0x108   : > { %v1306_v15 = vpop.permute.xlu1 %1305 }
 0x109   : > { %1377 = vst.msk [vmem:[#allocation3 + $0x64] sm:$0xf] %vm1351_vm14, %v1306_v15  ;;  %1649 = vrot.lane.b32.xlu2 %v1580_v25, %s4751_s21  ;;  %v1918_v25 = vld [vmem:[#allocation2 + $0x10] sm:$0xf]  ;;  %v5791_v15 = vrot.slane %v582_v17, 7 }
 0x10b   : > { %v1308_v32 = vpop.permute.xlu2 %1307  ;;  %1794 = vrot.lane.b32.xlu1 %v1727_v61, %s4752_s22  ;;  %v1748_v61 = vld [vmem:[#allocation2 + $0x9c] sm:$0xf] }
 0x10c   : > { %1378 = vst.msk [vmem:[#allocation3 + $0x68] sm:$0xf] %vm1351_vm14, %v1308_v32  ;;  %1804 = vrot.lane.b32.xlu0 %v1732_v52, %s4752_s22  ;;  %v1999_v52 = vshll.u32 %v1921_v23, 16  ;;  %v580_v32 = vrot.slane %v5769_v63, 4 }
 0x10e   : > { %v1316_v12 = vpop.permute.xlu0 %1315 }
 0x10f   : > { %1382 = vst.msk [vmem:[#allocation3 + $0x78] sm:$0xf] %vm1351_vm14, %v1316_v12  ;;  %v1972_v12 = vor.u32 %v1971_v57, %v1968_v45  ;;  %v5822_v45 = vld [vmem:[#allocation2 + $0x28] sm:$0xf] }
 0x111   : > { %1655 = vrot.lane.b32.xlu2 %v1591_v9, %s4751_s21  ;;  %v1753_v9 = vld [vmem:[#allocation2 + $0xb8] sm:$0xf] }
 0x113   : > { %v1314_v29 = vpop.permute.xlu2 %1313  ;;  %1800 = vrot.lane.b32.xlu1 %v1730_v40, %s4752_s22  ;;  %v1975_v40 = vshll.u32 %v1918_v25, 16 }
 0x114   : > { %1381 = vst.msk [vmem:[#allocation3 + $0x74] sm:$0xf] %vm1351_vm14, %v1314_v29  ;;  %1810 = vrot.lane.b32.xlu0 %v1735_v5, %s4752_s22  ;;  %v587_v5 = vor.u32 %v585_v33, %v5791_v15 }
 0x115   : > { %v1312_v39 = vpop.permute.xlu1 %1311 }
 0x116   : > { %1380 = vst.msk [vmem:[#allocation3 + $0x70] sm:$0xf] %vm1351_vm14, %v1312_v39  ;;  %v1598_v35 = vpop.permute.xlu0 %1597  ;;  %v5800_v39 = vrot.slane %v1999_v52, 5  ;;  %v1749_v52 = vld [vmem:[#allocation2 + $0xa0] sm:$0xf] }
 0x117   : > { %1693 = vst.msk [vmem:[#allocation3 + $0x4] sm:$0xf] %vm1691_vm15, %v1598_v35  ;;  %v588_v35 = vsel %vm4986_vm9, %v580_v32, %v587_v5 }
 0x118   : > { %752 = vst.msk [vmem:[#allocation2 + $0xc4] sm:$0xf] %vm227_vm0, %v588_v35  ;;  %vm1884_vm0 = vcmask 257216  }
 0x119   : > { %1790 = vrot.lane.b32.xlu2 %v1725_v42, %s4752_s22  ;;  %v2005_v42 = vrot.slane %v2003_v24, 4 }
 0x11b   : > { %v1596_v38 = vpop.permute.xlu2 %1595  ;;  %1806 = vrot.lane.b32.xlu1 %v1733_v55, %s4752_s22 }
 0x11c   : > { %1692 = vst.msk [vmem:[#allocation3] sm:$0xf] %vm1691_vm15, %v1596_v38  ;;  %1816 = vrot.lane.b32.xlu0 %v1738_v7, %s4752_s22  ;;  %v1973_v7 = vrot.slane %v1972_v12, 4  ;;  %v1977_v38 = vrot.slane %v1975_v40, 5  ;;  %v2051_v12 = vshrl.u32 %v1927_v14, 16  ;;  %v2023_v40 = vshll.u32 %v5822_v45, 16 }
 0x11d   : > { %v1318_v0 = vpop.permute.xlu1 %1317 }
 0x11e   : > { %1383 = vst.msk [vmem:[#allocation3 + $0x7c] sm:$0xf] %vm1351_vm14, %v1318_v0  ;;  %v1604_v30 = vpop.permute.xlu0 %1603  ;;  %v1922_v0 = vld [vmem:[#allocation2 + $0x20] sm:$0x1]  ;;  %v1978_v2 = vsel %vm4826_vm3, %v1973_v7, %v1977_v38 }
 0x11f   : > { %1696 = vst.msk [vmem:[#allocation3 + $0x10] sm:$0xf] %vm1691_vm15, %v1604_v30 }
 0x121   : > { %1796 = vrot.lane.b32.xlu2 %v1728_v3, %s4752_s22  ;;  %v1743_v3 = vld [vmem:[#allocation2 + $0x7c] sm:$0xf] }
 0x123   : > { %v1602_v18 = vpop.permute.xlu2 %1601  ;;  %1812 = vrot.lane.b32.xlu1 %v1736_v59, %s4752_s22  ;;  %v1926_v59 = vld [vmem:[#allocation2 + $0x30] sm:$0xf] }
 0x124   : > { %1695 = vst.msk [vmem:[#allocation3 + $0xc] sm:$0xf] %vm1691_vm15, %v1602_v18  ;;  %1822 = vrot.lane.b32.xlu0 %v1741_v51, %s4752_s22  ;;  %v1751_v51 = vld [vmem:[#allocation2 + $0xac] sm:$0xf]  ;;  %v1979_v18 = vshrl.u32 %v1918_v25, 16  ;;  %v2041_v48 = vshll.u32 %v1926_v59, 16 }
 0x125   : > { %v1600_v26 = vpop.permute.xlu1 %1599 }
 0x126   : > { %1694 = vst.msk [vmem:[#allocation3 + $0x8] sm:$0xf] %vm1691_vm15, %v1600_v26  ;;  %v1610_v16 = vpop.permute.xlu0 %1609  ;;  %v2006_v26 = vor.u32 %v2005_v42, %v5800_v39 }
 0x127   : > { %1699 = vst.msk [vmem:[#allocation3 + $0x1c] sm:$0xf] %vm1691_vm15, %v1610_v16  ;;  %v2038_v16 = vshrl.u32 %v1926_v59, 16  ;;  %v2053_v59 = vrot.slane %v2051_v12, 4 }
 0x128   : > { %v2007_v44 = vrot.slane %v2006_v26, 4 }
 0x129   : > { %1802 = vrot.lane.b32.xlu2 %v1731_v46, %s4752_s22  ;;  %v2009_v46 = vshll.u32 %v1922_v0, 16 }
 0x12b   : > { %v1608_v41 = vpop.permute.xlu2 %1607  ;;  %1818 = vrot.lane.b32.xlu1 %v1739_v43, %s4752_s22  ;;  %v2011_v63 = vrot.slane %v2009_v46, 5  ;;  %v1932_v46 = vld [vmem:[#allocation2 + $0x48] sm:$0xf] }
 0x12c   : > { %1698 = vst.msk [vmem:[#allocation3 + $0x18] sm:$0xf] %vm1691_vm15, %v1608_v41  ;;  %1828 = vrot.lane.b32.xlu0 %v1744_v22, %s4752_s22  ;;  %v1746_v22 = vld [vmem:[#allocation2 + $0x90] sm:$0xf]  ;;  %v1981_v41 = vrot.slane %v1979_v18, 4 }
 0x12d   : > { %v1606_v37 = vpop.permute.xlu1 %1605 }
 0x12e   : > { %1697 = vst.msk [vmem:[#allocation3 + $0x14] sm:$0xf] %vm1691_vm15, %v1606_v37  ;;  %v1616_v58 = vpop.permute.xlu0 %1615  ;;  %v1919_v37 = vld [vmem:[#allocation2 + $0x14] sm:$0x1] }
 0x12f   : > { %1702 = vst.msk [vmem:[#allocation3 + $0x28] sm:$0xf] %vm1691_vm15, %v1616_v58  ;;  %v2043_v58 = vrot.slane %v2041_v48, 5  ;;  %v1985_v8 = vshll.u32 %v1919_v37, 16 }
 0x131   : > { %1808 = vrot.lane.b32.xlu2 %v1734_v56, %s4752_s22  ;;  %v2040_v56 = vrot.slane %v2038_v16, 4  ;;  %v1752_v16 = vld [vmem:[#allocation2 + $0xb4] sm:$0xf] }
 0x133   : > { %v1614_v28 = vpop.permute.xlu2 %1613  ;;  %1824 = vrot.lane.b32.xlu1 %v1742_v49, %s4752_s22  ;;  %v2014_v49 = vshrl.u32 %v1923_v19, 16 }
 0x134   : > { %1701 = vst.msk [vmem:[#allocation3 + $0x24] sm:$0xf] %vm1691_vm15, %v1614_v28  ;;  %1834 = vrot.lane.b32.xlu0 %v1747_v53, %s4752_s22  ;;  %v2017_v53 = vshll.u32 %v1923_v19, 16  ;;  %v1930_v28 = vld [vmem:[#allocation2 + $0x40] sm:$0xf] }
 0x135   : > { %v1612_v54 = vpop.permute.xlu1 %1611  ;;  %v2071_v11 = vshll.u32 %v1930_v28, 16  ;;  %v2075_v13 = vshrl.u32 %v1930_v28, 16  ;;  %v2016_v21 = vrot.slane %v2014_v49, 4  ;;  %v1936_v19 = vld [vmem:[#allocation2 + $0x58] sm:$0xf] }
 0x136   : > { %1700 = vst.msk [vmem:[#allocation3 + $0x20] sm:$0xf] %vm1691_vm15, %v1612_v54  ;;  %v1622_v1 = vpop.permute.xlu0 %1621  ;;  %v1754_v54 = vld [vmem:[#allocation2 + $0xc0] sm:$0xf]  ;;  %v2019_v17 = vrot.slane %v2017_v53, 5  ;;  %v2119_v49 = vshll.u32 %v1936_v19, 16 }
 0x137   : > { %1705 = vst.msk [vmem:[#allocation3 + $0x34] sm:$0xf] %vm1691_vm15, %v1622_v1  ;;  %v1982_v1 = vor.u32 %v1981_v41, %v1977_v38  ;;  %v5824_v25 = vrot.slane %v2071_v11, 5  ;;  %v2077_v33 = vrot.slane %v2075_v13, 4  ;;  %v1939_v41 = vld [vmem:[#allocation2 + $0x64] sm:$0xf] }
 0x138   : > { %v2020_v32 = vor.u32 %v2019_v17, %v2016_v21  ;;  %v2143_v28 = vshll.u32 %v1939_v41, 16  ;;  %v5851_v17 = vrot.slane %v2119_v49, 5 }
 0x139   : > { %1814 = vrot.lane.b32.xlu2 %v1737_v60, %s4752_s22  ;;  %v2012_v60 = vsel %vm4826_vm3, %v2007_v44, %v2011_v63 }
 0x13a   : > { %v2021_v38 = vrot.slane %v2020_v32, 4  ;;  %v2123_v32 = vshrl.u32 %v1936_v19, 16 }
 0x13b   : > { %v1620_v27 = vpop.permute.xlu2 %1619  ;;  %1830 = vrot.lane.b32.xlu1 %v1745_v34, %s4752_s22  ;;  %v2044_v34 = vor.u32 %v2043_v58, %v2040_v56  ;;  %v2089_v56 = vshll.u32 %v1932_v46, 16 }
 0x13c   : > { %1704 = vst.msk [vmem:[#allocation3 + $0x30] sm:$0xf] %vm1691_vm15, %v1620_v27  ;;  %1840 = vrot.lane.b32.xlu0 %v1750_v47, %s4752_s22  ;;  %v2047_v47 = vshll.u32 %v1927_v14, 16  ;;  %v2086_v14 = vshrl.u32 %v1932_v46, 16  ;;  %v1937_v46 = vld [vmem:[#allocation2 + $0x5c] sm:$0x1] }
 0x13d   : > { %v1618_v50 = vpop.permute.xlu1 %1617  ;;  %v2045_v23 = vrot.slane %v2044_v34, 4  ;;  %v2091_v13 = vrot.slane %v2089_v56, 5  ;;  %v1945_v56 = vld [vmem:[#allocation2 + $0x7c] sm:$0xf] }
 0x13e   : > { %1703 = vst.msk [vmem:[#allocation3 + $0x2c] sm:$0xf] %vm1691_vm15, %v1618_v50  ;;  %v1628_v6 = vpop.permute.xlu0 %1627  ;;  %v1983_v50 = vrot.slane %v1982_v1, 4  ;;  %v2088_v11 = vrot.slane %v2086_v14, 4 }
 0x13f   : > { %1708 = vst.msk [vmem:[#allocation3 + $0x40] sm:$0xf] %vm1691_vm15, %v1628_v6  ;;  %v2049_v6 = vrot.slane %v2047_v47, 5 }
 0x141   : > { %1820 = vrot.lane.b32.xlu2 %v1740_v4, %s4752_s22  ;;  %v1987_v4 = vrot.slane %v1985_v8, 5  ;;  %v2050_v35 = vsel %vm4826_vm3, %v2045_v23, %v2049_v6  ;;  %v5856_v23 = vrot.slane %v2143_v28, 5 }
 0x143   : > { %v1626_v29 = vpop.permute.xlu2 %1625  ;;  %1836 = vrot.lane.b32.xlu1 %v1748_v61, %s4752_s22  ;;  %v1935_v61 = vld [vmem:[#allocation2 + $0x54] sm:$0xf]  ;;  %v1988_v5 = vsel %vm4826_vm3, %v1983_v50, %v1987_v4  ;;  %v2027_v50 = vshrl.u32 %v5822_v45, 16 }
 0x144   : > { %1707 = vst.msk [vmem:[#allocation3 + $0x3c] sm:$0xf] %vm1691_vm15, %v1626_v29  ;;  %1846 = vrot.lane.b32.xlu0 %v1753_v9, %s4752_s22  ;;  %v1931_v9 = vld [vmem:[#allocation2 + $0x44] sm:$0x1]  ;;  %v2110_v29 = vshrl.u32 %v1935_v61, 16  ;;  %v2113_v42 = vshll.u32 %v1935_v61, 16 }
 0x145   : > { %v1624_v55 = vpop.permute.xlu1 %1623  ;;  %v2081_v7 = vshll.u32 %v1931_v9, 16  ;;  %v2092_v9 = vor.u32 %v2091_v13, %v2088_v11 }
 0x146   : > { %1706 = vst.msk [vmem:[#allocation3 + $0x38] sm:$0xf] %vm1691_vm15, %v1624_v55  ;;  %v1634_v30 = vpop.permute.xlu0 %1633  ;;  %v2078_v55 = vor.u32 %v2077_v33, %v5824_v25  ;;  %v2112_v18 = vrot.slane %v2110_v29, 4  ;;  %v2115_v26 = vrot.slane %v2113_v42, 5 }
 0x147   : > { %1711 = vst.msk [vmem:[#allocation3 + $0x4c] sm:$0xf] %vm1691_vm15, %v1634_v30  ;;  %v1928_v30 = vld [vmem:[#allocation2 + $0x38] sm:$0x1] }
 0x148   : > { %v2079_v48 = vrot.slane %v2078_v55, 4  ;;  %v2057_v37 = vshll.u32 %v1928_v30, 16  ;;  %v2093_v30 = vrot.slane %v2092_v9, 4 }
 0x149   : > { %1826 = vrot.lane.b32.xlu2 %v1743_v3, %s4752_s22  ;;  %v5836_v3 = vrot.slane %v2023_v40, 5 }
 0x14a   : > { %v2059_v47 = vrot.slane %v2057_v37, 5 }
 0x14b   : > { %v1632_v43 = vpop.permute.xlu2 %1631  ;;  %1842 = vrot.lane.b32.xlu1 %v1751_v51, %s4752_s22  ;;  %v1920_v51 = vld [vmem:[#allocation2 + $0x18] sm:$0xf]  ;;  %v2026_v58 = vsel %vm4826_vm3, %v2021_v38, %v5836_v3  ;;  %v2029_v38 = vrot.slane %v2027_v50, 4 }
 0x14c   : > { %1710 = vst.msk [vmem:[#allocation3 + $0x48] sm:$0xf] %vm1691_vm15, %v1632_v43  ;;  %2349 = vrot.lane.b32.xlu0 %v1978_v2, %s4753_s23  ;;  %v2083_v43 = vrot.slane %v2081_v7, 5  ;;  %v1990_v44 = vshrl.u32 %v1920_v51, 16  ;;  %v1993_v63 = vshll.u32 %v1920_v51, 16 }
 0x14d   : > { %v1630_v36 = vpop.permute.xlu1 %1629 }
 0x14e   : > { %1709 = vst.msk [vmem:[#allocation3 + $0x44] sm:$0xf] %vm1691_vm15, %v1630_v36  ;;  %v1640_v62 = vpop.permute.xlu0 %1639  ;;  %v2054_v36 = vor.u32 %v2053_v59, %v2049_v6  ;;  %v2084_v53 = vsel %vm4826_vm3, %v2079_v48, %v2083_v43  ;;  %v1995_v1 = vrot.slane %v1993_v63, 5 }
 0x14f   : > { %1714 = vst.msk [vmem:[#allocation3 + $0x58] sm:$0xf] %vm1691_vm15, %v1640_v62  ;;  %v2116_v62 = vor.u32 %v2115_v26, %v2112_v18  ;;  %v2125_v18 = vrot.slane %v2123_v32, 4  ;;  %v1929_v26 = vld [vmem:[#allocation2 + $0x3c] sm:$0xf] }
 0x150   : > { %v2055_v34 = vrot.slane %v2054_v36, 4  ;;  %v2030_v36 = vor.u32 %v2029_v38, %v5836_v3  ;;  %v2062_v37 = vshrl.u32 %v1929_v26, 16  ;;  %v2065_v14 = vshll.u32 %v1929_v26, 16  ;;  %v1934_v38 = vld [vmem:[#allocation2 + $0x50] sm:$0x1] }
 0x151   : > { %1832 = vrot.lane.b32.xlu2 %v1746_v22, %s4752_s22  ;;  %v2117_v21 = vrot.slane %v2116_v62, 4  ;;  %v2129_v62 = vshll.u32 %v1937_v46, 16  ;;  %v1938_v46 = vld [vmem:[#allocation2 + $0x60] sm:$0xf] }
 0x152   : > { %v2060_v45 = vsel %vm4826_vm3, %v2055_v34, %v2059_v47  ;;  %v2064_v47 = vrot.slane %v2062_v37, 4  ;;  %v2067_v11 = vrot.slane %v2065_v14, 5  ;;  %v2134_v14 = vshrl.u32 %v1938_v46, 16 }
 0x153   : > { %v1638_v27 = vpop.permute.xlu2 %1637  ;;  %1848 = vrot.lane.b32.xlu1 %v1754_v54, %s4752_s22  ;;  %v2147_v54 = vshrl.u32 %v1939_v41, 16  ;;  %v2122_v40 = vsel %vm4826_vm3, %v2117_v21, %v5851_v17 }
 0x154   : > { %1713 = vst.msk [vmem:[#allocation3 + $0x54] sm:$0xf] %vm1691_vm15, %v1638_v27  ;;  %2355 = vrot.lane.b32.xlu0 %v2012_v60, %s4753_s23  ;;  %v1992_v60 = vrot.slane %v1990_v44, 4  ;;  %v5853_v27 = vld [vmem:[#allocation2 + $0x4c] sm:$0xf] }
 0x155   : > { %v1636_v57 = vpop.permute.xlu1 %1635  ;;  %v2149_v6 = vrot.slane %v2147_v54, 4  ;;  %v2095_v12 = vshll.u32 %v5853_v27, 16  ;;  %v1948_v44 = vld [vmem:[#allocation2 + $0x88] sm:$0xf] }
 0x156   : > { %1712 = vst.msk [vmem:[#allocation3 + $0x50] sm:$0xf] %vm1691_vm15, %v1636_v57  ;;  %v1646_v24 = vpop.permute.xlu0 %1645  ;;  %v1755_v57 = vld [vmem:[#allocation2 + $0xc4] sm:$0xf]  ;;  %v1996_v61 = vor.u32 %v1995_v1, %v1992_v60  ;;  %v2215_v54 = vshll.u32 %v1948_v44, 16  ;;  %v2219_v60 = vshrl.u32 %v1948_v44, 16 }
 0x157   : > { %1717 = vst.msk [vmem:[#allocation3 + $0x64] sm:$0xf] %vm1691_vm15, %v1646_v24  ;;  %v1944_v24 = vld [vmem:[#allocation2 + $0x78] sm:$0xf]  ;;  %v2150_v29 = vor.u32 %v2149_v6, %v5856_v23  ;;  %v5869_v59 = vrot.slane %v2095_v12, 5  ;;  %v2191_v1 = vshll.u32 %v1945_v56, 16 }
 0x158   : > { %v2185_v55 = vshll.u32 %v1944_v24, 16  ;;  %v1997_v7 = vrot.slane %v1996_v61, 4  ;;  %v5891_v6 = vrot.slane %v2215_v54, 5  ;;  %v2099_v61 = vshrl.u32 %v5853_v27, 16 }
 0x159   : > { %1838 = vrot.lane.b32.xlu2 %v1749_v52, %s4752_s22  ;;  %v1940_v52 = vld [vmem:[#allocation2 + $0x68] sm:$0x1]  ;;  %v2151_v48 = vrot.slane %v2150_v29, 4  ;;  %v2098_v28 = vsel %vm4826_vm3, %v2093_v30, %v5869_v59  ;;  %v5894_v32 = vrot.slane %v2191_v1, 5  ;;  %v2195_v29 = vshrl.u32 %v1945_v56, 16 }
 0x15a   : > { %v2153_v42 = vshll.u32 %v1940_v52, 16  ;;  %v2002_v63 = vsel %vm4826_vm3, %v1997_v7, %v5800_v39  ;;  %v2101_v26 = vrot.slane %v2099_v61, 4  ;;  %v2105_v44 = vshll.u32 %v1934_v38, 16  ;;  %v1962_v38 = vld [vmem:[#allocation2 + $0xc0] sm:$0xf] }
 0x15b   : > { %v1644_v0 = vpop.permute.xlu2 %1643  ;;  %2351 = vrot.lane.b32.xlu1 %v1988_v5, %s4753_s23  ;;  %v1925_v5 = vld [vmem:[#allocation2 + $0x2c] sm:$0x1]  ;;  %v2137_v54 = vshll.u32 %v1938_v46, 16 }
 0x15c   : > { %1716 = vst.msk [vmem:[#allocation3 + $0x60] sm:$0xf] %vm1691_vm15, %v1644_v0  ;;  %2361 = vrot.lane.b32.xlu0 %v2050_v35, %s4753_s23  ;;  %v2182_v35 = vshrl.u32 %v1944_v24, 16  ;;  %v2033_v51 = vshll.u32 %v1925_v5, 16  ;;  %v2155_v43 = vrot.slane %v2153_v42, 5 }
 0x15d   : > { %v1642_v2 = vpop.permute.xlu1 %1641  ;;  %v1953_v5 = vld [vmem:[#allocation2 + $0x9c] sm:$0xf] }
 0x15e   : > { %1715 = vst.msk [vmem:[#allocation3 + $0x5c] sm:$0xf] %vm1691_vm15, %v1642_v2  ;;  %v1652_v22 = vpop.permute.xlu0 %1651  ;;  %v1941_v2 = vld [vmem:[#allocation2 + $0x6c] sm:$0xf]  ;;  %v2184_v19 = vrot.slane %v2182_v35, 4  ;;  %v2156_v39 = vsel %vm4826_vm3, %v2151_v48, %v2155_v43  ;;  %v2035_v34 = vrot.slane %v2033_v51, 5 }
 0x15f   : > { %1720 = vst.msk [vmem:[#allocation3 + $0x70] sm:$0xf] %vm1691_vm15, %v1652_v22  ;;  %v2187_v22 = vrot.slane %v2185_v55, 5  ;;  %v2158_v49 = vshrl.u32 %v1941_v2, 16  ;;  %v2254_v30 = vshrl.u32 %v1953_v5, 16  ;;  %v2257_v51 = vshll.u32 %v1953_v5, 16 }
 0x161   : > { %1844 = vrot.lane.b32.xlu2 %v1752_v16, %s4752_s22  ;;  %v2188_v3 = vor.u32 %v2187_v22, %v2184_v19  ;;  %v2160_v50 = vrot.slane %v2158_v49, 4  ;;  %v1946_v19 = vld [vmem:[#allocation2 + $0x80] sm:$0x1]  ;;  %v2197_v22 = vrot.slane %v2195_v29, 4  ;;  %v2256_v56 = vrot.slane %v2254_v30, 4 }
 0x163   : > { %v1650_v8 = vpop.permute.xlu2 %1649  ;;  %2357 = vrot.lane.b32.xlu1 %v2026_v58, %s4753_s23  ;;  %v2126_v58 = vor.u32 %v2125_v18, %v5851_v17  ;;  %v2131_v17 = vrot.slane %v2129_v62, 5  ;;  %v2189_v24 = vrot.slane %v2188_v3, 4 }
 0x164   : > { %1719 = vst.msk [vmem:[#allocation3 + $0x6c] sm:$0xf] %vm1691_vm15, %v1650_v8  ;;  %2367 = vrot.lane.b32.xlu0 %v2084_v53, %s4753_s23  ;;  %v2161_v53 = vshll.u32 %v1941_v2, 16  ;;  %v2031_v8 = vrot.slane %v2030_v36, 4  ;;  %v589_v2 = vrot.slane %v5791_v15, 4  ;;  %v2259_v15 = vrot.slane %v2257_v51, 5 }
 0x165   : > { %v1648_v4 = vpop.permute.xlu1 %1647  ;;  %v2127_v21 = vrot.slane %v2126_v58, 4  ;;  %v2194_v7 = vsel %vm4826_vm3, %v2189_v24, %v5894_v32  ;;  %v1957_v58 = vld [vmem:[#allocation2 + $0xac] sm:$0xf] }
 0x166   : > { %1718 = vst.msk [vmem:[#allocation3 + $0x68] sm:$0xf] %vm1691_vm15, %v1648_v4  ;;  %v1658_v33 = vpop.permute.xlu0 %1657  ;;  %v2163_v4 = vrot.slane %v2161_v53, 5  ;;  %v2036_v9 = vsel %vm4826_vm3, %v2031_v8, %v2035_v34  ;;  %v2102_v53 = vor.u32 %v2101_v26, %v5869_v59  ;;  %v753_v8 = vld [vmem:[#allocation2 + $0xc8] sm:$0x1] }
 0x167   : > { %1723 = vst.msk [vmem:[#allocation3 + $0x7c] sm:$0xf] %vm1691_vm15, %v1658_v33  ;;  %v2221_v33 = vrot.slane %v2219_v60, 4  ;;  %v2132_v27 = vsel %vm4826_vm3, %v2127_v21, %v2131_v17  ;;  %v5919_v60 = vld [vmem:[#allocation2 + $0xa0] sm:$0xf]  ;;  %v754_v59 = vsel %vm5046_vm10, %v589_v2, %v753_v8 }
 0x168   : > { %v2164_v42 = vor.u32 %v2163_v4, %v2160_v50  ;;  %v2263_v21 = vshll.u32 %v5919_v60, 16  ;;  %755 = vst [vmem:[#allocation2 + $0xc8] sm:$0x1] %v754_v59  ;;  %v2103_v17 = vrot.slane %v2102_v53, 4  ;;  %v2107_v50 = vrot.slane %v2105_v44, 5 }
 0x169   : > { %1850 = vrot.lane.b32.xlu2 %v1755_v57, %s4752_s22  ;;  %v5889_v57 = vld [vmem:[#allocation2 + $0x70] sm:$0xf]  ;;  %v2222_v55 = vor.u32 %v2221_v33, %v5891_v6  ;;  %v2136_v4 = vrot.slane %v2134_v14, 4  ;;  %v2139_v33 = vrot.slane %v2137_v54, 5  ;;  %v1943_v2 = vld [vmem:[#allocation2 + $0x74] sm:$0x1] }
 0x16a   : > { %v2167_v35 = vshll.u32 %v5889_v57, 16  ;;  %v2165_v48 = vrot.slane %v2164_v42, 4  ;;  %v5939_v29 = vrot.slane %v2263_v21, 5  ;;  %v1958_v42 = vld [vmem:[#allocation2 + $0xb0] sm:$0x1] }
 0x16b   : > { %v1656_v0 = vpop.permute.xlu2 %1655  ;;  %2363 = vrot.lane.b32.xlu1 %v2060_v45, %s4753_s23  ;;  %v2068_v45 = vor.u32 %v2067_v11, %v2064_v47  ;;  %v2287_v47 = vshll.u32 %v1957_v58, 16  ;;  %v2297_v26 = vshll.u32 %v1958_v42, 16  ;;  %v1963_v8 = vld [vmem:[#allocation2 + $0xc4] sm:$0xf] }
 0x16c   : > { %1722 = vst.msk [vmem:[#allocation3 + $0x78] sm:$0xf] %vm1691_vm15, %v1656_v0  ;;  %2373 = vrot.lane.b32.xlu0 %v2122_v40, %s4753_s23  ;;  %v1949_v40 = vld [vmem:[#allocation2 + $0x8c] sm:$0x1]  ;;  %v5910_v43 = vrot.slane %v2167_v35, 5  ;;  %v2171_v35 = vshrl.u32 %v5889_v57, 16 }
 0x16d   : > { %v1654_v16 = vpop.permute.xlu1 %1653  ;;  %v2225_v0 = vshll.u32 %v1949_v40, 16  ;;  %v2069_v18 = vrot.slane %v2068_v45, 4 }
 0x16e   : > { %1721 = vst.msk [vmem:[#allocation3 + $0x74] sm:$0xf] %vm1691_vm15, %v1654_v16  ;;  %v1793_v41 = vpop.permute.xlu0 %1792  ;;  %v2170_v34 = vsel %vm4826_vm3, %v2165_v48, %v5910_v43  ;;  %v2329_v48 = vshll.u32 %v1962_v38, 16 }
 0x16f   : > { %1887 = vst.msk [vmem:[#allocation3 + $0x8] sm:$0xf] %vm1884_vm0, %v1793_v41  ;;  %v1950_v41 = vld [vmem:[#allocation2 + $0x90] sm:$0xf]  ;;  %v2227_v37 = vrot.slane %v2225_v0, 5  ;;  %v2074_v62 = vsel %vm4826_vm3, %v2069_v18, %v5824_v25  ;;  %v2291_v25 = vshrl.u32 %v1957_v58, 16 }
 0x170   : > { %v2230_v3 = vshrl.u32 %v1950_v41, 16  ;;  %v2233_v1 = vshll.u32 %v1950_v41, 16  ;;  %v2267_v18 = vshrl.u32 %v5919_v60, 16  ;;  %v2331_v53 = vrot.slane %v2329_v48, 5 }
 0x171   : > { %2353 = vrot.lane.b32.xlu2 %v2002_v63, %s4753_s23  ;;  %v2223_v63 = vrot.slane %v2222_v55, 4  ;;  %v2293_v45 = vrot.slane %v2291_v25, 4 }
 0x172   : > { %v2232_v31 = vrot.slane %v2230_v3, 4 }
 0x173   : > { %v1791_v13 = vpop.permute.xlu2 %1790  ;;  %2369 = vrot.lane.b32.xlu1 %v2098_v28, %s4753_s23  ;;  %v2201_v28 = vshll.u32 %v1946_v19, 16  ;;  %v2228_v11 = vsel %vm4826_vm3, %v2223_v63, %v2227_v37  ;;  %v2177_v37 = vshll.u32 %v1943_v2, 16 }
 0x174   : > { %1886 = vst.msk [vmem:[#allocation3 + $0x4] sm:$0xf] %vm1884_vm0, %v1791_v13  ;;  %2379 = vrot.lane.b32.xlu0 %v2156_v39, %s4753_s23  ;;  %v2198_v39 = vor.u32 %v2197_v22, %v5894_v32  ;;  %v2260_v13 = vor.u32 %v2259_v15, %v2256_v56  ;;  %v2235_v32 = vrot.slane %v2233_v1, 5  ;;  %v2173_v22 = vrot.slane %v2171_v35, 4 }
 0x175   : > { %v1789_v52 = vpop.permute.xlu1 %1788  ;;  %v2203_v24 = vrot.slane %v2201_v28, 5  ;;  %v2299_v56 = vrot.slane %v2297_v26, 5  ;;  %v2269_v15 = vrot.slane %v2267_v18, 4  ;;  %v1959_v28 = vld [vmem:[#allocation2 + $0xb4] sm:$0xf] }
 0x176   : > { %1885 = vst.msk [vmem:[#allocation3] sm:$0xf] %vm1884_vm0, %v1789_v52  ;;  %v1799_v12 = vpop.permute.xlu0 %1798  ;;  %v2199_v52 = vrot.slane %v2198_v39, 4  ;;  %v2261_v5 = vrot.slane %v2260_v13, 4  ;;  %v2236_v0 = vor.u32 %v2235_v32, %v2232_v31  ;;  %v2174_v39 = vor.u32 %v2173_v22, %v5910_v43  ;;  %v1952_v26 = vld [vmem:[#allocation2 + $0x98] sm:$0x1] }
 0x177   : > { %1890 = vst.msk [vmem:[#allocation3 + $0x14] sm:$0xf] %vm1884_vm0, %v1799_v12  ;;  %v5937_v12 = vrot.slane %v2287_v47, 5  ;;  %v2270_v47 = vor.u32 %v2269_v15, %v5939_v29  ;;  %v2302_v59 = vshrl.u32 %v1959_v28, 16  ;;  %v2335_v13 = vshll.u32 %v1963_v8, 16 }
 0x178   : > { %v2204_v51 = vsel %vm4826_vm3, %v2199_v52, %v2203_v24  ;;  %v2266_v46 = vsel %vm4826_vm3, %v2261_v5, %v5939_v29  ;;  %v2237_v63 = vrot.slane %v2236_v0, 4  ;;  %v2175_v21 = vrot.slane %v2174_v39, 4  ;;  %v5977_v29 = vld [vmem:[#allocation2 + $0xb8] sm:$0xf] }
 0x179   : > { %2359 = vrot.lane.b32.xlu2 %v2036_v9, %s4753_s23  ;;  %v5935_v9 = vld [vmem:[#allocation2 + $0x94] sm:$0xf]  ;;  %v2294_v57 = vor.u32 %v2293_v45, %v5937_v12  ;;  %v2304_v24 = vrot.slane %v2302_v59, 4  ;;  %v2337_v5 = vrot.slane %v2335_v13, 5  ;;  %v2311_v0 = vshll.u32 %v5977_v29, 16 }
 0x17a   : > { %v2239_v30 = vshll.u32 %v5935_v9, 16  ;;  %v2243_v32 = vshrl.u32 %v5935_v9, 16  ;;  %v2339_v9 = vshrl.u32 %v1963_v8, 16  ;;  %v2485_v8 = vld [vmem:[#allocation2 + $0x28] sm:$0xf] }
 0x17b   : > { %v1797_v16 = vpop.permute.xlu2 %1796  ;;  %2375 = vrot.lane.b32.xlu1 %v2132_v27, %s4753_s23  ;;  %v2108_v27 = vsel %vm4826_vm3, %v2103_v17, %v2107_v50  ;;  %v2295_v14 = vrot.slane %v2294_v57, 4  ;;  %v2179_v17 = vrot.slane %v2177_v37, 5 }
 0x17c   : > { %1889 = vst.msk [vmem:[#allocation3 + $0x10] sm:$0xf] %vm1884_vm0, %v1797_v16  ;;  %2385 = vrot.lane.b32.xlu0 %v2194_v7, %s4753_s23  ;;  %v2140_v7 = vor.u32 %v2139_v33, %v2136_v4  ;;  %v2326_v16 = vshrl.u32 %v1962_v38, 16  ;;  %v5956_v41 = vrot.slane %v2239_v30, 5  ;;  %v2341_v22 = vrot.slane %v2339_v9, 4 }
 0x17d   : > { %v1795_v36 = vpop.permute.xlu1 %1794  ;;  %v2180_v42 = vsel %vm4826_vm3, %v2175_v21, %v2179_v17 }
 0x17e   : > { %1888 = vst.msk [vmem:[#allocation3 + $0xc] sm:$0xf] %vm1884_vm0, %v1795_v36  ;;  %v1805_v49 = vpop.permute.xlu0 %1804  ;;  %v2141_v19 = vrot.slane %v2140_v7, 4  ;;  %v1947_v36 = vld [vmem:[#allocation2 + $0x84] sm:$0xf] }
 0x17f   : > { %1893 = vst.msk [vmem:[#allocation3 + $0x20] sm:$0xf] %vm1884_vm0, %v1805_v49  ;;  %v2328_v49 = vrot.slane %v2326_v16, 4  ;;  %v2206_v3 = vshrl.u32 %v1947_v36, 16  ;;  %v2209_v1 = vshll.u32 %v1947_v36, 16  ;;  %v2249_v36 = vshll.u32 %v1952_v26, 16 }
 0x180   : > { %v2146_v54 = vsel %vm4826_vm3, %v2141_v19, %v5856_v23  ;;  %v2300_v23 = vsel %vm4826_vm3, %v2295_v14, %v2299_v56  ;;  %v1956_v16 = vld [vmem:[#allocation2 + $0xa8] sm:$0xf]  ;;  %v5995_v19 = vrot.slane %v2311_v0, 5  ;;  %v2486_v26 = vld [vmem:[#allocation2 + $0x2c] sm:$0x1] }
 0x181   : > { %2365 = vrot.lane.b32.xlu2 %v2074_v62, %s4753_s23  ;;  %v1955_v62 = vld [vmem:[#allocation2 + $0xa4] sm:$0x1]  ;;  %v2332_v43 = vor.u32 %v2331_v53, %v2328_v49  ;;  %v2208_v50 = vrot.slane %v2206_v3, 4  ;;  %v2211_v4 = vrot.slane %v2209_v1, 5  ;;  %v1964_v56 = vld [vmem:[#allocation2 + $0xc8] sm:$0x1]  ;;  %v2342_v53 = vor.u32 %v2341_v22, %v2337_v5 }
 0x182   : > { %v2273_v25 = vshll.u32 %v1955_v62, 16  ;;  %v2278_v62 = vshrl.u32 %v1956_v16, 16  ;;  %v2281_v49 = vshll.u32 %v1956_v16, 16  ;;  %v2484_v1 = vld [vmem:[#allocation2 + $0x24] sm:$0xe]  ;;  %v2593_v22 = vrot.slane %v2486_v26, 5 }
 0x183   : > { %v1803_v61 = vpop.permute.xlu2 %1802  ;;  %2381 = vrot.lane.b32.xlu1 %v2170_v34, %s4753_s23  ;;  %v2242_v34 = vsel %vm4826_vm3, %v2237_v63, %v5956_v41  ;;  %v2493_v16 = vld [vmem:[#allocation2 + $0x48] sm:$0xe] }
 0x184   : > { %1892 = vst.msk [vmem:[#allocation3 + $0x1c] sm:$0xf] %vm1884_vm0, %v1803_v61  ;;  %2391 = vrot.lane.b32.xlu0 %v2228_v11, %s4753_s23  ;;  %v2305_v11 = vshll.u32 %v1959_v28, 16  ;;  %v2271_v61 = vrot.slane %v2270_v47, 4  ;;  %v2275_v52 = vrot.slane %v2273_v25, 5  ;;  %v2345_v28 = vshll.u32 %v1964_v56, 16 }
 0x185   : > { %v1801_v40 = vpop.permute.xlu1 %1800  ;;  %v2280_v3 = vrot.slane %v2278_v62, 4  ;;  %v2343_v47 = vrot.slane %v2342_v53, 4  ;;  %v6052_v56 = vld [vmem:[#allocation2 + $0x58] sm:$0xf] }
 0x186   : > { %1891 = vst.msk [vmem:[#allocation3 + $0x18] sm:$0xf] %vm1884_vm0, %v1801_v40  ;;  %v1811_v55 = vpop.permute.xlu0 %1810  ;;  %v2307_v31 = vrot.slane %v2305_v11, 5  ;;  %v2333_v40 = vrot.slane %v2332_v43, 4  ;;  %v2276_v7 = vsel %vm4826_vm3, %v2271_v61, %v2275_v52  ;;  %v2347_v25 = vrot.slane %v2345_v28, 5 }
 0x187   : > { %1896 = vst.msk [vmem:[#allocation3 + $0x2c] sm:$0xf] %vm1884_vm0, %v1811_v55  ;;  %v5982_v55 = vld [vmem:[#allocation2 + $0x10] sm:$0xf]  ;;  %v4431_v11 = vrot.slane %v2484_v1, 9  ;;  %v2315_v43 = vshrl.u32 %v5977_v29, 16 }
 0x188   : > { %v2308_v38 = vor.u32 %v2307_v31, %v2304_v24  ;;  %v2338_v30 = vsel %vm4826_vm3, %v2333_v40, %v2337_v5  ;;  %v2576_v18 = vrot.slane %v5982_v55, 5  ;;  %v2481_v61 = vld [vmem:[#allocation2 + $0x18] sm:$0xe]  ;;  %v6026_v52 = vld [vmem:[#allocation2 + $0x1c] sm:$0xf]  ;;  %v2618_v53 = vrot.slane %v6052_v56, 5 }
 0x189   : > { %2371 = vrot.lane.b32.xlu2 %v2108_v27, %s4753_s23  ;;  %v2212_v27 = vor.u32 %v2211_v4, %v2208_v50  ;;  %v6018_v50 = vld [vmem:[#allocation2 + $0x34] sm:$0xf]  ;;  %v2348_v4 = vsel %vm4826_vm3, %v2343_v47, %v2347_v25  ;;  %v1961_v5 = vld [vmem:[#allocation2 + $0xbc] sm:$0x1]  ;;  %v4430_v29 = vrot.slane %v2481_v61, 9 }
 0x18a   : > { %v2309_v48 = vrot.slane %v2308_v38, 4  ;;  %v2578_v37 = vrot.slane %v2576_v18, 4  ;;  %v2597_v24 = vrot.slane %v6018_v50, 5  ;;  %v2620_v1 = vrot.slane %v2618_v53, 4  ;;  %v2483_v25 = vld [vmem:[#allocation2 + $0x20] sm:$0x1] }
 0x18b   : > { %v1809_v44 = vpop.permute.xlu2 %1808  ;;  %2387 = vrot.lane.b32.xlu1 %v2204_v51, %s4753_s23  ;;  %v2245_v51 = vrot.slane %v2243_v32, 4  ;;  %v2213_v57 = vrot.slane %v2212_v27, 4  ;;  %v2317_v32 = vrot.slane %v2315_v43, 4  ;;  %v2503_v55 = vld [vmem:[#allocation2 + $0x70] sm:$0xf] }
 0x18c   : > { %1895 = vst.msk [vmem:[#allocation3 + $0x28] sm:$0xf] %vm1884_vm0, %v1809_v44  ;;  %2397 = vrot.lane.b32.xlu0 %v2266_v46, %s4753_s23  ;;  %v2480_v46 = vld [vmem:[#allocation2 + $0x14] sm:$0x1]  ;;  %v2599_v27 = vrot.slane %v2597_v24, 4 }
 0x18d   : > { %v1807_v58 = vpop.permute.xlu1 %1806  ;;  %v2246_v63 = vor.u32 %v2245_v51, %v5956_v41  ;;  %v2579_v14 = vrot.slane %v2480_v46, 5  ;;  %v2218_v15 = vsel %vm4826_vm3, %v2213_v57, %v5891_v6  ;;  %v2314_v41 = vsel %vm4826_vm3, %v2309_v48, %v5995_v19  ;;  %v2494_v48 = vld [vmem:[#allocation2 + $0x4c] sm:$0xf]  ;;  %v2512_v50 = vld [vmem:[#allocation2 + $0x94] sm:$0xf] }
 0x18e   : > { %1894 = vst.msk [vmem:[#allocation3 + $0x24] sm:$0xf] %vm1884_vm0, %v1807_v58  ;;  %v1817_v60 = vpop.permute.xlu0 %1816  ;;  %v2283_v6 = vrot.slane %v2281_v49, 5  ;;  %v2318_v0 = vor.u32 %v2317_v32, %v5995_v19  ;;  %v2490_v49 = vld [vmem:[#allocation2 + $0x3c] sm:$0xe] }
 0x18f   : > { %1899 = vst.msk [vmem:[#allocation3 + $0x38] sm:$0xf] %vm1884_vm0, %v1817_v60  ;;  %v2251_v60 = vrot.slane %v2249_v36, 5  ;;  %v2580_v39 = vsel %vm5489_vm13, %v2578_v37, %v2579_v14  ;;  %v2611_v36 = vrot.slane %v2494_v48, 5  ;;  %v2521_v56 = vld [vmem:[#allocation2 + $0xb8] sm:$0xf] }
 0x190   : > { %v2284_v17 = vor.u32 %v2283_v6, %v2280_v3  ;;  %v2319_v46 = vrot.slane %v2318_v0, 4 }
 0x191   : > { %2377 = vrot.lane.b32.xlu2 %v2146_v54, %s4753_s23  ;;  %v2247_v54 = vrot.slane %v2246_v63, 4  ;;  %v4434_v63 = vrot.slane %v2493_v16, 9  ;;  %v2492_v16 = vld [vmem:[#allocation2 + $0x44] sm:$0x1] }
 0x192   : > { %v2285_v31 = vrot.slane %v2284_v17, 4 }
 0x193   : > { %v1815_v33 = vpop.permute.xlu2 %1814  ;;  %2393 = vrot.lane.b32.xlu1 %v2242_v34, %s4753_s23  ;;  %v2252_v13 = vsel %vm4826_vm3, %v2247_v54, %v2251_v60  ;;  %v2612_v62 = vsel %vm5489_vm13, %v4434_v63, %v2611_v36  ;;  %v2498_v54 = vld [vmem:[#allocation2 + $0x5c] sm:$0x1]  ;;  %v2511_v63 = vld [vmem:[#allocation2 + $0x90] sm:$0xe] }
 0x194   : > { %1898 = vst.msk [vmem:[#allocation3 + $0x34] sm:$0xf] %vm1884_vm0, %v1815_v33  ;;  %2403 = vrot.lane.b32.xlu0 %v2300_v23, %s4753_s23  ;;  %v2590_v23 = vrot.slane %v2485_v8, 5  ;;  %v2290_v9 = vsel %vm4826_vm3, %v2285_v31, %v5937_v12  ;;  %v2621_v8 = vrot.slane %v2498_v54, 5 }
 0x195   : > { %v1813_v45 = vpop.permute.xlu1 %1812 }
 0x196   : > { %1897 = vst.msk [vmem:[#allocation3 + $0x30] sm:$0xf] %vm1884_vm0, %v1813_v45  ;;  %v1823_v35 = vpop.permute.xlu0 %1822  ;;  %v2591_v33 = vsel %vm5489_vm13, %v4431_v11, %v2590_v23  ;;  %v2489_v45 = vld [vmem:[#allocation2 + $0x38] sm:$0x1]  ;;  %v2592_v19 = vrot.slane %v2590_v23, 4  ;;  %v2622_v11 = vsel %vm5489_vm13, %v2620_v1, %v2621_v8 }
 0x197   : > { %1902 = vst.msk [vmem:[#allocation3 + $0x44] sm:$0xf] %vm1884_vm0, %v1823_v35  ;;  %v2495_v23 = vld [vmem:[#allocation2 + $0x50] sm:$0x1]  ;;  %v2516_v8 = vld [vmem:[#allocation2 + $0xa4] sm:$0x1] }
 0x199   : > { %2383 = vrot.lane.b32.xlu2 %v2180_v42, %s4753_s23  ;;  %v2583_v42 = vrot.slane %v6026_v52, 5  ;;  %v2632_v52 = vrot.slane %v2503_v55, 5 }
 0x19b   : > { %v1821_v2 = vpop.permute.xlu2 %1820  ;;  %2399 = vrot.lane.b32.xlu1 %v2276_v7, %s4753_s23  ;;  %v2600_v7 = vrot.slane %v2489_v45, 5  ;;  %v2584_v51 = vsel %vm5489_vm13, %v4430_v29, %v2583_v42  ;;  %v2585_v43 = vrot.slane %v2583_v42, 4  ;;  %v6086_v45 = vld [vmem:[#allocation2 + $0x7c] sm:$0xf]  ;;  %v2499_v42 = vld [vmem:[#allocation2 + $0x60] sm:$0xe] }
 0x19c   : > { %1901 = vst.msk [vmem:[#allocation3 + $0x40] sm:$0xf] %vm1884_vm0, %v1821_v2  ;;  %2409 = vrot.lane.b32.xlu0 %v2338_v30, %s4753_s23  ;;  %v2321_v30 = vshll.u32 %v1961_v5, 16  ;;  %v4436_v0 = vrot.slane %v2499_v42, 9 }
 0x19d   : > { %v1819_v44 = vpop.permute.xlu1 %1818  ;;  %v2601_v57 = vsel %vm5489_vm13, %v2599_v27, %v2600_v7  ;;  %v2639_v27 = vrot.slane %v6086_v45, 5 }
 0x19e   : > { %1900 = vst.msk [vmem:[#allocation3 + $0x3c] sm:$0xf] %vm1884_vm0, %v1819_v44  ;;  %v1829_v58 = vpop.permute.xlu0 %1828  ;;  %v2323_v2 = vrot.slane %v2321_v30, 5 }
 0x19f   : > { %1905 = vst.msk [vmem:[#allocation3 + $0x50] sm:$0xf] %vm1884_vm0, %v1829_v58  ;;  %v2594_v58 = vsel %vm5489_vm13, %v2592_v19, %v2593_v22  ;;  %v2504_v19 = vld [vmem:[#allocation2 + $0x74] sm:$0x1] }
 0x1a0   : > { %v2324_v37 = vsel %vm4826_vm3, %v2319_v46, %v2323_v2 }
 0x1a1   : > { %2389 = vrot.lane.b32.xlu2 %v2218_v15, %s4753_s23  ;;  %v2478_v15 = vld [vmem:[#allocation2 + $0xc] sm:$0xe] }
 0x1a2   : > { %v4429_v28 = vrot.slane %v2478_v15, 9  ;;  %v4440_v15 = vrot.slane %v2511_v63, 9  ;;  %v2510_v63 = vld [vmem:[#allocation2 + $0x8c] sm:$0x1] }
 0x1a3   : > { %v1827_v34 = vpop.permute.xlu2 %1826  ;;  %2405 = vrot.lane.b32.xlu1 %v2314_v41, %s4753_s23  ;;  %v6060_v41 = vld [vmem:[#allocation2 + $0x40] sm:$0xf] }
 0x1a4   : > { %1904 = vst.msk [vmem:[#allocation3 + $0x4c] sm:$0xf] %vm1884_vm0, %v1827_v34  ;;  %2688 = vrot.lane.b32.xlu0 %v2580_v39, %s4754_s24  ;;  %v4433_v39 = vrot.slane %v2490_v49, 9  ;;  %v2604_v3 = vrot.slane %v6060_v41, 5  ;;  %v2577_v34 = vsel %vm5489_vm13, %v4429_v28, %v2576_v18  ;;  %v2613_v18 = vrot.slane %v2611_v36, 4 }
 0x1a5   : > { %v1825_v59 = vpop.permute.xlu1 %1824  ;;  %v6120_v41 = vld [vmem:[#allocation2 + $0xa0] sm:$0xf]  ;;  %v2496_v28 = vld [vmem:[#allocation2 + $0x54] sm:$0xe] }
 0x1a6   : > { %1903 = vst.msk [vmem:[#allocation3 + $0x48] sm:$0xf] %vm1884_vm0, %v1825_v59  ;;  %v1835_v21 = vpop.permute.xlu0 %1834  ;;  %v2605_v59 = vsel %vm5489_vm13, %v4433_v39, %v2604_v3  ;;  %v2606_v22 = vrot.slane %v2604_v3, 4  ;;  %v2508_v39 = vld [vmem:[#allocation2 + $0x84] sm:$0xe]  ;;  %v4435_v1 = vrot.slane %v2496_v28, 9 }
 0x1a7   : > { %1908 = vst.msk [vmem:[#allocation3 + $0x5c] sm:$0xf] %vm1884_vm0, %v1835_v21  ;;  %v2502_v21 = vld [vmem:[#allocation2 + $0x6c] sm:$0xe]  ;;  %v6128_v3 = vld [vmem:[#allocation2 + $0x88] sm:$0xf] }
 0x1a8   : > { %v4437_v61 = vrot.slane %v2502_v21, 9  ;;  %v2501_v21 = vld [vmem:[#allocation2 + $0x68] sm:$0x1]  ;;  %v2514_v28 = vld [vmem:[#allocation2 + $0x9c] sm:$0xe] }
 0x1a9   : > { %2395 = vrot.lane.b32.xlu2 %v2252_v13, %s4753_s23  ;;  %v2586_v13 = vrot.slane %v2483_v25, 5  ;;  %v2646_v25 = vrot.slane %v6128_v3, 5 }
 0x1aa   : > { %v2633_v29 = vsel %vm5489_vm13, %v4437_v61, %v2632_v52  ;;  %v2520_v61 = vld [vmem:[#allocation2 + $0xb4] sm:$0xe] }
 0x1ab   : > { %v1833_v40 = vpop.permute.xlu2 %1832  ;;  %2411 = vrot.lane.b32.xlu1 %v2348_v4, %s4753_s23  ;;  %v2614_v4 = vrot.slane %v2495_v23, 5  ;;  %v2587_v31 = vsel %vm5489_vm13, %v2585_v43, %v2586_v13  ;;  %v2663_v23 = vrot.slane %v2516_v8, 5  ;;  %v2619_v43 = vsel %vm5489_vm13, %v4435_v1, %v2618_v53 }
 0x1ac   : > { %1907 = vst.msk [vmem:[#allocation3 + $0x58] sm:$0xf] %vm1884_vm0, %v1833_v40  ;;  %2694 = vrot.lane.b32.xlu0 %v2591_v33, %s4754_s24  ;;  %v2487_v40 = vld [vmem:[#allocation2 + $0x30] sm:$0xe] }
 0x1ad   : > { %v1831_v35 = vpop.permute.xlu1 %1830  ;;  %v2615_v5 = vsel %vm5489_vm13, %v2613_v18, %v2614_v4  ;;  %v4432_v7 = vrot.slane %v2487_v40, 9  ;;  %v2513_v18 = vld [vmem:[#allocation2 + $0x98] sm:$0x1]  ;;  %v4443_v40 = vrot.slane %v2520_v61, 9 }
 0x1ae   : > { %1906 = vst.msk [vmem:[#allocation3 + $0x54] sm:$0xf] %vm1884_vm0, %v1831_v35  ;;  %v1841_v38 = vpop.permute.xlu0 %1840  ;;  %v6094_v35 = vld [vmem:[#allocation2 + $0x64] sm:$0xf] }
 0x1af   : > { %1911 = vst.msk [vmem:[#allocation3 + $0x68] sm:$0xf] %vm1884_vm0, %v1841_v38  ;;  %v2625_v30 = vrot.slane %v6094_v35, 5  ;;  %v2598_v46 = vsel %vm5489_vm13, %v4432_v7, %v2597_v24  ;;  %v2634_v24 = vrot.slane %v2632_v52, 4  ;;  %v6154_v35 = vld [vmem:[#allocation2 + $0xc4] sm:$0xf] }
 0x1b0   : > { %v2505_v7 = vld [vmem:[#allocation2 + $0x78] sm:$0xe] }
 0x1b1   : > { %2401 = vrot.lane.b32.xlu2 %v2290_v9, %s4753_s23  ;;  %v2507_v9 = vld [vmem:[#allocation2 + $0x80] sm:$0x1]  ;;  %v2626_v48 = vsel %vm5489_vm13, %v4436_v0, %v2625_v30  ;;  %v2627_v4 = vrot.slane %v2625_v30, 4  ;;  %v2517_v0 = vld [vmem:[#allocation2 + $0xa8] sm:$0xe] }
 0x1b2   : > { %v2642_v26 = vrot.slane %v2507_v9, 5  ;;  %v2518_v30 = vld [vmem:[#allocation2 + $0xac] sm:$0xf] }
 0x1b3   : > { %v1839_v12 = vpop.permute.xlu2 %1838  ;;  %2690 = vrot.lane.b32.xlu1 %v2584_v51, %s4754_s24 }
 0x1b4   : > { %1910 = vst.msk [vmem:[#allocation3 + $0x64] sm:$0xf] %vm1884_vm0, %v1839_v12  ;;  %2700 = vrot.lane.b32.xlu0 %v2601_v57, %s4754_s24  ;;  %v2641_v57 = vrot.slane %v2639_v27, 4 }
 0x1b5   : > { %v1837_v44 = vpop.permute.xlu1 %1836 }
 0x1b6   : > { %1909 = vst.msk [vmem:[#allocation3 + $0x60] sm:$0xf] %vm1884_vm0, %v1837_v44  ;;  %v1847_v14 = vpop.permute.xlu0 %1846  ;;  %v2643_v12 = vsel %vm5489_vm13, %v2641_v57, %v2642_v26  ;;  %v2607_v44 = vrot.slane %v2492_v16, 5  ;;  %v4438_v57 = vrot.slane %v2505_v7, 9  ;;  %v2525_v26 = vld [vmem:[#allocation2 + $0xc8] sm:$0x1] }
 0x1b7   : > { %1914 = vst.msk [vmem:[#allocation3 + $0x74] sm:$0xf] %vm1884_vm0, %v1847_v14  ;;  %v2667_v16 = vrot.slane %v2518_v30, 5 }
 0x1b9   : > { %2407 = vrot.lane.b32.xlu2 %v2324_v37, %s4753_s23  ;;  %v2635_v37 = vrot.slane %v2504_v19, 5  ;;  %v2684_v19 = vrot.slane %v2525_v26, 5 }
 0x1bb   : > { %v1845_v60 = vpop.permute.xlu2 %1844  ;;  %2696 = vrot.lane.b32.xlu1 %v2594_v58, %s4754_s24  ;;  %v2653_v58 = vrot.slane %v2512_v50, 5  ;;  %v2636_v54 = vsel %vm5489_vm13, %v2634_v24, %v2635_v37  ;;  %v2522_v24 = vld [vmem:[#allocation2 + $0xbc] sm:$0x1]  ;;  %v2648_v37 = vrot.slane %v2646_v25, 4 }
 0x1bc   : > { %1913 = vst.msk [vmem:[#allocation3 + $0x70] sm:$0xf] %vm1884_vm0, %v1845_v60  ;;  %2706 = vrot.lane.b32.xlu0 %v2612_v62, %s4754_s24  ;;  %v2608_v62 = vsel %vm5489_vm13, %v2606_v22, %v2607_v44  ;;  %v2640_v22 = vsel %vm5489_vm13, %v4438_v57, %v2639_v27  ;;  %v2677_v27 = vrot.slane %v2522_v24, 5  ;;  %v2820_v57 = vld [vmem:[#allocation2 + $0x30] sm:$0xf] }
 0x1bd   : > { %v1843_v6 = vpop.permute.xlu1 %1842  ;;  %v2654_v60 = vsel %vm5489_vm13, %v4440_v15, %v2653_v58  ;;  %v2655_v53 = vrot.slane %v2653_v58, 4 }
 0x1be   : > { %1912 = vst.msk [vmem:[#allocation3 + $0x6c] sm:$0xf] %vm1884_vm0, %v1843_v6  ;;  %v2350_v47 = vpop.permute.xlu0 %2349  ;;  %v2660_v6 = vrot.slane %v6120_v41, 5 }
 0x1bf   : > { %2446 = vst.msk [vmem:[#allocation3] sm:$0xf] %vm2445_vm1, %v2350_v47  ;;  %v4439_v47 = vrot.slane %v2508_v39, 9  ;;  %v4441_v39 = vrot.slane %v2514_v28, 9 }
 0x1c1   : > { %2686 = vrot.lane.b32.xlu2 %v2577_v34, %s4754_s24  ;;  %v2647_v55 = vsel %vm5489_vm13, %v4439_v47, %v2646_v25  ;;  %v2661_v8 = vsel %vm5489_vm13, %v4441_v39, %v2660_v6  ;;  %v2519_v47 = vld [vmem:[#allocation2 + $0xb0] sm:$0x1]  ;;  %v2816_v25 = vld [vmem:[#allocation2 + $0x18] sm:$0xf] }
 0x1c3   : > { %v1851_v17 = vpop.permute.xlu2 %1850  ;;  %2702 = vrot.lane.b32.xlu1 %v2605_v59, %s4754_s24 }
 0x1c4   : > { %1916 = vst.msk [vmem:[#allocation3 + $0x7c] sm:$0xf] %vm1884_vm0, %v1851_v17  ;;  %2712 = vrot.lane.b32.xlu0 %v2622_v11, %s4754_s24  ;;  %v2662_v11 = vrot.slane %v2660_v6, 4 }
 0x1c5   : > { %v1849_v33 = vpop.permute.xlu1 %1848 }
 0x1c6   : > { %1915 = vst.msk [vmem:[#allocation3 + $0x78] sm:$0xf] %vm1884_vm0, %v1849_v33  ;;  %v2356_v32 = vpop.permute.xlu0 %2355  ;;  %v2664_v17 = vsel %vm5489_vm13, %v2662_v11, %v2663_v23  ;;  %v2628_v33 = vrot.slane %v2501_v21, 5  ;;  %v2669_v11 = vrot.slane %v2667_v16, 4  ;;  %v2670_v23 = vrot.slane %v2519_v47, 5 }
 0x1c7   : > { %2449 = vst.msk [vmem:[#allocation3 + $0xc] sm:$0xf] %vm2445_vm1, %v2356_v32  ;;  %v2523_v21 = vld [vmem:[#allocation2 + $0xc0] sm:$0xe]  ;;  %v3021_v47 = vld [vmem:[#allocation2 + $0x48] sm:$0xf] }
 0x1c8   : > { %v2671_v6 = vsel %vm5489_vm13, %v2669_v11, %v2670_v23 }
 0x1c9   : > { %2692 = vrot.lane.b32.xlu2 %v2587_v31, %s4754_s24  ;;  %v2656_v31 = vrot.slane %v2513_v18, 5  ;;  %v4444_v18 = vrot.slane %v2523_v21, 9 }
 0x1cb   : > { %v2354_v38 = vpop.permute.xlu2 %2353  ;;  %2708 = vrot.lane.b32.xlu1 %v2615_v5, %s4754_s24  ;;  %v2674_v5 = vrot.slane %v2521_v56, 5  ;;  %v2657_v9 = vsel %vm5489_vm13, %v2655_v53, %v2656_v31  ;;  %v2827_v53 = vld [vmem:[#allocation2 + $0x58] sm:$0xf] }
 0x1cc   : > { %2448 = vst.msk [vmem:[#allocation3 + $0x8] sm:$0xf] %vm2445_vm1, %v2354_v38  ;;  %2718 = vrot.lane.b32.xlu0 %v2633_v29, %s4754_s24  ;;  %v2629_v29 = vsel %vm5489_vm13, %v2627_v4, %v2628_v33 }
 0x1cd   : > { %v2352_v51 = vpop.permute.xlu1 %2351  ;;  %v2675_v38 = vsel %vm5489_vm13, %v4443_v40, %v2674_v5  ;;  %v2676_v45 = vrot.slane %v2674_v5, 4  ;;  %v2817_v40 = vld [vmem:[#allocation2 + $0x1c] sm:$0xf] }
 0x1ce   : > { %2447 = vst.msk [vmem:[#allocation3 + $0x4] sm:$0xf] %vm2445_vm1, %v2352_v51  ;;  %v2362_v2 = vpop.permute.xlu0 %2361  ;;  %v2681_v51 = vrot.slane %v6154_v35, 5  ;;  %v2830_v35 = vld [vmem:[#allocation2 + $0x6c] sm:$0xf] }
 0x1cf   : > { %2452 = vst.msk [vmem:[#allocation3 + $0x18] sm:$0xf] %vm2445_vm1, %v2362_v2  ;;  %v4442_v2 = vrot.slane %v2517_v0, 9 }
 0x1d0   : > { %v2682_v61 = vsel %vm5489_vm13, %v4444_v18, %v2681_v51 }
 0x1d1   : > { %2698 = vrot.lane.b32.xlu2 %v2598_v46, %s4754_s24  ;;  %v2668_v50 = vsel %vm5489_vm13, %v4442_v2, %v2667_v16  ;;  %v2828_v2 = vld [vmem:[#allocation2 + $0x60] sm:$0xf]  ;;  %v2840_v16 = vld [vmem:[#allocation2 + $0xa8] sm:$0xf] }
 0x1d3   : > { %v2360_v36 = vpop.permute.xlu2 %2359  ;;  %2714 = vrot.lane.b32.xlu1 %v2626_v48, %s4754_s24 }
 0x1d4   : > { %2451 = vst.msk [vmem:[#allocation3 + $0x14] sm:$0xf] %vm2445_vm1, %v2360_v36  ;;  %2724 = vrot.lane.b32.xlu0 %v2643_v12, %s4754_s24  ;;  %v2683_v12 = vrot.slane %v2681_v51, 4 }
 0x1d5   : > { %v2358_v14 = vpop.permute.xlu1 %2357 }
 0x1d6   : > { %2450 = vst.msk [vmem:[#allocation3 + $0x10] sm:$0xf] %vm2445_vm1, %v2358_v14  ;;  %v2368_v49 = vpop.permute.xlu0 %2367  ;;  %v2685_v36 = vsel %vm5489_vm13, %v2683_v12, %v2684_v19  ;;  %v2649_v14 = vrot.slane %v2510_v63, 5 }
 0x1d7   : > { %2455 = vst.msk [vmem:[#allocation3 + $0x24] sm:$0xf] %vm2445_vm1, %v2368_v49 }
 0x1d9   : > { %2704 = vrot.lane.b32.xlu2 %v2608_v62, %s4754_s24  ;;  %v2650_v62 = vsel %vm5489_vm13, %v2648_v37, %v2649_v14  ;;  %v2832_v37 = vld [vmem:[#allocation2 + $0x78] sm:$0xf] }
 0x1db   : > { %v2366_v34 = vpop.permute.xlu2 %2365  ;;  %2720 = vrot.lane.b32.xlu1 %v2636_v54, %s4754_s24  ;;  %v2678_v54 = vsel %vm5489_vm13, %v2676_v45, %v2677_v27  ;;  %v3594_v27 = vld [vmem:[#allocation2 + $0x78] sm:$0xe] }
 0x1dc   : > { %2454 = vst.msk [vmem:[#allocation3 + $0x20] sm:$0xf] %vm2445_vm1, %v2366_v34  ;;  %2730 = vrot.lane.b32.xlu0 %v2654_v60, %s4754_s24  ;;  %v2818_v60 = vld [vmem:[#allocation2 + $0x24] sm:$0xf]  ;;  %v4453_v39 = vrot.slane %v3594_v27, 9 }
 0x1dd   : > { %v2364_v59 = vpop.permute.xlu1 %2363 }
 0x1de   : > { %2453 = vst.msk [vmem:[#allocation3 + $0x1c] sm:$0xf] %vm2445_vm1, %v2364_v59  ;;  %v2374_v13 = vpop.permute.xlu0 %2373  ;;  %v2821_v59 = vld [vmem:[#allocation2 + $0x34] sm:$0xf] }
 0x1df   : > { %2458 = vst.msk [vmem:[#allocation3 + $0x30] sm:$0xf] %vm2445_vm1, %v2374_v13 }
 0x1e1   : > { %2710 = vrot.lane.b32.xlu2 %v2619_v43, %s4754_s24 }
 0x1e3   : > { %v2372_v52 = vpop.permute.xlu2 %2371  ;;  %2726 = vrot.lane.b32.xlu1 %v2647_v55, %s4754_s24  ;;  %v2819_v55 = vld [vmem:[#allocation2 + $0x28] sm:$0xf] }
 0x1e4   : > { %2457 = vst.msk [vmem:[#allocation3 + $0x2c] sm:$0xf] %vm2445_vm1, %v2372_v52  ;;  %2736 = vrot.lane.b32.xlu0 %v2664_v17, %s4754_s24  ;;  %v2824_v17 = vld [vmem:[#allocation2 + $0x48] sm:$0xf]  ;;  %v2822_v52 = vld [vmem:[#allocation2 + $0x3c] sm:$0xf] }
 0x1e5   : > { %v2370_v32 = vpop.permute.xlu1 %2369 }
 0x1e6   : > { %2456 = vst.msk [vmem:[#allocation3 + $0x28] sm:$0xf] %vm2445_vm1, %v2370_v32  ;;  %v2380_v42 = vpop.permute.xlu0 %2379 }
 0x1e7   : > { %2461 = vst.msk [vmem:[#allocation3 + $0x3c] sm:$0xf] %vm2445_vm1, %v2380_v42  ;;  %v2825_v42 = vld [vmem:[#allocation2 + $0x4c] sm:$0xf] }
 0x1e9   : > { %2716 = vrot.lane.b32.xlu2 %v2629_v29, %s4754_s24  ;;  %v3034_v29 = vld [vmem:[#allocation2 + $0x7c] sm:$0xf] }
 0x1ea   : > { %v3259_v7 = vshll.u32 %v3034_v29, 16 }
 0x1eb   : > { %v2378_v46 = vpop.permute.xlu2 %2377  ;;  %2732 = vrot.lane.b32.xlu1 %v2657_v9, %s4754_s24  ;;  %v3263_v9 = vshrl.u32 %v3034_v29, 16  ;;  %v3022_v29 = vld [vmem:[#allocation2 + $0x4c] sm:$0xf] }
 0x1ec   : > { %2460 = vst.msk [vmem:[#allocation3 + $0x38] sm:$0xf] %vm2445_vm1, %v2378_v46  ;;  %2742 = vrot.lane.b32.xlu0 %v2675_v38, %s4754_s24  ;;  %v6226_v30 = vrot.slane %v3259_v7, 5  ;;  %v3035_v46 = vld [vmem:[#allocation2 + $0x80] sm:$0x1] }
 0x1ed   : > { %v2376_v48 = vpop.permute.xlu1 %2375  ;;  %v3265_v51 = vrot.slane %v3263_v9, 4  ;;  %v3269_v12 = vshll.u32 %v3035_v46, 16 }
 0x1ee   : > { %2459 = vst.msk [vmem:[#allocation3 + $0x34] sm:$0xf] %vm2445_vm1, %v2376_v48  ;;  %v2386_v44 = vpop.permute.xlu0 %2385 }
 0x1ef   : > { %2464 = vst.msk [vmem:[#allocation3 + $0x48] sm:$0xf] %vm2445_vm1, %v2386_v44  ;;  %v3266_v48 = vor.u32 %v3265_v51, %v6226_v30  ;;  %v3271_v63 = vrot.slane %v3269_v12, 5  ;;  %v3163_v51 = vshll.u32 %v3022_v29, 16 }
 0x1f1   : > { %2722 = vrot.lane.b32.xlu2 %v2640_v22, %s4754_s24  ;;  %v3267_v44 = vrot.slane %v3266_v48, 4 }
 0x1f3   : > { %v2384_v15 = vpop.permute.xlu2 %2383  ;;  %2738 = vrot.lane.b32.xlu1 %v2668_v50, %s4754_s24  ;;  %v3045_v50 = vld [vmem:[#allocation2 + $0xa8] sm:$0xf]  ;;  %v3272_v45 = vsel %vm4826_vm3, %v3267_v44, %v3271_v63  ;;  %v3165_v63 = vrot.slane %v3163_v51, 5 }
 0x1f4   : > { %2463 = vst.msk [vmem:[#allocation3 + $0x44] sm:$0xf] %vm2445_vm1, %v2384_v15  ;;  %2748 = vrot.lane.b32.xlu0 %v2685_v36, %s4754_s24  ;;  %v2823_v36 = vld [vmem:[#allocation2 + $0x40] sm:$0xf]  ;;  %v3346_v14 = vshrl.u32 %v3045_v50, 16  ;;  %v3349_v15 = vshll.u32 %v3045_v50, 16 }
 0x1f5   : > { %v2382_v58 = vpop.permute.xlu1 %2381  ;;  %v6273_v50 = vld [vmem:[#allocation2 + $0x1c] sm:$0xf] }
 0x1f6   : > { %2462 = vst.msk [vmem:[#allocation3 + $0x40] sm:$0xf] %vm2445_vm1, %v2382_v58  ;;  %v2392_v49 = vpop.permute.xlu0 %2391  ;;  %v3595_v58 = vld [vmem:[#allocation2 + $0x7c] sm:$0xf]  ;;  %v3351_v28 = vrot.slane %v3349_v15, 5 }
 0x1f7   : > { %2467 = vst.msk [vmem:[#allocation3 + $0x54] sm:$0xf] %vm2445_vm1, %v2392_v49  ;;  %v3348_v49 = vrot.slane %v3346_v14, 4  ;;  %v6276_v14 = vld [vmem:[#allocation2 + $0x1c] sm:$0xf] }
 0x1f9   : > { %2728 = vrot.lane.b32.xlu2 %v2650_v62, %s4754_s24 }
 0x1fb   : > { %v2390_v3 = vpop.permute.xlu2 %2389  ;;  %2744 = vrot.lane.b32.xlu1 %v2678_v54, %s4754_s24 }
 0x1fc   : > { %2466 = vst.msk [vmem:[#allocation3 + $0x50] sm:$0xf] %vm2445_vm1, %v2390_v3  ;;  %2884 = vrot.lane.b32.xlu0 %v2818_v60, %s4755_s25  ;;  %v2826_v60 = vld [vmem:[#allocation2 + $0x54] sm:$0xf]  ;;  %v3724_v3 = vrot.slane %v3595_v58, 5  ;;  %v3067_v58 = vshll.u32 %v6273_v50, 16 }
 0x1fd   : > { %v2388_v1 = vpop.permute.xlu1 %2387 }
 0x1fe   : > { %2465 = vst.msk [vmem:[#allocation3 + $0x4c] sm:$0xf] %vm2445_vm1, %v2388_v1  ;;  %v2398_v34 = vpop.permute.xlu0 %2397  ;;  %v6243_v1 = vld [vmem:[#allocation2 + $0xac] sm:$0xf]  ;;  %v3725_v23 = vsel %vm5489_vm13, %v4453_v39, %v3724_v3 }
 0x1ff   : > { %2470 = vst.msk [vmem:[#allocation3 + $0x60] sm:$0xf] %vm2445_vm1, %v2398_v34  ;;  %v6246_v34 = vld [vmem:[#allocation2 + $0xac] sm:$0xf]  ;;  %v3355_v11 = vshll.u32 %v6243_v1, 16 }
 0x201   : > { %2734 = vrot.lane.b32.xlu2 %v2661_v8, %s4754_s24 }
 0x203   : > { %v2396_v43 = vpop.permute.xlu2 %2395  ;;  %2880 = vrot.lane.b32.xlu1 %v2816_v25, %s4755_s25  ;;  %v2841_v25 = vld [vmem:[#allocation2 + $0xac] sm:$0xf] }
 0x204   : > { %2469 = vst.msk [vmem:[#allocation3 + $0x5c] sm:$0xf] %vm2445_vm1, %v2396_v43  ;;  %2890 = vrot.lane.b32.xlu0 %v2821_v59, %s4755_s25  ;;  %v3352_v59 = vor.u32 %v3351_v28, %v3348_v49  ;;  %v3752_v43 = vrot.slane %v6246_v34, 5  ;;  %v3668_v49 = vrot.slane %v6276_v14, 5  ;;  %v2843_v34 = vld [vmem:[#allocation2 + $0xb8] sm:$0xf] }
 0x205   : > { %v2394_v41 = vpop.permute.xlu1 %2393 }
 0x206   : > { %2468 = vst.msk [vmem:[#allocation3 + $0x58] sm:$0xf] %vm2445_vm1, %v2394_v41  ;;  %v2404_v13 = vpop.permute.xlu0 %2403  ;;  %v3154_v41 = vshrl.u32 %v3021_v47, 16  ;;  %v3353_v18 = vrot.slane %v3352_v59, 4  ;;  %v3670_v59 = vrot.slane %v3668_v49, 4 }
 0x207   : > { %2473 = vst.msk [vmem:[#allocation3 + $0x6c] sm:$0xf] %vm2445_vm1, %v2404_v13  ;;  %v3608_v13 = vld [vmem:[#allocation2 + $0xb0] sm:$0x1] }
 0x209   : > { %2740 = vrot.lane.b32.xlu2 %v2671_v6, %s4754_s24  ;;  %v3157_v6 = vshll.u32 %v3021_v47, 16 }
 0x20b   : > { %v2402_v4 = vpop.permute.xlu2 %2401  ;;  %2886 = vrot.lane.b32.xlu1 %v2819_v55, %s4755_s25  ;;  %v3033_v55 = vld [vmem:[#allocation2 + $0x78] sm:$0xf] }
 0x20c   : > { %2472 = vst.msk [vmem:[#allocation3 + $0x68] sm:$0xf] %vm2445_vm1, %v2402_v4  ;;  %2896 = vrot.lane.b32.xlu0 %v2824_v17, %s4755_s25  ;;  %v2829_v17 = vld [vmem:[#allocation2 + $0x64] sm:$0xf]  ;;  %v6257_v4 = vrot.slane %v3355_v11, 5 }
 0x20d   : > { %v2400_v33 = vpop.permute.xlu1 %2399 }
 0x20e   : > { %2471 = vst.msk [vmem:[#allocation3 + $0x64] sm:$0xf] %vm2445_vm1, %v2400_v33  ;;  %v2410_v56 = vpop.permute.xlu0 %2409 }
 0x20f   : > { %2476 = vst.msk [vmem:[#allocation3 + $0x78] sm:$0xf] %vm2445_vm1, %v2410_v56  ;;  %v3755_v56 = vrot.slane %v3608_v13, 5 }
 0x211   : > { %2746 = vrot.lane.b32.xlu2 %v2682_v61, %s4754_s24  ;;  %v3754_v61 = vrot.slane %v3752_v43, 4 }
 0x213   : > { %v2408_v31 = vpop.permute.xlu2 %2407  ;;  %2892 = vrot.lane.b32.xlu1 %v2822_v52, %s4755_s25  ;;  %v3156_v52 = vrot.slane %v3154_v41, 4  ;;  %v3756_v9 = vsel %vm5489_vm13, %v3754_v61, %v3755_v56 }
 0x214   : > { %2475 = vst.msk [vmem:[#allocation3 + $0x74] sm:$0xf] %vm2445_vm1, %v2408_v31  ;;  %2902 = vrot.lane.b32.xlu0 %v2827_v53, %s4755_s25  ;;  %v3159_v53 = vrot.slane %v3157_v6, 5  ;;  %v3009_v31 = vld [vmem:[#allocation2 + $0x18] sm:$0xf] }
 0x215   : > { %v2406_v32 = vpop.permute.xlu1 %2405  ;;  %v3061_v7 = vshll.u32 %v3009_v31, 16 }
 0x216   : > { %2474 = vst.msk [vmem:[#allocation3 + $0x70] sm:$0xf] %vm2445_vm1, %v2406_v32  ;;  %v2689_v5 = vpop.permute.xlu0 %2688 }
 0x217   : > { %2784 = vst.msk [vmem:[#allocation3 + $0x4] sm:$0xf] %vm2782_vm2, %v2689_v5  ;;  %v3253_v5 = vshll.u32 %v3033_v55, 16  ;;  %v3063_v12 = vrot.slane %v3061_v7, 5  ;;  %v3582_v7 = vld [vmem:[#allocation2 + $0x48] sm:$0xe] }
 0x219   : > { %2882 = vrot.lane.b32.xlu2 %v2817_v40, %s4755_s25  ;;  %v3250_v40 = vshrl.u32 %v3033_v55, 16 }
 0x21b   : > { %v2687_v38 = vpop.permute.xlu2 %2686  ;;  %2898 = vrot.lane.b32.xlu1 %v2825_v42, %s4755_s25  ;;  %v3358_v42 = vsel %vm4826_vm3, %v3353_v18, %v6257_v4 }
 0x21c   : > { %2783 = vst.msk [vmem:[#allocation3] sm:$0xf] %vm2782_vm2, %v2687_v38  ;;  %2908 = vrot.lane.b32.xlu0 %v2830_v35, %s4755_s25  ;;  %v3058_v35 = vshrl.u32 %v3009_v31, 16  ;;  %v3596_v38 = vld [vmem:[#allocation2 + $0x80] sm:$0x1]  ;;  %v3071_v31 = vshrl.u32 %v6273_v50, 16 }
 0x21d   : > { %v2412_v0 = vpop.permute.xlu1 %2411 }
 0x21e   : > { %2477 = vst.msk [vmem:[#allocation3 + $0x7c] sm:$0xf] %vm2445_vm1, %v2412_v0  ;;  %v2695_v26 = vpop.permute.xlu0 %2694  ;;  %v3160_v0 = vor.u32 %v3159_v53, %v3156_v52  ;;  %v3060_v48 = vrot.slane %v3058_v35, 4  ;;  %v2834_v35 = vld [vmem:[#allocation2 + $0x84] sm:$0xf] }
 0x21f   : > { %2787 = vst.msk [vmem:[#allocation3 + $0x10] sm:$0xf] %vm2782_vm2, %v2695_v26  ;;  %v3255_v26 = vrot.slane %v3253_v5, 5  ;;  %v3048_v5 = vld [vmem:[#allocation2 + $0xb4] sm:$0xf] }
 0x220   : > { %v3161_v44 = vrot.slane %v3160_v0, 4  ;;  %v3064_v27 = vor.u32 %v3063_v12, %v3060_v48  ;;  %v3373_v0 = vshll.u32 %v3048_v5, 16 }
 0x221   : > { %2888 = vrot.lane.b32.xlu2 %v2820_v57, %s4755_s25  ;;  %v3252_v57 = vrot.slane %v3250_v40, 4 }
 0x223   : > { %v2693_v19 = vpop.permute.xlu2 %2692  ;;  %2904 = vrot.lane.b32.xlu1 %v2828_v2, %s4755_s25  ;;  %v3726_v2 = vrot.slane %v3724_v3, 4  ;;  %v3047_v3 = vld [vmem:[#allocation2 + $0xb0] sm:$0x1] }
 0x224   : > { %2786 = vst.msk [vmem:[#allocation3 + $0xc] sm:$0xf] %vm2782_vm2, %v2693_v19  ;;  %2928 = vrot.lane.b32.xlu0 %v2840_v16, %s4755_s25  ;;  %v3727_v16 = vrot.slane %v3596_v38, 5  ;;  %v3359_v19 = vshrl.u32 %v6243_v1, 16  ;;  %v3065_v1 = vrot.slane %v3064_v27, 4  ;;  %v3370_v38 = vshrl.u32 %v3048_v5, 16 }
 0x225   : > { %v2691_v22 = vpop.permute.xlu1 %2690  ;;  %v3050_v5 = vld [vmem:[#allocation2 + $0xbc] sm:$0x1] }
 0x226   : > { %2785 = vst.msk [vmem:[#allocation3 + $0x8] sm:$0xf] %vm2782_vm2, %v2691_v22  ;;  %v2701_v24 = vpop.permute.xlu0 %2700  ;;  %v3728_v15 = vsel %vm5489_vm13, %v3726_v2, %v3727_v16  ;;  %v4449_v2 = vrot.slane %v3582_v7, 9  ;;  %v3372_v12 = vrot.slane %v3370_v38, 4  ;;  %v3013_v38 = vld [vmem:[#allocation2 + $0x28] sm:$0xf] }
 0x227   : > { %2790 = vst.msk [vmem:[#allocation3 + $0x1c] sm:$0xf] %vm2782_vm2, %v2701_v24 }
 0x229   : > { %2894 = vrot.lane.b32.xlu2 %v2823_v36, %s4755_s25  ;;  %v2833_v36 = vld [vmem:[#allocation2 + $0x7c] sm:$0xf] }
 0x22b   : > { %v2699_v62 = vpop.permute.xlu2 %2698  ;;  %2912 = vrot.lane.b32.xlu1 %v2832_v37, %s4755_s25  ;;  %v3256_v37 = vor.u32 %v3255_v26, %v3252_v57  ;;  %v3073_v57 = vrot.slane %v3071_v31, 4 }
 0x22c   : > { %2789 = vst.msk [vmem:[#allocation3 + $0x18] sm:$0xf] %vm2782_vm2, %v2699_v62  ;;  %3475 = vrot.lane.b32.xlu0 %v3272_v45, %s4756_s26  ;;  %v3167_v45 = vshrl.u32 %v3022_v29, 16  ;;  %v3166_v62 = vsel %vm4826_vm3, %v3161_v44, %v3165_v63  ;;  %v3606_v29 = vld [vmem:[#allocation2 + $0xa8] sm:$0xe] }
 0x22d   : > { %v2697_v54 = vpop.permute.xlu1 %2696  ;;  %v3257_v28 = vrot.slane %v3256_v37, 4  ;;  %v4457_v51 = vrot.slane %v3606_v29, 9 }
 0x22e   : > { %2788 = vst.msk [vmem:[#allocation3 + $0x14] sm:$0xf] %vm2782_vm2, %v2697_v54  ;;  %v2707_v8 = vpop.permute.xlu0 %2706  ;;  %v3361_v54 = vrot.slane %v3359_v19, 4  ;;  %v3169_v47 = vrot.slane %v3167_v45, 4  ;;  %v3375_v19 = vrot.slane %v3373_v0, 5 }
 0x22f   : > { %2793 = vst.msk [vmem:[#allocation3 + $0x28] sm:$0xf] %vm2782_vm2, %v2707_v8  ;;  %v6289_v8 = vrot.slane %v3067_v58, 5  ;;  %v3262_v41 = vsel %vm4826_vm3, %v3257_v28, %v6226_v30  ;;  %v3753_v44 = vsel %vm5489_vm13, %v4457_v51, %v3752_v43  ;;  %v3025_v0 = vld [vmem:[#allocation2 + $0x58] sm:$0xf] }
 0x230   : > { %v3362_v13 = vor.u32 %v3361_v54, %v6257_v4  ;;  %v3376_v27 = vor.u32 %v3375_v19, %v3372_v12  ;;  %v6337_v54 = vld [vmem:[#allocation2 + $0x88] sm:$0xf]  ;;  %v3584_v51 = vld [vmem:[#allocation2 + $0x50] sm:$0x1]  ;;  %v3191_v12 = vshrl.u32 %v3025_v0, 16 }
 0x231   : > { %2900 = vrot.lane.b32.xlu2 %v2826_v60, %s4755_s25  ;;  %v3572_v60 = vld [vmem:[#allocation2 + $0x20] sm:$0x1]  ;;  %v3070_v55 = vsel %vm4826_vm3, %v3065_v1, %v6289_v8  ;;  %v3074_v50 = vor.u32 %v3073_v57, %v6289_v8 }
 0x232   : > { %v3671_v11 = vrot.slane %v3572_v60, 5  ;;  %v3363_v61 = vrot.slane %v3362_v13, 4  ;;  %v3377_v1 = vrot.slane %v3376_v27, 4  ;;  %v3026_v27 = vld [vmem:[#allocation2 + $0x5c] sm:$0x1] }
 0x233   : > { %v2705_v21 = vpop.permute.xlu2 %2704  ;;  %2930 = vrot.lane.b32.xlu1 %v2841_v25, %s4755_s25  ;;  %v3075_v43 = vrot.slane %v3074_v50, 4 }
 0x234   : > { %2792 = vst.msk [vmem:[#allocation3 + $0x24] sm:$0xf] %vm2782_vm2, %v2705_v21  ;;  %3810 = vrot.lane.b32.xlu0 %v3725_v23, %s4757_s27  ;;  %v3023_v23 = vld [vmem:[#allocation2 + $0x50] sm:$0x1]  ;;  %v3365_v21 = vshll.u32 %v3047_v3, 16 }
 0x235   : > { %v2703_v33 = vpop.permute.xlu1 %2702  ;;  %v3173_v18 = vshll.u32 %v3023_v23, 16  ;;  %v3570_v23 = vld [vmem:[#allocation2 + $0x18] sm:$0xe] }
 0x236   : > { %2791 = vst.msk [vmem:[#allocation3 + $0x20] sm:$0xf] %vm2782_vm2, %v2703_v33  ;;  %v2713_v32 = vpop.permute.xlu0 %2712  ;;  %v3672_v33 = vsel %vm5489_vm13, %v3670_v59, %v3671_v11  ;;  %v3367_v56 = vrot.slane %v3365_v21, 5  ;;  %v3012_v11 = vld [vmem:[#allocation2 + $0x24] sm:$0xf] }
 0x237   : > { %2796 = vst.msk [vmem:[#allocation3 + $0x34] sm:$0xf] %vm2782_vm2, %v2713_v32  ;;  %v3175_v52 = vrot.slane %v3173_v18, 5  ;;  %v3599_v18 = vld [vmem:[#allocation2 + $0x8c] sm:$0x1] }
 0x238   : > { %v3368_v32 = vsel %vm4826_vm3, %v3363_v61, %v3367_v56  ;;  %v3085_v61 = vshll.u32 %v3012_v11, 16  ;;  %v4445_v56 = vrot.slane %v3570_v23, 9  ;;  %v3734_v31 = vrot.slane %v3599_v18, 5 }
 0x239   : > { %2906 = vrot.lane.b32.xlu2 %v2829_v17, %s4755_s25  ;;  %v3170_v17 = vor.u32 %v3169_v47, %v3165_v63  ;;  %v6339_v47 = vld [vmem:[#allocation2 + $0x88] sm:$0xf] }
 0x23b   : > { %v2711_v46 = vpop.permute.xlu2 %2710  ;;  %3489 = vrot.lane.b32.xlu1 %v3358_v42, %s4756_s26  ;;  %v3171_v4 = vrot.slane %v3170_v17, 4 }
 0x23c   : > { %2795 = vst.msk [vmem:[#allocation3 + $0x30] sm:$0xf] %vm2782_vm2, %v2711_v46  ;;  %3828 = vrot.lane.b32.xlu0 %v3756_v9, %s4757_s27  ;;  %v6316_v9 = vld [vmem:[#allocation2 + $0x4c] sm:$0xf]  ;;  %v3011_v46 = vld [vmem:[#allocation2 + $0x20] sm:$0x1] }
 0x23d   : > { %v2709_v22 = vpop.permute.xlu1 %2708  ;;  %v3176_v42 = vsel %vm4826_vm3, %v3171_v4, %v3175_v52  ;;  %v3696_v16 = vrot.slane %v6316_v9, 5  ;;  %v3287_v9 = vshrl.u32 %v6337_v54, 16 }
 0x23e   : > { %2794 = vst.msk [vmem:[#allocation3 + $0x2c] sm:$0xf] %vm2782_vm2, %v2709_v22  ;;  %v2719_v24 = vpop.permute.xlu0 %2718  ;;  %v3036_v22 = vld [vmem:[#allocation2 + $0x84] sm:$0xf] }
 0x23f   : > { %2799 = vst.msk [vmem:[#allocation3 + $0x40] sm:$0xf] %vm2782_vm2, %v2719_v24  ;;  %v3049_v24 = vld [vmem:[#allocation2 + $0xb8] sm:$0xf]  ;;  %v3697_v37 = vsel %vm5489_vm13, %v4449_v2, %v3696_v16  ;;  %v3277_v45 = vshll.u32 %v3036_v22, 16  ;;  %v3389_v2 = vshll.u32 %v3050_v5, 16 }
 0x240   : > { %v3379_v58 = vshll.u32 %v3049_v24, 16  ;;  %v3383_v13 = vshrl.u32 %v3049_v24, 16  ;;  %v3698_v19 = vrot.slane %v3696_v16, 4 }
 0x241   : > { %2914 = vrot.lane.b32.xlu2 %v2833_v36, %s4755_s25  ;;  %v3077_v36 = vshll.u32 %v3011_v46, 16  ;;  %v3391_v50 = vrot.slane %v3389_v2, 5  ;;  %v3573_v2 = vld [vmem:[#allocation2 + $0x24] sm:$0xe] }
 0x242   : > { %v3381_v8 = vrot.slane %v3379_v58, 5 }
 0x243   : > { %v2717_v39 = vpop.permute.xlu2 %2716  ;;  %3812 = vrot.lane.b32.xlu1 %v3728_v15, %s4757_s27  ;;  %v3274_v15 = vshrl.u32 %v3036_v22, 16  ;;  %v3699_v22 = vrot.slane %v3584_v51, 5  ;;  %v3039_v51 = vld [vmem:[#allocation2 + $0x90] sm:$0xf] }
 0x244   : > { %2798 = vst.msk [vmem:[#allocation3 + $0x3c] sm:$0xf] %vm2782_vm2, %v2717_v39  ;;  %3457 = vrot.lane.b32.xlu0 %v3166_v62, %s4756_s26  ;;  %v3079_v62 = vrot.slane %v3077_v36, 5  ;;  %v3279_v39 = vrot.slane %v3277_v45, 5  ;;  %v3382_v17 = vsel %vm4826_vm3, %v3377_v1, %v3381_v8  ;;  %v3193_v45 = vrot.slane %v3191_v12, 4 }
 0x245   : > { %v2715_v25 = vpop.permute.xlu1 %2714  ;;  %v3276_v60 = vrot.slane %v3274_v15, 4  ;;  %v3700_v16 = vsel %vm5489_vm13, %v3698_v19, %v3699_v22  ;;  %v3024_v22 = vld [vmem:[#allocation2 + $0x54] sm:$0xf] }
 0x246   : > { %2797 = vst.msk [vmem:[#allocation3 + $0x38] sm:$0xf] %vm2782_vm2, %v2715_v25  ;;  %v2725_v6 = vpop.permute.xlu0 %2724  ;;  %v3080_v25 = vsel %vm4826_vm3, %v3075_v43, %v3079_v62  ;;  %v3095_v43 = vshrl.u32 %v3013_v38, 16 }
 0x247   : > { %2802 = vst.msk [vmem:[#allocation3 + $0x4c] sm:$0xf] %vm2782_vm2, %v2725_v6  ;;  %v2835_v6 = vld [vmem:[#allocation2 + $0x88] sm:$0xf]  ;;  %v3280_v21 = vor.u32 %v3279_v39, %v3276_v60  ;;  %v3197_v39 = vshll.u32 %v3026_v27, 16  ;;  %v3178_v27 = vshrl.u32 %v3024_v22, 16 }
 0x249   : > { %3473 = vrot.lane.b32.xlu2 %v3262_v41, %s4756_s26  ;;  %v3283_v41 = vshll.u32 %v6337_v54, 16  ;;  %v3281_v52 = vrot.slane %v3280_v21, 4  ;;  %v6386_v54 = vld [vmem:[#allocation2 + $0xb8] sm:$0xf]  ;;  %v2842_v21 = vld [vmem:[#allocation2 + $0xb4] sm:$0xf] }
 0x24b   : > { %v2723_v30 = vpop.permute.xlu2 %2722  ;;  %3441 = vrot.lane.b32.xlu1 %v3070_v55, %s4756_s26  ;;  %v3731_v55 = vrot.slane %v6339_v47, 5  ;;  %v6351_v4 = vrot.slane %v3283_v41, 5  ;;  %v3587_v47 = vld [vmem:[#allocation2 + $0x5c] sm:$0x1] }
 0x24c   : > { %2801 = vst.msk [vmem:[#allocation3 + $0x48] sm:$0xf] %vm2782_vm2, %v2723_v30  ;;  %3780 = vrot.lane.b32.xlu0 %v3672_v33, %s4757_s27  ;;  %v3082_v33 = vshrl.u32 %v3012_v11, 16  ;;  %v3097_v11 = vrot.slane %v3095_v43, 4  ;;  %v3052_v43 = vld [vmem:[#allocation2 + $0xc4] sm:$0xf] }
 0x24d   : > { %v2721_v53 = vpop.permute.xlu1 %2720  ;;  %v3286_v57 = vsel %vm4826_vm3, %v3281_v52, %v6351_v4 }
 0x24e   : > { %2800 = vst.msk [vmem:[#allocation3 + $0x44] sm:$0xf] %vm2782_vm2, %v2721_v53  ;;  %v2731_v40 = vpop.permute.xlu0 %2730  ;;  %v3733_v53 = vrot.slane %v3731_v55, 4  ;;  %v3084_v29 = vrot.slane %v3082_v33, 4 }
 0x24f   : > { %2805 = vst.msk [vmem:[#allocation3 + $0x58] sm:$0xf] %vm2782_vm2, %v2731_v40 }
 0x251   : > { %3491 = vrot.lane.b32.xlu2 %v3368_v32, %s4756_s26  ;;  %v3385_v32 = vrot.slane %v3383_v13, 4  ;;  %v3014_v13 = vld [vmem:[#allocation2 + $0x2c] sm:$0x1] }
 0x253   : > { %v2729_v26 = vpop.permute.xlu2 %2728  ;;  %3459 = vrot.lane.b32.xlu1 %v3176_v42, %s4756_s26  ;;  %v3087_v42 = vrot.slane %v3085_v61, 5  ;;  %v3386_v46 = vor.u32 %v3385_v32, %v3381_v8  ;;  %v3038_v8 = vld [vmem:[#allocation2 + $0x8c] sm:$0x1]  ;;  %v3585_v32 = vld [vmem:[#allocation2 + $0x54] sm:$0xe] }
 0x254   : > { %2804 = vst.msk [vmem:[#allocation3 + $0x54] sm:$0xf] %vm2782_vm2, %v2729_v26  ;;  %2916 = vrot.lane.b32.xlu0 %v2834_v35, %s4755_s25  ;;  %v3669_v35 = vsel %vm5489_vm13, %v4445_v56, %v3668_v49  ;;  %v3735_v26 = vsel %vm5489_vm13, %v3733_v53, %v3734_v31  ;;  %v3187_v49 = vshll.u32 %v3025_v0, 16  ;;  %v3293_v33 = vshll.u32 %v3038_v8, 16 }
 0x255   : > { %v2727_v48 = vpop.permute.xlu1 %2726  ;;  %v3088_v14 = vor.u32 %v3087_v42, %v3084_v29  ;;  %v3407_v8 = vshrl.u32 %v3052_v43, 16 }
 0x256   : > { %2803 = vst.msk [vmem:[#allocation3 + $0x50] sm:$0xf] %vm2782_vm2, %v2727_v48  ;;  %v2737_v63 = vpop.permute.xlu0 %2736  ;;  %v3091_v48 = vshll.u32 %v3013_v38, 16  ;;  %v6374_v15 = vrot.slane %v3187_v49, 5  ;;  %v3295_v31 = vrot.slane %v3293_v33, 5  ;;  %v3301_v49 = vshll.u32 %v3039_v51, 16 }
 0x257   : > { %2808 = vst.msk [vmem:[#allocation3 + $0x64] sm:$0xf] %vm2782_vm2, %v2737_v63  ;;  %v3387_v63 = vrot.slane %v3386_v46, 4  ;;  %v3089_v24 = vrot.slane %v3088_v14, 4  ;;  %v6418_v14 = vld [vmem:[#allocation2 + $0x28] sm:$0xf] }
 0x258   : > { %v3194_v60 = vor.u32 %v3193_v45, %v6374_v15  ;;  %v3303_v45 = vrot.slane %v3301_v49, 5  ;;  %v3016_v49 = vld [vmem:[#allocation2 + $0x34] sm:$0xf] }
 0x259   : > { %3826 = vrot.lane.b32.xlu2 %v3753_v44, %s4757_s27  ;;  %v3392_v58 = vsel %vm4826_vm3, %v3387_v63, %v3391_v50  ;;  %v3675_v63 = vrot.slane %v6418_v14, 5  ;;  %v3947_v50 = vld [vmem:[%s6816_s1 + $0x20] sm:$0xf] }
 0x25a   : > { %v3195_v41 = vrot.slane %v3194_v60, 4 }
 0x25b   : > { %v2735_v28 = vpop.permute.xlu2 %2734  ;;  %3794 = vrot.lane.b32.xlu1 %v3697_v37, %s4757_s27  ;;  %v3093_v37 = vrot.slane %v3091_v48, 5  ;;  %v3298_v48 = vshrl.u32 %v3039_v51, 16 }
 0x25c   : > { %2807 = vst.msk [vmem:[#allocation3 + $0x60] sm:$0xf] %vm2782_vm2, %v2735_v28  ;;  %2934 = vrot.lane.b32.xlu0 %v2843_v34, %s4755_s25  ;;  %v3609_v28 = vld [vmem:[#allocation2 + $0xb4] sm:$0xe] }
 0x25d   : > { %v2733_v3 = vpop.permute.xlu1 %2732  ;;  %v3094_v62 = vsel %vm4826_vm3, %v3089_v24, %v3093_v37  ;;  %v3098_v56 = vor.u32 %v3097_v11, %v3093_v37  ;;  %v6427_v24 = vld [vmem:[#allocation2 + $0x94] sm:$0xf]  ;;  %v3300_v37 = vrot.slane %v3298_v48, 4 }
 0x25e   : > { %2806 = vst.msk [vmem:[#allocation3 + $0x5c] sm:$0xf] %vm2782_vm2, %v2733_v3  ;;  %v2743_v59 = vpop.permute.xlu0 %2742  ;;  %v3289_v3 = vrot.slane %v3287_v9, 4  ;;  %v4049_v9 = vunpack.c.l.b16 %v3947_v50  ;;  %v4577_v50 = vld [vmem:[%s6816_s1] sm:$0xff] }
 0x25f   : > { %2811 = vst.msk [vmem:[#allocation3 + $0x70] sm:$0xf] %vm2782_vm2, %v2743_v59  ;;  %v3759_v59 = vrot.slane %v6386_v54, 5  ;;  %v3099_v5 = vrot.slane %v3098_v56, 4  ;;  %v4580_v54 = vld [vmem:[%s6816_s1 + $0x18] sm:$0xff]  ;;  %v3409_v56 = vrot.slane %v3407_v8, 4 }
 0x260   : > { %v3290_v18 = vor.u32 %v3289_v3, %v6351_v4  ;;  %v3307_v3 = vshll.u32 %v6427_v24, 16  ;;  %v6502_v8 = vld [vmem:[#allocation2 + $0x94] sm:$0xf] }
 0x261   : > { %3443 = vrot.lane.b32.xlu2 %v3080_v25, %s4756_s26  ;;  %v4458_v25 = vrot.slane %v3609_v28, 9  ;;  %v4054_v28 = vpack.c.b16 %v4049_v9, %v4049_v9  ;;  %v3761_v11 = vrot.slane %v3759_v59, 4  ;;  %v3612_v9 = vld [vmem:[#allocation2 + $0xc0] sm:$0xe] }
 0x262   : > { %v3291_v53 = vrot.slane %v3290_v18, 4  ;;  %v6449_v33 = vrot.slane %v3307_v3, 5  ;;  %v4459_v14 = vrot.slane %v3612_v9, 9  ;;  %v3017_v3 = vld [vmem:[#allocation2 + $0x38] sm:$0x1] }
 0x263   : > { %v2741_v30 = vpop.permute.xlu2 %2740  ;;  %2918 = vrot.lane.b32.xlu1 %v2835_v6, %s4755_s25  ;;  %v3199_v6 = vrot.slane %v3197_v39, 5  ;;  %v3760_v61 = vsel %vm5489_vm13, %v4458_v25, %v3759_v59  ;;  %v2837_v39 = vld [vmem:[#allocation2 + $0x94] sm:$0xf]  ;;  %v4110_v25 = vsel %vm4108_vm5, %v4054_v28, 0  ;;  %v3015_v9 = vld [vmem:[#allocation2 + $0x30] sm:$0xf] }
 0x264   : > { %2810 = vst.msk [vmem:[#allocation3 + $0x6c] sm:$0xf] %vm2782_vm2, %v2741_v30  ;;  %3493 = vrot.lane.b32.xlu0 %v3382_v17, %s4756_s26  ;;  %v3101_v30 = vshll.u32 %v3014_v13, 16  ;;  %v3296_v38 = vsel %vm4826_vm3, %v3291_v53, %v3295_v31  ;;  %4678 = vmatpush.bf16.msra.mxu3 %v4110_v25  ;;  %v3053_v31 = vld [vmem:[#allocation2 + $0xc8] sm:$0x1] }
 0x265   : > { %v2739_v40 = vpop.permute.xlu1 %2738  ;;  %v3200_v52 = vsel %vm4826_vm3, %v3195_v41, %v3199_v6  ;;  %v3180_v41 = vrot.slane %v3178_v27, 4  ;;  %4677 = vmatpush.bf16.msra.mxu2 %v4110_v25  ;;  %4115 = vmatpush.bf16.msra.mxu0 %v4110_v25 }
 0x266   : > { %2809 = vst.msk [vmem:[#allocation3 + $0x68] sm:$0xf] %vm2782_vm2, %v2739_v40  ;;  %v2749_v7 = vpop.permute.xlu0 %2748  ;;  %v6403_v40 = vld [vmem:[#allocation2 + $0x58] sm:$0xf]  ;;  %v3103_v29 = vrot.slane %v3101_v30, 5  ;;  %4676 = vmatpush.bf16.msra.mxu1 %v4110_v25 }
 0x267   : > { %2814 = vst.msk [vmem:[#allocation3 + $0x7c] sm:$0xf] %vm2782_vm2, %v2749_v7  ;;  %v3703_v7 = vrot.slane %v6403_v40, 5  ;;  %v3311_v40 = vshrl.u32 %v6427_v24, 16  ;;  %v3119_v24 = vshrl.u32 %v3016_v49, 16 }
 0x268   : > { %4681 = vmatpush.bf16.msra.mxu3 %v4580_v54 }
 0x269   : > { %3778 = vrot.lane.b32.xlu2 %v3669_v35, %s4757_s27  ;;  %v4450_v35 = vrot.slane %v3585_v32, 9  ;;  %4680 = vmatpush.bf16.msra.mxu2 %v4580_v54  ;;  %v3121_v28 = vrot.slane %v3119_v24, 4 }
 0x26a   : > { %4116 = vmatpush.bf16.msra.mxu0 %v4580_v54  ;;  %4679 = vmatpush.bf16.msra.mxu1 %v4580_v54 }
 0x26b   : > { %v2747_v44 = vpop.permute.xlu2 %2746  ;;  %3477 = vrot.lane.b32.xlu1 %v3286_v57, %s4756_s26  ;;  %v3597_v57 = vld [vmem:[#allocation2 + $0x84] sm:$0xe]  ;;  %v3704_v46 = vsel %vm5489_vm13, %v4450_v35, %v3703_v7 }
 0x26c   : > { %2813 = vst.msk [vmem:[#allocation3 + $0x78] sm:$0xf] %vm2782_vm2, %v2747_v44  ;;  %3816 = vrot.lane.b32.xlu0 %v3735_v26, %s4757_s27  ;;  %v3104_v26 = vsel %vm4826_vm3, %v3099_v5, %v3103_v29  ;;  %v4454_v12 = vrot.slane %v3597_v57, 9  ;;  %v4446_v44 = vrot.slane %v3573_v2, 9 }
 0x26d   : > { %v2745_v36 = vpop.permute.xlu1 %2744 }
 0x26e   : > { %2812 = vst.msk [vmem:[#allocation3 + $0x74] sm:$0xf] %vm2782_vm2, %v2745_v36  ;;  %v2885_v34 = vpop.permute.xlu0 %2884  ;;  %v3676_v60 = vsel %vm5489_vm13, %v4446_v44, %v3675_v63 }
 0x26f   : > { %2979 = vst.msk [vmem:[#allocation3 + $0x8] sm:$0xf] %vm2976_vm4, %v2885_v34 }
 0x271   : > { %3796 = vrot.lane.b32.xlu2 %v3700_v16, %s4757_s27  ;;  %v3732_v16 = vsel %vm5489_vm13, %v4454_v12, %v3731_v55  ;;  %v3304_v55 = vor.u32 %v3303_v45, %v3300_v37  ;;  %v3575_v12 = vld [vmem:[#allocation2 + $0x2c] sm:$0x1]  ;;  %v3677_v37 = vrot.slane %v3675_v63, 4 }
 0x272   : > { %v3678_v45 = vrot.slane %v3575_v12, 5 }
 0x273   : > { %v2883_v1 = vpop.permute.xlu2 %2882  ;;  %3495 = vrot.lane.b32.xlu1 %v3392_v58, %s4756_s26  ;;  %v3181_v58 = vshll.u32 %v3024_v22, 16  ;;  %v3305_v18 = vrot.slane %v3304_v55, 4 }
 0x274   : > { %2978 = vst.msk [vmem:[#allocation3 + $0x4] sm:$0xf] %vm2976_vm4, %v2883_v1  ;;  %3445 = vrot.lane.b32.xlu0 %v3094_v62, %s4756_s26  ;;  %v3611_v62 = vld [vmem:[#allocation2 + $0xbc] sm:$0x1]  ;;  %v3403_v1 = vshll.u32 %v3052_v43, 16 }
 0x275   : > { %v2881_v23 = vpop.permute.xlu1 %2880  ;;  %v3183_v6 = vrot.slane %v3181_v58, 5  ;;  %v3310_v5 = vsel %vm4826_vm3, %v3305_v18, %v6449_v33  ;;  %v2836_v18 = vld [vmem:[#allocation2 + $0x90] sm:$0xf] }
 0x276   : > { %2977 = vst.msk [vmem:[#allocation3] sm:$0xf] %vm2976_vm4, %v2881_v23  ;;  %v2891_v17 = vpop.permute.xlu0 %2890  ;;  %v3762_v23 = vrot.slane %v3611_v62, 5 }
 0x277   : > { %2982 = vst.msk [vmem:[#allocation3 + $0x14] sm:$0xf] %vm2976_vm4, %v2891_v17  ;;  %v3706_v17 = vrot.slane %v3587_v47, 5  ;;  %v3184_v53 = vor.u32 %v3183_v6, %v3180_v41  ;;  %v3051_v41 = vld [vmem:[#allocation2 + $0xc0] sm:$0xf] }
 0x278   : > { %v3763_v30 = vsel %vm5489_vm13, %v3761_v11, %v3762_v23  ;;  %v3125_v11 = vshll.u32 %v3017_v3, 16  ;;  %v3602_v3 = vld [vmem:[#allocation2 + $0x98] sm:$0x1] }
 0x279   : > { %2932 = vrot.lane.b32.xlu2 %v2842_v21, %s4755_s25  ;;  %v3705_v21 = vrot.slane %v3703_v7, 4  ;;  %v3185_v35 = vrot.slane %v3184_v53, 4 }
 0x27a   : > { %v3127_v54 = vrot.slane %v3125_v11, 5 }
 0x27b   : > { %v2889_v4 = vpop.permute.xlu2 %2888  ;;  %3830 = vrot.lane.b32.xlu1 %v3760_v61, %s4757_s27  ;;  %v6451_v61 = vrot.slane %v3403_v1, 5  ;;  %v3707_v32 = vsel %vm5489_vm13, %v3705_v21, %v3706_v17  ;;  %v3190_v2 = vsel %vm4826_vm3, %v3185_v35, %v6374_v15  ;;  %v3600_v1 = vld [vmem:[#allocation2 + $0x90] sm:$0xe] }
 0x27c   : > { %2981 = vst.msk [vmem:[#allocation3 + $0x10] sm:$0xf] %vm2976_vm4, %v2889_v4  ;;  %3463 = vrot.lane.b32.xlu0 %v3200_v52, %s4756_s26  ;;  %v4579_v4 = vld [vmem:[%s6816_s1 + $0x10] sm:$0xff]  ;;  %v4455_v6 = vrot.slane %v3600_v1, 9  ;;  %v3578_v1 = vld [vmem:[#allocation2 + $0x38] sm:$0x1] }
 0x27d   : > { %v2887_v42 = vpop.permute.xlu1 %2886  ;;  %v3410_v29 = vor.u32 %v3409_v56, %v6451_v61  ;;  %4684 = vmatpush.bf16.msra.mxu3 %v4579_v4  ;;  %4683 = vmatpush.bf16.msra.mxu2 %v4579_v4  ;;  %v3394_v56 = vshrl.u32 %v3051_v41, 16 }
 0x27e   : > { %2980 = vst.msk [vmem:[#allocation3 + $0xc] sm:$0xf] %vm2976_vm4, %v2887_v42  ;;  %v2897_v0 = vpop.permute.xlu0 %2896  ;;  %v3413_v42 = vshll.u32 %v3053_v31, 16  ;;  %4117 = vmatpush.bf16.msra.mxu0 %v4579_v4  ;;  %4682 = vmatpush.bf16.msra.mxu1 %v4579_v4 }
 0x27f   : > { %2985 = vst.msk [vmem:[#allocation3 + $0x20] sm:$0xf] %vm2976_vm4, %v2897_v0  ;;  %v4578_v0 = vld [vmem:[%s6816_s1 + $0x8] sm:$0xff]  ;;  %v3411_v57 = vrot.slane %v3410_v29, 4  ;;  %v3396_v4 = vrot.slane %v3394_v56, 4 }
 0x280   : > { %v3576_v29 = vld [vmem:[#allocation2 + $0x30] sm:$0xe] }
 0x281   : > { %3479 = vrot.lane.b32.xlu2 %v3296_v38, %s4756_s26  ;;  %v3313_v38 = vrot.slane %v3311_v40, 4  ;;  %4687 = vmatpush.bf16.msra.mxu3 %v4578_v0  ;;  %v3614_v40 = vld [vmem:[#allocation2 + $0xc8] sm:$0x1] }
 0x282   : > { %4686 = vmatpush.bf16.msra.mxu2 %v4578_v0  ;;  %4118 = vmatpush.bf16.msra.mxu0 %v4578_v0 }
 0x283   : > { %v2895_v19 = vpop.permute.xlu2 %2894  ;;  %3447 = vrot.lane.b32.xlu1 %v3104_v26, %s4756_s26  ;;  %v3415_v26 = vrot.slane %v3413_v42, 5  ;;  %v3314_v22 = vor.u32 %v3313_v38, %v6449_v33  ;;  %4685 = vmatpush.bf16.msra.mxu1 %v4578_v0  ;;  %v3577_v42 = vld [vmem:[#allocation2 + $0x34] sm:$0xf]  ;;  %v3769_v38 = vrot.slane %v3614_v40, 5  ;;  %v2846_v40 = vld [vmem:[#allocation2 + $0xcc] sm:$0xf] }
 0x284   : > { %2984 = vst.msk [vmem:[#allocation3 + $0x1c] sm:$0xf] %vm2976_vm4, %v2895_v19  ;;  %3798 = vrot.lane.b32.xlu0 %v3704_v46, %s4757_s27  ;;  %v3041_v46 = vld [vmem:[#allocation2 + $0x98] sm:$0x1]  ;;  %v2844_v19 = vld [vmem:[#allocation2 + $0xc0] sm:$0xf] }
 0x285   : > { %v2893_v36 = vpop.permute.xlu1 %2892  ;;  %v3317_v44 = vshll.u32 %v3041_v46, 16  ;;  %v3416_v15 = vsel %vm4826_vm3, %v3411_v57, %v3415_v26  ;;  %4690 = vmatpush.bf16.msra.mxu3 %v4577_v50  ;;  %v3315_v27 = vrot.slane %v3314_v22, 4  ;;  %v4447_v26 = vrot.slane %v3576_v29, 9 }
 0x286   : > { %2983 = vst.msk [vmem:[#allocation3 + $0x18] sm:$0xf] %vm2976_vm4, %v2893_v36  ;;  %v2903_v34 = vpop.permute.xlu0 %2902  ;;  %v3115_v36 = vshll.u32 %v3016_v49, 16  ;;  %4689 = vmatpush.bf16.msra.mxu2 %v4577_v50  ;;  %4119 = vmatpush.bf16.msra.mxu0 %v4577_v50  ;;  %v3682_v46 = vrot.slane %v3577_v42, 5 }
 0x287   : > { %2988 = vst.msk [vmem:[#allocation3 + $0x2c] sm:$0xf] %vm2976_vm4, %v2903_v34  ;;  %v3319_v58 = vrot.slane %v3317_v44, 5  ;;  %4688 = vmatpush.bf16.msra.mxu1 %v4577_v50 }
 0x288   : > { %v6491_v62 = vrot.slane %v3115_v36, 5 }
 0x289   : > { %3814 = vrot.lane.b32.xlu2 %v3732_v16, %s4757_s27  ;;  %v3613_v16 = vld [vmem:[#allocation2 + $0xc4] sm:$0xf]  ;;  %v3320_v47 = vsel %vm4826_vm3, %v3315_v27, %v3319_v58 }
 0x28a   : > { %v3766_v63 = vrot.slane %v3613_v16, 5  ;;  %v3122_v25 = vor.u32 %v3121_v28, %v6491_v62  ;;  %v3106_v28 = vshrl.u32 %v3015_v9, 16 }
 0x28b   : > { %v2901_v13 = vpop.permute.xlu2 %2900  ;;  %3782 = vrot.lane.b32.xlu1 %v3676_v60, %s4757_s27  ;;  %v3679_v60 = vsel %vm5489_vm13, %v3677_v37, %v3678_v45  ;;  %v3590_v37 = vld [vmem:[#allocation2 + $0x68] sm:$0x1] }
 0x28c   : > { %2987 = vst.msk [vmem:[#allocation3 + $0x28] sm:$0xf] %vm2976_vm4, %v2901_v13  ;;  %2922 = vrot.lane.b32.xlu0 %v2837_v39, %s4755_s25  ;;  %v3767_v55 = vsel %vm5489_vm13, %v4459_v14, %v3766_v63  ;;  %v3738_v13 = vrot.slane %v6502_v8, 5  ;;  %v3123_v17 = vrot.slane %v3122_v25, 4 }
 0x28d   : > { %v2899_v59 = vpop.permute.xlu1 %2898 }
 0x28e   : > { %2986 = vst.msk [vmem:[#allocation3 + $0x24] sm:$0xf] %vm2976_vm4, %v2899_v59  ;;  %v2909_v52 = vpop.permute.xlu0 %2908  ;;  %v3027_v59 = vld [vmem:[#allocation2 + $0x60] sm:$0xf]  ;;  %v3740_v11 = vrot.slane %v3738_v13, 4 }
 0x28f   : > { %2991 = vst.msk [vmem:[#allocation3 + $0x38] sm:$0xf] %vm2976_vm4, %v2909_v52  ;;  %v3739_v52 = vsel %vm5489_vm13, %v4455_v6, %v3738_v13  ;;  %v3202_v53 = vshrl.u32 %v3027_v59, 16  ;;  %v3205_v31 = vshll.u32 %v3027_v59, 16  ;;  %v3685_v59 = vrot.slane %v3578_v1, 5 }
 0x291   : > { %3832 = vrot.lane.b32.xlu2 %v3763_v30, %s4757_s27  ;;  %v3397_v30 = vshll.u32 %v3051_v41, 16  ;;  %v3204_v0 = vrot.slane %v3202_v53, 4  ;;  %v3108_v41 = vrot.slane %v3106_v28, 4  ;;  %v6594_v28 = vld [vmem:[#allocation2 + $0xd0] sm:$0xf] }
 0x293   : > { %v2907_v7 = vpop.permute.xlu2 %2906  ;;  %3800 = vrot.lane.b32.xlu1 %v3707_v32, %s4757_s27  ;;  %v3128_v32 = vsel %vm4826_vm3, %v3123_v17, %v3127_v54  ;;  %v3684_v54 = vrot.slane %v3682_v46, 4 }
 0x294   : > { %2990 = vst.msk [vmem:[#allocation3 + $0x34] sm:$0xf] %vm2976_vm4, %v2907_v7  ;;  %3481 = vrot.lane.b32.xlu0 %v3310_v5, %s4756_s26  ;;  %v3399_v5 = vrot.slane %v3397_v30, 5  ;;  %v3768_v7 = vrot.slane %v3766_v63, 4 }
 0x295   : > { %v2905_v51 = vpop.permute.xlu1 %2904 }
 0x296   : > { %2989 = vst.msk [vmem:[#allocation3 + $0x30] sm:$0xf] %vm2976_vm4, %v2905_v51  ;;  %v2929_v48 = vpop.permute.xlu0 %2928  ;;  %v3207_v51 = vrot.slane %v3205_v31, 5  ;;  %v3400_v12 = vor.u32 %v3399_v5, %v3396_v4  ;;  %v3770_v22 = vsel %vm5489_vm13, %v3768_v7, %v3769_v38  ;;  %v3044_v31 = vld [vmem:[#allocation2 + $0xa4] sm:$0x1] }
 0x297   : > { %3001 = vst.msk [vmem:[#allocation3 + $0x60] sm:$0xf] %vm2976_vm4, %v2929_v48  ;;  %v2845_v48 = vld [vmem:[#allocation2 + $0xc4] sm:$0xf]  ;;  %v3341_v5 = vshll.u32 %v3044_v31, 16 }
 0x298   : > { %v3208_v44 = vor.u32 %v3207_v51, %v3204_v0  ;;  %v3401_v24 = vrot.slane %v3400_v12, 4  ;;  %v3029_v7 = vld [vmem:[#allocation2 + $0x68] sm:$0x1] }
 0x299   : > { %3461 = vrot.lane.b32.xlu2 %v3190_v2, %s4756_s26  ;;  %v6521_v2 = vld [vmem:[#allocation2 + $0x64] sm:$0xf]  ;;  %v3343_v51 = vrot.slane %v3341_v5, 5 }
 0x29a   : > { %v3211_v50 = vshll.u32 %v6521_v2, 16  ;;  %v3209_v16 = vrot.slane %v3208_v44, 4  ;;  %v3406_v14 = vsel %vm4826_vm3, %v3401_v24, %v6451_v61  ;;  %v3215_v13 = vshrl.u32 %v6521_v2, 16  ;;  %v3603_v24 = vld [vmem:[#allocation2 + $0x9c] sm:$0xe] }
 0x29b   : > { %v2915_v34 = vpop.permute.xlu2 %2914  ;;  %2936 = vrot.lane.b32.xlu1 %v2844_v19, %s4755_s25  ;;  %v6524_v19 = vld [vmem:[#allocation2 + $0x64] sm:$0xf] }
 0x29c   : > { %2994 = vst.msk [vmem:[#allocation3 + $0x44] sm:$0xf] %vm2976_vm4, %v2915_v34  ;;  %3499 = vrot.lane.b32.xlu0 %v3416_v15, %s4756_s26  ;;  %v3683_v15 = vsel %vm5489_vm13, %v4447_v26, %v3682_v46  ;;  %v3710_v36 = vrot.slane %v6524_v19, 5  ;;  %v6537_v34 = vrot.slane %v3211_v50, 5  ;;  %v3217_v42 = vrot.slane %v3215_v13, 4 }
 0x29d   : > { %v2913_v43 = vpop.permute.xlu1 %2912  ;;  %v3605_v5 = vld [vmem:[#allocation2 + $0xa4] sm:$0x1] }
 0x29e   : > { %2993 = vst.msk [vmem:[#allocation3 + $0x40] sm:$0xf] %vm2976_vm4, %v2913_v43  ;;  %v3476_v39 = vpop.permute.xlu0 %3475  ;;  %v3712_v58 = vrot.slane %v3710_v36, 4  ;;  %v3713_v43 = vrot.slane %v3590_v37, 5  ;;  %v3218_v2 = vor.u32 %v3217_v42, %v6537_v34  ;;  %v6582_v37 = vld [vmem:[#allocation2 + $0xa0] sm:$0xf] }
 0x29f   : > { %3555 = vst.msk [vmem:[#allocation3 + $0x44] sm:$0xf] %vm3537_vm6, %v3476_v39  ;;  %v3043_v39 = vld [vmem:[#allocation2 + $0xa0] sm:$0xf] }
 0x2a0   : > { %v3331_v25 = vshll.u32 %v3043_v39, 16  ;;  %v3335_v61 = vshrl.u32 %v3043_v39, 16  ;;  %v3219_v50 = vrot.slane %v3218_v2, 4  ;;  %v3588_v39 = vld [vmem:[#allocation2 + $0x60] sm:$0xe] }
 0x2a1   : > { %3784 = vrot.lane.b32.xlu2 %v3679_v60, %s4757_s27  ;;  %v3109_v60 = vshll.u32 %v3015_v9, 16 }
 0x2a2   : > { %v6558_v56 = vrot.slane %v3331_v25, 5  ;;  %v3337_v8 = vrot.slane %v3335_v61, 4  ;;  %v3773_v25 = vrot.slane %v6594_v28, 5  ;;  %v3032_v28 = vld [vmem:[#allocation2 + $0x74] sm:$0x1] }
 0x2a3   : > { %v3474_v23 = vpop.permute.xlu2 %3473  ;;  %3483 = vrot.lane.b32.xlu1 %v3320_v47, %s4756_s26  ;;  %v3214_v47 = vsel %vm4826_vm3, %v3209_v16, %v6537_v34  ;;  %v3111_v6 = vrot.slane %v3109_v60, 5  ;;  %v3019_v60 = vld [vmem:[#allocation2 + $0x40] sm:$0xf] }
 0x2a4   : > { %3554 = vst.msk [vmem:[#allocation3 + $0x40] sm:$0xf] %vm3537_vm6, %v3474_v23  ;;  %3834 = vrot.lane.b32.xlu0 %v3767_v55, %s4757_s27  ;;  %v3714_v55 = vsel %vm5489_vm13, %v3712_v58, %v3713_v43  ;;  %v3741_v23 = vrot.slane %v3602_v3, 5  ;;  %v3338_v4 = vor.u32 %v3337_v8, %v6558_v56  ;;  %v3745_v58 = vrot.slane %v6582_v37, 5  ;;  %v6589_v43 = vld [vmem:[#allocation2 + $0xd0] sm:$0xf] }
 0x2a5   : > { %v2931_v21 = vpop.permute.xlu1 %2930  ;;  %v3112_v53 = vor.u32 %v3111_v6, %v3108_v41  ;;  %v2847_v3 = vld [vmem:[#allocation2 + $0xd0] sm:$0xf]  ;;  %v3139_v61 = vshll.u32 %v3019_v60, 16  ;;  %v3617_v41 = vld [vmem:[#allocation2 + $0xd4] sm:$0x1]  ;;  %v3431_v2 = vshrl.u32 %v6589_v43, 16 }
 0x2a6   : > { %3002 = vst.msk [vmem:[#allocation3 + $0x64] sm:$0xf] %vm2976_vm4, %v2931_v21  ;;  %v3811_v33 = vpop.permute.xlu0 %3810  ;;  %v3742_v30 = vsel %vm5489_vm13, %v3740_v11, %v3741_v23  ;;  %v3339_v0 = vrot.slane %v3338_v4, 4  ;;  %v3143_v11 = vshrl.u32 %v3019_v60, 16  ;;  %v4451_v23 = vrot.slane %v3588_v39, 9 }
 0x2a7   : > { %3891 = vst.msk [vmem:[#allocation3 + $0x40] sm:$0xf] %vm3874_vm7, %v3811_v33  ;;  %v3113_v29 = vrot.slane %v3112_v53, 4  ;;  %v3776_v8 = vrot.slane %v3617_v41, 5  ;;  %v6609_v13 = vrot.slane %v3139_v61, 5  ;;  %v3433_v37 = vrot.slane %v3431_v2, 4 }
 0x2a8   : > { %v3344_v44 = vsel %vm4826_vm3, %v3339_v0, %v3343_v51  ;;  %v3748_v0 = vrot.slane %v3605_v5, 5 }
 0x2a9   : > { %2920 = vrot.lane.b32.xlu2 %v2836_v18, %s4755_s25  ;;  %v3118_v26 = vsel %vm4826_vm3, %v3113_v29, %v6491_v62 }
 0x2ab   : > { %v3492_v35 = vpop.permute.xlu2 %3491  ;;  %3818 = vrot.lane.b32.xlu1 %v3739_v52, %s4757_s27 }
 0x2ac   : > { %3563 = vst.msk [vmem:[#allocation3 + $0x64] sm:$0xf] %vm3537_vm6, %v3492_v35  ;;  %3451 = vrot.lane.b32.xlu0 %v3128_v32, %s4756_s26  ;;  %v3686_v32 = vsel %vm5489_vm13, %v3684_v54, %v3685_v59 }
 0x2ad   : > { %v3490_v57 = vpop.permute.xlu1 %3489 }
 0x2ae   : > { %3562 = vst.msk [vmem:[#allocation3 + $0x60] sm:$0xf] %vm3537_vm6, %v3490_v57  ;;  %v3829_v49 = vpop.permute.xlu0 %3828  ;;  %v3054_v57 = vld [vmem:[#allocation2 + $0xcc] sm:$0xf] }
 0x2af   : > { %3900 = vst.msk [vmem:[#allocation3 + $0x64] sm:$0xf] %vm3874_vm7, %v3829_v49  ;;  %v2838_v49 = vld [vmem:[#allocation2 + $0x9c] sm:$0xf]  ;;  %v3418_v12 = vshrl.u32 %v3054_v57, 16 }
 0x2b1   : > { %2938 = vrot.lane.b32.xlu2 %v2845_v48, %s4755_s25  ;;  %v3221_v48 = vshll.u32 %v3029_v7, 16  ;;  %v3420_v9 = vrot.slane %v3418_v12, 4 }
 0x2b3   : > { %v3827_v45 = vpop.permute.xlu2 %3826  ;;  %3836 = vrot.lane.b32.xlu1 %v3770_v22, %s4757_s27  ;;  %v3421_v22 = vshll.u32 %v3054_v57, 16 }
 0x2b4   : > { %3899 = vst.msk [vmem:[#allocation3 + $0x60] sm:$0xf] %vm3874_vm7, %v3827_v45  ;;  %3786 = vrot.lane.b32.xlu0 %v3683_v15, %s4757_s27  ;;  %v3223_v15 = vrot.slane %v3221_v48, 5  ;;  %v2839_v48 = vld [vmem:[#allocation2 + $0xa0] sm:$0xf] }
 0x2b5   : > { %v3813_v27 = vpop.permute.xlu1 %3812  ;;  %v3423_v16 = vrot.slane %v3421_v22, 5 }
 0x2b6   : > { %3892 = vst.msk [vmem:[#allocation3 + $0x44] sm:$0xf] %vm3874_vm7, %v3813_v27  ;;  %v3458_v63 = vpop.permute.xlu0 %3457  ;;  %v4456_v27 = vrot.slane %v3603_v24, 9 }
 0x2b7   : > { %3546 = vst.msk [vmem:[#allocation3 + $0x20] sm:$0xf] %vm3537_vm6, %v3458_v63 }
 0x2b8   : > { %v3746_v1 = vsel %vm5489_vm13, %v4456_v27, %v3745_v58 }
 0x2b9   : > { %3497 = vrot.lane.b32.xlu2 %v3406_v14, %s4756_s26  ;;  %v3224_v14 = vsel %vm4826_vm3, %v3219_v50, %v3223_v15 }
 0x2bb   : > { %v3444_v21 = vpop.permute.xlu2 %3443  ;;  %3465 = vrot.lane.b32.xlu1 %v3214_v47, %s4756_s26  ;;  %v4573_v17 = vld [vmem:[#allocation3 + $0x60] sm:$0xff]  ;;  %v3424_v47 = vor.u32 %v3423_v16, %v3420_v9  ;;  %v3056_v16 = vld [vmem:[#allocation2 + $0xd4] sm:$0x1] }
 0x2bc   : > { %3539 = vst.msk [vmem:[#allocation3 + $0x4] sm:$0xf] %vm3537_vm6, %v3444_v21  ;;  %3804 = vrot.lane.b32.xlu0 %v3714_v55, %s4757_s27  ;;  %4553 = vmatmul.msk.bf16.vlgmr.msra.gmra.mxu3 %vm4059_vm8, %v4573_v17  ;;  %v3427_v55 = vshll.u32 %v6589_v43, 16  ;;  %v3042_v21 = vld [vmem:[#allocation2 + $0x9c] sm:$0xf] }
 0x2bd   : > { %v3442_v18 = vpop.permute.xlu1 %3441  ;;  %v4569_v33 = vld [vmem:[#allocation3 + $0x40] sm:$0xff]  ;;  %v3425_v17 = vrot.slane %v3424_v47, 4  ;;  %v3322_v31 = vshrl.u32 %v3042_v21, 16  ;;  %v3437_v47 = vshll.u32 %v3056_v16, 16 }
 0x2be   : > { %3538 = vst.msk [vmem:[#allocation3] sm:$0xf] %vm3537_vm6, %v3442_v18  ;;  %v3781_v52 = vpop.permute.xlu0 %3780  ;;  %4549 = vmatmul.msk.bf16.vlgmr.msra.gmra.mxu2 %vm4059_vm8, %v4569_v33  ;;  %v6605_v54 = vrot.slane %v3427_v55, 5  ;;  %v3775_v33 = vrot.slane %v3773_v25, 4  ;;  %v6644_v55 = vld [vmem:[#allocation2 + $0x70] sm:$0xf] }
 0x2bf   : > { %3876 = vst.msk [vmem:[#allocation3 + $0x4] sm:$0xf] %vm3874_vm7, %v3781_v52  ;;  %v3711_v52 = vsel %vm5489_vm13, %v4451_v23, %v3710_v36  ;;  %v3324_v42 = vrot.slane %v3322_v31, 4  ;;  %v3717_v41 = vrot.slane %v6644_v55, 5 }
 0x2c0   : > { %v3430_v4 = vsel %vm4826_vm3, %v3425_v17, %v6605_v54  ;;  %v3777_v19 = vsel %vm5489_vm13, %v3775_v33, %v3776_v8 }
 0x2c1   : > { %3820 = vrot.lane.b32.xlu2 %v3742_v30, %s4757_s27  ;;  %v3145_v30 = vrot.slane %v3143_v11, 4 }
 0x2c3   : > { %v3779_v35 = vpop.permute.xlu2 %3778  ;;  %3788 = vrot.lane.b32.xlu1 %v3686_v32, %s4757_s27  ;;  %v3325_v32 = vshll.u32 %v3042_v21, 16  ;;  %v3146_v36 = vor.u32 %v3145_v30, %v6609_v13  ;;  %v3593_v21 = vld [vmem:[#allocation2 + $0x74] sm:$0x1]  ;;  %v3719_v30 = vrot.slane %v3717_v41, 4 }
 0x2c4   : > { %3875 = vst.msk [vmem:[#allocation3] sm:$0xf] %vm3874_vm7, %v3779_v35  ;;  %2940 = vrot.lane.b32.xlu0 %v2846_v40, %s4755_s25  ;;  %v3020_v40 = vld [vmem:[#allocation2 + $0x44] sm:$0x1] }
 0x2c5   : > { %v3460_v38 = vpop.permute.xlu1 %3459  ;;  %v3149_v29 = vshll.u32 %v3020_v40, 16  ;;  %v3327_v35 = vrot.slane %v3325_v32, 5  ;;  %v3147_v57 = vrot.slane %v3146_v36, 4  ;;  %v3581_v36 = vld [vmem:[#allocation2 + $0x44] sm:$0x1] }
 0x2c6   : > { %3547 = vst.msk [vmem:[#allocation3 + $0x24] sm:$0xf] %vm3537_vm6, %v3460_v38  ;;  %v2917_v46 = vpop.permute.xlu0 %2916  ;;  %v3747_v38 = vrot.slane %v3745_v58, 4 }
 0x2c7   : > { %2995 = vst.msk [vmem:[#allocation3 + $0x48] sm:$0xf] %vm2976_vm4, %v2917_v46  ;;  %v3030_v46 = vld [vmem:[#allocation2 + $0x6c] sm:$0xf]  ;;  %v3328_v12 = vor.u32 %v3327_v35, %v3324_v42 }
 0x2c8   : > { %v3749_v22 = vsel %vm5489_vm13, %v3747_v38, %v3748_v0  ;;  %v3229_v50 = vshll.u32 %v3030_v46, 16  ;;  %v3692_v0 = vrot.slane %v3581_v36, 5 }
 0x2c9   : > { %3449 = vrot.lane.b32.xlu2 %v3118_v26, %s4756_s26  ;;  %v3151_v26 = vrot.slane %v3149_v29, 5  ;;  %v3329_v24 = vrot.slane %v3328_v12, 4 }
 0x2ca   : > { %v3231_v27 = vrot.slane %v3229_v50, 5 }
 0x2cb   : > { %v3797_v62 = vpop.permute.xlu2 %3796  ;;  %2924 = vrot.lane.b32.xlu1 %v2838_v49, %s4755_s25  ;;  %v4561_v45 = vld [vmem:[#allocation3] sm:$0xff]  ;;  %v3152_v15 = vsel %vm4826_vm3, %v3147_v57, %v3151_v26  ;;  %v3334_v60 = vsel %vm4826_vm3, %v3329_v24, %v6558_v56  ;;  %v3439_v56 = vrot.slane %v3437_v47, 5 }
 0x2cc   : > { %3884 = vst.msk [vmem:[#allocation3 + $0x24] sm:$0xf] %vm3874_vm7, %v3797_v62  ;;  %3487 = vrot.lane.b32.xlu0 %v3344_v44, %s4756_s26  ;;  %4541 = vmatmul.msk.bf16.vlgmr.msra.gmra.mxu0 %vm4059_vm8, %v4561_v45  ;;  %v3226_v44 = vshrl.u32 %v3030_v46, 16  ;;  %v3579_v62 = vld [vmem:[#allocation2 + $0x3c] sm:$0xe] }
 0x2cd   : > { %v3795_v34 = vpop.permute.xlu1 %3794  ;;  %v3580_v45 = vld [vmem:[#allocation2 + $0x40] sm:$0xf]  ;;  %v4448_v43 = vrot.slane %v3579_v62, 9 }
 0x2ce   : > { %3883 = vst.msk [vmem:[#allocation3 + $0x20] sm:$0xf] %vm3874_vm7, %v3795_v34  ;;  %v2935_v63 = vpop.permute.xlu0 %2934  ;;  %v3228_v34 = vrot.slane %v3226_v44, 4 }
 0x2cf   : > { %3004 = vst.msk [vmem:[#allocation3 + $0x6c] sm:$0xf] %vm2976_vm4, %v2935_v63  ;;  %v3031_v63 = vld [vmem:[#allocation2 + $0x70] sm:$0xf] }
 0x2d0   : > { %v3232_v61 = vor.u32 %v3231_v27, %v3228_v34  ;;  %v3235_v11 = vshll.u32 %v3031_v63, 16  ;;  %v3239_v26 = vshrl.u32 %v3031_v63, 16 }
 0x2d1   : > { %3467 = vrot.lane.b32.xlu2 %v3224_v14, %s4756_s26  ;;  %v3689_v14 = vrot.slane %v3580_v45, 5 }
 0x2d2   : > { %v3237_v33 = vrot.slane %v3235_v11, 5 }
 0x2d3   : > { %v2933_v6 = vpop.permute.xlu2 %2932  ;;  %2942 = vrot.lane.b32.xlu1 %v2847_v3, %s4755_s25  ;;  %v3434_v3 = vor.u32 %v3433_v37, %v6605_v54  ;;  %v3690_v23 = vsel %vm5489_vm13, %v4448_v43, %v3689_v14  ;;  %v3691_v38 = vrot.slane %v3689_v14, 4  ;;  %v3245_v37 = vshll.u32 %v3032_v28, 16 }
 0x2d4   : > { %3003 = vst.msk [vmem:[#allocation3 + $0x68] sm:$0xf] %vm2976_vm4, %v2933_v6  ;;  %3822 = vrot.lane.b32.xlu0 %v3746_v1, %s4757_s27  ;;  %v2831_v1 = vld [vmem:[#allocation2 + $0x70] sm:$0xf] }
 0x2d5   : > { %v2919_v59 = vpop.permute.xlu1 %2918  ;;  %v4565_v18 = vld [vmem:[#allocation3 + $0x20] sm:$0xff]  ;;  %v3435_v6 = vrot.slane %v3434_v3, 4  ;;  %v3247_v45 = vrot.slane %v3245_v37, 5 }
 0x2d6   : > { %2996 = vst.msk [vmem:[#allocation3 + $0x4c] sm:$0xf] %vm2976_vm4, %v2919_v59  ;;  %v3494_v53 = vpop.permute.xlu0 %3493  ;;  %4545 = vmatmul.msk.bf16.vlgmr.msra.gmra.mxu1 %vm4059_vm8, %v4565_v18  ;;  %v3018_v59 = vld [vmem:[#allocation2 + $0x3c] sm:$0xf]  ;;  %v3233_v18 = vrot.slane %v3232_v61, 4 }
 0x2d7   : > { %3564 = vst.msk [vmem:[#allocation3 + $0x68] sm:$0xf] %vm3537_vm6, %v3494_v53  ;;  %v3440_v53 = vsel %vm4826_vm3, %v3435_v6, %v3439_v56  ;;  %v3130_v32 = vshrl.u32 %v3018_v59, 16  ;;  %v3133_v40 = vshll.u32 %v3018_v59, 16 }
 0x2d9   : > { %3802 = vrot.lane.b32.xlu2 %v3711_v52, %s4757_s27  ;;  %v3720_v52 = vrot.slane %v3593_v21, 5  ;;  %v3132_v42 = vrot.slane %v3130_v32, 4  ;;  %v3135_v35 = vrot.slane %v3133_v40, 5 }
 0x2db   : > { %v3480_v7 = vpop.permute.xlu2 %3479  ;;  %3501 = vrot.lane.b32.xlu1 %v3430_v4, %s4756_s26  ;;  %v3615_v4 = vld [vmem:[#allocation2 + $0xcc] sm:$0xe]  ;;  %v3721_v5 = vsel %vm5489_vm13, %v3719_v30, %v3720_v52 }
 0x2dc   : > { %3557 = vst.msk [vmem:[#allocation3 + $0x4c] sm:$0xf] %vm3537_vm6, %v3480_v7  ;;  %3840 = vrot.lane.b32.xlu0 %v3777_v19, %s4757_s27  ;;  %v3238_v19 = vsel %vm4826_vm3, %v3233_v18, %v3237_v33  ;;  %v4460_v29 = vrot.slane %v3615_v4, 9  ;;  %v6728_v4 = vld [vmem:[%s6817_s2] ss:$0 sm:$0xff] }
 0x2dd   : > { %v3478_v51 = vpop.permute.xlu1 %3477 }
 0x2de   : > { %3556 = vst.msk [vmem:[#allocation3 + $0x48] sm:$0xf] %vm3537_vm6, %v3478_v51  ;;  %v3817_v49 = vpop.permute.xlu0 %3816  ;;  %v3774_v46 = vsel %vm5489_vm13, %v4460_v29, %v3773_v25 }
 0x2df   : > { %3894 = vst.msk [vmem:[#allocation3 + $0x4c] sm:$0xf] %vm3874_vm7, %v3817_v49  ;;  %v3693_v49 = vsel %vm5489_vm13, %v3691_v38, %v3692_v0 }
 0x2e1   : > { %2926 = vrot.lane.b32.xlu2 %v2839_v48, %s4755_s25  ;;  %v3136_v48 = vor.u32 %v3135_v35, %v3132_v42 }
 0x2e3   : > { %v3815_v9 = vpop.permute.xlu2 %3814  ;;  %3824 = vrot.lane.b32.xlu1 %v3749_v22, %s4757_s27  ;;  %v3137_v12 = vrot.slane %v3136_v48, 4  ;;  %v3241_v22 = vrot.slane %v3239_v26, 4 }
 0x2e4   : > { %3893 = vst.msk [vmem:[#allocation3 + $0x48] sm:$0xf] %vm3874_vm7, %v3815_v9  ;;  %3455 = vrot.lane.b32.xlu0 %v3152_v15, %s4756_s26 }
 0x2e5   : > { %v3496_v58 = vpop.permute.xlu1 %3495  ;;  %v3142_v50 = vsel %vm4826_vm3, %v3137_v12, %v6609_v13  ;;  %v3242_v24 = vor.u32 %v3241_v22, %v3237_v33 }
 0x2e6   : > { %3565 = vst.msk [vmem:[#allocation3 + $0x6c] sm:$0xf] %vm3537_vm6, %v3496_v58  ;;  %v3446_v39 = vpop.permute.xlu0 %3445  ;;  %v3591_v58 = vld [vmem:[#allocation2 + $0x6c] sm:$0xe] }
 0x2e7   : > { %3540 = vst.msk [vmem:[#allocation3 + $0x8] sm:$0xf] %vm3537_vm6, %v3446_v39  ;;  %v3243_v62 = vrot.slane %v3242_v24, 4  ;;  %v4452_v43 = vrot.slane %v3591_v58, 9 }
 0x2e9   : > { %3485 = vrot.lane.b32.xlu2 %v3334_v60, %s4756_s26  ;;  %v3248_v27 = vsel %vm4826_vm3, %v3243_v62, %v3247_v45  ;;  %v3718_v10 = vsel %vm5489_vm13, %v4452_v43, %v3717_v41 }
 0x2eb   : > { %v3833_v17 = vpop.permute.xlu2 %3832  ;;  %2910 = vrot.lane.b32.xlu1 %v2831_v1, %s4755_s25  ;;  %v4570_v54 = vld [vmem:[#allocation3 + $0x48] sm:$0xff] }
 0x2ec   : > { %3902 = vst.msk [vmem:[#allocation3 + $0x6c] sm:$0xf] %vm3874_vm7, %v3833_v17  ;;  %3790 = vrot.lane.b32.xlu0 %v3690_v23, %s4757_s27  ;;  %4550 = vmatmul.msk.bf16.gmra.mxu2 %vm4059_vm8, %v4570_v54 }
 0x2ed   : > { %v3831_v8 = vpop.permute.xlu1 %3830 }
 0x2ee   : > { %3901 = vst.msk [vmem:[#allocation3 + $0x68] sm:$0xf] %vm3874_vm7, %v3831_v8  ;;  %v3464_v31 = vpop.permute.xlu0 %3463 }
 0x2ef   : > { %3549 = vst.msk [vmem:[#allocation3 + $0x2c] sm:$0xf] %vm3537_vm6, %v3464_v31 }
 0x2f1   : > { %3503 = vrot.lane.b32.xlu2 %v3440_v53, %s4756_s26 }
 0x2f3   : > { %v3462_v7 = vpop.permute.xlu2 %3461  ;;  %3469 = vrot.lane.b32.xlu1 %v3238_v19, %s4756_s26 }
 0x2f4   : > { %3548 = vst.msk [vmem:[#allocation3 + $0x28] sm:$0xf] %vm3537_vm6, %v3462_v7  ;;  %3808 = vrot.lane.b32.xlu0 %v3721_v5, %s4757_s27 }
 0x2f5   : > { %v3448_v51 = vpop.permute.xlu1 %3447  ;;  %v4574_v57 = vld [vmem:[#allocation3 + $0x68] sm:$0xff] }
 0x2f6   : > { %3541 = vst.msk [vmem:[#allocation3 + $0xc] sm:$0xf] %vm3537_vm6, %v3448_v51  ;;  %v3799_v2 = vpop.permute.xlu0 %3798  ;;  %4554 = vmatmul.msk.bf16.gmra.mxu3 %vm4059_vm8, %v4574_v57 }
 0x2f7   : > { %3885 = vst.msk [vmem:[#allocation3 + $0x28] sm:$0xf] %vm3874_vm7, %v3799_v2 }
 0x2f9   : > { %3838 = vrot.lane.b32.xlu2 %v3774_v46, %s4757_s27 }
 0x2fb   : > { %v3785_v44 = vpop.permute.xlu2 %3784  ;;  %3792 = vrot.lane.b32.xlu1 %v3693_v49, %s4757_s27 }
 0x2fc   : > { %3878 = vst.msk [vmem:[#allocation3 + $0xc] sm:$0xf] %vm3874_vm7, %v3785_v44 }
 0x2fd   : > { %v3783_v25 = vpop.permute.xlu1 %3782 }
 0x2fe   : > { %3877 = vst.msk [vmem:[#allocation3 + $0x8] sm:$0xf] %vm3874_vm7, %v3783_v25  ;;  %v2923_v15 = vpop.permute.xlu0 %2922 }
 0x2ff   : > { %2998 = vst.msk [vmem:[#allocation3 + $0x54] sm:$0xf] %vm2976_vm4, %v2923_v15 }
 0x301   : > { %3453 = vrot.lane.b32.xlu2 %v3142_v50, %s4756_s26 }
 0x303   : > { %v2921_v9 = vpop.permute.xlu2 %2920 }
 0x304   : > { %2997 = vst.msk [vmem:[#allocation3 + $0x50] sm:$0xf] %vm2976_vm4, %v2921_v9 }
 0x305   : > { %v3801_v16 = vpop.permute.xlu1 %3800  ;;  %v4562_v34 = vld [vmem:[#allocation3 + $0x8] sm:$0xff] }
 0x306   : > { %3886 = vst.msk [vmem:[#allocation3 + $0x2c] sm:$0xf] %vm3874_vm7, %v3801_v16  ;;  %v3482_v13 = vpop.permute.xlu0 %3481  ;;  %4542 = vmatmul.msk.bf16.gmra.mxu0 %vm4059_vm8, %v4562_v34 }
 0x307   : > { %3558 = vst.msk [vmem:[#allocation3 + $0x50] sm:$0xf] %vm3537_vm6, %v3482_v13 }
 0x309   : > { %3471 = vrot.lane.b32.xlu2 %v3248_v27, %s4756_s26 }
 0x30b   : > { %v2939_v14 = vpop.permute.xlu2 %2938 }
 0x30c   : > { %3006 = vst.msk [vmem:[#allocation3 + $0x74] sm:$0xf] %vm2976_vm4, %v2939_v14 }
 0x30d   : > { %v2937_v63 = vpop.permute.xlu1 %2936  ;;  %v4566_v60 = vld [vmem:[#allocation3 + $0x28] sm:$0xff] }
 0x30e   : > { %3005 = vst.msk [vmem:[#allocation3 + $0x70] sm:$0xf] %vm2976_vm4, %v2937_v63  ;;  %v3500_v39 = vpop.permute.xlu0 %3499  ;;  %4546 = vmatmul.msk.bf16.gmra.mxu1 %vm4059_vm8, %v4566_v60 }
 0x30f   : > { %3567 = vst.msk [vmem:[#allocation3 + $0x74] sm:$0xf] %vm3537_vm6, %v3500_v39 }
 0x311   : > { %3806 = vrot.lane.b32.xlu2 %v3718_v10, %s4757_s27 }
 0x313   : > { %v3498_v3 = vpop.permute.xlu2 %3497 }
 0x314   : > { %3566 = vst.msk [vmem:[#allocation3 + $0x70] sm:$0xf] %vm3537_vm6, %v3498_v3 }
 0x315   : > { %v3484_v47 = vpop.permute.xlu1 %3483 }
 0x316   : > { %3559 = vst.msk [vmem:[#allocation3 + $0x54] sm:$0xf] %vm3537_vm6, %v3484_v47  ;;  %v3835_v1 = vpop.permute.xlu0 %3834 }
 0x317   : > { %3903 = vst.msk [vmem:[#allocation3 + $0x70] sm:$0xf] %vm3874_vm7, %v3835_v1 }
 0x31b   : > { %v3821_v55 = vpop.permute.xlu2 %3820 }
 0x31c   : > { %3896 = vst.msk [vmem:[#allocation3 + $0x54] sm:$0xf] %vm3874_vm7, %v3821_v55 }
 0x31d   : > { %v3819_v20 = vpop.permute.xlu1 %3818 }
 0x31e   : > { %3895 = vst.msk [vmem:[#allocation3 + $0x50] sm:$0xf] %vm3874_vm7, %v3819_v20  ;;  %v3452_v61 = vpop.permute.xlu0 %3451 }
 0x31f   : > { %3543 = vst.msk [vmem:[#allocation3 + $0x14] sm:$0xf] %vm3537_vm6, %v3452_v61 }
 0x323   : > { %v3450_v11 = vpop.permute.xlu2 %3449 }
 0x324   : > { %3542 = vst.msk [vmem:[#allocation3 + $0x10] sm:$0xf] %vm3537_vm6, %v3450_v11 }
 0x325   : > { %v3837_v23 = vpop.permute.xlu1 %3836  ;;  %v4571_v41 = vld [vmem:[#allocation3 + $0x50] sm:$0xff] }
 0x326   : > { %3904 = vst.msk [vmem:[#allocation3 + $0x74] sm:$0xf] %vm3874_vm7, %v3837_v23  ;;  %v3787_v6 = vpop.permute.xlu0 %3786  ;;  %4551 = vmatmul.msk.bf16.gmra.mxu2 %vm4059_vm8, %v4571_v41 }
 0x327   : > { %3879 = vst.msk [vmem:[#allocation3 + $0x10] sm:$0xf] %vm3874_vm7, %v3787_v6 }
 0x32b   : > { %v3468_v56 = vpop.permute.xlu2 %3467 }
 0x32c   : > { %3551 = vst.msk [vmem:[#allocation3 + $0x34] sm:$0xf] %vm3537_vm6, %v3468_v56 }
 0x32d   : > { %v3466_v21 = vpop.permute.xlu1 %3465  ;;  %v4575_v17 = vld [vmem:[#allocation3 + $0x70] sm:$0xff] }
 0x32e   : > { %3550 = vst.msk [vmem:[#allocation3 + $0x30] sm:$0xf] %vm3537_vm6, %v3466_v21  ;;  %v3805_v54 = vpop.permute.xlu0 %3804  ;;  %4555 = vmatmul.msk.bf16.gmra.mxu3 %vm4059_vm8, %v4575_v17 }
 0x32f   : > { %3888 = vst.msk [vmem:[#allocation3 + $0x34] sm:$0xf] %vm3874_vm7, %v3805_v54 }
 0x333   : > { %v3803_v59 = vpop.permute.xlu2 %3802 }
 0x334   : > { %3887 = vst.msk [vmem:[#allocation3 + $0x30] sm:$0xf] %vm3874_vm7, %v3803_v59 }
 0x335   : > { %v3789_v18 = vpop.permute.xlu1 %3788 }
 0x336   : > { %3880 = vst.msk [vmem:[#allocation3 + $0x14] sm:$0xf] %vm3874_vm7, %v3789_v18  ;;  %v2941_v33 = vpop.permute.xlu0 %2940 }
 0x337   : > { %3007 = vst.msk [vmem:[#allocation3 + $0x78] sm:$0xf] %vm2976_vm4, %v2941_v33 }
 0x33b   : > { %v2927_v8 = vpop.permute.xlu2 %2926  ;;  %v4567_v30 = vld [vmem:[#allocation3 + $0x30] sm:$0xff] }
 0x33c   : > { %3000 = vst.msk [vmem:[#allocation3 + $0x5c] sm:$0xf] %vm2976_vm4, %v2927_v8  ;;  %4547 = vmatmul.msk.bf16.gmra.mxu1 %vm4059_vm8, %v4567_v30 }
 0x33d   : > { %v2925_v52 = vpop.permute.xlu1 %2924  ;;  %v4563_v53 = vld [vmem:[#allocation3 + $0x10] sm:$0xff] }
 0x33e   : > { %2999 = vst.msk [vmem:[#allocation3 + $0x58] sm:$0xf] %vm2976_vm4, %v2925_v52  ;;  %v3488_v31 = vpop.permute.xlu0 %3487  ;;  %4543 = vmatmul.msk.bf16.gmra.mxu0 %vm4059_vm8, %v4563_v53 }
 0x33f   : > { %3561 = vst.msk [vmem:[#allocation3 + $0x5c] sm:$0xf] %vm3537_vm6, %v3488_v31  ;;  %v4181_v32 = vpop.f32.mrf.mxu3 }
 0x340   : > { %v4182_v29 = vadd.f32 %v6728_v4, %v4181_v32 }
 0x341   : > { %v4161_v40 = vpop.f32.mrf.mxu2 }
 0x342   : > { %v4162_v35 = vadd.f32 %v6728_v4, %v4161_v40  ;;  %v4225_v51 = vmax.f32 %v4182_v29, 0.0 }
 0x343   : > { %v3486_v19 = vpop.permute.xlu2 %3485 }
 0x344   : > { %3560 = vst.msk [vmem:[#allocation3 + $0x58] sm:$0xf] %vm3537_vm6, %v3486_v19  ;;  %v4217_v2 = vmax.f32 %v4162_v35, 0.0 }
 0x345   : > { %v2943_v5 = vpop.permute.xlu1 %2942 }
 0x346   : > { %3008 = vst.msk [vmem:[#allocation3 + $0x7c] sm:$0xf] %vm2976_vm4, %v2943_v5  ;;  %v3823_v36 = vpop.permute.xlu0 %3822 }
 0x347   : > { %3897 = vst.msk [vmem:[#allocation3 + $0x58] sm:$0xf] %vm3874_vm7, %v3823_v36  ;;  %v4183_v42 = vpop.f32.mrf.mxu3 }
 0x348   : > { %v4184_v7 = vadd.f32 %v6728_v4, %v4183_v42 }
 0x349   : > { %v4121_v38 = vpop.f32.mrf.mxu0  ;;  %v4163_v0 = vpop.f32.mrf.mxu2 }
 0x34a   : > { %v4226_v57 = vmax.f32 %v4184_v7, 0.0  ;;  %v4164_v46 = vadd.f32 %v6728_v4, %v4163_v0  ;;  %v4122_v28 = vadd.f32 %v6728_v4, %v4121_v38 }
 0x34b   : > { %v3504_v26 = vpop.permute.xlu2 %3503 }
 0x34c   : > { %3569 = vst.msk [vmem:[#allocation3 + $0x7c] sm:$0xf] %vm3537_vm6, %v3504_v26  ;;  %v4644_v48 = vpack.c.bf16 %v4226_v57, %v4225_v51  ;;  %v4218_v49 = vmax.f32 %v4164_v46, 0.0  ;;  %v4201_v37 = vmax.f32 %v4122_v28, 0.0 }
 0x34d   : > { %v3502_v12 = vpop.permute.xlu1 %3501 }
 0x34e   : > { %3568 = vst.msk [vmem:[#allocation3 + $0x78] sm:$0xf] %vm3537_vm6, %v3502_v12  ;;  %v3841_v22 = vpop.permute.xlu0 %3840  ;;  %v4624_v44 = vpack.c.bf16 %v4218_v49, %v4217_v2 }
 0x34f   : > { %4672 = vst [vmem:[%s6742_s20 + $0x60] sm:$0xff] %v4644_v48  }
 0x350   : > { %3906 = vst.msk [vmem:[#allocation3 + $0x7c] sm:$0xf] %vm3874_vm7, %v3841_v22 }
 0x351   : > { %4668 = vst [vmem:[%s6742_s20 + $0x40] sm:$0xff] %v4624_v44   ;;  %v4123_v25 = vpop.f32.mrf.mxu0 }
 0x352   : > { %v4124_v15 = vadd.f32 %v6728_v4, %v4123_v25 }
 0x353   : > { %v3839_v50 = vpop.permute.xlu2 %3838  ;;  %v4141_v24 = vpop.f32.mrf.mxu1 }
 0x354   : > { %3905 = vst.msk [vmem:[#allocation3 + $0x78] sm:$0xf] %vm3874_vm7, %v3839_v50  ;;  %v4202_v62 = vmax.f32 %v4124_v15, 0.0  ;;  %v4142_v34 = vadd.f32 %v6728_v4, %v4141_v24 }
 0x355   : > { %v3825_v45 = vpop.permute.xlu1 %3824 }
 0x356   : > { %3898 = vst.msk [vmem:[#allocation3 + $0x5c] sm:$0xf] %vm3874_vm7, %v3825_v45  ;;  %v3456_v9 = vpop.permute.xlu0 %3455  ;;  %v4584_v16 = vpack.c.bf16 %v4202_v62, %v4201_v37  ;;  %v4209_v10 = vmax.f32 %v4142_v34, 0.0 }
 0x357   : > { %3545 = vst.msk [vmem:[#allocation3 + $0x1c] sm:$0xf] %vm3537_vm6, %v3456_v9 }
 0x358   : > { %4585 = vst [vmem:[%s6742_s20] sm:$0xff] %v4584_v16  }
 0x35b   : > { %v3454_v27 = vpop.permute.xlu2 %3453  ;;  %v4576_v13 = vld [vmem:[#allocation3 + $0x78] sm:$0xff]  ;;  %v4143_v58 = vpop.f32.mrf.mxu1 }
 0x35c   : > { %3544 = vst.msk [vmem:[#allocation3 + $0x18] sm:$0xf] %vm3537_vm6, %v3454_v27  ;;  %4556 = vmatmul.msk.bf16.gmra.mxu3 %vm4059_vm8, %v4576_v13  ;;  %v4144_v43 = vadd.f32 %v6728_v4, %v4143_v58 }
 0x35d   : > { %v2911_v14 = vpop.permute.xlu1 %2910  ;;  %v4572_v63 = vld [vmem:[#allocation3 + $0x58] sm:$0xff] }
 0x35e   : > { %2992 = vst.msk [vmem:[#allocation3 + $0x3c] sm:$0xf] %vm2976_vm4, %v2911_v14  ;;  %v3791_v60 = vpop.permute.xlu0 %3790  ;;  %v4210_v39 = vmax.f32 %v4144_v43, 0.0  ;;  %4552 = vmatmul.msk.bf16.gmra.mxu2 %vm4059_vm8, %v4572_v63 }
 0x35f   : > { %3881 = vst.msk [vmem:[#allocation3 + $0x18] sm:$0xf] %vm3874_vm7, %v3791_v60 }
 0x360   : > { %v4604_v3 = vpack.c.bf16 %v4210_v39, %v4209_v10 }
 0x362   : > { %4664 = vst [vmem:[%s6742_s20 + $0x20] sm:$0xff] %v4604_v3  }
 0x363   : > { %v3472_v47 = vpop.permute.xlu2 %3471 }
 0x364   : > { %3553 = vst.msk [vmem:[#allocation3 + $0x3c] sm:$0xf] %vm3537_vm6, %v3472_v47 }
 0x365   : > { %v3470_v1 = vpop.permute.xlu1 %3469 }
 0x366   : > { %3552 = vst.msk [vmem:[#allocation3 + $0x38] sm:$0xf] %vm3537_vm6, %v3470_v1  ;;  %v3809_v55 = vpop.permute.xlu0 %3808 }
 0x367   : > { %3890 = vst.msk [vmem:[#allocation3 + $0x3c] sm:$0xf] %vm3874_vm7, %v3809_v55 }
 0x36b   : > { %v3807_v20 = vpop.permute.xlu2 %3806 }
 0x36c   : > { %3889 = vst.msk [vmem:[#allocation3 + $0x38] sm:$0xf] %vm3874_vm7, %v3807_v20 }
 0x36d   : > { %v3793_v61 = vpop.permute.xlu1 %3792 }
 0x36e   : > { %3882 = vst.msk [vmem:[#allocation3 + $0x1c] sm:$0xf] %vm3874_vm7, %v3793_v61 }
 0x36f   : > { %v4166_v11 = vpop.f32.mrf.mxu2 }
 0x370   : > { %v4167_v6 = vadd.f32 %v6728_v4, %v4166_v11 }
 0x372   : > { %v4219_v54 = vmax.f32 %v4167_v6, 0.0 }
 0x373   : > { %v4568_v23 = vld [vmem:[#allocation3 + $0x38] sm:$0xff] }
 0x374   : > { %4548 = vmatmul.msk.bf16.gmra.mxu1 %vm4059_vm8, %v4568_v23 }
 0x375   : > { %v4564_v41 = vld [vmem:[#allocation3 + $0x18] sm:$0xff] }
 0x376   : > { %4544 = vmatmul.msk.bf16.gmra.mxu0 %vm4059_vm8, %v4564_v41 }
 0x377   : > { %v4168_v56 = vpop.f32.mrf.mxu2 }
 0x378   : > { %v4169_v21 = vadd.f32 %v6728_v4, %v4168_v56 }
 0x379   : > { %v4186_v17 = vpop.f32.mrf.mxu3 }
 0x37a   : > { %v4220_v59 = vmax.f32 %v4169_v21, 0.0  ;;  %v4187_v33 = vadd.f32 %v6728_v4, %v4186_v17 }
 0x37c   : > { %v4629_v18 = vpack.c.bf16 %v4220_v59, %v4219_v54  ;;  %v4227_v53 = vmax.f32 %v4187_v33, 0.0 }
 0x37e   : > { %4669 = vst [vmem:[%s6742_s20 + $0x48] sm:$0xff] %v4629_v18  }
 0x381   : > { %v4188_v8 = vpop.f32.mrf.mxu3 }
 0x382   : > { %v4189_v30 = vadd.f32 %v6728_v4, %v4188_v8 }
 0x383   : > { %v4126_v52 = vpop.f32.mrf.mxu0 }
 0x384   : > { %v4228_v31 = vmax.f32 %v4189_v30, 0.0  ;;  %v4127_v40 = vadd.f32 %v6728_v4, %v4126_v52 }
 0x386   : > { %v4649_v32 = vpack.c.bf16 %v4228_v31, %v4227_v53  ;;  %v4203_v29 = vmax.f32 %v4127_v40, 0.0 }
 0x388   : > { %4673 = vst [vmem:[%s6742_s20 + $0x68] sm:$0xff] %v4649_v32  }
 0x38b   : > { %v4128_v19 = vpop.f32.mrf.mxu0  ;;  %v4146_v5 = vpop.f32.mrf.mxu1 }
 0x38c   : > { %v4129_v36 = vadd.f32 %v6728_v4, %v4128_v19  ;;  %v4147_v7 = vadd.f32 %v6728_v4, %v4146_v5 }
 0x38e   : > { %v4204_v42 = vmax.f32 %v4129_v36, 0.0  ;;  %v4211_v51 = vmax.f32 %v4147_v7, 0.0 }
 0x390   : > { %v4589_v35 = vpack.c.bf16 %v4204_v42, %v4203_v29 }
 0x392   : > { %4661 = vst [vmem:[%s6742_s20 + $0x8] sm:$0xff] %v4589_v35  }
 0x393   : > { %v4148_v38 = vpop.f32.mrf.mxu1 }
 0x394   : > { %v4149_v0 = vadd.f32 %v6728_v4, %v4148_v38 }
 0x396   : > { %v4212_v57 = vmax.f32 %v4149_v0, 0.0 }
 0x398   : > { %v4609_v26 = vpack.c.bf16 %v4212_v57, %v4211_v51 }
 0x39a   : > { %4665 = vst [vmem:[%s6742_s20 + $0x28] sm:$0xff] %v4609_v26  }
 0x3a9   : > { %v4171_v46 = vpop.f32.mrf.mxu2 }
 0x3aa   : > { %v4172_v2 = vadd.f32 %v6728_v4, %v4171_v46 }
 0x3ac   : > { %v4221_v22 = vmax.f32 %v4172_v2, 0.0 }
 0x3b1   : > { %v4173_v48 = vpop.f32.mrf.mxu2  ;;  %v4191_v49 = vpop.f32.mrf.mxu3 }
 0x3b2   : > { %v4174_v12 = vadd.f32 %v6728_v4, %v4173_v48  ;;  %v4192_v25 = vadd.f32 %v6728_v4, %v4191_v49 }
 0x3b4   : > { %v4222_v44 = vmax.f32 %v4174_v12, 0.0  ;;  %v4229_v62 = vmax.f32 %v4192_v25, 0.0 }
 0x3b6   : > { %v4634_v28 = vpack.c.bf16 %v4222_v44, %v4221_v22 }
 0x3b8   : > { %4670 = vst [vmem:[%s6742_s20 + $0x50] sm:$0xff] %v4634_v28  }
 0x3b9   : > { %v4151_v50 = vpop.f32.mrf.mxu1  ;;  %v4193_v15 = vpop.f32.mrf.mxu3 }
 0x3ba   : > { %v4194_v24 = vadd.f32 %v6728_v4, %v4193_v15  ;;  %v4152_v16 = vadd.f32 %v6728_v4, %v4151_v50 }
 0x3bb   : > { %v4131_v37 = vpop.f32.mrf.mxu0 }
 0x3bc   : > { %v4230_v45 = vmax.f32 %v4194_v24, 0.0  ;;  %v4132_v27 = vadd.f32 %v6728_v4, %v4131_v37  ;;  %v4213_v43 = vmax.f32 %v4152_v16, 0.0 }
 0x3be   : > { %v4654_v9 = vpack.c.bf16 %v4230_v45, %v4229_v62  ;;  %v4205_v60 = vmax.f32 %v4132_v27, 0.0 }
 0x3c0   : > { %4674 = vst [vmem:[%s6742_s20 + $0x70] sm:$0xff] %v4654_v9  }
 0x3c1   : > { %v4153_v34 = vpop.f32.mrf.mxu1 }
 0x3c2   : > { %v4154_v13 = vadd.f32 %v6728_v4, %v4153_v34 }
 0x3c3   : > { %v4133_v58 = vpop.f32.mrf.mxu0 }
 0x3c4   : > { %v4214_v14 = vmax.f32 %v4154_v13, 0.0  ;;  %v4134_v63 = vadd.f32 %v6728_v4, %v4133_v58 }
 0x3c6   : > { %v4614_v10 = vpack.c.bf16 %v4214_v14, %v4213_v43  ;;  %v4206_v39 = vmax.f32 %v4134_v63, 0.0 }
 0x3c8   : > { %4666 = vst [vmem:[%s6742_s20 + $0x30] sm:$0xff] %v4614_v10   ;;  %v4594_v3 = vpack.c.bf16 %v4206_v39, %v4205_v60 }
 0x3ca   : > { %4662 = vst [vmem:[%s6742_s20 + $0x10] sm:$0xff] %v4594_v3  }
 0x3df   : > { %v4196_v47 = vpop.f32.mrf.mxu3 }
 0x3e0   : > { %v4197_v55 = vadd.f32 %v6728_v4, %v4196_v47 }
 0x3e1   : > { %v4176_v1 = vpop.f32.mrf.mxu2 }
 0x3e2   : > { %v4177_v61 = vadd.f32 %v6728_v4, %v4176_v1  ;;  %v4231_v41 = vmax.f32 %v4197_v55, 0.0 }
 0x3e4   : > { %v4223_v21 = vmax.f32 %v4177_v61, 0.0 }
 0x3e7   : > { %v4198_v20 = vpop.f32.mrf.mxu3 }
 0x3e8   : > { %v4199_v11 = vadd.f32 %v6728_v4, %v4198_v20 }
 0x3e9   : > { %v4178_v23 = vpop.f32.mrf.mxu2 }
 0x3ea   : > { %v4232_v6 = vmax.f32 %v4199_v11, 0.0  ;;  %v4179_v56 = vadd.f32 %v6728_v4, %v4178_v23 }
 0x3ec   : > { %v4659_v17 = vpack.c.bf16 %v4232_v6, %v4231_v41  ;;  %v4224_v54 = vmax.f32 %v4179_v56, 0.0 }
 0x3ee   : > { %4675 = vst [vmem:[%s6742_s20 + $0x78] sm:$0xff] %v4659_v17   ;;  %v4639_v59 = vpack.c.bf16 %v4224_v54, %v4223_v21 }
 0x3f0   : > { %4671 = vst [vmem:[%s6742_s20 + $0x58] sm:$0xff] %v4639_v59  }
 0x3f1   : > { %v4156_v18 = vpop.f32.mrf.mxu1 }
 0x3f2   : > { %v4157_v8 = vadd.f32 %v6728_v4, %v4156_v18 }
 0x3f3   : > { %v4136_v33 = vpop.f32.mrf.mxu0 }
 0x3f4   : > { %v4137_v52 = vadd.f32 %v6728_v4, %v4136_v33  ;;  %v4215_v32 = vmax.f32 %v4157_v8, 0.0 }
 0x3f6   : > { %v4207_v5 = vmax.f32 %v4137_v52, 0.0 }
 0x3f9   : > { %v4158_v30 = vpop.f32.mrf.mxu1 }
 0x3fa   : > { %v4159_v53 = vadd.f32 %v6728_v4, %v4158_v30 }
 0x3fb   : > { %v4138_v31 = vpop.f32.mrf.mxu0 }
 0x3fc   : > { %v4216_v40 = vmax.f32 %v4159_v53, 0.0  ;;  %v4139_v19 = vadd.f32 %v6728_v4, %v4138_v31 }
 0x3fe   : > { %v4619_v36 = vpack.c.bf16 %v4216_v40, %v4215_v32  ;;  %v4208_v29 = vmax.f32 %v4139_v19, 0.0 }
 0x400   : > { %4667 = vst [vmem:[%s6742_s20 + $0x38] sm:$0xff] %v4619_v36   ;;  %v4599_v42 = vpack.c.bf16 %v4208_v29, %v4207_v5 }
 0x402   : > { %4663 = vst [vmem:[%s6742_s20 + $0x18] sm:$0xff] %v4599_v42  }
 0x403 PF: > { %s13_s14 = sadd.s32 1, %s4747_s14   ;;  %s6829_s12 = smov %s4743_s13 }
 0x404   : > { %p10_p5 = scmp.ge.s32.totalorder %s13_s14, 4   ;;  %s6830_s13 = smov %s6832_s15 }
 0x406   :  { %12 = sbr.rel (!%p10_p5) target bundleno = 2 (0x2), region = 74 }

// kernel: basic_block_forward.3
= control target key start
LH: loop header
LB: loop body
LE: loop exit
PB: predicated region body
PF: predicated region fallthrough
CT: control target
= control target key end

     0   :  { %s4910_s15 = smov 0   ;;  %s4912_s16 = smov 0   ;;  %s6985_s0 = inlined_call_operand.vmem [shape: bf16[2,16,16,128], index: 0, kind: input, shape index: {}]   ;;  %s6986_s1 = inlined_call_operand.vmem [shape: bf16[72,128], index: 1, kind: input, shape index: {}]   ;;  %s6987_s2 = inlined_call_operand.vmem [shape: f32[1,128], index: 2, kind: input, shape index: {}]   ;;  %s6988_s3 = inlined_call_operand.vmem [shape: bf16[2,256,128], index: 3, kind: input, shape index: {}]   ;;  %s6989_s4 = inlined_call_operand.vmem [shape: f32[2,256,128], index: 4, kind: output, shape index: {}]  }
   0x1   :  { %s4914_s17 = smov 0  }
   0x2 LB: > { %s26_s18 = sadd.s32 1, %s4870_s16  ;;  %p4548_p0 = scmp.ge.s32.totalorder %s4874_s17, 1  ;;  %s4874_s17 = sphi %s4914_s17, %s14_s17   ;;  %s4870_s16 = sphi %s4912_s16, %s7001_s16   ;;  %s4866_s15 = sphi %s4910_s15, %s7000_s15  }
   0x3   : > { %p28_p1 = scmp.ge.s32.totalorder %s26_s18, 2  ;;  %p208_p2 = scmp.lt.s32.totalorder %s4874_s17, 3 }
   0x5   : > { %s7003_s18 = smov (%p28_p1, %s26_s18), 0  ;;  %p209_p3 = pnand %p4548_p0, %p208_p2 }
   0x6   : > { %p252_p4 = scmp.lt.s32.totalorder (!%p209_p3), %s4866_s15, 1  ;;  %s4877_s19 = smov (!%p209_p3), 8  }
   0x7   : > { %212 = sbr.rel (%p209_p3) target bundleno = 1027 (0x403), region = 36  ;;  %s4878_s24 = smov (!%p209_p3), 16  }
   0x8   : > { %s4879_s25 = smov (!%p209_p3), 24   ;;  %s4880_s26 = smov (!%p209_p3), 32  }
   0x9   : > { %s4881_s27 = smov (!%p209_p3), 40   ;;  %s4882_s28 = smov (!%p209_p3), 48  }
   0xa   : > { %s4883_s29 = smov (!%p209_p3), 56   ;;  %s4884_s30 = smov (!%p209_p3), 64  }
   0xc   : > { %vm285_vm0 = vcmask 60416   ;;  %v4876_v0 = vmov 0   ;;  %vm926_vm1 = vsmask.f32 3328  ;;  %vm927_vm2 = vsmask.f32 7440 }
   0xd   : > { %286 = vst.msk [vmem:[#allocation2] sm:$0xf] %vm285_vm0, %v4876_v0  ;;  %vm4958_vm3 = vmor %vm926_vm1, %vm927_vm2  ;;  %s7005_s15 = smov (!%p252_p4, %s4866_s15), 1  ;;  %vm288_vm4 = vcmask 57344   ;;  %vm698_vm5 = vsmask.f32 7938 }
   0xe   : > { %287 = vst.msk [vmem:[#allocation2 + $0x4] sm:$0xf] %vm285_vm0, %v4876_v0  ;;  %s4701_s20 = sshll.u32 %s7005_s15, 7  ;;  %vm373_vm6 = vsmask.f32 256  ;;  %vm5104_vm8 = vmand %vm285_vm0, %vm698_vm5  ;;  %vm1538_vm11 = vcmask 1042432  }
   0xf   : > { %290 = vst.msk [vmem:[#allocation2 + $0xc] sm:$0xf] %vm285_vm0, %v4876_v0  ;;  %s5002_s23 = scalar_lea.vmem %s6985_s0, %s4701_s20  ;;  %vm374_vm7 = vsmask.f32 4368  ;;  %vm5178_vm10 = vmand %vm288_vm4, %vm373_vm6  ;;  %vm1539_vm12 = vcmask 1046532   ;;  %vm1409_vm14 = vcmask 126016   ;;  %s6857_s22 = scalar_lea.vmem %s6988_s3, %s4701_s20 }
  0x10   : > { %291 = vst.msk [vmem:[#allocation2 + $0x10] sm:$0xf] %vm285_vm0, %v4876_v0  ;;  %v341_v14 = vld [vmem:[%s5002_s23] sm:$0xf]  ;;  %v342_v15 = vld [vmem:[%s5002_s23 + $0x4] sm:$0xf]  ;;  %vm5118_vm9 = vmor %vm373_vm6, %vm374_vm7 }
  0x11   : > { %293 = vst.msk [vmem:[#allocation2 + $0x18] sm:$0xf] %vm285_vm0, %v4876_v0  ;;  %v345_v16 = vld [vmem:[%s5002_s23 + $0x10] sm:$0xf]  ;;  %v5018_v17 = vld [vmem:[%s5002_s23 + $0x14] sm:$0xf]  ;;  %vm5621_vm13 = vmor %vm1538_vm11, %vm1539_vm12 }
  0x12   : > { %294 = vst.msk [vmem:[#allocation2 + $0x1c] sm:$0xf] %vm285_vm0, %v4876_v0  ;;  %v377_v18 = vshrl.u32 %v341_v14, 16  ;;  %v5023_v19 = vld [vmem:[%s5002_s23 + $0x18] sm:$0xf]  ;;  %v385_v21 = vshrl.u32 %v342_v15, 16 }
  0x13   : > { %296 = vst.msk [vmem:[#allocation2 + $0x24] sm:$0xf] %vm285_vm0, %v4876_v0  ;;  %v348_v22 = vld [vmem:[%s5002_s23 + $0x1c] sm:$0xf]  ;;  %v411_v23 = vshrl.u32 %v345_v16, 16  ;;  %v419_v24 = vshrl.u32 %v5018_v17, 16 }
  0x14   : > { %v878_v1 = vld [vmem:[#allocation2] sm:$0xf]  ;;  %297 = vst.msk [vmem:[#allocation2 + $0x28] sm:$0xf] %vm285_vm0, %v4876_v0  ;;  %v428_v25 = vshrl.u32 %v5023_v19, 16  ;;  %v380_v26 = vshll.u32 %v341_v14, 16 }
  0x15   : > { %v879_v2 = vld [vmem:[#allocation2 + $0x4] sm:$0xf]  ;;  %v930_v3 = vshrl.u32 %v878_v1, 16  ;;  %v933_v4 = vshll.u32 %v878_v1, 16  ;;  %299 = vst.msk [vmem:[#allocation2 + $0x30] sm:$0xf] %vm285_vm0, %v4876_v0 }
  0x16   : > { %v939_v5 = vshll.u32 %v879_v2, 16  ;;  %300 = vst.msk [vmem:[#allocation2 + $0x34] sm:$0xf] %vm285_vm0, %v4876_v0  ;;  %v943_v13 = vshrl.u32 %v879_v2, 16  ;;  %v436_v27 = vshrl.u32 %v348_v22, 16  ;;  %v5042_v30 = vrot.slane %v377_v18, 7 }
  0x17   : > { %v932_v6 = vrot.slane %v930_v3, 4  ;;  %v935_v7 = vrot.slane %v933_v4, 5  ;;  %302 = vst.msk [vmem:[#allocation2 + $0x3c] sm:$0xf] %vm285_vm0, %v4876_v0  ;;  %v5037_v28 = vld [vmem:[%s5002_s23 + $0x28] sm:$0xf] }
  0x18   : > { %303 = vst.msk [vmem:[#allocation2 + $0x40] sm:$0xf] %vm285_vm0, %v4876_v0  ;;  %v4954_v9 = vrot.slane %v939_v5, 5  ;;  %v945_v20 = vrot.slane %v943_v13, 4  ;;  %v5044_v31 = vrot.slane %v385_v21, 7  ;;  %v388_v32 = vshll.u32 %v342_v15, 16 }
  0x19   : > { %v936_v8 = vor.u32 %v935_v7, %v932_v6  ;;  %305 = vst.msk [vmem:[#allocation2 + $0x48] sm:$0xf] %vm285_vm0, %v4876_v0  ;;  %v5048_v33 = vrot.slane %v411_v23, 7  ;;  %v414_v34 = vshll.u32 %v345_v16, 16  ;;  %v5050_v35 = vrot.slane %v419_v24, 7  ;;  %s4703_s20 = sshll.u32 %s7005_s15, 8 }
  0x1a   : > { %306 = vst.msk [vmem:[#allocation2 + $0x4c] sm:$0xf] %vm285_vm0, %v4876_v0  ;;  %v946_v29 = vor.u32 %v945_v20, %v4954_v9  ;;  %v422_v36 = vshll.u32 %v5018_v17, 16  ;;  %v5055_v37 = vrot.slane %v428_v25, 7  ;;  %v462_v38 = vshrl.u32 %v5037_v28, 16 }
  0x1b   : > { %v937_v11 = vrot.slane %v936_v8, 4  ;;  %308 = vst.msk [vmem:[#allocation2 + $0x54] sm:$0xf] %vm285_vm0, %v4876_v0  ;;  %v5059_v39 = vld [vmem:[%s5002_s23 + $0x8] sm:$0xf]  ;;  %v5063_v40 = vrot.slane %v436_v27, 7  ;;  %v5079_v46 = vor.u32 %v380_v26, %v5042_v30  ;;  %v390_v54 = vor.u32 %v388_v32, %v5044_v31 }
  0x1c   : > { %309 = vst.msk [vmem:[#allocation2 + $0x58] sm:$0xf] %vm285_vm0, %v4876_v0  ;;  %v439_v41 = vshll.u32 %v348_v22, 16  ;;  %v5066_v42 = vld [vmem:[%s5002_s23 + $0x2c] sm:$0xf]  ;;  %v947_v45 = vrot.slane %v946_v29, 4  ;;  %v5096_v56 = vor.u32 %v414_v34, %v5048_v33  ;;  %v424_v61 = vor.u32 %v422_v36, %v5050_v35 }
  0x1d   : > { %v942_v12 = vsel %vm4958_vm3, %v937_v11, %v4954_v9  ;;  %311 = vst.msk [vmem:[#allocation2 + $0x60] sm:$0xf] %vm285_vm0, %v4876_v0  ;;  %v5071_v43 = vld [vmem:[%s5002_s23 + $0xc] sm:$0xf]  ;;  %v5074_v44 = vld [vmem:[%s5002_s23 + $0x20] sm:$0xf] }
  0x1e   : > { %1313 = vrot.lane.b32.xlu0 %v942_v12, %s4877_s19  ;;  %312 = vst.msk [vmem:[#allocation2 + $0x64] sm:$0xf] %vm285_vm0, %v4876_v0  ;;  %v383_v47 = vrot.slane %v5042_v30, 4  ;;  %v394_v48 = vshrl.u32 %v5059_v39, 16  ;;  %v417_v49 = vrot.slane %v5048_v33, 4  ;;  %v434_v50 = vrot.slane %v5055_v37, 4 }
  0x1f   : > { %314 = vst.msk [vmem:[#allocation2 + $0x6c] sm:$0xf] %vm285_vm0, %v4876_v0  ;;  %v5087_v51 = vrot.slane %v462_v38, 7  ;;  %v470_v52 = vshrl.u32 %v5066_v42, 16  ;;  %v5093_v55 = vld [vmem:[#allocation2 + $0xc] sm:$0xf]  ;;  %v441_v62 = vor.u32 %v439_v41, %v5063_v40 }
  0x20   : > { %315 = vst.msk [vmem:[#allocation2 + $0x70] sm:$0xf] %vm285_vm0, %v4876_v0  ;;  %v402_v57 = vshrl.u32 %v5071_v43, 16  ;;  %v445_v58 = vshrl.u32 %v5074_v44, 16  ;;  %v465_v63 = vshll.u32 %v5037_v28, 16  ;;  %v392_v4 = vrot.slane %v5044_v31, 4 }
  0x21   : > { %317 = vst.msk [vmem:[#allocation2 + $0x78] sm:$0xf] %vm285_vm0, %v4876_v0  ;;  %v5112_v1 = vld [vmem:[%s5002_s23 + $0x24] sm:$0xf]  ;;  %v443_v5 = vrot.slane %v5063_v40, 4  ;;  %v5126_v6 = vrot.slane %v394_v48, 7  ;;  %v391_v20 = vsel %vm5118_vm9, %v383_v47, %v390_v54  ;;  %v701_v21 = vsel %vm5104_vm8, %v5079_v46, %v5093_v55 }
  0x22   : > { %318 = vst.msk [vmem:[#allocation2 + $0x7c] sm:$0xf] %vm285_vm0, %v4876_v0  ;;  %v5122_v3 = vld [vmem:[#allocation2 + $0x24] sm:$0xf]  ;;  %v397_v7 = vshll.u32 %v5059_v39, 16  ;;  %v426_v9 = vrot.slane %v5050_v35, 4  ;;  %v5156_v22 = vor.u32 %v465_v63, %v5087_v51  ;;  %v425_v29 = vsel %vm5118_vm9, %v417_v49, %v424_v61 }
  0x23   : > { %320 = vst.msk [vmem:[#allocation2 + $0x84] sm:$0xf] %vm285_vm0, %v4876_v0  ;;  %v5132_v11 = vrot.slane %v470_v52, 7  ;;  %v473_v12 = vshll.u32 %v5066_v42, 16  ;;  %v5137_v13 = vld [vmem:[#allocation2 + $0x48] sm:$0xf]  ;;  %v717_v30 = vsel %vm5104_vm8, %v5096_v56, %v5122_v3  ;;  %v442_v33 = vsel %vm5118_vm9, %v434_v50, %v441_v62 }
  0x24   : > { %321 = vst.msk [vmem:[#allocation2 + $0x88] sm:$0xf] %vm285_vm0, %v4876_v0  ;;  %v5139_v14 = vrot.slane %v402_v57, 7  ;;  %v405_v15 = vshll.u32 %v5071_v43, 16  ;;  %v5142_v16 = vrot.slane %v445_v58, 7  ;;  %v453_v17 = vshrl.u32 %v5112_v1, 16 }
  0x25   : > { %323 = vst.msk [vmem:[#allocation2 + $0x90] sm:$0xf] %vm285_vm0, %v4876_v0  ;;  %v5159_v23 = vld [vmem:[%s5002_s23 + $0x30] sm:$0xf]  ;;  %v354_v24 = vld [vmem:[%s5002_s23 + $0x34] sm:$0xf]  ;;  %v5185_v34 = vor.u32 %v397_v7, %v5126_v6  ;;  %v738_v46 = vsel %vm5104_vm8, %v5156_v22, %v5137_v13 }
  0x26   : > { %324 = vst.msk [vmem:[#allocation2 + $0x94] sm:$0xf] %vm285_vm0, %v4876_v0  ;;  %v468_v25 = vrot.slane %v5087_v51, 4  ;;  %v400_v26 = vrot.slane %v5126_v6, 4  ;;  %v479_v27 = vshrl.u32 %v5159_v23, 16  ;;  %v487_v28 = vshrl.u32 %v354_v24, 16 }
  0x27   : > { %326 = vst.msk [vmem:[#allocation2 + $0x9c] sm:$0xf] %vm285_vm0, %v4876_v0  ;;  %v357_v36 = vld [vmem:[%s5002_s23 + $0x40] sm:$0xf]  ;;  %v448_v38 = vshll.u32 %v5074_v44, 16  ;;  %v5191_v39 = vrot.slane %v453_v17, 7  ;;  %v407_v51 = vor.u32 %v405_v15, %v5139_v14 }
  0x28   : > { %327 = vst.msk [vmem:[#allocation2 + $0xa0] sm:$0xf] %vm285_vm0, %v4876_v0  ;;  %v456_v41 = vshll.u32 %v5112_v1, 16  ;;  %v5194_v42 = vrot.slane %v479_v27, 7  ;;  %v5203_v47 = vld [vmem:[#allocation2 + $0x18] sm:$0xf] }
  0x29   : > { %329 = vst.msk [vmem:[#allocation2 + $0xa8] sm:$0xf] %vm285_vm0, %v4876_v0  ;;  %v451_v44 = vrot.slane %v5142_v16, 4  ;;  %v513_v48 = vshrl.u32 %v357_v36, 16  ;;  %v489_v52 = vrot.slane %v487_v28, 7  ;;  %v516_v56 = vshll.u32 %v357_v36, 16 }
  0x2a   : > { %330 = vst.msk [vmem:[#allocation2 + $0xac] sm:$0xf] %vm285_vm0, %v4876_v0  ;;  %v358_v54 = vld [vmem:[%s5002_s23 + $0x44] sm:$0xf]  ;;  %v431_v58 = vshll.u32 %v5023_v19, 16  ;;  %v485_v62 = vrot.slane %v5194_v42, 4  ;;  %v710_v13 = vsel %vm5104_vm8, %v5185_v34, %v5203_v47 }
  0x2b   : > { %332 = vst.msk [vmem:[#allocation2 + $0xb4] sm:$0xf] %vm285_vm0, %v4876_v0  ;;  %v515_v55 = vrot.slane %v513_v48, 7  ;;  %v521_v57 = vshrl.u32 %v358_v54, 16  ;;  %v5218_v61 = vld [vmem:[#allocation2 + $0x3c] sm:$0xf] }
  0x2c   : > { %333 = vst.msk [vmem:[#allocation2 + $0xb8] sm:$0xf] %vm285_vm0, %v4876_v0  ;;  %v409_v63 = vrot.slane %v5139_v14, 4  ;;  %v494_v3 = vrot.slane %v489_v52, 4  ;;  %v477_v19 = vrot.slane %v5132_v11, 4  ;;  %v524_v7 = vshll.u32 %v358_v54, 16 }
  0x2d   : > { %335 = vst.msk [vmem:[#allocation2 + $0xc0] sm:$0xf] %vm285_vm0, %v4876_v0  ;;  %v5223_v6 = vrot.slane %v521_v57, 7  ;;  %v5236_v14 = vld [vmem:[#allocation2 + $0x6c] sm:$0xf]  ;;  %v5247_v17 = vor.u32 %v516_v56, %v515_v55  ;;  %vm1749_vm15 = vcmask 191616  }
  0x2e   : > { %336 = vst.msk [vmem:[#allocation2 + $0xc4] sm:$0xf] %vm285_vm0, %v4876_v0  ;;  %v355_v15 = vld [vmem:[%s5002_s23 + $0x38] sm:$0xf]  ;;  %vm2503_vm1 = vcmask 322816   ;;  %vm2840_vm2 = vcmask 388416  }
  0x2f   : > { %338 = vst.msk [vmem:[#allocation2 + $0xcc] sm:$0xf] %vm285_vm0, %v4876_v0  ;;  %v526_v35 = vor.u32 %v524_v7, %v5223_v6  ;;  %v496_v22 = vshrl.u32 %v355_v15, 16  ;;  %v499_v27 = vshll.u32 %v355_v15, 16  ;;  %vm4166_vm5 = vcmask 1043456  }
  0x30   : > { %339 = vst.msk [vmem:[#allocation2 + $0xd0] sm:$0xf] %vm285_vm0, %v4876_v0  ;;  %vm3595_vm6 = vcmask 519616   ;;  %vm3932_vm7 = vcmask 585216  }
  0x31   : > { %289 = vst.msk [vmem:[#allocation2 + $0x8] sm:$0x1] %vm288_vm4, %v4876_v0 }
  0x32   : > { %292 = vst.msk [vmem:[#allocation2 + $0x14] sm:$0x1] %vm288_vm4, %v4876_v0 }
  0x33   : > { %295 = vst.msk [vmem:[#allocation2 + $0x20] sm:$0x1] %vm288_vm4, %v4876_v0 }
  0x34   : > { %298 = vst.msk [vmem:[#allocation2 + $0x2c] sm:$0x1] %vm288_vm4, %v4876_v0 }
  0x35   : > { %301 = vst.msk [vmem:[#allocation2 + $0x38] sm:$0x1] %vm288_vm4, %v4876_v0 }
  0x36   : > { %304 = vst.msk [vmem:[#allocation2 + $0x44] sm:$0x1] %vm288_vm4, %v4876_v0 }
  0x37   : > { %307 = vst.msk [vmem:[#allocation2 + $0x50] sm:$0x1] %vm288_vm4, %v4876_v0 }
  0x38   : > { %v880_v53 = vld [vmem:[#allocation2 + $0x8] sm:$0x1]  ;;  %310 = vst.msk [vmem:[#allocation2 + $0x5c] sm:$0x1] %vm288_vm4, %v4876_v0 }
  0x39   : > { %v949_v59 = vshll.u32 %v880_v53, 16  ;;  %313 = vst.msk [vmem:[#allocation2 + $0x68] sm:$0x1] %vm288_vm4, %v4876_v0  ;;  %v706_v32 = vld [vmem:[#allocation2 + $0x14] sm:$0x1]  ;;  %v490_v53 = vshll.u32 %v354_v24, 16 }
  0x3a   : > { %316 = vst.msk [vmem:[#allocation2 + $0x74] sm:$0x1] %vm288_vm4, %v4876_v0  ;;  %v707_v49 = vsel %vm5178_vm10, %v392_v4, %v706_v32  ;;  %v713_v1 = vld [vmem:[#allocation2 + $0x20] sm:$0x1]  ;;  %v5280_v32 = vrot.slane %v496_v22, 7 }
  0x3b   : > { %v951_v8 = vrot.slane %v949_v59, 5  ;;  %319 = vst.msk [vmem:[#allocation2 + $0x80] sm:$0x1] %vm288_vm4, %v4876_v0  ;;  %v720_v50 = vld [vmem:[#allocation2 + $0x2c] sm:$0x1]  ;;  %v5215_v59 = vor.u32 %v448_v38, %v5142_v16 }
  0x3c   : > { %322 = vst.msk [vmem:[#allocation2 + $0x8c] sm:$0x1] %vm288_vm4, %v4876_v0  ;;  %v727_v43 = vld [vmem:[#allocation2 + $0x38] sm:$0x1]  ;;  %v721_v40 = vsel %vm5178_vm10, %v426_v9, %v720_v50  ;;  %v5302_v15 = vor.u32 %v499_v27, %v5280_v32 }
  0x3d   : > { %v952_v18 = vsel %vm4958_vm3, %v947_v45, %v951_v8  ;;  %325 = vst.msk [vmem:[#allocation2 + $0x98] sm:$0x1] %vm288_vm4, %v4876_v0  ;;  %v475_v45 = vor.u32 %v473_v12, %v5132_v11  ;;  %v728_v8 = vsel %vm5178_vm10, %v443_v5, %v727_v43  ;;  %v492_v11 = vor.u32 %v490_v53, %v489_v52 }
  0x3e   : > { %1315 = vrot.lane.b32.xlu0 %v952_v18, %s4877_s19  ;;  %328 = vst.msk [vmem:[#allocation2 + $0xa4] sm:$0x1] %vm288_vm4, %v4876_v0  ;;  %v5245_v5 = vsel %vm5118_vm9, %v400_v26, %v407_v51  ;;  %v741_v16 = vld [vmem:[#allocation2 + $0x50] sm:$0x1]  ;;  %v5250_v18 = vor.u32 %v431_v58, %v5055_v37  ;;  %v731_v37 = vsel %vm5104_vm8, %v5215_v59, %v5218_v61 }
  0x3f   : > { %331 = vst.msk [vmem:[#allocation2 + $0xb0] sm:$0x1] %vm288_vm4, %v4876_v0  ;;  %v748_v4 = vld [vmem:[#allocation2 + $0x5c] sm:$0x1]  ;;  %v476_v12 = vsel %vm5118_vm9, %v468_v25, %v475_v45  ;;  %v5268_v25 = vsel %vm5178_vm10, %v409_v63, %v713_v1  ;;  %v5270_v26 = vld [vmem:[#allocation2 + $0x30] sm:$0xf]  ;;  %v5286_v43 = vsel %vm5178_vm10, %v477_v19, %v741_v16  ;;  %v759_v45 = vsel %vm5104_vm8, %v5247_v17, %v5236_v14 }
  0x40   : > { %334 = vst.msk [vmem:[#allocation2 + $0xbc] sm:$0x1] %vm288_vm4, %v4876_v0 }
  0x41   : > { %337 = vst.msk [vmem:[#allocation2 + $0xc8] sm:$0x1] %vm288_vm4, %v4876_v0 }
  0x42   : > { %340 = vst.msk [vmem:[#allocation2 + $0xd4] sm:$0x1] %vm288_vm4, %v4876_v0  ;;  %v458_v0 = vor.u32 %v456_v41, %v5191_v39  ;;  %vm3034_vm4 = vcmask 454016  }
  0x43   : > { %702 = vst [vmem:[#allocation2 + $0xc] sm:$0xf] %v701_v21  ;;  %v519_v21 = vrot.slane %v515_v55, 4 }
  0x44   : > { %703 = vst.msk [vmem:[#allocation2 + $0x10] sm:$0xf] %vm285_vm0, %v391_v20  ;;  %v5253_v20 = vld [vmem:[%s5002_s23 + $0x3c] sm:$0xf]  ;;  %v5260_v24 = vsel %vm5118_vm9, %v451_v44, %v458_v0 }
  0x45   : > { %718 = vst [vmem:[#allocation2 + $0x24] sm:$0xf] %v717_v30  ;;  %v504_v9 = vshrl.u32 %v5253_v20, 16  ;;  %v5278_v30 = vsel %vm5178_vm10, %v494_v3, %v748_v4  ;;  %v5295_v50 = vsel %vm5118_vm9, %v519_v21, %v526_v35 }
  0x46   : > { %719 = vst.msk [vmem:[#allocation2 + $0x28] sm:$0xf] %vm285_vm0, %v425_v29  ;;  %v5274_v29 = vsel %vm5118_vm9, %v485_v62, %v492_v11 }
  0x47   : > { %708 = vst [vmem:[#allocation2 + $0x14] sm:$0x1] %v707_v49 }
  0x48   : > { %726 = vst.msk [vmem:[#allocation2 + $0x34] sm:$0xf] %vm285_vm0, %v442_v33  ;;  %v5282_v33 = vrot.slane %v504_v9, 7 }
  0x49   : > { %729 = vst [vmem:[#allocation2 + $0x38] sm:$0x1] %v728_v8 }
  0x4a   : > { %v881_v28 = vld [vmem:[#allocation2 + $0xc] sm:$0xf]  ;;  %722 = vst [vmem:[#allocation2 + $0x2c] sm:$0x1] %v721_v40 }
  0x4b   : > { %v882_v36 = vld [vmem:[#allocation2 + $0x10] sm:$0xf]  ;;  %v954_v38 = vshrl.u32 %v881_v28, 16  ;;  %v957_v41 = vshll.u32 %v881_v28, 16  ;;  %739 = vst [vmem:[#allocation2 + $0x48] sm:$0xf] %v738_v46  ;;  %v724_v46 = vsel %vm5104_vm8, %v5250_v18, %v5270_v26 }
  0x4c   : > { %v963_v44 = vshll.u32 %v882_v36, 16  ;;  %v967_v48 = vshrl.u32 %v882_v36, 16  ;;  %v887_v49 = vld [vmem:[#allocation2 + $0x24] sm:$0xf]  ;;  %740 = vst.msk [vmem:[#allocation2 + $0x4c] sm:$0xf] %vm285_vm0, %v476_v12 }
  0x4d   : > { %v956_v51 = vrot.slane %v954_v38, 4  ;;  %v959_v52 = vrot.slane %v957_v41, 5  ;;  %v888_v53 = vld [vmem:[#allocation2 + $0x28] sm:$0xf]  ;;  %v1002_v54 = vshrl.u32 %v887_v49, 16  ;;  %v1005_v55 = vshll.u32 %v887_v49, 16 }
  0x4e   : > { %v965_v56 = vrot.slane %v963_v44, 5  ;;  %v969_v57 = vrot.slane %v967_v48, 4  ;;  %v1011_v58 = vshll.u32 %v888_v53, 16  ;;  %v1015_v0 = vshrl.u32 %v888_v53, 16  ;;  %v883_v62 = vld [vmem:[#allocation2 + $0x14] sm:$0x1] }
  0x4f   : > { %v960_v63 = vor.u32 %v959_v52, %v956_v51  ;;  %v1004_v1 = vrot.slane %v1002_v54, 4  ;;  %v1007_v3 = vrot.slane %v1005_v55, 5  ;;  %v973_v4 = vshll.u32 %v883_v62, 16  ;;  %v891_v19 = vld [vmem:[#allocation2 + $0x34] sm:$0xf] }
  0x50   : > { %v970_v7 = vor.u32 %v969_v57, %v965_v56  ;;  %v892_v8 = vld [vmem:[#allocation2 + $0x38] sm:$0x1]  ;;  %v1035_v12 = vshll.u32 %v891_v19, 16  ;;  %v1039_v11 = vshrl.u32 %v891_v19, 16  ;;  %v1013_v21 = vrot.slane %v1011_v58, 5 }
  0x51   : > { %v961_v40 = vrot.slane %v960_v63, 4  ;;  %v1008_v16 = vor.u32 %v1007_v3, %v1004_v1  ;;  %v1045_v35 = vshll.u32 %v892_v8, 16  ;;  %v889_v22 = vld [vmem:[#allocation2 + $0x2c] sm:$0x1]  ;;  %v975_v9 = vrot.slane %v973_v4, 5 }
  0x52   : > { %v5304_v28 = vrot.slane %v1035_v12, 5  ;;  %v1041_v36 = vrot.slane %v1039_v11, 4  ;;  %v1017_v38 = vrot.slane %v1015_v0, 4  ;;  %v896_v41 = vld [vmem:[#allocation2 + $0x48] sm:$0xf]  ;;  %v971_v49 = vrot.slane %v970_v7, 4 }
  0x53   : > { %v966_v44 = vsel %vm4958_vm3, %v961_v40, %v965_v56  ;;  %v1009_v48 = vrot.slane %v1008_v16, 4  ;;  %v1021_v27 = vshll.u32 %v889_v22, 16  ;;  %v897_v51 = vld [vmem:[#allocation2 + $0x4c] sm:$0xf]  ;;  %v1047_v53 = vrot.slane %v1045_v35, 5 }
  0x54   : > { %1317 = vrot.lane.b32.xlu1 %v966_v44, %s4877_s19  ;;  %v1042_v52 = vor.u32 %v1041_v36, %v5304_v28  ;;  %v1018_v54 = vor.u32 %v1017_v38, %v1013_v21  ;;  %v1074_v55 = vshrl.u32 %v896_v41, 16  ;;  %711 = vst [vmem:[#allocation2 + $0x18] sm:$0xf] %v710_v13  ;;  %v5316_v57 = vld [vmem:[%s5002_s23 + $0x48] sm:$0xf]  ;;  %v1077_v62 = vshll.u32 %v896_v41, 16 }
  0x55   : > { %v5319_v56 = vld [vmem:[%s5002_s23 + $0x4c] sm:$0xf]  ;;  %v1014_v58 = vsel %vm4958_vm3, %v1009_v48, %v1013_v21  ;;  %v5323_v0 = vrot.slane %v1021_v27, 5  ;;  %v1083_v63 = vshll.u32 %v897_v51, 16  ;;  %712 = vst.msk [vmem:[#allocation2 + $0x1c] sm:$0xf] %vm285_vm0, %v5245_v5  ;;  %v976_v13 = vsel %vm4958_vm3, %v971_v49, %v975_v9 }
  0x56   : > { %1325 = vrot.lane.b32.xlu0 %v1014_v58, %s4877_s19  ;;  %v1043_v1 = vrot.slane %v1042_v52, 4  ;;  %v5328_v3 = vrot.slane %v1018_v54, 4  ;;  %v1076_v34 = vrot.slane %v1074_v55, 4  ;;  %v1087_v47 = vshrl.u32 %v897_v51, 16  ;;  %732 = vst [vmem:[#allocation2 + $0x3c] sm:$0xf] %v731_v37 }
  0x57   : > { %v1079_v4 = vrot.slane %v1077_v62, 5  ;;  %733 = vst.msk [vmem:[#allocation2 + $0x40] sm:$0xf] %vm285_vm0, %v5260_v24  ;;  %v502_v5 = vrot.slane %v5280_v32, 4  ;;  %v507_v19 = vshll.u32 %v5253_v20, 16  ;;  %v5347_v61 = vrot.slane %v1083_v63, 5 }
  0x58   : > { %v1048_v7 = vsel %vm4958_vm3, %v1043_v1, %v1047_v53  ;;  %v1024_v59 = vsel %vm4958_vm3, %v5328_v3, %v5323_v0  ;;  %747 = vst.msk [vmem:[#allocation2 + $0x58] sm:$0xf] %vm285_vm0, %v5274_v29  ;;  %v1089_v37 = vrot.slane %v1087_v47, 4  ;;  %v5351_v8 = vld [vmem:[#allocation2 + $0x60] sm:$0xf]  ;;  %v530_v32 = vshrl.u32 %v5316_v57, 16 }
  0x59   : > { %v1080_v24 = vor.u32 %v1079_v4, %v1076_v34  ;;  %750 = vst [vmem:[#allocation2 + $0x5c] sm:$0x1] %v5278_v30  ;;  %v509_v20 = vor.u32 %v507_v19, %v5282_v33  ;;  %v538_v12 = vshrl.u32 %v5319_v56, 16  ;;  %v734_v11 = vld [vmem:[#allocation2 + $0x44] sm:$0x1]  ;;  %v541_v16 = vshll.u32 %v5319_v56, 16 }
  0x5a   : > { %715 = vst [vmem:[#allocation2 + $0x20] sm:$0x1] %v5268_v25  ;;  %v1090_v40 = vor.u32 %v1089_v37, %v5347_v61  ;;  %v460_v29 = vrot.slane %v5191_v39, 4  ;;  %v528_v21 = vrot.slane %v5223_v6, 4  ;;  %v752_v25 = vsel %vm5104_vm8, %v5302_v15, %v5351_v8 }
  0x5b   : > { %v5362_v35 = vrot.slane %v1080_v24, 4  ;;  %v884_v30 = vld [vmem:[#allocation2 + $0x18] sm:$0xf]  ;;  %743 = vst [vmem:[#allocation2 + $0x50] sm:$0x1] %v5286_v43  ;;  %v510_v22 = vsel %vm5118_vm9, %v502_v5, %v509_v20  ;;  %v5371_v9 = vrot.slane %v530_v32, 7 }
  0x5c   : > { %1319 = vrot.lane.b32.xlu1 %v976_v13, %s4877_s19  ;;  %v885_v39 = vld [vmem:[#allocation2 + $0x1c] sm:$0xf]  ;;  %v978_v36 = vshrl.u32 %v884_v30, 16  ;;  %v981_v38 = vshll.u32 %v884_v30, 16  ;;  %v5374_v41 = vrot.slane %v1090_v40, 4  ;;  %v5376_v44 = vrot.slane %v538_v12, 7 }
  0x5d   : > { %v1086_v43 = vsel %vm4958_vm3, %v5362_v35, %v5347_v61  ;;  %v987_v48 = vshll.u32 %v885_v39, 16  ;;  %v991_v49 = vshrl.u32 %v885_v39, 16  ;;  %v893_v27 = vld [vmem:[#allocation2 + $0x3c] sm:$0xf]  ;;  %760 = vst [vmem:[#allocation2 + $0x6c] sm:$0xf] %v759_v45  ;;  %v735_v15 = vsel %vm5178_vm10, %v460_v29, %v734_v11 }
  0x5e   : > { %1331 = vrot.lane.b32.xlu0 %v1048_v7, %s4877_s19  ;;  %v980_v51 = vrot.slane %v978_v36, 4  ;;  %v983_v52 = vrot.slane %v981_v38, 5  ;;  %v894_v53 = vld [vmem:[#allocation2 + $0x40] sm:$0xf]  ;;  %v1050_v54 = vshrl.u32 %v893_v27, 16  ;;  %v1053_v55 = vshll.u32 %v893_v27, 16 }
  0x5f   : > { %v989_v56 = vrot.slane %v987_v48, 5  ;;  %v993_v58 = vrot.slane %v991_v49, 4  ;;  %v1059_v62 = vshll.u32 %v894_v53, 16  ;;  %v1063_v63 = vshrl.u32 %v894_v53, 16  ;;  %v900_v1 = vld [vmem:[#allocation2 + $0x58] sm:$0xf] }
  0x60   : > { %v984_v34 = vor.u32 %v983_v52, %v980_v51  ;;  %v1052_v47 = vrot.slane %v1050_v54, 4  ;;  %v1055_v13 = vrot.slane %v1053_v55, 5  ;;  %v901_v14 = vld [vmem:[#allocation2 + $0x5c] sm:$0x1]  ;;  %v1107_v17 = vshll.u32 %v900_v1, 16 }
  0x61   : > { %v5390_v45 = vrot.slane %v1059_v62, 5  ;;  %v1111_v4 = vshrl.u32 %v900_v1, 16  ;;  %v1117_v5 = vshll.u32 %v901_v14, 16  ;;  %v886_v19 = vld [vmem:[#allocation2 + $0x20] sm:$0x1]  ;;  %v994_v7 = vor.u32 %v993_v58, %v989_v56 }
  0x62   : > { %v985_v61 = vrot.slane %v984_v34, 4  ;;  %v1056_v37 = vor.u32 %v1055_v13, %v1052_v47  ;;  %v5392_v8 = vrot.slane %v1107_v17, 5  ;;  %v997_v24 = vshll.u32 %v886_v19, 16  ;;  %v898_v20 = vld [vmem:[#allocation2 + $0x50] sm:$0x1] }
  0x63   : > { %v1113_v32 = vrot.slane %v1111_v4, 4  ;;  %v1119_v12 = vrot.slane %v1117_v5, 5  ;;  %v995_v11 = vrot.slane %v994_v7, 4  ;;  %v1093_v40 = vshll.u32 %v898_v20, 16  ;;  %761 = vst.msk [vmem:[#allocation2 + $0x70] sm:$0xf] %vm285_vm0, %v5295_v50 }
  0x64   : > { %v769_v29 = vld [vmem:[#allocation2 + $0x80] sm:$0x1]  ;;  %1327 = vrot.lane.b32.xlu1 %v1024_v59, %s4877_s19  ;;  %v990_v35 = vsel %vm4958_vm3, %v985_v61, %v989_v56  ;;  %v1057_v30 = vrot.slane %v1056_v37, 4  ;;  %v999_v39 = vrot.slane %v997_v24, 5  ;;  %v905_v36 = vld [vmem:[#allocation2 + $0x6c] sm:$0xf]  ;;  %v543_v50 = vor.u32 %v541_v16, %v5376_v44 }
  0x65   : > { %725 = vst [vmem:[#allocation2 + $0x30] sm:$0xf] %v724_v46  ;;  %1321 = vrot.lane.b32.xlu2 %v990_v35, %s4877_s19  ;;  %v1114_v38 = vor.u32 %v1113_v32, %v5392_v8  ;;  %v5412_v0 = vrot.slane %v1093_v40, 5  ;;  %v1146_v3 = vshrl.u32 %v905_v36, 16  ;;  %v1149_v59 = vshll.u32 %v905_v36, 16 }
  0x66   : > { %753 = vst [vmem:[#allocation2 + $0x60] sm:$0xf] %v752_v25  ;;  %1337 = vrot.lane.b32.xlu0 %v1086_v43, %s4877_s19  ;;  %v536_v18 = vrot.slane %v5371_v9, 4  ;;  %v545_v26 = vrot.slane %v5376_v44, 4  ;;  %v762_v46 = vld [vmem:[#allocation2 + $0x74] sm:$0x1]  ;;  %v1062_v16 = vsel %vm4958_vm3, %v1057_v30, %v5390_v45  ;;  %v1000_v25 = vsel %vm4958_vm3, %v995_v11, %v999_v39 }
  0x67   : > { %754 = vst.msk [vmem:[#allocation2 + $0x64] sm:$0xf] %vm285_vm0, %v510_v22  ;;  %v1115_v48 = vrot.slane %v1114_v38, 4  ;;  %v1148_v49 = vrot.slane %v1146_v3, 4  ;;  %v1151_v27 = vrot.slane %v1149_v59, 5  ;;  %v1065_v51 = vrot.slane %v1063_v63, 4 }
  0x68   : > { %736 = vst [vmem:[#allocation2 + $0x44] sm:$0x1] %v735_v15  ;;  %v544_v43 = vsel %vm5118_vm9, %v536_v18, %v543_v50  ;;  %v770_v22 = vsel %vm5178_vm10, %v545_v26, %v769_v29  ;;  %v363_v44 = vld [vmem:[%s5002_s23 + $0x58] sm:$0xf]  ;;  %v5429_v52 = vld [vmem:[%s5002_s23 + $0x5c] sm:$0xf]  ;;  %v1096_v53 = vsel %vm4958_vm3, %v5374_v41, %v5412_v0  ;;  %v763_v15 = vsel %vm5178_vm10, %v528_v21, %v762_v46 }
  0x69   : > { %v1152_v54 = vor.u32 %v1151_v27, %v1148_v49  ;;  %768 = vst.msk [vmem:[#allocation2 + $0x7c] sm:$0xf] %vm285_vm0, %v544_v43  ;;  %v564_v55 = vshrl.u32 %v363_v44, 16  ;;  %v1120_v56 = vsel %vm4958_vm3, %v1115_v48, %v1119_v12  ;;  %v1066_v62 = vor.u32 %v1065_v51, %v5390_v45  ;;  %v779_v3 = vld [vmem:[#allocation2 + $0x90] sm:$0xf] }
  0x6a   : > { %v906_v58 = vld [vmem:[#allocation2 + $0x70] sm:$0xf]  ;;  %771 = vst [vmem:[#allocation2 + $0x80] sm:$0x1] %v770_v22  ;;  %v567_v63 = vshll.u32 %v363_v44, 16  ;;  %v572_v1 = vshrl.u32 %v5429_v52, 16 }
  0x6b   : > { %v5444_v41 = vrot.slane %v1152_v54, 4  ;;  %v1155_v34 = vshll.u32 %v906_v58, 16  ;;  %v1159_v47 = vshrl.u32 %v906_v58, 16  ;;  %v575_v6 = vshll.u32 %v5429_v52, 16  ;;  %764 = vst [vmem:[#allocation2 + $0x74] sm:$0x1] %v763_v15 }
  0x6c   : > { %v890_v13 = vld [vmem:[#allocation2 + $0x30] sm:$0xf]  ;;  %1333 = vrot.lane.b32.xlu1 %v1062_v16, %s4877_s19  ;;  %v5448_v4 = vrot.slane %v1066_v62, 4  ;;  %v566_v5 = vrot.slane %v564_v55, 7  ;;  %v5455_v11 = vrot.slane %v572_v1, 7 }
  0x6d   : > { %v1026_v21 = vshrl.u32 %v890_v13, 16  ;;  %v1029_v14 = vshll.u32 %v890_v13, 16  ;;  %v902_v17 = vld [vmem:[#allocation2 + $0x60] sm:$0xf]  ;;  %1323 = vrot.lane.b32.xlu2 %v1000_v25, %s4877_s19  ;;  %v1157_v45 = vrot.slane %v1155_v34, 5  ;;  %v1161_v37 = vrot.slane %v1159_v47, 4 }
  0x6e   : > { %v5451_v19 = vld [vmem:[#allocation2 + $0x64] sm:$0xf]  ;;  %v1122_v7 = vshrl.u32 %v902_v17, 16  ;;  %v1125_v61 = vshll.u32 %v902_v17, 16  ;;  %1343 = vrot.lane.b32.xlu0 %v1120_v56, %s4877_s19  ;;  %v569_v0 = vor.u32 %v567_v63, %v566_v5  ;;  %v570_v25 = vrot.slane %v566_v5, 4 }
  0x6f   : > { %v1028_v24 = vrot.slane %v1026_v21, 4  ;;  %v1031_v20 = vrot.slane %v1029_v14, 5  ;;  %v1131_v32 = vshll.u32 %v5451_v19, 16  ;;  %v895_v12 = vld [vmem:[#allocation2 + $0x44] sm:$0x1]  ;;  %v1135_v35 = vshrl.u32 %v5451_v19, 16 }
  0x70   : > { %v1124_v40 = vrot.slane %v1122_v7, 4  ;;  %v1127_v29 = vrot.slane %v1125_v61, 5  ;;  %v1069_v30 = vshll.u32 %v895_v12, 16  ;;  %v1158_v39 = vsel %vm4958_vm3, %v5444_v41, %v1157_v45  ;;  %v909_v50 = vld [vmem:[#allocation2 + $0x7c] sm:$0xf] }
  0x71   : > { %v1032_v36 = vor.u32 %v1031_v20, %v1028_v24  ;;  %v1162_v38 = vor.u32 %v1161_v37, %v1157_v45  ;;  %v910_v18 = vld [vmem:[#allocation2 + $0x80] sm:$0x1]  ;;  %v1179_v26 = vshll.u32 %v909_v50, 16  ;;  %v1183_v46 = vshrl.u32 %v909_v50, 16  ;;  %v361_v43 = vld [vmem:[%s5002_s23 + $0x50] sm:$0xf] }
  0x72   : > { %v1128_v59 = vor.u32 %v1127_v29, %v1124_v40  ;;  %v5461_v16 = vrot.slane %v1069_v30, 5  ;;  %v5463_v49 = vrot.slane %v1131_v32, 5  ;;  %v1189_v27 = vshll.u32 %v910_v18, 16  ;;  %v362_v54 = vld [vmem:[%s5002_s23 + $0x54] sm:$0xf] }
  0x73   : > { %v1033_v48 = vrot.slane %v1032_v36, 4  ;;  %v5466_v51 = vrot.slane %v1179_v26, 5  ;;  %v1185_v44 = vrot.slane %v1183_v46, 4  ;;  %v5468_v52 = vrot.slane %v1162_v38, 4  ;;  %v744_v62 = vld [vmem:[#allocation2 + $0x54] sm:$0xf] }
  0x74   : > { %v1129_v22 = vrot.slane %v1128_v59, 4  ;;  %1339 = vrot.lane.b32.xlu1 %v1096_v53, %s4877_s19  ;;  %v1191_v55 = vrot.slane %v1189_v27, 5  ;;  %v577_v56 = vor.u32 %v575_v6, %v5455_v11  ;;  %v780_v58 = vsel %vm5104_vm8, %v569_v0, %v779_v3  ;;  %v5479_v63 = vld [vmem:[%s5002_s23 + $0x60] sm:$0xf]  ;;  %v366_v34 = vld [vmem:[%s5002_s23 + $0x64] sm:$0xf] }
  0x75   : > { %v1038_v15 = vsel %vm4958_vm3, %v1033_v48, %v5304_v28  ;;  %v1186_v1 = vor.u32 %v1185_v44, %v5466_v51  ;;  %v1072_v53 = vsel %vm4958_vm3, %v5448_v4, %v5461_v16  ;;  %781 = vst [vmem:[#allocation2 + $0x90] sm:$0xf] %v780_v58  ;;  %v482_v28 = vshll.u32 %v5159_v23, 16  ;;  %v907_v47 = vld [vmem:[#allocation2 + $0x74] sm:$0x1] }
  0x76   : > { %1329 = vrot.lane.b32.xlu2 %v1038_v15, %s4877_s19  ;;  %v547_v41 = vshrl.u32 %v361_v43, 16  ;;  %1349 = vrot.lane.b32.xlu0 %v1158_v39, %s4877_s19  ;;  %v578_v13 = vsel %vm5118_vm9, %v570_v25, %v577_v56  ;;  %v550_v6 = vshll.u32 %v361_v43, 16  ;;  %v555_v21 = vshrl.u32 %v362_v54, 16  ;;  %v772_v23 = vld [vmem:[#allocation2 + $0x84] sm:$0xf] }
  0x77   : > { %v558_v14 = vshll.u32 %v362_v54, 16  ;;  %v1187_v17 = vrot.slane %v1186_v1, 4  ;;  %v1165_v5 = vshll.u32 %v907_v47, 16  ;;  %782 = vst.msk [vmem:[#allocation2 + $0x94] sm:$0xf] %vm285_vm0, %v578_v13  ;;  %v484_v4 = vor.u32 %v482_v28, %v5194_v42 }
  0x78   : > { %v549_v45 = vrot.slane %v547_v41, 7  ;;  %v5494_v7 = vrot.slane %v555_v21, 7  ;;  %v581_v61 = vshrl.u32 %v5479_v63, 16  ;;  %v589_v37 = vshrl.u32 %v366_v34, 16  ;;  %v790_v40 = vld [vmem:[#allocation2 + $0xa4] sm:$0x1] }
  0x79   : > { %v592_v24 = vshll.u32 %v366_v34, 16  ;;  %v1134_v20 = vsel %vm4958_vm3, %v1129_v22, %v5463_v49  ;;  %v1192_v32 = vsel %vm4958_vm3, %v1187_v17, %v1191_v55  ;;  %v745_v12 = vsel %vm5104_vm8, %v484_v4, %v744_v62  ;;  %v755_v29 = vld [vmem:[#allocation2 + $0x68] sm:$0x1]  ;;  %v369_v18 = vld [vmem:[%s5002_s23 + $0x70] sm:$0xf] }
  0x7a   : > { %v552_v42 = vor.u32 %v550_v6, %v549_v45  ;;  %746 = vst [vmem:[#allocation2 + $0x54] sm:$0xf] %v745_v12  ;;  %v553_v30 = vrot.slane %v549_v45, 4  ;;  %v560_v39 = vor.u32 %v558_v14, %v5494_v7  ;;  %v5505_v36 = vrot.slane %v581_v61, 7  ;;  %v1795_v60 = vld [vmem:[#allocation2 + $0x58] sm:$0xf] }
  0x7b   : > { %v591_v50 = vrot.slane %v589_v37, 7  ;;  %v1167_v38 = vrot.slane %v1165_v5, 5  ;;  %v511_v3 = vrot.slane %v5282_v33, 4  ;;  %v1137_v59 = vrot.slane %v1135_v35, 4  ;;  %v783_v35 = vld [vmem:[#allocation2 + $0x98] sm:$0x1] }
  0x7c   : > { %v773_v0 = vsel %vm5104_vm8, %v552_v42, %v772_v23  ;;  %1345 = vrot.lane.b32.xlu1 %v1134_v20, %s4877_s19  ;;  %v914_v26 = vld [vmem:[#allocation2 + $0x90] sm:$0xf]  ;;  %v561_v46 = vsel %vm5118_vm9, %v553_v30, %v560_v39  ;;  %v587_v16 = vrot.slane %v5505_v36, 4  ;;  %v579_v15 = vrot.slane %v5455_v11, 4 }
  0x7d   : > { %774 = vst [vmem:[#allocation2 + $0x84] sm:$0xf] %v773_v0  ;;  %v594_v48 = vor.u32 %v592_v24, %v591_v50  ;;  %v596_v27 = vrot.slane %v591_v50, 4  ;;  %v1218_v25 = vshrl.u32 %v914_v26, 16  ;;  %v1221_v43 = vshll.u32 %v914_v26, 16 }
  0x7e   : > { %1335 = vrot.lane.b32.xlu2 %v1072_v53, %s4877_s19  ;;  %775 = vst.msk [vmem:[#allocation2 + $0x88] sm:$0xf] %vm285_vm0, %v561_v46  ;;  %v756_v33 = vsel %vm5178_vm10, %v511_v3, %v755_v29  ;;  %v1138_v19 = vor.u32 %v1137_v59, %v5463_v49  ;;  %1355 = vrot.lane.b32.xlu0 %v1192_v32, %s4877_s19  ;;  %v915_v22 = vld [vmem:[#allocation2 + $0x94] sm:$0xf]  ;;  %v615_v55 = vshrl.u32 %v369_v18, 16  ;;  %v618_v13 = vshll.u32 %v369_v18, 16 }
  0x7f   : > { %v595_v44 = vsel %vm5118_vm9, %v587_v16, %v594_v48  ;;  %v791_v54 = vsel %vm5178_vm10, %v596_v27, %v790_v40  ;;  %757 = vst [vmem:[#allocation2 + $0x68] sm:$0x1] %v756_v33  ;;  %v1220_v56 = vrot.slane %v1218_v25, 4  ;;  %v1223_v58 = vrot.slane %v1221_v43, 5  ;;  %v370_v53 = vld [vmem:[%s5002_s23 + $0x74] sm:$0xf] }
  0x80   : > { %v1227_v62 = vshll.u32 %v915_v22, 16  ;;  %v1231_v1 = vshrl.u32 %v915_v22, 16  ;;  %789 = vst.msk [vmem:[#allocation2 + $0xa0] sm:$0xf] %vm285_vm0, %v595_v44  ;;  %v784_v49 = vsel %vm5178_vm10, %v579_v15, %v783_v35  ;;  %v617_v28 = vrot.slane %v615_v55, 7 }
  0x81   : > { %792 = vst [vmem:[#allocation2 + $0xa4] sm:$0x1] %v791_v54  ;;  %v1168_v41 = vsel %vm4958_vm3, %v5468_v52, %v1167_v38  ;;  %v1224_v34 = vor.u32 %v1223_v58, %v1220_v56  ;;  %v899_v11 = vld [vmem:[#allocation2 + $0x54] sm:$0xf]  ;;  %v5537_v5 = vrot.slane %v1138_v19, 4  ;;  %v623_v45 = vshrl.u32 %v370_v53, 16 }
  0x82   : > { %v5535_v47 = vrot.slane %v1227_v62, 5  ;;  %785 = vst [vmem:[#allocation2 + $0x98] sm:$0x1] %v784_v49  ;;  %v1098_v6 = vshrl.u32 %v899_v11, 16  ;;  %v1101_v21 = vshll.u32 %v899_v11, 16  ;;  %v1233_v4 = vrot.slane %v1231_v1, 4 }
  0x83   : > { %v1225_v14 = vrot.slane %v1224_v34, 4  ;;  %v620_v42 = vor.u32 %v618_v13, %v617_v28  ;;  %v626_v40 = vshll.u32 %v370_v53, 16  ;;  %v800_v0 = vld [vmem:[#allocation2 + $0xb4] sm:$0xf]  ;;  %v621_v26 = vrot.slane %v617_v28, 4 }
  0x84   : > { %v911_v17 = vld [vmem:[#allocation2 + $0x84] sm:$0xf]  ;;  %1351 = vrot.lane.b32.xlu1 %v1168_v41, %s4877_s19  ;;  %v1100_v23 = vrot.slane %v1098_v6, 4  ;;  %v1103_v61 = vrot.slane %v1101_v21, 5  ;;  %v5547_v46 = vrot.slane %v623_v45, 7  ;;  %v1234_v35 = vor.u32 %v1233_v4, %v5535_v47 }
  0x85   : > { %v5540_v37 = vld [vmem:[#allocation2 + $0x88] sm:$0xf]  ;;  %v1194_v52 = vshrl.u32 %v911_v17, 16  ;;  %v1197_v24 = vshll.u32 %v911_v17, 16  ;;  %v1230_v20 = vsel %vm4958_vm3, %v1225_v14, %v5535_v47  ;;  %v368_v58 = vld [vmem:[%s5002_s23 + $0x6c] sm:$0xf]  ;;  %v801_v53 = vsel %vm5104_vm8, %v620_v42, %v800_v0 }
  0x86   : > { %v1203_v32 = vshll.u32 %v5540_v37, 16  ;;  %v904_v12 = vld [vmem:[#allocation2 + $0x68] sm:$0x1]  ;;  %1361 = vrot.lane.b32.xlu0 %v1230_v20, %s4877_s19  ;;  %v1104_v29 = vor.u32 %v1103_v61, %v1100_v23  ;;  %v628_v22 = vor.u32 %v626_v40, %v5547_v46  ;;  %v765_v28 = vld [vmem:[#allocation2 + $0x78] sm:$0xf]  ;;  %v533_v41 = vshll.u32 %v5316_v57, 16 }
  0x87   : > { %v1196_v30 = vrot.slane %v1194_v52, 4  ;;  %v1199_v39 = vrot.slane %v1197_v24, 5  ;;  %v918_v50 = vld [vmem:[#allocation2 + $0xa0] sm:$0xf]  ;;  %v1141_v38 = vshll.u32 %v904_v12, 16  ;;  %v606_v13 = vshrl.u32 %v368_v58, 16 }
  0x88   : > { %v919_v3 = vld [vmem:[#allocation2 + $0xa4] sm:$0x1]  ;;  %v1251_v59 = vshll.u32 %v918_v50, 16  ;;  %v1255_v18 = vshrl.u32 %v918_v50, 16  ;;  %v1105_v16 = vrot.slane %v1104_v29, 4  ;;  %v5549_v27 = vrot.slane %v1203_v32, 5 }
  0x89   : > { %v1200_v48 = vor.u32 %v1199_v39, %v1196_v30  ;;  %v1261_v25 = vshll.u32 %v919_v3, 16  ;;  %v916_v43 = vld [vmem:[#allocation2 + $0x98] sm:$0x1]  ;;  %v367_v44 = vld [vmem:[%s5002_s23 + $0x68] sm:$0xf]  ;;  %v1143_v55 = vrot.slane %v1141_v38, 5  ;;  %v629_v49 = vsel %vm5118_vm9, %v621_v26, %v628_v22 }
  0x8a   : > { %v5551_v33 = vrot.slane %v1251_v59, 5  ;;  %v1257_v19 = vrot.slane %v1255_v18, 4  ;;  %v1110_v54 = vsel %vm4958_vm3, %v1105_v16, %v5392_v8  ;;  %v1237_v56 = vshll.u32 %v916_v43, 16  ;;  %802 = vst [vmem:[#allocation2 + $0xb4] sm:$0xf] %v801_v53 }
  0x8b   : > { %v1201_v15 = vrot.slane %v1200_v48, 4  ;;  %1341 = vrot.lane.b32.xlu2 %v1110_v54, %s4877_s19  ;;  %v1263_v1 = vrot.slane %v1261_v25, 5  ;;  %v598_v34 = vshrl.u32 %v367_v44, 16  ;;  %v601_v47 = vshll.u32 %v367_v44, 16  ;;  %803 = vst.msk [vmem:[#allocation2 + $0xb8] sm:$0xf] %vm285_vm0, %v629_v49 }
  0x8c   : > { %v1258_v62 = vor.u32 %v1257_v19, %v5551_v33  ;;  %v609_v6 = vshll.u32 %v368_v58, 16  ;;  %v1235_v21 = vrot.slane %v1234_v35, 4  ;;  %v1239_v14 = vrot.slane %v1237_v56, 5  ;;  %v793_v61 = vld [vmem:[#allocation2 + $0xa8] sm:$0xf] }
  0x8d   : > { %v1206_v8 = vsel %vm4958_vm3, %v1201_v15, %v5549_v27  ;;  %v535_v17 = vor.u32 %v533_v41, %v5371_v9  ;;  %v600_v4 = vrot.slane %v598_v34, 7  ;;  %v1144_v57 = vsel %vm4958_vm3, %v5537_v5, %v1143_v55  ;;  %v776_v52 = vld [vmem:[#allocation2 + $0x8c] sm:$0x1]  ;;  %v804_v40 = vld [vmem:[#allocation2 + $0xbc] sm:$0x1] }
  0x8e   : > { %1357 = vrot.lane.b32.xlu1 %v1206_v8, %s4877_s19  ;;  %v1259_v11 = vrot.slane %v1258_v62, 4  ;;  %v5578_v23 = vrot.slane %v606_v13, 7  ;;  %v562_v9 = vrot.slane %v5494_v7, 4  ;;  %v630_v42 = vrot.slane %v5547_v46, 4  ;;  %v786_v39 = vld [vmem:[#allocation2 + $0x9c] sm:$0xf] }
  0x8f   : > { %v766_v24 = vsel %vm5104_vm8, %v535_v17, %v765_v28  ;;  %v603_v20 = vor.u32 %v601_v47, %v600_v4  ;;  %v604_v32 = vrot.slane %v600_v4, 4  ;;  %v1240_v5 = vsel %vm4958_vm3, %v1235_v21, %v1239_v14  ;;  %v1444_v55 = vld [vmem:[#allocation2 + $0x8] sm:$0x1] }
  0x90   : > { %v1264_v45 = vsel %vm4958_vm3, %v1259_v11, %v1263_v1  ;;  %767 = vst [vmem:[#allocation2 + $0x78] sm:$0xf] %v766_v24  ;;  %v611_v12 = vor.u32 %v609_v6, %v5578_v23  ;;  %v777_v30 = vsel %vm5178_vm10, %v562_v9, %v776_v52  ;;  %v584_v38 = vshll.u32 %v5479_v63, 16  ;;  %v5602_v63 = vld [vmem:[#allocation2 + $0x4] sm:$0xf] }
  0x91   : > { %1367 = vrot.lane.b32.xlu0 %v1264_v45, %s4877_s19  ;;  %v794_v29 = vsel %vm5104_vm8, %v603_v20, %v793_v61  ;;  %v923_v50 = vld [vmem:[#allocation2 + $0xb4] sm:$0xf]  ;;  %v805_v18 = vsel %vm5178_vm10, %v630_v42, %v804_v40  ;;  %778 = vst [vmem:[#allocation2 + $0x8c] sm:$0x1] %v777_v30  ;;  %v1207_v16 = vshrl.u32 %v5540_v37, 16  ;;  %v1543_v37 = vrot.slane %v5602_v63, 5 }
  0x92   : > { %v612_v7 = vsel %vm5118_vm9, %v604_v32, %v611_v12  ;;  %795 = vst [vmem:[#allocation2 + $0xa8] sm:$0xf] %v794_v29  ;;  %v924_v0 = vld [vmem:[#allocation2 + $0xb8] sm:$0xf]  ;;  %v1290_v3 = vshrl.u32 %v923_v50, 16  ;;  %v1293_v59 = vshll.u32 %v923_v50, 16  ;;  %v586_v46 = vor.u32 %v584_v38, %v5505_v36 }
  0x93   : > { %1347 = vrot.lane.b32.xlu2 %v1144_v57, %s4877_s19  ;;  %796 = vst.msk [vmem:[#allocation2 + $0xac] sm:$0xf] %vm285_vm0, %v612_v7  ;;  %v1299_v26 = vshll.u32 %v924_v0, 16  ;;  %v1303_v44 = vshrl.u32 %v924_v0, 16  ;;  %v1209_v58 = vrot.slane %v1207_v16, 4  ;;  %v613_v62 = vrot.slane %v5578_v23, 4 }
  0x94   : > { %v1292_v48 = vrot.slane %v1290_v3, 4  ;;  %v1295_v25 = vrot.slane %v1293_v59, 5  ;;  %806 = vst [vmem:[#allocation2 + $0xbc] sm:$0x1] %v805_v18  ;;  %v787_v43 = vsel %vm5104_vm8, %v586_v46, %v786_v39  ;;  %v1546_v47 = vrot.slane %v1444_v55, 5  ;;  %v1314_v18 = vpop.permute.xlu0 %1313 }
  0x95   : > { %v1301_v35 = vrot.slane %v1299_v26, 5  ;;  %788 = vst [vmem:[#allocation2 + $0x9c] sm:$0xf] %v787_v43  ;;  %v1305_v14 = vrot.slane %v1303_v44, 4  ;;  %v1545_v17 = vrot.slane %v1543_v37, 4  ;;  %v1210_v4 = vor.u32 %v1209_v58, %v5549_v27 }
  0x96   : > { %1363 = vrot.lane.b32.xlu1 %v1240_v5, %s4877_s19  ;;  %v1296_v19 = vor.u32 %v1295_v25, %v1292_v48  ;;  %v797_v23 = vld [vmem:[#allocation2 + $0xb0] sm:$0x1]  ;;  %v1448_v50 = vld [vmem:[#allocation2 + $0x18] sm:$0xe]  ;;  %v5633_v7 = vld [vmem:[#allocation2 + $0x1c] sm:$0xf] }
  0x97   : > { %v908_v22 = vld [vmem:[#allocation2 + $0x78] sm:$0xf]  ;;  %v798_v9 = vsel %vm5178_vm10, %v613_v62, %v797_v23  ;;  %v1306_v5 = vor.u32 %v1305_v14, %v1301_v35  ;;  %v1547_v30 = vsel %vm5621_vm13, %v1545_v17, %v1546_v47  ;;  %v1211_v39 = vrot.slane %v1210_v4, 4  ;;  %v1445_v44 = vld [vmem:[#allocation2 + $0xc] sm:$0xe] }
  0x98   : > { %v1170_v54 = vshrl.u32 %v908_v22, 16  ;;  %v1173_v15 = vshll.u32 %v908_v22, 16  ;;  %v1297_v36 = vrot.slane %v1296_v19, 4  ;;  %v913_v11 = vld [vmem:[#allocation2 + $0x8c] sm:$0x1]  ;;  %v4557_v16 = vrot.slane %v1448_v50, 9 }
  0x99   : > { %v920_v56 = vld [vmem:[#allocation2 + $0xa8] sm:$0xf]  ;;  %v1213_v45 = vshll.u32 %v913_v11, 16  ;;  %799 = vst [vmem:[#allocation2 + $0xb0] sm:$0x1] %v798_v9  ;;  %v1307_v26 = vrot.slane %v1306_v5, 4 }
  0x9a   : > { %v1172_v1 = vrot.slane %v1170_v54, 4  ;;  %v1175_v49 = vrot.slane %v1173_v15, 5  ;;  %v5608_v53 = vld [vmem:[#allocation2 + $0xac] sm:$0xf]  ;;  %v1266_v28 = vshrl.u32 %v920_v56, 16  ;;  %v1269_v8 = vshll.u32 %v920_v56, 16 }
  0x9b   : > { %v1302_v41 = vsel %vm4958_vm3, %v1297_v36, %v1301_v35  ;;  %v1275_v34 = vshll.u32 %v5608_v53, 16  ;;  %v925_v57 = vld [vmem:[#allocation2 + $0xbc] sm:$0x1]  ;;  %v1215_v0 = vrot.slane %v1213_v45, 5  ;;  %v1557_v48 = vrot.slane %v5633_v7, 5 }
  0x9c   : > { %1373 = vrot.lane.b32.xlu0 %v1302_v41, %s4877_s19  ;;  %v1176_v13 = vor.u32 %v1175_v49, %v1172_v1  ;;  %v1268_v6 = vrot.slane %v1266_v28, 4  ;;  %v1271_v21 = vrot.slane %v1269_v8, 5  ;;  %v917_v32 = vld [vmem:[#allocation2 + $0x9c] sm:$0xf]  ;;  %v1309_v29 = vshll.u32 %v925_v57, 16 }
  0x9d   : > { %v5617_v24 = vrot.slane %v1275_v34, 5  ;;  %v1242_v12 = vshrl.u32 %v917_v32, 16  ;;  %v1245_v42 = vshll.u32 %v917_v32, 16  ;;  %v1279_v25 = vshrl.u32 %v5608_v53, 16  ;;  %v5646_v35 = vld [vmem:[#allocation2 + $0x28] sm:$0xf] }
  0x9e   : > { %v1177_v61 = vrot.slane %v1176_v13, 4  ;;  %v1272_v52 = vor.u32 %v1271_v21, %v1268_v6  ;;  %v1311_v46 = vrot.slane %v1309_v29, 5  ;;  %v1216_v43 = vsel %vm4958_vm3, %v1211_v39, %v1215_v0  ;;  %v5650_v54 = vld [vmem:[#allocation2 + $0x10] sm:$0xf]  ;;  %v815_v36 = vld [vmem:[#allocation2 + $0x4] sm:$0xf] }
  0x9f   : > { %v1244_v3 = vrot.slane %v1242_v12, 4  ;;  %v1247_v59 = vrot.slane %v1245_v42, 5  ;;  %v1558_v15 = vsel %vm5621_vm13, %v4557_v16, %v1557_v48  ;;  %v1564_v55 = vrot.slane %v5646_v35, 5  ;;  %v818_v56 = vld [vmem:[#allocation2 + $0x18] sm:$0xf] }
  0xa0   : > { %v1182_v27 = vsel %vm4958_vm3, %v1177_v61, %v5466_v51  ;;  %v1273_v40 = vrot.slane %v1272_v52, 4  ;;  %v814_v51 = vld [vmem:[#allocation2] sm:$0xf]  ;;  %v1312_v22 = vsel %vm4958_vm3, %v1307_v26, %v1311_v46  ;;  %v1453_v62 = vld [vmem:[#allocation2 + $0x2c] sm:$0x1]  ;;  %v1281_v1 = vrot.slane %v1279_v25, 4 }
  0xa1   : > { %1353 = vrot.lane.b32.xlu2 %v1182_v27, %s4877_s19  ;;  %846 = vst.msk [vmem:[#allocation3] sm:$0xf] %vm285_vm0, %v814_v51  ;;  %v1248_v19 = vor.u32 %v1247_v59, %v1244_v3  ;;  %v922_v49 = vld [vmem:[#allocation2 + $0xb0] sm:$0x1]  ;;  %v816_v53 = vld [vmem:[#allocation2 + $0xc] sm:$0xf] }
  0xa2   : > { %v1278_v38 = vsel %vm4958_vm3, %v1273_v40, %v5617_v24  ;;  %1410 = vst.msk [vmem:[#allocation3] sm:$0xf] %vm1409_vm14, %v1314_v18  ;;  %v4556_v28 = vrot.slane %v1445_v44, 9  ;;  %v1550_v8 = vrot.slane %v5650_v54, 5  ;;  %v1566_v41 = vrot.slane %v1564_v55, 4 }
  0xa3   : > { %1369 = vrot.lane.b32.xlu1 %v1278_v38, %s4877_s19  ;;  %v1249_v58 = vrot.slane %v1248_v19, 4  ;;  %847 = vst.msk [vmem:[#allocation3 + $0x4] sm:$0xf] %vm285_vm0, %v815_v36  ;;  %v1567_v34 = vrot.slane %v1453_v62, 5  ;;  %v1282_v11 = vor.u32 %v1281_v1, %v5617_v24  ;;  %v1285_v13 = vshll.u32 %v922_v49, 16 }
  0xa4   : > { %1655 = vrot.lane.b32.xlu0 %v1547_v30, %s4878_s24  ;;  %850 = vst.msk [vmem:[#allocation3 + $0x10] sm:$0xf] %vm285_vm0, %v818_v56  ;;  %v1551_v21 = vsel %vm5621_vm13, %v4556_v28, %v1550_v8  ;;  %v1450_v14 = vld [vmem:[#allocation2 + $0x20] sm:$0x1]  ;;  %v1457_v4 = vld [vmem:[#allocation2 + $0x3c] sm:$0xe] }
  0xa5   : > { %848 = vst.msk [vmem:[#allocation3 + $0x8] sm:$0xf] %vm285_vm0, %v816_v53  ;;  %v1254_v47 = vsel %vm4958_vm3, %v1249_v58, %v5551_v33  ;;  %v1568_v17 = vsel %vm5621_vm13, %v1566_v41, %v1567_v34  ;;  %v820_v45 = vld [vmem:[#allocation2 + $0x24] sm:$0xf]  ;;  %v819_v57 = vld [vmem:[#allocation2 + $0x1c] sm:$0xf] }
  0xa6   : > { %v1283_v23 = vrot.slane %v1282_v11, 4  ;;  %v1287_v33 = vrot.slane %v1285_v13, 5  ;;  %v1458_v61 = vld [vmem:[#allocation2 + $0x40] sm:$0xf]  ;;  %852 = vst.msk [vmem:[#allocation3 + $0x18] sm:$0xf] %vm285_vm0, %v820_v45 }
  0xa7   : > { %851 = vst.msk [vmem:[#allocation3 + $0x14] sm:$0xf] %vm285_vm0, %v819_v57  ;;  %v817_v52 = vld [vmem:[#allocation2 + $0x10] sm:$0xf]  ;;  %v1559_v24 = vrot.slane %v1557_v48, 4  ;;  %v1560_v32 = vrot.slane %v1450_v14, 5 }
  0xa8   : > { %849 = vst.msk [vmem:[#allocation3 + $0xc] sm:$0xf] %vm285_vm0, %v817_v52  ;;  %v4560_v9 = vrot.slane %v1457_v4, 9  ;;  %v1578_v12 = vrot.slane %v1458_v61, 5  ;;  %v1288_v42 = vsel %vm4958_vm3, %v1283_v23, %v1287_v33  ;;  %v5681_v27 = vld [vmem:[#allocation2 + $0x4c] sm:$0xf] }
  0xa9   : > { %1359 = vrot.lane.b32.xlu2 %v1216_v43, %s4877_s19  ;;  %v1442_v40 = vld [vmem:[#allocation2] sm:$0xe]  ;;  %v1561_v5 = vsel %vm5621_vm13, %v1559_v24, %v1560_v32  ;;  %v1454_v29 = vld [vmem:[#allocation2 + $0x30] sm:$0xe]  ;;  %v5685_v30 = vld [vmem:[#allocation2 + $0x34] sm:$0xf] }
  0xaa   : > { %v1579_v39 = vsel %vm5621_vm13, %v4560_v9, %v1578_v12  ;;  %v1585_v50 = vrot.slane %v5681_v27, 5  ;;  %v823_v7 = vld [vmem:[#allocation2 + $0x34] sm:$0xf]  ;;  %v822_v38 = vld [vmem:[#allocation2 + $0x30] sm:$0xf]  ;;  %v4555_v0 = vrot.slane %v1442_v40, 9 }
  0xab   : > { %1375 = vrot.lane.b32.xlu1 %v1312_v22, %s4877_s19  ;;  %v1462_v3 = vld [vmem:[#allocation2 + $0x50] sm:$0x1]  ;;  %855 = vst.msk [vmem:[#allocation3 + $0x24] sm:$0xf] %vm285_vm0, %v823_v7  ;;  %v821_v59 = vld [vmem:[#allocation2 + $0x28] sm:$0xf] }
  0xac   : > { %1661 = vrot.lane.b32.xlu0 %v1558_v15, %s4878_s24  ;;  %854 = vst.msk [vmem:[#allocation3 + $0x20] sm:$0xf] %vm285_vm0, %v822_v38  ;;  %v4559_v51 = vrot.slane %v1454_v29, 9  ;;  %v1571_v18 = vrot.slane %v5685_v30, 5  ;;  %v1587_v26 = vrot.slane %v1585_v50, 4  ;;  %v1588_v46 = vrot.slane %v1462_v3, 5 }
  0xad   : > { %853 = vst.msk [vmem:[#allocation3 + $0x1c] sm:$0xf] %vm285_vm0, %v821_v59  ;;  %v1447_v16 = vld [vmem:[#allocation2 + $0x14] sm:$0x1]  ;;  %v1544_v48 = vsel %vm5621_vm13, %v4555_v0, %v1543_v37  ;;  %v1552_v19 = vrot.slane %v1550_v8, 4  ;;  %v1580_v58 = vrot.slane %v1578_v12, 4 }
  0xae   : > { %v1572_v43 = vsel %vm5621_vm13, %v4559_v51, %v1571_v18  ;;  %v1553_v22 = vrot.slane %v1447_v16, 5  ;;  %v1589_v44 = vsel %vm5621_vm13, %v1587_v26, %v1588_v46  ;;  %v1459_v54 = vld [vmem:[#allocation2 + $0x44] sm:$0x1]  ;;  %v826_v63 = vld [vmem:[#allocation2 + $0x48] sm:$0xf]  ;;  %v1573_v29 = vrot.slane %v1571_v18, 4 }
  0xaf   : > { %v825_v15 = vld [vmem:[#allocation2 + $0x40] sm:$0xf]  ;;  %v5711_v37 = vld [vmem:[#allocation2 + $0x64] sm:$0xf]  ;;  %858 = vst.msk [vmem:[#allocation3 + $0x30] sm:$0xf] %vm285_vm0, %v826_v63 }
  0xb0   : > { %v1316_v6 = vpop.permute.xlu0 %1315  ;;  %v1466_v36 = vld [vmem:[#allocation2 + $0x60] sm:$0xe]  ;;  %857 = vst.msk [vmem:[#allocation3 + $0x2c] sm:$0xf] %vm285_vm0, %v825_v15  ;;  %v824_v56 = vld [vmem:[#allocation2 + $0x3c] sm:$0xf]  ;;  %v1554_v28 = vsel %vm5621_vm13, %v1552_v19, %v1553_v22 }
  0xb1   : > { %1411 = vst.msk [vmem:[#allocation3 + $0x4] sm:$0xf] %vm1409_vm14, %v1316_v6  ;;  %1365 = vrot.lane.b32.xlu2 %v1254_v47, %s4877_s19  ;;  %v1581_v62 = vrot.slane %v1459_v54, 5  ;;  %v4563_v49 = vrot.slane %v1466_v36, 9  ;;  %v1599_v53 = vrot.slane %v5711_v37, 5 }
  0xb2   : > { %856 = vst.msk [vmem:[#allocation3 + $0x28] sm:$0xf] %vm285_vm0, %v824_v56  ;;  %v5722_v41 = vld [vmem:[#allocation2 + $0x70] sm:$0xf]  ;;  %v1451_v34 = vld [vmem:[#allocation2 + $0x24] sm:$0xe] }
  0xb3   : > { %1657 = vrot.lane.b32.xlu1 %v1551_v21, %s4878_s24  ;;  %v1582_v11 = vsel %vm5621_vm13, %v1580_v58, %v1581_v62  ;;  %v1463_v13 = vld [vmem:[#allocation2 + $0x54] sm:$0xe]  ;;  %v5728_v6 = vld [vmem:[#allocation2 + $0x58] sm:$0xf]  ;;  %v1600_v21 = vsel %vm5621_vm13, %v4563_v49, %v1599_v53  ;;  %v1606_v14 = vrot.slane %v5722_v41, 5  ;;  %v4558_v45 = vrot.slane %v1451_v34, 9 }
  0xb4   : > { %1667 = vrot.lane.b32.xlu0 %v1568_v17, %s4878_s24  ;;  %v829_v17 = vld [vmem:[#allocation2 + $0x58] sm:$0xf]  ;;  %v828_v4 = vld [vmem:[#allocation2 + $0x54] sm:$0xf]  ;;  %v827_v23 = vld [vmem:[#allocation2 + $0x4c] sm:$0xf] }
  0xb5   : > { %v1471_v57 = vld [vmem:[#allocation2 + $0x74] sm:$0x1]  ;;  %861 = vst.msk [vmem:[#allocation3 + $0x3c] sm:$0xf] %vm285_vm0, %v829_v17  ;;  %v4562_v33 = vrot.slane %v1463_v13, 9  ;;  %v1592_v61 = vrot.slane %v5728_v6, 5  ;;  %v1565_v12 = vsel %vm5621_vm13, %v4558_v45, %v1564_v55 }
  0xb6   : > { %860 = vst.msk [vmem:[#allocation3 + $0x38] sm:$0xf] %vm285_vm0, %v828_v4  ;;  %v1608_v24 = vrot.slane %v1606_v14, 4  ;;  %v1609_v32 = vrot.slane %v1471_v57, 5  ;;  %v1456_v9 = vld [vmem:[#allocation2 + $0x38] sm:$0x1] }
  0xb7   : > { %859 = vst.msk [vmem:[#allocation3 + $0x34] sm:$0xf] %vm285_vm0, %v827_v23  ;;  %v1468_v55 = vld [vmem:[#allocation2 + $0x68] sm:$0x1]  ;;  %v832_v7 = vld [vmem:[#allocation2 + $0x6c] sm:$0xf] }
  0xb8   : > { %v1610_v35 = vsel %vm5621_vm13, %v1608_v24, %v1609_v32  ;;  %v831_v38 = vld [vmem:[#allocation2 + $0x64] sm:$0xf]  ;;  %v1476_v3 = vld [vmem:[#allocation2 + $0x88] sm:$0xf]  ;;  %864 = vst.msk [vmem:[#allocation3 + $0x48] sm:$0xf] %vm285_vm0, %v832_v7 }
  0xb9   : > { %1371 = vrot.lane.b32.xlu2 %v1288_v42, %s4877_s19  ;;  %v1475_v0 = vld [vmem:[#allocation2 + $0x84] sm:$0xe]  ;;  %863 = vst.msk [vmem:[#allocation3 + $0x44] sm:$0xf] %vm285_vm0, %v831_v38  ;;  %v830_v30 = vld [vmem:[#allocation2 + $0x60] sm:$0xf] }
  0xba   : > { %v1601_v59 = vrot.slane %v1599_v53, 4  ;;  %v1602_v51 = vrot.slane %v1468_v55, 5  ;;  %862 = vst.msk [vmem:[#allocation3 + $0x40] sm:$0xf] %vm285_vm0, %v830_v30  ;;  %v4566_v26 = vrot.slane %v1475_v0, 9  ;;  %v1620_v46 = vrot.slane %v1476_v3, 5 }
  0xbb   : > { %1663 = vrot.lane.b32.xlu1 %v1561_v5, %s4878_s24  ;;  %v1593_v5 = vsel %vm5621_vm13, %v4562_v33, %v1592_v61  ;;  %v5772_v54 = vld [vmem:[#allocation2 + $0x7c] sm:$0xf]  ;;  %v834_v37 = vld [vmem:[#allocation2 + $0x78] sm:$0xf]  ;;  %v833_v49 = vld [vmem:[#allocation2 + $0x70] sm:$0xf] }
  0xbc   : > { %1673 = vrot.lane.b32.xlu0 %v1579_v39, %s4878_s24  ;;  %v1574_v39 = vrot.slane %v1456_v9, 5  ;;  %v1603_v22 = vsel %vm5621_vm13, %v1601_v59, %v1602_v51  ;;  %v1621_v63 = vsel %vm5621_vm13, %v4566_v26, %v1620_v46  ;;  %v835_v36 = vld [vmem:[#allocation2 + $0x7c] sm:$0xf]  ;;  %v1480_v58 = vld [vmem:[#allocation2 + $0x98] sm:$0x1]  ;;  %v1622_v33 = vrot.slane %v1620_v46, 4 }
  0xbd   : > { %867 = vst.msk [vmem:[#allocation3 + $0x54] sm:$0xf] %vm285_vm0, %v835_v36  ;;  %v1465_v34 = vld [vmem:[#allocation2 + $0x5c] sm:$0x1]  ;;  %v838_v4 = vld [vmem:[#allocation2 + $0x90] sm:$0xf] }
  0xbe   : > { %v1575_v16 = vsel %vm5621_vm13, %v1573_v29, %v1574_v39  ;;  %866 = vst.msk [vmem:[#allocation3 + $0x50] sm:$0xf] %vm285_vm0, %v834_v37  ;;  %v1595_v17 = vrot.slane %v1465_v34, 5  ;;  %v837_v45 = vld [vmem:[#allocation2 + $0x88] sm:$0xf] }
  0xbf   : > { %v1322_v25 = vpop.permute.xlu2 %1321  ;;  %865 = vst.msk [vmem:[#allocation3 + $0x4c] sm:$0xf] %vm285_vm0, %v833_v49  ;;  %v1484_v57 = vld [vmem:[#allocation2 + $0xa8] sm:$0xe]  ;;  %v1485_v23 = vld [vmem:[#allocation2 + $0xac] sm:$0xf] }
  0xc0   : > { %1414 = vst.msk [vmem:[#allocation3 + $0x10] sm:$0xf] %vm1409_vm14, %v1322_v25  ;;  %v5766_v25 = vld [vmem:[#allocation2 + $0x94] sm:$0xf]  ;;  %v4569_v32 = vrot.slane %v1484_v57, 9  ;;  %v1641_v9 = vrot.slane %v1485_v23, 5 }
  0xc1   : > { %1653 = vrot.lane.b32.xlu2 %v1544_v48, %s4878_s24  ;;  %v1627_v15 = vrot.slane %v5766_v25, 5  ;;  %870 = vst.msk [vmem:[#allocation3 + $0x60] sm:$0xf] %vm285_vm0, %v838_v4  ;;  %v1481_v39 = vld [vmem:[#allocation2 + $0x9c] sm:$0xe] }
  0xc2   : > { %869 = vst.msk [vmem:[#allocation3 + $0x5c] sm:$0xf] %vm285_vm0, %v837_v45  ;;  %v1642_v55 = vsel %vm5621_vm13, %v4569_v32, %v1641_v9  ;;  %v841_v38 = vld [vmem:[#allocation2 + $0xa0] sm:$0xf]  ;;  %v840_v0 = vld [vmem:[#allocation2 + $0x9c] sm:$0xf] }
  0xc3   : > { %1669 = vrot.lane.b32.xlu1 %v1572_v43, %s4878_s24  ;;  %v1460_v43 = vld [vmem:[#allocation2 + $0x48] sm:$0xe]  ;;  %v1489_v30 = vld [vmem:[#allocation2 + $0xbc] sm:$0x1]  ;;  %873 = vst.msk [vmem:[#allocation3 + $0x6c] sm:$0xf] %vm285_vm0, %v841_v38 }
  0xc4   : > { %1679 = vrot.lane.b32.xlu0 %v1589_v44, %s4878_s24  ;;  %v1472_v44 = vld [vmem:[#allocation2 + $0x78] sm:$0xe]  ;;  %v4561_v56 = vrot.slane %v1460_v43, 9  ;;  %872 = vst.msk [vmem:[#allocation3 + $0x68] sm:$0xf] %vm285_vm0, %v840_v0  ;;  %v4568_v51 = vrot.slane %v1481_v39, 9 }
  0xc5   : > { %v4565_v62 = vrot.slane %v1472_v44, 9  ;;  %v839_v26 = vld [vmem:[#allocation2 + $0x94] sm:$0xf]  ;;  %v1486_v41 = vld [vmem:[#allocation2 + $0xb0] sm:$0x1] }
  0xc6   : > { %v1318_v1 = vpop.permute.xlu1 %1317  ;;  %871 = vst.msk [vmem:[#allocation3 + $0x64] sm:$0xf] %vm285_vm0, %v839_v26  ;;  %v844_v36 = vld [vmem:[#allocation2 + $0xb4] sm:$0xf]  ;;  %v843_v37 = vld [vmem:[#allocation2 + $0xac] sm:$0xf] }
  0xc7   : > { %1412 = vst.msk [vmem:[#allocation3 + $0x8] sm:$0xf] %vm1409_vm14, %v1318_v1  ;;  %v1324_v8 = vpop.permute.xlu2 %1323  ;;  %v1613_v1 = vrot.slane %v5772_v54, 5  ;;  %v842_v49 = vld [vmem:[#allocation2 + $0xa8] sm:$0xf] }
  0xc8   : > { %v1326_v47 = vpop.permute.xlu0 %1325  ;;  %1415 = vst.msk [vmem:[#allocation3 + $0x14] sm:$0xf] %vm1409_vm14, %v1324_v8  ;;  %v1630_v8 = vrot.slane %v1480_v58, 5  ;;  %v1643_v58 = vrot.slane %v1641_v9, 4  ;;  %v1478_v54 = vld [vmem:[#allocation2 + $0x90] sm:$0xe] }
  0xc9   : > { %1416 = vst.msk [vmem:[#allocation3 + $0x18] sm:$0xf] %vm1409_vm14, %v1326_v47  ;;  %1659 = vrot.lane.b32.xlu2 %v1554_v28, %s4878_s24  ;;  %v1629_v28 = vrot.slane %v1627_v15, 4  ;;  %v1586_v47 = vsel %vm5621_vm13, %v4561_v56, %v1585_v50  ;;  %v1614_v13 = vsel %vm5621_vm13, %v4565_v62, %v1613_v1  ;;  %v1477_v50 = vld [vmem:[#allocation2 + $0x8c] sm:$0x1]  ;;  %v1644_v62 = vrot.slane %v1486_v41, 5 }
  0xca   : > { %876 = vst.msk [vmem:[#allocation3 + $0x78] sm:$0xf] %vm285_vm0, %v844_v36  ;;  %v1784_v34 = vld [vmem:[#allocation2 + $0x18] sm:$0xf]  ;;  %v1787_v4 = vld [vmem:[#allocation2 + $0x28] sm:$0xf] }
  0xcb   : > { %1675 = vrot.lane.b32.xlu1 %v1582_v11, %s4878_s24  ;;  %v1631_v27 = vsel %vm5621_vm13, %v1629_v28, %v1630_v8  ;;  %875 = vst.msk [vmem:[#allocation3 + $0x74] sm:$0xf] %vm285_vm0, %v843_v37  ;;  %v1645_v8 = vsel %vm5621_vm13, %v1643_v58, %v1644_v62 }
  0xcc   : > { %1685 = vrot.lane.b32.xlu0 %v1600_v21, %s4878_s24  ;;  %v1594_v21 = vrot.slane %v1592_v61, 4  ;;  %v1623_v61 = vrot.slane %v1477_v50, 5  ;;  %874 = vst.msk [vmem:[#allocation3 + $0x70] sm:$0xf] %vm285_vm0, %v842_v49  ;;  %v1782_v50 = vld [vmem:[#allocation2 + $0xc] sm:$0xf] }
  0xcd   : > { %v1800_v49 = vld [vmem:[#allocation2 + $0x78] sm:$0xf] }
  0xce   : > { %v1320_v52 = vpop.permute.xlu1 %1319  ;;  %v1624_v29 = vsel %vm5621_vm13, %v1622_v33, %v1623_v61  ;;  %v1487_v33 = vld [vmem:[#allocation2 + $0xb4] sm:$0xe]  ;;  %v1785_v61 = vld [vmem:[#allocation2 + $0x1c] sm:$0xf] }
  0xcf   : > { %1413 = vst.msk [vmem:[#allocation3 + $0xc] sm:$0xf] %vm1409_vm14, %v1320_v52  ;;  %v836_v52 = vld [vmem:[#allocation2 + $0x84] sm:$0xf] }
  0xd0   : > { %v1330_v42 = vpop.permute.xlu2 %1329  ;;  %v1332_v40 = vpop.permute.xlu0 %1331  ;;  %868 = vst.msk [vmem:[#allocation3 + $0x58] sm:$0xf] %vm285_vm0, %v836_v52  ;;  %v1790_v52 = vld [vmem:[#allocation2 + $0x3c] sm:$0xf] }
  0xd1   : > { %1418 = vst.msk [vmem:[#allocation3 + $0x20] sm:$0xf] %vm1409_vm14, %v1330_v42  ;;  %1665 = vrot.lane.b32.xlu2 %v1565_v12, %s4878_s24  ;;  %v1596_v12 = vsel %vm5621_vm13, %v1594_v21, %v1595_v17  ;;  %v5809_v42 = vld [vmem:[#allocation2 + $0xb8] sm:$0xf] }
  0xd2   : > { %1419 = vst.msk [vmem:[#allocation3 + $0x24] sm:$0xf] %vm1409_vm14, %v1332_v40  ;;  %v1469_v40 = vld [vmem:[#allocation2 + $0x6c] sm:$0xe]  ;;  %v1648_v7 = vrot.slane %v5809_v42, 5 }
  0xd3   : > { %1681 = vrot.lane.b32.xlu1 %v1593_v5, %s4878_s24  ;;  %v4564_v3 = vrot.slane %v1469_v40, 9  ;;  %v1788_v40 = vld [vmem:[#allocation2 + $0x30] sm:$0xf] }
  0xd4   : > { %1691 = vrot.lane.b32.xlu0 %v1610_v35, %s4878_s24  ;;  %v5815_v35 = vld [vmem:[#allocation2 + $0xa0] sm:$0xf]  ;;  %v1783_v42 = vld [vmem:[#allocation2 + $0x10] sm:$0xf] }
  0xd5   : > { %v1607_v43 = vsel %vm5621_vm13, %v4564_v3, %v1606_v14  ;;  %v1615_v14 = vrot.slane %v1613_v1, 4  ;;  %v1786_v3 = vld [vmem:[#allocation2 + $0x24] sm:$0xf] }
  0xd6   : > { %v1328_v18 = vpop.permute.xlu1 %1327 }
  0xd7   : > { %1417 = vst.msk [vmem:[#allocation3 + $0x1c] sm:$0xf] %vm1409_vm14, %v1328_v18  ;;  %v1634_v18 = vrot.slane %v5815_v35, 5 }
  0xd8   : > { %v1336_v48 = vpop.permute.xlu2 %1335  ;;  %v1338_v19 = vpop.permute.xlu0 %1337 }
  0xd9   : > { %1421 = vst.msk [vmem:[#allocation3 + $0x2c] sm:$0xf] %vm1409_vm14, %v1336_v48  ;;  %1671 = vrot.lane.b32.xlu2 %v1575_v16, %s4878_s24  ;;  %v1650_v16 = vrot.slane %v1648_v7, 4  ;;  %v1651_v48 = vrot.slane %v1489_v30, 5  ;;  %v1635_v44 = vsel %vm5621_vm13, %v4568_v51, %v1634_v18  ;;  %v1636_v57 = vrot.slane %v1634_v18, 4 }
  0xda   : > { %1422 = vst.msk [vmem:[#allocation3 + $0x30] sm:$0xf] %vm1409_vm14, %v1338_v19  ;;  %v1474_v19 = vld [vmem:[#allocation2 + $0x80] sm:$0x1]  ;;  %v1799_v51 = vld [vmem:[#allocation2 + $0x70] sm:$0xf] }
  0xdb   : > { %1687 = vrot.lane.b32.xlu1 %v1603_v22, %s4878_s24  ;;  %v1616_v56 = vrot.slane %v1474_v19, 5 }
  0xdc   : > { %1697 = vrot.lane.b32.xlu0 %v1621_v63, %s4878_s24  ;;  %v1652_v63 = vsel %vm5621_vm13, %v1650_v16, %v1651_v48  ;;  %v371_v48 = vld [vmem:[%s5002_s23 + $0x78] sm:$0xf] }
  0xdd   : > { %v1617_v28 = vsel %vm5621_vm13, %v1615_v14, %v1616_v56  ;;  %v632_v19 = vshrl.u32 %v371_v48, 16  ;;  %v807_v14 = vld [vmem:[#allocation2 + $0xc0] sm:$0xf]  ;;  %v1792_v56 = vld [vmem:[#allocation2 + $0x48] sm:$0xf] }
  0xde   : > { %v1334_v53 = vpop.permute.xlu1 %1333 }
  0xdf   : > { %1420 = vst.msk [vmem:[#allocation3 + $0x28] sm:$0xf] %vm1409_vm14, %v1334_v53 }
  0xe0   : > { %v1344_v11 = vpop.permute.xlu0 %1343 }
  0xe1   : > { %1425 = vst.msk [vmem:[#allocation3 + $0x3c] sm:$0xf] %vm1409_vm14, %v1344_v11  ;;  %1677 = vrot.lane.b32.xlu2 %v1586_v47, %s4878_s24  ;;  %v4567_v47 = vrot.slane %v1478_v54, 9 }
  0xe3   : > { %1693 = vrot.lane.b32.xlu1 %v1614_v13, %s4878_s24  ;;  %v845_v13 = vld [vmem:[#allocation2 + $0xb8] sm:$0xf]  ;;  %v1628_v21 = vsel %vm5621_vm13, %v4567_v47, %v1627_v15  ;;  %v1808_v47 = vld [vmem:[#allocation2 + $0xa8] sm:$0xf] }
  0xe4   : > { %1703 = vrot.lane.b32.xlu0 %v1631_v27, %s4878_s24  ;;  %877 = vst.msk [vmem:[#allocation3 + $0x7c] sm:$0xf] %vm285_vm0, %v845_v13  ;;  %v1483_v27 = vld [vmem:[#allocation2 + $0xa4] sm:$0x1] }
  0xe5   : > { %v1342_v6 = vpop.permute.xlu2 %1341  ;;  %v1637_v23 = vrot.slane %v1483_v27, 5 }
  0xe6   : > { %1424 = vst.msk [vmem:[#allocation3 + $0x38] sm:$0xf] %vm1409_vm14, %v1342_v6  ;;  %v1340_v24 = vpop.permute.xlu1 %1339 }
  0xe7   : > { %1423 = vst.msk [vmem:[#allocation3 + $0x34] sm:$0xf] %vm1409_vm14, %v1340_v24  ;;  %v1638_v25 = vsel %vm5621_vm13, %v1636_v57, %v1637_v23  ;;  %v4570_v24 = vrot.slane %v1487_v33, 9  ;;  %v1979_v23 = vld [vmem:[#allocation2 + $0x1c] sm:$0xf] }
  0xe8   : > { %v1350_v5 = vpop.permute.xlu0 %1349 }
  0xe9   : > { %1428 = vst.msk [vmem:[#allocation3 + $0x48] sm:$0xf] %vm1409_vm14, %v1350_v5  ;;  %1683 = vrot.lane.b32.xlu2 %v1596_v12, %s4878_s24  ;;  %v1649_v9 = vsel %vm5621_vm13, %v4570_v24, %v1648_v7  ;;  %v1793_v5 = vld [vmem:[#allocation2 + $0x4c] sm:$0xf]  ;;  %v1796_v7 = vld [vmem:[#allocation2 + $0x60] sm:$0xf] }
  0xea   : > { %v2061_v24 = vshrl.u32 %v1979_v23, 16 }
  0xeb   : > { %1699 = vrot.lane.b32.xlu1 %v1624_v29, %s4878_s24 }
  0xec   : > { %1709 = vrot.lane.b32.xlu0 %v1642_v55, %s4878_s24  ;;  %v1791_v55 = vld [vmem:[#allocation2 + $0x40] sm:$0xf] }
  0xed   : > { %v1348_v59 = vpop.permute.xlu2 %1347 }
  0xee   : > { %1427 = vst.msk [vmem:[#allocation3 + $0x44] sm:$0xf] %vm1409_vm14, %v1348_v59  ;;  %v1346_v46 = vpop.permute.xlu1 %1345  ;;  %v1794_v59 = vld [vmem:[#allocation2 + $0x54] sm:$0xf] }
  0xef   : > { %1426 = vst.msk [vmem:[#allocation3 + $0x40] sm:$0xf] %vm1409_vm14, %v1346_v46  ;;  %v1789_v46 = vld [vmem:[#allocation2 + $0x34] sm:$0xf] }
  0xf0   : > { %v1356_v22 = vpop.permute.xlu0 %1355 }
  0xf1   : > { %1431 = vst.msk [vmem:[#allocation3 + $0x54] sm:$0xf] %vm1409_vm14, %v1356_v22  ;;  %1689 = vrot.lane.b32.xlu2 %v1607_v43, %s4878_s24  ;;  %v1797_v43 = vld [vmem:[#allocation2 + $0x64] sm:$0xf] }
  0xf2   : > { %v1802_v22 = vld [vmem:[#allocation2 + $0x84] sm:$0xf] }
  0xf3   : > { %1705 = vrot.lane.b32.xlu1 %v1635_v44, %s4878_s24  ;;  %v635_v44 = vshll.u32 %v371_v48, 16 }
  0xf4   : > { %1715 = vrot.lane.b32.xlu0 %v1652_v63, %s4878_s24  ;;  %v5901_v63 = vrot.slane %v632_v19, 7  ;;  %v1981_v19 = vld [vmem:[#allocation2 + $0x24] sm:$0xf] }
  0xf6   : > { %v1352_v53 = vpop.permute.xlu1 %1351  ;;  %v637_v36 = vor.u32 %v635_v44, %v5901_v63 }
  0xf7   : > { %1429 = vst.msk [vmem:[#allocation3 + $0x4c] sm:$0xf] %vm1409_vm14, %v1352_v53  ;;  %v1805_v53 = vld [vmem:[#allocation2 + $0x94] sm:$0xf] }
  0xf8   : > { %v1362_v1 = vpop.permute.xlu0 %1361  ;;  %v808_v62 = vsel %vm5104_vm8, %v637_v36, %v807_v14  ;;  %v1985_v14 = vld [vmem:[#allocation2 + $0x34] sm:$0xf]  ;;  %vm4117_vm8 = vcmask 588800  }
  0xf9   : > { %1434 = vst.msk [vmem:[#allocation3 + $0x60] sm:$0xf] %vm1409_vm14, %v1362_v1  ;;  %1695 = vrot.lane.b32.xlu2 %v1617_v28, %s4878_s24 }
  0xfa   : > { %809 = vst [vmem:[#allocation2 + $0xc0] sm:$0xf] %v808_v62 }
  0xfb   : > { %v1354_v11 = vpop.permute.xlu2 %1353  ;;  %1711 = vrot.lane.b32.xlu1 %v1645_v8, %s4878_s24  ;;  %v1975_v8 = vld [vmem:[#allocation2 + $0xc] sm:$0xf] }
  0xfc   : > { %1430 = vst.msk [vmem:[#allocation3 + $0x50] sm:$0xf] %vm1409_vm14, %v1354_v11  ;;  %1850 = vrot.lane.b32.xlu0 %v1784_v34, %s4879_s25  ;;  %v1803_v34 = vld [vmem:[#allocation2 + $0x88] sm:$0xf]  ;;  %v2024_v11 = vshrl.u32 %v1975_v8, 16  ;;  %v2027_v13 = vshll.u32 %v1975_v8, 16 }
  0xfe   : > { %v2029_v57 = vrot.slane %v2027_v13, 5 }
 0x100   : > { %v1358_v17 = vpop.permute.xlu1 %1357 }
 0x101   : > { %1432 = vst.msk [vmem:[#allocation3 + $0x58] sm:$0xf] %vm1409_vm14, %v1358_v17  ;;  %1701 = vrot.lane.b32.xlu2 %v1628_v21, %s4878_s24  ;;  %v372_v21 = vld [vmem:[%s5002_s23 + $0x7c] sm:$0xf] }
 0x102   : > { %v640_v17 = vshrl.u32 %v372_v21, 16  ;;  %v643_v33 = vshll.u32 %v372_v21, 16 }
 0x103   : > { %v1368_v45 = vpop.permute.xlu0 %1367  ;;  %v1360_v6 = vpop.permute.xlu2 %1359  ;;  %1846 = vrot.lane.b32.xlu1 %v1782_v50, %s4879_s25 }
 0x104   : > { %1437 = vst.msk [vmem:[#allocation3 + $0x6c] sm:$0xf] %vm1409_vm14, %v1368_v45  ;;  %1856 = vrot.lane.b32.xlu0 %v1787_v4, %s4879_s25  ;;  %v1798_v4 = vld [vmem:[#allocation2 + $0x6c] sm:$0xf]  ;;  %v2026_v45 = vrot.slane %v2024_v11, 4 }
 0x105   : > { %1433 = vst.msk [vmem:[#allocation3 + $0x5c] sm:$0xf] %vm1409_vm14, %v1360_v6 }
 0x108   : > { %v1364_v15 = vpop.permute.xlu1 %1363 }
 0x109   : > { %1435 = vst.msk [vmem:[#allocation3 + $0x64] sm:$0xf] %vm1409_vm14, %v1364_v15  ;;  %1707 = vrot.lane.b32.xlu2 %v1638_v25, %s4878_s24  ;;  %v1976_v25 = vld [vmem:[#allocation2 + $0x10] sm:$0xf]  ;;  %v5923_v15 = vrot.slane %v640_v17, 7 }
 0x10b   : > { %v1366_v32 = vpop.permute.xlu2 %1365  ;;  %1852 = vrot.lane.b32.xlu1 %v1785_v61, %s4879_s25  ;;  %v1806_v61 = vld [vmem:[#allocation2 + $0x9c] sm:$0xf] }
 0x10c   : > { %1436 = vst.msk [vmem:[#allocation3 + $0x68] sm:$0xf] %vm1409_vm14, %v1366_v32  ;;  %1862 = vrot.lane.b32.xlu0 %v1790_v52, %s4879_s25  ;;  %v2057_v52 = vshll.u32 %v1979_v23, 16  ;;  %v638_v32 = vrot.slane %v5901_v63, 4 }
 0x10e   : > { %v1374_v12 = vpop.permute.xlu0 %1373 }
 0x10f   : > { %1440 = vst.msk [vmem:[#allocation3 + $0x78] sm:$0xf] %vm1409_vm14, %v1374_v12  ;;  %v2030_v12 = vor.u32 %v2029_v57, %v2026_v45  ;;  %v5954_v45 = vld [vmem:[#allocation2 + $0x28] sm:$0xf] }
 0x111   : > { %1713 = vrot.lane.b32.xlu2 %v1649_v9, %s4878_s24  ;;  %v1811_v9 = vld [vmem:[#allocation2 + $0xb8] sm:$0xf] }
 0x113   : > { %v1372_v29 = vpop.permute.xlu2 %1371  ;;  %1858 = vrot.lane.b32.xlu1 %v1788_v40, %s4879_s25  ;;  %v2033_v40 = vshll.u32 %v1976_v25, 16 }
 0x114   : > { %1439 = vst.msk [vmem:[#allocation3 + $0x74] sm:$0xf] %vm1409_vm14, %v1372_v29  ;;  %1868 = vrot.lane.b32.xlu0 %v1793_v5, %s4879_s25  ;;  %v645_v5 = vor.u32 %v643_v33, %v5923_v15 }
 0x115   : > { %v1370_v39 = vpop.permute.xlu1 %1369 }
 0x116   : > { %1438 = vst.msk [vmem:[#allocation3 + $0x70] sm:$0xf] %vm1409_vm14, %v1370_v39  ;;  %v1656_v35 = vpop.permute.xlu0 %1655  ;;  %v5932_v39 = vrot.slane %v2057_v52, 5  ;;  %v1807_v52 = vld [vmem:[#allocation2 + $0xa0] sm:$0xf] }
 0x117   : > { %1751 = vst.msk [vmem:[#allocation3 + $0x4] sm:$0xf] %vm1749_vm15, %v1656_v35  ;;  %v646_v35 = vsel %vm5118_vm9, %v638_v32, %v645_v5 }
 0x118   : > { %810 = vst.msk [vmem:[#allocation2 + $0xc4] sm:$0xf] %vm285_vm0, %v646_v35  ;;  %vm1942_vm0 = vcmask 257216  }
 0x119   : > { %1848 = vrot.lane.b32.xlu2 %v1783_v42, %s4879_s25  ;;  %v2063_v42 = vrot.slane %v2061_v24, 4 }
 0x11b   : > { %v1654_v38 = vpop.permute.xlu2 %1653  ;;  %1864 = vrot.lane.b32.xlu1 %v1791_v55, %s4879_s25 }
 0x11c   : > { %1750 = vst.msk [vmem:[#allocation3] sm:$0xf] %vm1749_vm15, %v1654_v38  ;;  %1874 = vrot.lane.b32.xlu0 %v1796_v7, %s4879_s25  ;;  %v2031_v7 = vrot.slane %v2030_v12, 4  ;;  %v2035_v38 = vrot.slane %v2033_v40, 5  ;;  %v2109_v12 = vshrl.u32 %v1985_v14, 16  ;;  %v2081_v40 = vshll.u32 %v5954_v45, 16 }
 0x11d   : > { %v1376_v0 = vpop.permute.xlu1 %1375 }
 0x11e   : > { %1441 = vst.msk [vmem:[#allocation3 + $0x7c] sm:$0xf] %vm1409_vm14, %v1376_v0  ;;  %v1662_v30 = vpop.permute.xlu0 %1661  ;;  %v1980_v0 = vld [vmem:[#allocation2 + $0x20] sm:$0x1]  ;;  %v2036_v2 = vsel %vm4958_vm3, %v2031_v7, %v2035_v38 }
 0x11f   : > { %1754 = vst.msk [vmem:[#allocation3 + $0x10] sm:$0xf] %vm1749_vm15, %v1662_v30 }
 0x121   : > { %1854 = vrot.lane.b32.xlu2 %v1786_v3, %s4879_s25  ;;  %v1801_v3 = vld [vmem:[#allocation2 + $0x7c] sm:$0xf] }
 0x123   : > { %v1660_v18 = vpop.permute.xlu2 %1659  ;;  %1870 = vrot.lane.b32.xlu1 %v1794_v59, %s4879_s25  ;;  %v1984_v59 = vld [vmem:[#allocation2 + $0x30] sm:$0xf] }
 0x124   : > { %1753 = vst.msk [vmem:[#allocation3 + $0xc] sm:$0xf] %vm1749_vm15, %v1660_v18  ;;  %1880 = vrot.lane.b32.xlu0 %v1799_v51, %s4879_s25  ;;  %v1809_v51 = vld [vmem:[#allocation2 + $0xac] sm:$0xf]  ;;  %v2037_v18 = vshrl.u32 %v1976_v25, 16  ;;  %v2099_v48 = vshll.u32 %v1984_v59, 16 }
 0x125   : > { %v1658_v26 = vpop.permute.xlu1 %1657 }
 0x126   : > { %1752 = vst.msk [vmem:[#allocation3 + $0x8] sm:$0xf] %vm1749_vm15, %v1658_v26  ;;  %v1668_v16 = vpop.permute.xlu0 %1667  ;;  %v2064_v26 = vor.u32 %v2063_v42, %v5932_v39 }
 0x127   : > { %1757 = vst.msk [vmem:[#allocation3 + $0x1c] sm:$0xf] %vm1749_vm15, %v1668_v16  ;;  %v2096_v16 = vshrl.u32 %v1984_v59, 16  ;;  %v2111_v59 = vrot.slane %v2109_v12, 4 }
 0x128   : > { %v2065_v44 = vrot.slane %v2064_v26, 4 }
 0x129   : > { %1860 = vrot.lane.b32.xlu2 %v1789_v46, %s4879_s25  ;;  %v2067_v46 = vshll.u32 %v1980_v0, 16 }
 0x12b   : > { %v1666_v41 = vpop.permute.xlu2 %1665  ;;  %1876 = vrot.lane.b32.xlu1 %v1797_v43, %s4879_s25  ;;  %v2069_v63 = vrot.slane %v2067_v46, 5  ;;  %v1990_v46 = vld [vmem:[#allocation2 + $0x48] sm:$0xf] }
 0x12c   : > { %1756 = vst.msk [vmem:[#allocation3 + $0x18] sm:$0xf] %vm1749_vm15, %v1666_v41  ;;  %1886 = vrot.lane.b32.xlu0 %v1802_v22, %s4879_s25  ;;  %v1804_v22 = vld [vmem:[#allocation2 + $0x90] sm:$0xf]  ;;  %v2039_v41 = vrot.slane %v2037_v18, 4 }
 0x12d   : > { %v1664_v37 = vpop.permute.xlu1 %1663 }
 0x12e   : > { %1755 = vst.msk [vmem:[#allocation3 + $0x14] sm:$0xf] %vm1749_vm15, %v1664_v37  ;;  %v1674_v58 = vpop.permute.xlu0 %1673  ;;  %v1977_v37 = vld [vmem:[#allocation2 + $0x14] sm:$0x1] }
 0x12f   : > { %1760 = vst.msk [vmem:[#allocation3 + $0x28] sm:$0xf] %vm1749_vm15, %v1674_v58  ;;  %v2101_v58 = vrot.slane %v2099_v48, 5  ;;  %v2043_v8 = vshll.u32 %v1977_v37, 16 }
 0x131   : > { %1866 = vrot.lane.b32.xlu2 %v1792_v56, %s4879_s25  ;;  %v2098_v56 = vrot.slane %v2096_v16, 4  ;;  %v1810_v16 = vld [vmem:[#allocation2 + $0xb4] sm:$0xf] }
 0x133   : > { %v1672_v28 = vpop.permute.xlu2 %1671  ;;  %1882 = vrot.lane.b32.xlu1 %v1800_v49, %s4879_s25  ;;  %v2072_v49 = vshrl.u32 %v1981_v19, 16 }
 0x134   : > { %1759 = vst.msk [vmem:[#allocation3 + $0x24] sm:$0xf] %vm1749_vm15, %v1672_v28  ;;  %1892 = vrot.lane.b32.xlu0 %v1805_v53, %s4879_s25  ;;  %v2075_v53 = vshll.u32 %v1981_v19, 16  ;;  %v1988_v28 = vld [vmem:[#allocation2 + $0x40] sm:$0xf] }
 0x135   : > { %v1670_v54 = vpop.permute.xlu1 %1669  ;;  %v2129_v11 = vshll.u32 %v1988_v28, 16  ;;  %v2133_v13 = vshrl.u32 %v1988_v28, 16  ;;  %v2074_v21 = vrot.slane %v2072_v49, 4  ;;  %v1994_v19 = vld [vmem:[#allocation2 + $0x58] sm:$0xf] }
 0x136   : > { %1758 = vst.msk [vmem:[#allocation3 + $0x20] sm:$0xf] %vm1749_vm15, %v1670_v54  ;;  %v1680_v1 = vpop.permute.xlu0 %1679  ;;  %v1812_v54 = vld [vmem:[#allocation2 + $0xc0] sm:$0xf]  ;;  %v2077_v17 = vrot.slane %v2075_v53, 5  ;;  %v2177_v49 = vshll.u32 %v1994_v19, 16 }
 0x137   : > { %1763 = vst.msk [vmem:[#allocation3 + $0x34] sm:$0xf] %vm1749_vm15, %v1680_v1  ;;  %v2040_v1 = vor.u32 %v2039_v41, %v2035_v38  ;;  %v5956_v25 = vrot.slane %v2129_v11, 5  ;;  %v2135_v33 = vrot.slane %v2133_v13, 4  ;;  %v1997_v41 = vld [vmem:[#allocation2 + $0x64] sm:$0xf] }
 0x138   : > { %v2078_v32 = vor.u32 %v2077_v17, %v2074_v21  ;;  %v2201_v28 = vshll.u32 %v1997_v41, 16  ;;  %v5983_v17 = vrot.slane %v2177_v49, 5 }
 0x139   : > { %1872 = vrot.lane.b32.xlu2 %v1795_v60, %s4879_s25  ;;  %v2070_v60 = vsel %vm4958_vm3, %v2065_v44, %v2069_v63 }
 0x13a   : > { %v2079_v38 = vrot.slane %v2078_v32, 4  ;;  %v2181_v32 = vshrl.u32 %v1994_v19, 16 }
 0x13b   : > { %v1678_v27 = vpop.permute.xlu2 %1677  ;;  %1888 = vrot.lane.b32.xlu1 %v1803_v34, %s4879_s25  ;;  %v2102_v34 = vor.u32 %v2101_v58, %v2098_v56  ;;  %v2147_v56 = vshll.u32 %v1990_v46, 16 }
 0x13c   : > { %1762 = vst.msk [vmem:[#allocation3 + $0x30] sm:$0xf] %vm1749_vm15, %v1678_v27  ;;  %1898 = vrot.lane.b32.xlu0 %v1808_v47, %s4879_s25  ;;  %v2105_v47 = vshll.u32 %v1985_v14, 16  ;;  %v2144_v14 = vshrl.u32 %v1990_v46, 16  ;;  %v1995_v46 = vld [vmem:[#allocation2 + $0x5c] sm:$0x1] }
 0x13d   : > { %v1676_v50 = vpop.permute.xlu1 %1675  ;;  %v2103_v23 = vrot.slane %v2102_v34, 4  ;;  %v2149_v13 = vrot.slane %v2147_v56, 5  ;;  %v2003_v56 = vld [vmem:[#allocation2 + $0x7c] sm:$0xf] }
 0x13e   : > { %1761 = vst.msk [vmem:[#allocation3 + $0x2c] sm:$0xf] %vm1749_vm15, %v1676_v50  ;;  %v1686_v6 = vpop.permute.xlu0 %1685  ;;  %v2041_v50 = vrot.slane %v2040_v1, 4  ;;  %v2146_v11 = vrot.slane %v2144_v14, 4 }
 0x13f   : > { %1766 = vst.msk [vmem:[#allocation3 + $0x40] sm:$0xf] %vm1749_vm15, %v1686_v6  ;;  %v2107_v6 = vrot.slane %v2105_v47, 5 }
 0x141   : > { %1878 = vrot.lane.b32.xlu2 %v1798_v4, %s4879_s25  ;;  %v2045_v4 = vrot.slane %v2043_v8, 5  ;;  %v2108_v35 = vsel %vm4958_vm3, %v2103_v23, %v2107_v6  ;;  %v5988_v23 = vrot.slane %v2201_v28, 5 }
 0x143   : > { %v1684_v29 = vpop.permute.xlu2 %1683  ;;  %1894 = vrot.lane.b32.xlu1 %v1806_v61, %s4879_s25  ;;  %v1993_v61 = vld [vmem:[#allocation2 + $0x54] sm:$0xf]  ;;  %v2046_v5 = vsel %vm4958_vm3, %v2041_v50, %v2045_v4  ;;  %v2085_v50 = vshrl.u32 %v5954_v45, 16 }
 0x144   : > { %1765 = vst.msk [vmem:[#allocation3 + $0x3c] sm:$0xf] %vm1749_vm15, %v1684_v29  ;;  %1904 = vrot.lane.b32.xlu0 %v1811_v9, %s4879_s25  ;;  %v1989_v9 = vld [vmem:[#allocation2 + $0x44] sm:$0x1]  ;;  %v2168_v29 = vshrl.u32 %v1993_v61, 16  ;;  %v2171_v42 = vshll.u32 %v1993_v61, 16 }
 0x145   : > { %v1682_v55 = vpop.permute.xlu1 %1681  ;;  %v2139_v7 = vshll.u32 %v1989_v9, 16  ;;  %v2150_v9 = vor.u32 %v2149_v13, %v2146_v11 }
 0x146   : > { %1764 = vst.msk [vmem:[#allocation3 + $0x38] sm:$0xf] %vm1749_vm15, %v1682_v55  ;;  %v1692_v30 = vpop.permute.xlu0 %1691  ;;  %v2136_v55 = vor.u32 %v2135_v33, %v5956_v25  ;;  %v2170_v18 = vrot.slane %v2168_v29, 4  ;;  %v2173_v26 = vrot.slane %v2171_v42, 5 }
 0x147   : > { %1769 = vst.msk [vmem:[#allocation3 + $0x4c] sm:$0xf] %vm1749_vm15, %v1692_v30  ;;  %v1986_v30 = vld [vmem:[#allocation2 + $0x38] sm:$0x1] }
 0x148   : > { %v2137_v48 = vrot.slane %v2136_v55, 4  ;;  %v2115_v37 = vshll.u32 %v1986_v30, 16  ;;  %v2151_v30 = vrot.slane %v2150_v9, 4 }
 0x149   : > { %1884 = vrot.lane.b32.xlu2 %v1801_v3, %s4879_s25  ;;  %v5968_v3 = vrot.slane %v2081_v40, 5 }
 0x14a   : > { %v2117_v47 = vrot.slane %v2115_v37, 5 }
 0x14b   : > { %v1690_v43 = vpop.permute.xlu2 %1689  ;;  %1900 = vrot.lane.b32.xlu1 %v1809_v51, %s4879_s25  ;;  %v1978_v51 = vld [vmem:[#allocation2 + $0x18] sm:$0xf]  ;;  %v2084_v58 = vsel %vm4958_vm3, %v2079_v38, %v5968_v3  ;;  %v2087_v38 = vrot.slane %v2085_v50, 4 }
 0x14c   : > { %1768 = vst.msk [vmem:[#allocation3 + $0x48] sm:$0xf] %vm1749_vm15, %v1690_v43  ;;  %2407 = vrot.lane.b32.xlu0 %v2036_v2, %s4880_s26  ;;  %v2141_v43 = vrot.slane %v2139_v7, 5  ;;  %v2048_v44 = vshrl.u32 %v1978_v51, 16  ;;  %v2051_v63 = vshll.u32 %v1978_v51, 16 }
 0x14d   : > { %v1688_v36 = vpop.permute.xlu1 %1687 }
 0x14e   : > { %1767 = vst.msk [vmem:[#allocation3 + $0x44] sm:$0xf] %vm1749_vm15, %v1688_v36  ;;  %v1698_v62 = vpop.permute.xlu0 %1697  ;;  %v2112_v36 = vor.u32 %v2111_v59, %v2107_v6  ;;  %v2142_v53 = vsel %vm4958_vm3, %v2137_v48, %v2141_v43  ;;  %v2053_v1 = vrot.slane %v2051_v63, 5 }
 0x14f   : > { %1772 = vst.msk [vmem:[#allocation3 + $0x58] sm:$0xf] %vm1749_vm15, %v1698_v62  ;;  %v2174_v62 = vor.u32 %v2173_v26, %v2170_v18  ;;  %v2183_v18 = vrot.slane %v2181_v32, 4  ;;  %v1987_v26 = vld [vmem:[#allocation2 + $0x3c] sm:$0xf] }
 0x150   : > { %v2113_v34 = vrot.slane %v2112_v36, 4  ;;  %v2088_v36 = vor.u32 %v2087_v38, %v5968_v3  ;;  %v2120_v37 = vshrl.u32 %v1987_v26, 16  ;;  %v2123_v14 = vshll.u32 %v1987_v26, 16  ;;  %v1992_v38 = vld [vmem:[#allocation2 + $0x50] sm:$0x1] }
 0x151   : > { %1890 = vrot.lane.b32.xlu2 %v1804_v22, %s4879_s25  ;;  %v2175_v21 = vrot.slane %v2174_v62, 4  ;;  %v2187_v62 = vshll.u32 %v1995_v46, 16  ;;  %v1996_v46 = vld [vmem:[#allocation2 + $0x60] sm:$0xf] }
 0x152   : > { %v2118_v45 = vsel %vm4958_vm3, %v2113_v34, %v2117_v47  ;;  %v2122_v47 = vrot.slane %v2120_v37, 4  ;;  %v2125_v11 = vrot.slane %v2123_v14, 5  ;;  %v2192_v14 = vshrl.u32 %v1996_v46, 16 }
 0x153   : > { %v1696_v27 = vpop.permute.xlu2 %1695  ;;  %1906 = vrot.lane.b32.xlu1 %v1812_v54, %s4879_s25  ;;  %v2205_v54 = vshrl.u32 %v1997_v41, 16  ;;  %v2180_v40 = vsel %vm4958_vm3, %v2175_v21, %v5983_v17 }
 0x154   : > { %1771 = vst.msk [vmem:[#allocation3 + $0x54] sm:$0xf] %vm1749_vm15, %v1696_v27  ;;  %2413 = vrot.lane.b32.xlu0 %v2070_v60, %s4880_s26  ;;  %v2050_v60 = vrot.slane %v2048_v44, 4  ;;  %v5985_v27 = vld [vmem:[#allocation2 + $0x4c] sm:$0xf] }
 0x155   : > { %v1694_v57 = vpop.permute.xlu1 %1693  ;;  %v2207_v6 = vrot.slane %v2205_v54, 4  ;;  %v2153_v12 = vshll.u32 %v5985_v27, 16  ;;  %v2006_v44 = vld [vmem:[#allocation2 + $0x88] sm:$0xf] }
 0x156   : > { %1770 = vst.msk [vmem:[#allocation3 + $0x50] sm:$0xf] %vm1749_vm15, %v1694_v57  ;;  %v1704_v24 = vpop.permute.xlu0 %1703  ;;  %v1813_v57 = vld [vmem:[#allocation2 + $0xc4] sm:$0xf]  ;;  %v2054_v61 = vor.u32 %v2053_v1, %v2050_v60  ;;  %v2273_v54 = vshll.u32 %v2006_v44, 16  ;;  %v2277_v60 = vshrl.u32 %v2006_v44, 16 }
 0x157   : > { %1775 = vst.msk [vmem:[#allocation3 + $0x64] sm:$0xf] %vm1749_vm15, %v1704_v24  ;;  %v2002_v24 = vld [vmem:[#allocation2 + $0x78] sm:$0xf]  ;;  %v2208_v29 = vor.u32 %v2207_v6, %v5988_v23  ;;  %v6001_v59 = vrot.slane %v2153_v12, 5  ;;  %v2249_v1 = vshll.u32 %v2003_v56, 16 }
 0x158   : > { %v2243_v55 = vshll.u32 %v2002_v24, 16  ;;  %v2055_v7 = vrot.slane %v2054_v61, 4  ;;  %v6023_v6 = vrot.slane %v2273_v54, 5  ;;  %v2157_v61 = vshrl.u32 %v5985_v27, 16 }
 0x159   : > { %1896 = vrot.lane.b32.xlu2 %v1807_v52, %s4879_s25  ;;  %v1998_v52 = vld [vmem:[#allocation2 + $0x68] sm:$0x1]  ;;  %v2209_v48 = vrot.slane %v2208_v29, 4  ;;  %v2156_v28 = vsel %vm4958_vm3, %v2151_v30, %v6001_v59  ;;  %v6026_v32 = vrot.slane %v2249_v1, 5  ;;  %v2253_v29 = vshrl.u32 %v2003_v56, 16 }
 0x15a   : > { %v2211_v42 = vshll.u32 %v1998_v52, 16  ;;  %v2060_v63 = vsel %vm4958_vm3, %v2055_v7, %v5932_v39  ;;  %v2159_v26 = vrot.slane %v2157_v61, 4  ;;  %v2163_v44 = vshll.u32 %v1992_v38, 16  ;;  %v2020_v38 = vld [vmem:[#allocation2 + $0xc0] sm:$0xf] }
 0x15b   : > { %v1702_v0 = vpop.permute.xlu2 %1701  ;;  %2409 = vrot.lane.b32.xlu1 %v2046_v5, %s4880_s26  ;;  %v1983_v5 = vld [vmem:[#allocation2 + $0x2c] sm:$0x1]  ;;  %v2195_v54 = vshll.u32 %v1996_v46, 16 }
 0x15c   : > { %1774 = vst.msk [vmem:[#allocation3 + $0x60] sm:$0xf] %vm1749_vm15, %v1702_v0  ;;  %2419 = vrot.lane.b32.xlu0 %v2108_v35, %s4880_s26  ;;  %v2240_v35 = vshrl.u32 %v2002_v24, 16  ;;  %v2091_v51 = vshll.u32 %v1983_v5, 16  ;;  %v2213_v43 = vrot.slane %v2211_v42, 5 }
 0x15d   : > { %v1700_v2 = vpop.permute.xlu1 %1699  ;;  %v2011_v5 = vld [vmem:[#allocation2 + $0x9c] sm:$0xf] }
 0x15e   : > { %1773 = vst.msk [vmem:[#allocation3 + $0x5c] sm:$0xf] %vm1749_vm15, %v1700_v2  ;;  %v1710_v22 = vpop.permute.xlu0 %1709  ;;  %v1999_v2 = vld [vmem:[#allocation2 + $0x6c] sm:$0xf]  ;;  %v2242_v19 = vrot.slane %v2240_v35, 4  ;;  %v2214_v39 = vsel %vm4958_vm3, %v2209_v48, %v2213_v43  ;;  %v2093_v34 = vrot.slane %v2091_v51, 5 }
 0x15f   : > { %1778 = vst.msk [vmem:[#allocation3 + $0x70] sm:$0xf] %vm1749_vm15, %v1710_v22  ;;  %v2245_v22 = vrot.slane %v2243_v55, 5  ;;  %v2216_v49 = vshrl.u32 %v1999_v2, 16  ;;  %v2312_v30 = vshrl.u32 %v2011_v5, 16  ;;  %v2315_v51 = vshll.u32 %v2011_v5, 16 }
 0x161   : > { %1902 = vrot.lane.b32.xlu2 %v1810_v16, %s4879_s25  ;;  %v2246_v3 = vor.u32 %v2245_v22, %v2242_v19  ;;  %v2218_v50 = vrot.slane %v2216_v49, 4  ;;  %v2004_v19 = vld [vmem:[#allocation2 + $0x80] sm:$0x1]  ;;  %v2255_v22 = vrot.slane %v2253_v29, 4  ;;  %v2314_v56 = vrot.slane %v2312_v30, 4 }
 0x163   : > { %v1708_v8 = vpop.permute.xlu2 %1707  ;;  %2415 = vrot.lane.b32.xlu1 %v2084_v58, %s4880_s26  ;;  %v2184_v58 = vor.u32 %v2183_v18, %v5983_v17  ;;  %v2189_v17 = vrot.slane %v2187_v62, 5  ;;  %v2247_v24 = vrot.slane %v2246_v3, 4 }
 0x164   : > { %1777 = vst.msk [vmem:[#allocation3 + $0x6c] sm:$0xf] %vm1749_vm15, %v1708_v8  ;;  %2425 = vrot.lane.b32.xlu0 %v2142_v53, %s4880_s26  ;;  %v2219_v53 = vshll.u32 %v1999_v2, 16  ;;  %v2089_v8 = vrot.slane %v2088_v36, 4  ;;  %v647_v2 = vrot.slane %v5923_v15, 4  ;;  %v2317_v15 = vrot.slane %v2315_v51, 5 }
 0x165   : > { %v1706_v4 = vpop.permute.xlu1 %1705  ;;  %v2185_v21 = vrot.slane %v2184_v58, 4  ;;  %v2252_v7 = vsel %vm4958_vm3, %v2247_v24, %v6026_v32  ;;  %v2015_v58 = vld [vmem:[#allocation2 + $0xac] sm:$0xf] }
 0x166   : > { %1776 = vst.msk [vmem:[#allocation3 + $0x68] sm:$0xf] %vm1749_vm15, %v1706_v4  ;;  %v1716_v33 = vpop.permute.xlu0 %1715  ;;  %v2221_v4 = vrot.slane %v2219_v53, 5  ;;  %v2094_v9 = vsel %vm4958_vm3, %v2089_v8, %v2093_v34  ;;  %v2160_v53 = vor.u32 %v2159_v26, %v6001_v59  ;;  %v811_v8 = vld [vmem:[#allocation2 + $0xc8] sm:$0x1] }
 0x167   : > { %1781 = vst.msk [vmem:[#allocation3 + $0x7c] sm:$0xf] %vm1749_vm15, %v1716_v33  ;;  %v2279_v33 = vrot.slane %v2277_v60, 4  ;;  %v2190_v27 = vsel %vm4958_vm3, %v2185_v21, %v2189_v17  ;;  %v6051_v60 = vld [vmem:[#allocation2 + $0xa0] sm:$0xf]  ;;  %v812_v59 = vsel %vm5178_vm10, %v647_v2, %v811_v8 }
 0x168   : > { %v2222_v42 = vor.u32 %v2221_v4, %v2218_v50  ;;  %v2321_v21 = vshll.u32 %v6051_v60, 16  ;;  %813 = vst [vmem:[#allocation2 + $0xc8] sm:$0x1] %v812_v59  ;;  %v2161_v17 = vrot.slane %v2160_v53, 4  ;;  %v2165_v50 = vrot.slane %v2163_v44, 5 }
 0x169   : > { %1908 = vrot.lane.b32.xlu2 %v1813_v57, %s4879_s25  ;;  %v6021_v57 = vld [vmem:[#allocation2 + $0x70] sm:$0xf]  ;;  %v2280_v55 = vor.u32 %v2279_v33, %v6023_v6  ;;  %v2194_v4 = vrot.slane %v2192_v14, 4  ;;  %v2197_v33 = vrot.slane %v2195_v54, 5  ;;  %v2001_v2 = vld [vmem:[#allocation2 + $0x74] sm:$0x1] }
 0x16a   : > { %v2225_v35 = vshll.u32 %v6021_v57, 16  ;;  %v2223_v48 = vrot.slane %v2222_v42, 4  ;;  %v6071_v29 = vrot.slane %v2321_v21, 5  ;;  %v2016_v42 = vld [vmem:[#allocation2 + $0xb0] sm:$0x1] }
 0x16b   : > { %v1714_v0 = vpop.permute.xlu2 %1713  ;;  %2421 = vrot.lane.b32.xlu1 %v2118_v45, %s4880_s26  ;;  %v2126_v45 = vor.u32 %v2125_v11, %v2122_v47  ;;  %v2345_v47 = vshll.u32 %v2015_v58, 16  ;;  %v2355_v26 = vshll.u32 %v2016_v42, 16  ;;  %v2021_v8 = vld [vmem:[#allocation2 + $0xc4] sm:$0xf] }
 0x16c   : > { %1780 = vst.msk [vmem:[#allocation3 + $0x78] sm:$0xf] %vm1749_vm15, %v1714_v0  ;;  %2431 = vrot.lane.b32.xlu0 %v2180_v40, %s4880_s26  ;;  %v2007_v40 = vld [vmem:[#allocation2 + $0x8c] sm:$0x1]  ;;  %v6042_v43 = vrot.slane %v2225_v35, 5  ;;  %v2229_v35 = vshrl.u32 %v6021_v57, 16 }
 0x16d   : > { %v1712_v16 = vpop.permute.xlu1 %1711  ;;  %v2283_v0 = vshll.u32 %v2007_v40, 16  ;;  %v2127_v18 = vrot.slane %v2126_v45, 4 }
 0x16e   : > { %1779 = vst.msk [vmem:[#allocation3 + $0x74] sm:$0xf] %vm1749_vm15, %v1712_v16  ;;  %v1851_v41 = vpop.permute.xlu0 %1850  ;;  %v2228_v34 = vsel %vm4958_vm3, %v2223_v48, %v6042_v43  ;;  %v2387_v48 = vshll.u32 %v2020_v38, 16 }
 0x16f   : > { %1945 = vst.msk [vmem:[#allocation3 + $0x8] sm:$0xf] %vm1942_vm0, %v1851_v41  ;;  %v2008_v41 = vld [vmem:[#allocation2 + $0x90] sm:$0xf]  ;;  %v2285_v37 = vrot.slane %v2283_v0, 5  ;;  %v2132_v62 = vsel %vm4958_vm3, %v2127_v18, %v5956_v25  ;;  %v2349_v25 = vshrl.u32 %v2015_v58, 16 }
 0x170   : > { %v2288_v3 = vshrl.u32 %v2008_v41, 16  ;;  %v2291_v1 = vshll.u32 %v2008_v41, 16  ;;  %v2325_v18 = vshrl.u32 %v6051_v60, 16  ;;  %v2389_v53 = vrot.slane %v2387_v48, 5 }
 0x171   : > { %2411 = vrot.lane.b32.xlu2 %v2060_v63, %s4880_s26  ;;  %v2281_v63 = vrot.slane %v2280_v55, 4  ;;  %v2351_v45 = vrot.slane %v2349_v25, 4 }
 0x172   : > { %v2290_v31 = vrot.slane %v2288_v3, 4 }
 0x173   : > { %v1849_v13 = vpop.permute.xlu2 %1848  ;;  %2427 = vrot.lane.b32.xlu1 %v2156_v28, %s4880_s26  ;;  %v2259_v28 = vshll.u32 %v2004_v19, 16  ;;  %v2286_v11 = vsel %vm4958_vm3, %v2281_v63, %v2285_v37  ;;  %v2235_v37 = vshll.u32 %v2001_v2, 16 }
 0x174   : > { %1944 = vst.msk [vmem:[#allocation3 + $0x4] sm:$0xf] %vm1942_vm0, %v1849_v13  ;;  %2437 = vrot.lane.b32.xlu0 %v2214_v39, %s4880_s26  ;;  %v2256_v39 = vor.u32 %v2255_v22, %v6026_v32  ;;  %v2318_v13 = vor.u32 %v2317_v15, %v2314_v56  ;;  %v2293_v32 = vrot.slane %v2291_v1, 5  ;;  %v2231_v22 = vrot.slane %v2229_v35, 4 }
 0x175   : > { %v1847_v52 = vpop.permute.xlu1 %1846  ;;  %v2261_v24 = vrot.slane %v2259_v28, 5  ;;  %v2357_v56 = vrot.slane %v2355_v26, 5  ;;  %v2327_v15 = vrot.slane %v2325_v18, 4  ;;  %v2017_v28 = vld [vmem:[#allocation2 + $0xb4] sm:$0xf] }
 0x176   : > { %1943 = vst.msk [vmem:[#allocation3] sm:$0xf] %vm1942_vm0, %v1847_v52  ;;  %v1857_v12 = vpop.permute.xlu0 %1856  ;;  %v2257_v52 = vrot.slane %v2256_v39, 4  ;;  %v2319_v5 = vrot.slane %v2318_v13, 4  ;;  %v2294_v0 = vor.u32 %v2293_v32, %v2290_v31  ;;  %v2232_v39 = vor.u32 %v2231_v22, %v6042_v43  ;;  %v2010_v26 = vld [vmem:[#allocation2 + $0x98] sm:$0x1] }
 0x177   : > { %1948 = vst.msk [vmem:[#allocation3 + $0x14] sm:$0xf] %vm1942_vm0, %v1857_v12  ;;  %v6069_v12 = vrot.slane %v2345_v47, 5  ;;  %v2328_v47 = vor.u32 %v2327_v15, %v6071_v29  ;;  %v2360_v59 = vshrl.u32 %v2017_v28, 16  ;;  %v2393_v13 = vshll.u32 %v2021_v8, 16 }
 0x178   : > { %v2262_v51 = vsel %vm4958_vm3, %v2257_v52, %v2261_v24  ;;  %v2324_v46 = vsel %vm4958_vm3, %v2319_v5, %v6071_v29  ;;  %v2295_v63 = vrot.slane %v2294_v0, 4  ;;  %v2233_v21 = vrot.slane %v2232_v39, 4  ;;  %v6109_v29 = vld [vmem:[#allocation2 + $0xb8] sm:$0xf] }
 0x179   : > { %2417 = vrot.lane.b32.xlu2 %v2094_v9, %s4880_s26  ;;  %v6067_v9 = vld [vmem:[#allocation2 + $0x94] sm:$0xf]  ;;  %v2352_v57 = vor.u32 %v2351_v45, %v6069_v12  ;;  %v2362_v24 = vrot.slane %v2360_v59, 4  ;;  %v2395_v5 = vrot.slane %v2393_v13, 5  ;;  %v2369_v0 = vshll.u32 %v6109_v29, 16 }
 0x17a   : > { %v2297_v30 = vshll.u32 %v6067_v9, 16  ;;  %v2301_v32 = vshrl.u32 %v6067_v9, 16  ;;  %v2397_v9 = vshrl.u32 %v2021_v8, 16  ;;  %v2543_v8 = vld [vmem:[#allocation2 + $0x28] sm:$0xf] }
 0x17b   : > { %v1855_v16 = vpop.permute.xlu2 %1854  ;;  %2433 = vrot.lane.b32.xlu1 %v2190_v27, %s4880_s26  ;;  %v2166_v27 = vsel %vm4958_vm3, %v2161_v17, %v2165_v50  ;;  %v2353_v14 = vrot.slane %v2352_v57, 4  ;;  %v2237_v17 = vrot.slane %v2235_v37, 5 }
 0x17c   : > { %1947 = vst.msk [vmem:[#allocation3 + $0x10] sm:$0xf] %vm1942_vm0, %v1855_v16  ;;  %2443 = vrot.lane.b32.xlu0 %v2252_v7, %s4880_s26  ;;  %v2198_v7 = vor.u32 %v2197_v33, %v2194_v4  ;;  %v2384_v16 = vshrl.u32 %v2020_v38, 16  ;;  %v6088_v41 = vrot.slane %v2297_v30, 5  ;;  %v2399_v22 = vrot.slane %v2397_v9, 4 }
 0x17d   : > { %v1853_v36 = vpop.permute.xlu1 %1852  ;;  %v2238_v42 = vsel %vm4958_vm3, %v2233_v21, %v2237_v17 }
 0x17e   : > { %1946 = vst.msk [vmem:[#allocation3 + $0xc] sm:$0xf] %vm1942_vm0, %v1853_v36  ;;  %v1863_v49 = vpop.permute.xlu0 %1862  ;;  %v2199_v19 = vrot.slane %v2198_v7, 4  ;;  %v2005_v36 = vld [vmem:[#allocation2 + $0x84] sm:$0xf] }
 0x17f   : > { %1951 = vst.msk [vmem:[#allocation3 + $0x20] sm:$0xf] %vm1942_vm0, %v1863_v49  ;;  %v2386_v49 = vrot.slane %v2384_v16, 4  ;;  %v2264_v3 = vshrl.u32 %v2005_v36, 16  ;;  %v2267_v1 = vshll.u32 %v2005_v36, 16  ;;  %v2307_v36 = vshll.u32 %v2010_v26, 16 }
 0x180   : > { %v2204_v54 = vsel %vm4958_vm3, %v2199_v19, %v5988_v23  ;;  %v2358_v23 = vsel %vm4958_vm3, %v2353_v14, %v2357_v56  ;;  %v2014_v16 = vld [vmem:[#allocation2 + $0xa8] sm:$0xf]  ;;  %v6127_v19 = vrot.slane %v2369_v0, 5  ;;  %v2544_v26 = vld [vmem:[#allocation2 + $0x2c] sm:$0x1] }
 0x181   : > { %2423 = vrot.lane.b32.xlu2 %v2132_v62, %s4880_s26  ;;  %v2013_v62 = vld [vmem:[#allocation2 + $0xa4] sm:$0x1]  ;;  %v2390_v43 = vor.u32 %v2389_v53, %v2386_v49  ;;  %v2266_v50 = vrot.slane %v2264_v3, 4  ;;  %v2269_v4 = vrot.slane %v2267_v1, 5  ;;  %v2022_v56 = vld [vmem:[#allocation2 + $0xc8] sm:$0x1]  ;;  %v2400_v53 = vor.u32 %v2399_v22, %v2395_v5 }
 0x182   : > { %v2331_v25 = vshll.u32 %v2013_v62, 16  ;;  %v2336_v62 = vshrl.u32 %v2014_v16, 16  ;;  %v2339_v49 = vshll.u32 %v2014_v16, 16  ;;  %v2542_v1 = vld [vmem:[#allocation2 + $0x24] sm:$0xe]  ;;  %v2651_v22 = vrot.slane %v2544_v26, 5 }
 0x183   : > { %v1861_v61 = vpop.permute.xlu2 %1860  ;;  %2439 = vrot.lane.b32.xlu1 %v2228_v34, %s4880_s26  ;;  %v2300_v34 = vsel %vm4958_vm3, %v2295_v63, %v6088_v41  ;;  %v2551_v16 = vld [vmem:[#allocation2 + $0x48] sm:$0xe] }
 0x184   : > { %1950 = vst.msk [vmem:[#allocation3 + $0x1c] sm:$0xf] %vm1942_vm0, %v1861_v61  ;;  %2449 = vrot.lane.b32.xlu0 %v2286_v11, %s4880_s26  ;;  %v2363_v11 = vshll.u32 %v2017_v28, 16  ;;  %v2329_v61 = vrot.slane %v2328_v47, 4  ;;  %v2333_v52 = vrot.slane %v2331_v25, 5  ;;  %v2403_v28 = vshll.u32 %v2022_v56, 16 }
 0x185   : > { %v1859_v40 = vpop.permute.xlu1 %1858  ;;  %v2338_v3 = vrot.slane %v2336_v62, 4  ;;  %v2401_v47 = vrot.slane %v2400_v53, 4  ;;  %v6184_v56 = vld [vmem:[#allocation2 + $0x58] sm:$0xf] }
 0x186   : > { %1949 = vst.msk [vmem:[#allocation3 + $0x18] sm:$0xf] %vm1942_vm0, %v1859_v40  ;;  %v1869_v55 = vpop.permute.xlu0 %1868  ;;  %v2365_v31 = vrot.slane %v2363_v11, 5  ;;  %v2391_v40 = vrot.slane %v2390_v43, 4  ;;  %v2334_v7 = vsel %vm4958_vm3, %v2329_v61, %v2333_v52  ;;  %v2405_v25 = vrot.slane %v2403_v28, 5 }
 0x187   : > { %1954 = vst.msk [vmem:[#allocation3 + $0x2c] sm:$0xf] %vm1942_vm0, %v1869_v55  ;;  %v6114_v55 = vld [vmem:[#allocation2 + $0x10] sm:$0xf]  ;;  %v4573_v11 = vrot.slane %v2542_v1, 9  ;;  %v2373_v43 = vshrl.u32 %v6109_v29, 16 }
 0x188   : > { %v2366_v38 = vor.u32 %v2365_v31, %v2362_v24  ;;  %v2396_v30 = vsel %vm4958_vm3, %v2391_v40, %v2395_v5  ;;  %v2634_v18 = vrot.slane %v6114_v55, 5  ;;  %v2539_v61 = vld [vmem:[#allocation2 + $0x18] sm:$0xe]  ;;  %v6158_v52 = vld [vmem:[#allocation2 + $0x1c] sm:$0xf]  ;;  %v2676_v53 = vrot.slane %v6184_v56, 5 }
 0x189   : > { %2429 = vrot.lane.b32.xlu2 %v2166_v27, %s4880_s26  ;;  %v2270_v27 = vor.u32 %v2269_v4, %v2266_v50  ;;  %v6150_v50 = vld [vmem:[#allocation2 + $0x34] sm:$0xf]  ;;  %v2406_v4 = vsel %vm4958_vm3, %v2401_v47, %v2405_v25  ;;  %v2019_v5 = vld [vmem:[#allocation2 + $0xbc] sm:$0x1]  ;;  %v4572_v29 = vrot.slane %v2539_v61, 9 }
 0x18a   : > { %v2367_v48 = vrot.slane %v2366_v38, 4  ;;  %v2636_v37 = vrot.slane %v2634_v18, 4  ;;  %v2655_v24 = vrot.slane %v6150_v50, 5  ;;  %v2678_v1 = vrot.slane %v2676_v53, 4  ;;  %v2541_v25 = vld [vmem:[#allocation2 + $0x20] sm:$0x1] }
 0x18b   : > { %v1867_v44 = vpop.permute.xlu2 %1866  ;;  %2445 = vrot.lane.b32.xlu1 %v2262_v51, %s4880_s26  ;;  %v2303_v51 = vrot.slane %v2301_v32, 4  ;;  %v2271_v57 = vrot.slane %v2270_v27, 4  ;;  %v2375_v32 = vrot.slane %v2373_v43, 4  ;;  %v2561_v55 = vld [vmem:[#allocation2 + $0x70] sm:$0xf] }
 0x18c   : > { %1953 = vst.msk [vmem:[#allocation3 + $0x28] sm:$0xf] %vm1942_vm0, %v1867_v44  ;;  %2455 = vrot.lane.b32.xlu0 %v2324_v46, %s4880_s26  ;;  %v2538_v46 = vld [vmem:[#allocation2 + $0x14] sm:$0x1]  ;;  %v2657_v27 = vrot.slane %v2655_v24, 4 }
 0x18d   : > { %v1865_v58 = vpop.permute.xlu1 %1864  ;;  %v2304_v63 = vor.u32 %v2303_v51, %v6088_v41  ;;  %v2637_v14 = vrot.slane %v2538_v46, 5  ;;  %v2276_v15 = vsel %vm4958_vm3, %v2271_v57, %v6023_v6  ;;  %v2372_v41 = vsel %vm4958_vm3, %v2367_v48, %v6127_v19  ;;  %v2552_v48 = vld [vmem:[#allocation2 + $0x4c] sm:$0xf]  ;;  %v2570_v50 = vld [vmem:[#allocation2 + $0x94] sm:$0xf] }
 0x18e   : > { %1952 = vst.msk [vmem:[#allocation3 + $0x24] sm:$0xf] %vm1942_vm0, %v1865_v58  ;;  %v1875_v60 = vpop.permute.xlu0 %1874  ;;  %v2341_v6 = vrot.slane %v2339_v49, 5  ;;  %v2376_v0 = vor.u32 %v2375_v32, %v6127_v19  ;;  %v2548_v49 = vld [vmem:[#allocation2 + $0x3c] sm:$0xe] }
 0x18f   : > { %1957 = vst.msk [vmem:[#allocation3 + $0x38] sm:$0xf] %vm1942_vm0, %v1875_v60  ;;  %v2309_v60 = vrot.slane %v2307_v36, 5  ;;  %v2638_v39 = vsel %vm5621_vm13, %v2636_v37, %v2637_v14  ;;  %v2669_v36 = vrot.slane %v2552_v48, 5  ;;  %v2579_v56 = vld [vmem:[#allocation2 + $0xb8] sm:$0xf] }
 0x190   : > { %v2342_v17 = vor.u32 %v2341_v6, %v2338_v3  ;;  %v2377_v46 = vrot.slane %v2376_v0, 4 }
 0x191   : > { %2435 = vrot.lane.b32.xlu2 %v2204_v54, %s4880_s26  ;;  %v2305_v54 = vrot.slane %v2304_v63, 4  ;;  %v4576_v63 = vrot.slane %v2551_v16, 9  ;;  %v2550_v16 = vld [vmem:[#allocation2 + $0x44] sm:$0x1] }
 0x192   : > { %v2343_v31 = vrot.slane %v2342_v17, 4 }
 0x193   : > { %v1873_v33 = vpop.permute.xlu2 %1872  ;;  %2451 = vrot.lane.b32.xlu1 %v2300_v34, %s4880_s26  ;;  %v2310_v13 = vsel %vm4958_vm3, %v2305_v54, %v2309_v60  ;;  %v2670_v62 = vsel %vm5621_vm13, %v4576_v63, %v2669_v36  ;;  %v2556_v54 = vld [vmem:[#allocation2 + $0x5c] sm:$0x1]  ;;  %v2569_v63 = vld [vmem:[#allocation2 + $0x90] sm:$0xe] }
 0x194   : > { %1956 = vst.msk [vmem:[#allocation3 + $0x34] sm:$0xf] %vm1942_vm0, %v1873_v33  ;;  %2461 = vrot.lane.b32.xlu0 %v2358_v23, %s4880_s26  ;;  %v2648_v23 = vrot.slane %v2543_v8, 5  ;;  %v2348_v9 = vsel %vm4958_vm3, %v2343_v31, %v6069_v12  ;;  %v2679_v8 = vrot.slane %v2556_v54, 5 }
 0x195   : > { %v1871_v45 = vpop.permute.xlu1 %1870 }
 0x196   : > { %1955 = vst.msk [vmem:[#allocation3 + $0x30] sm:$0xf] %vm1942_vm0, %v1871_v45  ;;  %v1881_v35 = vpop.permute.xlu0 %1880  ;;  %v2649_v33 = vsel %vm5621_vm13, %v4573_v11, %v2648_v23  ;;  %v2547_v45 = vld [vmem:[#allocation2 + $0x38] sm:$0x1]  ;;  %v2650_v19 = vrot.slane %v2648_v23, 4  ;;  %v2680_v11 = vsel %vm5621_vm13, %v2678_v1, %v2679_v8 }
 0x197   : > { %1960 = vst.msk [vmem:[#allocation3 + $0x44] sm:$0xf] %vm1942_vm0, %v1881_v35  ;;  %v2553_v23 = vld [vmem:[#allocation2 + $0x50] sm:$0x1]  ;;  %v2574_v8 = vld [vmem:[#allocation2 + $0xa4] sm:$0x1] }
 0x199   : > { %2441 = vrot.lane.b32.xlu2 %v2238_v42, %s4880_s26  ;;  %v2641_v42 = vrot.slane %v6158_v52, 5  ;;  %v2690_v52 = vrot.slane %v2561_v55, 5 }
 0x19b   : > { %v1879_v2 = vpop.permute.xlu2 %1878  ;;  %2457 = vrot.lane.b32.xlu1 %v2334_v7, %s4880_s26  ;;  %v2658_v7 = vrot.slane %v2547_v45, 5  ;;  %v2642_v51 = vsel %vm5621_vm13, %v4572_v29, %v2641_v42  ;;  %v2643_v43 = vrot.slane %v2641_v42, 4  ;;  %v6218_v45 = vld [vmem:[#allocation2 + $0x7c] sm:$0xf]  ;;  %v2557_v42 = vld [vmem:[#allocation2 + $0x60] sm:$0xe] }
 0x19c   : > { %1959 = vst.msk [vmem:[#allocation3 + $0x40] sm:$0xf] %vm1942_vm0, %v1879_v2  ;;  %2467 = vrot.lane.b32.xlu0 %v2396_v30, %s4880_s26  ;;  %v2379_v30 = vshll.u32 %v2019_v5, 16  ;;  %v4578_v0 = vrot.slane %v2557_v42, 9 }
 0x19d   : > { %v1877_v44 = vpop.permute.xlu1 %1876  ;;  %v2659_v57 = vsel %vm5621_vm13, %v2657_v27, %v2658_v7  ;;  %v2697_v27 = vrot.slane %v6218_v45, 5 }
 0x19e   : > { %1958 = vst.msk [vmem:[#allocation3 + $0x3c] sm:$0xf] %vm1942_vm0, %v1877_v44  ;;  %v1887_v58 = vpop.permute.xlu0 %1886  ;;  %v2381_v2 = vrot.slane %v2379_v30, 5 }
 0x19f   : > { %1963 = vst.msk [vmem:[#allocation3 + $0x50] sm:$0xf] %vm1942_vm0, %v1887_v58  ;;  %v2652_v58 = vsel %vm5621_vm13, %v2650_v19, %v2651_v22  ;;  %v2562_v19 = vld [vmem:[#allocation2 + $0x74] sm:$0x1] }
 0x1a0   : > { %v2382_v37 = vsel %vm4958_vm3, %v2377_v46, %v2381_v2 }
 0x1a1   : > { %2447 = vrot.lane.b32.xlu2 %v2276_v15, %s4880_s26  ;;  %v2536_v15 = vld [vmem:[#allocation2 + $0xc] sm:$0xe] }
 0x1a2   : > { %v4571_v28 = vrot.slane %v2536_v15, 9  ;;  %v4582_v15 = vrot.slane %v2569_v63, 9  ;;  %v2568_v63 = vld [vmem:[#allocation2 + $0x8c] sm:$0x1] }
 0x1a3   : > { %v1885_v34 = vpop.permute.xlu2 %1884  ;;  %2463 = vrot.lane.b32.xlu1 %v2372_v41, %s4880_s26  ;;  %v6192_v41 = vld [vmem:[#allocation2 + $0x40] sm:$0xf] }
 0x1a4   : > { %1962 = vst.msk [vmem:[#allocation3 + $0x4c] sm:$0xf] %vm1942_vm0, %v1885_v34  ;;  %2746 = vrot.lane.b32.xlu0 %v2638_v39, %s4881_s27  ;;  %v4575_v39 = vrot.slane %v2548_v49, 9  ;;  %v2662_v3 = vrot.slane %v6192_v41, 5  ;;  %v2635_v34 = vsel %vm5621_vm13, %v4571_v28, %v2634_v18  ;;  %v2671_v18 = vrot.slane %v2669_v36, 4 }
 0x1a5   : > { %v1883_v59 = vpop.permute.xlu1 %1882  ;;  %v6252_v41 = vld [vmem:[#allocation2 + $0xa0] sm:$0xf]  ;;  %v2554_v28 = vld [vmem:[#allocation2 + $0x54] sm:$0xe] }
 0x1a6   : > { %1961 = vst.msk [vmem:[#allocation3 + $0x48] sm:$0xf] %vm1942_vm0, %v1883_v59  ;;  %v1893_v21 = vpop.permute.xlu0 %1892  ;;  %v2663_v59 = vsel %vm5621_vm13, %v4575_v39, %v2662_v3  ;;  %v2664_v22 = vrot.slane %v2662_v3, 4  ;;  %v2566_v39 = vld [vmem:[#allocation2 + $0x84] sm:$0xe]  ;;  %v4577_v1 = vrot.slane %v2554_v28, 9 }
 0x1a7   : > { %1966 = vst.msk [vmem:[#allocation3 + $0x5c] sm:$0xf] %vm1942_vm0, %v1893_v21  ;;  %v2560_v21 = vld [vmem:[#allocation2 + $0x6c] sm:$0xe]  ;;  %v6260_v3 = vld [vmem:[#allocation2 + $0x88] sm:$0xf] }
 0x1a8   : > { %v4579_v61 = vrot.slane %v2560_v21, 9  ;;  %v2559_v21 = vld [vmem:[#allocation2 + $0x68] sm:$0x1]  ;;  %v2572_v28 = vld [vmem:[#allocation2 + $0x9c] sm:$0xe] }
 0x1a9   : > { %2453 = vrot.lane.b32.xlu2 %v2310_v13, %s4880_s26  ;;  %v2644_v13 = vrot.slane %v2541_v25, 5  ;;  %v2704_v25 = vrot.slane %v6260_v3, 5 }
 0x1aa   : > { %v2691_v29 = vsel %vm5621_vm13, %v4579_v61, %v2690_v52  ;;  %v2578_v61 = vld [vmem:[#allocation2 + $0xb4] sm:$0xe] }
 0x1ab   : > { %v1891_v40 = vpop.permute.xlu2 %1890  ;;  %2469 = vrot.lane.b32.xlu1 %v2406_v4, %s4880_s26  ;;  %v2672_v4 = vrot.slane %v2553_v23, 5  ;;  %v2645_v31 = vsel %vm5621_vm13, %v2643_v43, %v2644_v13  ;;  %v2721_v23 = vrot.slane %v2574_v8, 5  ;;  %v2677_v43 = vsel %vm5621_vm13, %v4577_v1, %v2676_v53 }
 0x1ac   : > { %1965 = vst.msk [vmem:[#allocation3 + $0x58] sm:$0xf] %vm1942_vm0, %v1891_v40  ;;  %2752 = vrot.lane.b32.xlu0 %v2649_v33, %s4881_s27  ;;  %v2545_v40 = vld [vmem:[#allocation2 + $0x30] sm:$0xe] }
 0x1ad   : > { %v1889_v35 = vpop.permute.xlu1 %1888  ;;  %v2673_v5 = vsel %vm5621_vm13, %v2671_v18, %v2672_v4  ;;  %v4574_v7 = vrot.slane %v2545_v40, 9  ;;  %v2571_v18 = vld [vmem:[#allocation2 + $0x98] sm:$0x1]  ;;  %v4585_v40 = vrot.slane %v2578_v61, 9 }
 0x1ae   : > { %1964 = vst.msk [vmem:[#allocation3 + $0x54] sm:$0xf] %vm1942_vm0, %v1889_v35  ;;  %v1899_v38 = vpop.permute.xlu0 %1898  ;;  %v6226_v35 = vld [vmem:[#allocation2 + $0x64] sm:$0xf] }
 0x1af   : > { %1969 = vst.msk [vmem:[#allocation3 + $0x68] sm:$0xf] %vm1942_vm0, %v1899_v38  ;;  %v2683_v30 = vrot.slane %v6226_v35, 5  ;;  %v2656_v46 = vsel %vm5621_vm13, %v4574_v7, %v2655_v24  ;;  %v2692_v24 = vrot.slane %v2690_v52, 4  ;;  %v6286_v35 = vld [vmem:[#allocation2 + $0xc4] sm:$0xf] }
 0x1b0   : > { %v2563_v7 = vld [vmem:[#allocation2 + $0x78] sm:$0xe] }
 0x1b1   : > { %2459 = vrot.lane.b32.xlu2 %v2348_v9, %s4880_s26  ;;  %v2565_v9 = vld [vmem:[#allocation2 + $0x80] sm:$0x1]  ;;  %v2684_v48 = vsel %vm5621_vm13, %v4578_v0, %v2683_v30  ;;  %v2685_v4 = vrot.slane %v2683_v30, 4  ;;  %v2575_v0 = vld [vmem:[#allocation2 + $0xa8] sm:$0xe] }
 0x1b2   : > { %v2700_v26 = vrot.slane %v2565_v9, 5  ;;  %v2576_v30 = vld [vmem:[#allocation2 + $0xac] sm:$0xf] }
 0x1b3   : > { %v1897_v12 = vpop.permute.xlu2 %1896  ;;  %2748 = vrot.lane.b32.xlu1 %v2642_v51, %s4881_s27 }
 0x1b4   : > { %1968 = vst.msk [vmem:[#allocation3 + $0x64] sm:$0xf] %vm1942_vm0, %v1897_v12  ;;  %2758 = vrot.lane.b32.xlu0 %v2659_v57, %s4881_s27  ;;  %v2699_v57 = vrot.slane %v2697_v27, 4 }
 0x1b5   : > { %v1895_v44 = vpop.permute.xlu1 %1894 }
 0x1b6   : > { %1967 = vst.msk [vmem:[#allocation3 + $0x60] sm:$0xf] %vm1942_vm0, %v1895_v44  ;;  %v1905_v14 = vpop.permute.xlu0 %1904  ;;  %v2701_v12 = vsel %vm5621_vm13, %v2699_v57, %v2700_v26  ;;  %v2665_v44 = vrot.slane %v2550_v16, 5  ;;  %v4580_v57 = vrot.slane %v2563_v7, 9  ;;  %v2583_v26 = vld [vmem:[#allocation2 + $0xc8] sm:$0x1] }
 0x1b7   : > { %1972 = vst.msk [vmem:[#allocation3 + $0x74] sm:$0xf] %vm1942_vm0, %v1905_v14  ;;  %v2725_v16 = vrot.slane %v2576_v30, 5 }
 0x1b9   : > { %2465 = vrot.lane.b32.xlu2 %v2382_v37, %s4880_s26  ;;  %v2693_v37 = vrot.slane %v2562_v19, 5  ;;  %v2742_v19 = vrot.slane %v2583_v26, 5 }
 0x1bb   : > { %v1903_v60 = vpop.permute.xlu2 %1902  ;;  %2754 = vrot.lane.b32.xlu1 %v2652_v58, %s4881_s27  ;;  %v2711_v58 = vrot.slane %v2570_v50, 5  ;;  %v2694_v54 = vsel %vm5621_vm13, %v2692_v24, %v2693_v37  ;;  %v2580_v24 = vld [vmem:[#allocation2 + $0xbc] sm:$0x1]  ;;  %v2706_v37 = vrot.slane %v2704_v25, 4 }
 0x1bc   : > { %1971 = vst.msk [vmem:[#allocation3 + $0x70] sm:$0xf] %vm1942_vm0, %v1903_v60  ;;  %2764 = vrot.lane.b32.xlu0 %v2670_v62, %s4881_s27  ;;  %v2666_v62 = vsel %vm5621_vm13, %v2664_v22, %v2665_v44  ;;  %v2698_v22 = vsel %vm5621_vm13, %v4580_v57, %v2697_v27  ;;  %v2735_v27 = vrot.slane %v2580_v24, 5  ;;  %v2878_v57 = vld [vmem:[#allocation2 + $0x30] sm:$0xf] }
 0x1bd   : > { %v1901_v6 = vpop.permute.xlu1 %1900  ;;  %v2712_v60 = vsel %vm5621_vm13, %v4582_v15, %v2711_v58  ;;  %v2713_v53 = vrot.slane %v2711_v58, 4 }
 0x1be   : > { %1970 = vst.msk [vmem:[#allocation3 + $0x6c] sm:$0xf] %vm1942_vm0, %v1901_v6  ;;  %v2408_v47 = vpop.permute.xlu0 %2407  ;;  %v2718_v6 = vrot.slane %v6252_v41, 5 }
 0x1bf   : > { %2504 = vst.msk [vmem:[#allocation3] sm:$0xf] %vm2503_vm1, %v2408_v47  ;;  %v4581_v47 = vrot.slane %v2566_v39, 9  ;;  %v4583_v39 = vrot.slane %v2572_v28, 9 }
 0x1c1   : > { %2744 = vrot.lane.b32.xlu2 %v2635_v34, %s4881_s27  ;;  %v2705_v55 = vsel %vm5621_vm13, %v4581_v47, %v2704_v25  ;;  %v2719_v8 = vsel %vm5621_vm13, %v4583_v39, %v2718_v6  ;;  %v2577_v47 = vld [vmem:[#allocation2 + $0xb0] sm:$0x1]  ;;  %v2874_v25 = vld [vmem:[#allocation2 + $0x18] sm:$0xf] }
 0x1c3   : > { %v1909_v17 = vpop.permute.xlu2 %1908  ;;  %2760 = vrot.lane.b32.xlu1 %v2663_v59, %s4881_s27 }
 0x1c4   : > { %1974 = vst.msk [vmem:[#allocation3 + $0x7c] sm:$0xf] %vm1942_vm0, %v1909_v17  ;;  %2770 = vrot.lane.b32.xlu0 %v2680_v11, %s4881_s27  ;;  %v2720_v11 = vrot.slane %v2718_v6, 4 }
 0x1c5   : > { %v1907_v33 = vpop.permute.xlu1 %1906 }
 0x1c6   : > { %1973 = vst.msk [vmem:[#allocation3 + $0x78] sm:$0xf] %vm1942_vm0, %v1907_v33  ;;  %v2414_v32 = vpop.permute.xlu0 %2413  ;;  %v2722_v17 = vsel %vm5621_vm13, %v2720_v11, %v2721_v23  ;;  %v2686_v33 = vrot.slane %v2559_v21, 5  ;;  %v2727_v11 = vrot.slane %v2725_v16, 4  ;;  %v2728_v23 = vrot.slane %v2577_v47, 5 }
 0x1c7   : > { %2507 = vst.msk [vmem:[#allocation3 + $0xc] sm:$0xf] %vm2503_vm1, %v2414_v32  ;;  %v2581_v21 = vld [vmem:[#allocation2 + $0xc0] sm:$0xe]  ;;  %v3079_v47 = vld [vmem:[#allocation2 + $0x48] sm:$0xf] }
 0x1c8   : > { %v2729_v6 = vsel %vm5621_vm13, %v2727_v11, %v2728_v23 }
 0x1c9   : > { %2750 = vrot.lane.b32.xlu2 %v2645_v31, %s4881_s27  ;;  %v2714_v31 = vrot.slane %v2571_v18, 5  ;;  %v4586_v18 = vrot.slane %v2581_v21, 9 }
 0x1cb   : > { %v2412_v38 = vpop.permute.xlu2 %2411  ;;  %2766 = vrot.lane.b32.xlu1 %v2673_v5, %s4881_s27  ;;  %v2732_v5 = vrot.slane %v2579_v56, 5  ;;  %v2715_v9 = vsel %vm5621_vm13, %v2713_v53, %v2714_v31  ;;  %v2885_v53 = vld [vmem:[#allocation2 + $0x58] sm:$0xf] }
 0x1cc   : > { %2506 = vst.msk [vmem:[#allocation3 + $0x8] sm:$0xf] %vm2503_vm1, %v2412_v38  ;;  %2776 = vrot.lane.b32.xlu0 %v2691_v29, %s4881_s27  ;;  %v2687_v29 = vsel %vm5621_vm13, %v2685_v4, %v2686_v33 }
 0x1cd   : > { %v2410_v51 = vpop.permute.xlu1 %2409  ;;  %v2733_v38 = vsel %vm5621_vm13, %v4585_v40, %v2732_v5  ;;  %v2734_v45 = vrot.slane %v2732_v5, 4  ;;  %v2875_v40 = vld [vmem:[#allocation2 + $0x1c] sm:$0xf] }
 0x1ce   : > { %2505 = vst.msk [vmem:[#allocation3 + $0x4] sm:$0xf] %vm2503_vm1, %v2410_v51  ;;  %v2420_v2 = vpop.permute.xlu0 %2419  ;;  %v2739_v51 = vrot.slane %v6286_v35, 5  ;;  %v2888_v35 = vld [vmem:[#allocation2 + $0x6c] sm:$0xf] }
 0x1cf   : > { %2510 = vst.msk [vmem:[#allocation3 + $0x18] sm:$0xf] %vm2503_vm1, %v2420_v2  ;;  %v4584_v2 = vrot.slane %v2575_v0, 9 }
 0x1d0   : > { %v2740_v61 = vsel %vm5621_vm13, %v4586_v18, %v2739_v51 }
 0x1d1   : > { %2756 = vrot.lane.b32.xlu2 %v2656_v46, %s4881_s27  ;;  %v2726_v50 = vsel %vm5621_vm13, %v4584_v2, %v2725_v16  ;;  %v2886_v2 = vld [vmem:[#allocation2 + $0x60] sm:$0xf]  ;;  %v2898_v16 = vld [vmem:[#allocation2 + $0xa8] sm:$0xf] }
 0x1d3   : > { %v2418_v36 = vpop.permute.xlu2 %2417  ;;  %2772 = vrot.lane.b32.xlu1 %v2684_v48, %s4881_s27 }
 0x1d4   : > { %2509 = vst.msk [vmem:[#allocation3 + $0x14] sm:$0xf] %vm2503_vm1, %v2418_v36  ;;  %2782 = vrot.lane.b32.xlu0 %v2701_v12, %s4881_s27  ;;  %v2741_v12 = vrot.slane %v2739_v51, 4 }
 0x1d5   : > { %v2416_v14 = vpop.permute.xlu1 %2415 }
 0x1d6   : > { %2508 = vst.msk [vmem:[#allocation3 + $0x10] sm:$0xf] %vm2503_vm1, %v2416_v14  ;;  %v2426_v49 = vpop.permute.xlu0 %2425  ;;  %v2743_v36 = vsel %vm5621_vm13, %v2741_v12, %v2742_v19  ;;  %v2707_v14 = vrot.slane %v2568_v63, 5 }
 0x1d7   : > { %2513 = vst.msk [vmem:[#allocation3 + $0x24] sm:$0xf] %vm2503_vm1, %v2426_v49 }
 0x1d9   : > { %2762 = vrot.lane.b32.xlu2 %v2666_v62, %s4881_s27  ;;  %v2708_v62 = vsel %vm5621_vm13, %v2706_v37, %v2707_v14  ;;  %v2890_v37 = vld [vmem:[#allocation2 + $0x78] sm:$0xf] }
 0x1db   : > { %v2424_v34 = vpop.permute.xlu2 %2423  ;;  %2778 = vrot.lane.b32.xlu1 %v2694_v54, %s4881_s27  ;;  %v2736_v54 = vsel %vm5621_vm13, %v2734_v45, %v2735_v27  ;;  %v3652_v27 = vld [vmem:[#allocation2 + $0x78] sm:$0xe] }
 0x1dc   : > { %2512 = vst.msk [vmem:[#allocation3 + $0x20] sm:$0xf] %vm2503_vm1, %v2424_v34  ;;  %2788 = vrot.lane.b32.xlu0 %v2712_v60, %s4881_s27  ;;  %v2876_v60 = vld [vmem:[#allocation2 + $0x24] sm:$0xf]  ;;  %v4595_v39 = vrot.slane %v3652_v27, 9 }
 0x1dd   : > { %v2422_v59 = vpop.permute.xlu1 %2421 }
 0x1de   : > { %2511 = vst.msk [vmem:[#allocation3 + $0x1c] sm:$0xf] %vm2503_vm1, %v2422_v59  ;;  %v2432_v13 = vpop.permute.xlu0 %2431  ;;  %v2879_v59 = vld [vmem:[#allocation2 + $0x34] sm:$0xf] }
 0x1df   : > { %2516 = vst.msk [vmem:[#allocation3 + $0x30] sm:$0xf] %vm2503_vm1, %v2432_v13 }
 0x1e1   : > { %2768 = vrot.lane.b32.xlu2 %v2677_v43, %s4881_s27 }
 0x1e3   : > { %v2430_v52 = vpop.permute.xlu2 %2429  ;;  %2784 = vrot.lane.b32.xlu1 %v2705_v55, %s4881_s27  ;;  %v2877_v55 = vld [vmem:[#allocation2 + $0x28] sm:$0xf] }
 0x1e4   : > { %2515 = vst.msk [vmem:[#allocation3 + $0x2c] sm:$0xf] %vm2503_vm1, %v2430_v52  ;;  %2794 = vrot.lane.b32.xlu0 %v2722_v17, %s4881_s27  ;;  %v2882_v17 = vld [vmem:[#allocation2 + $0x48] sm:$0xf]  ;;  %v2880_v52 = vld [vmem:[#allocation2 + $0x3c] sm:$0xf] }
 0x1e5   : > { %v2428_v32 = vpop.permute.xlu1 %2427 }
 0x1e6   : > { %2514 = vst.msk [vmem:[#allocation3 + $0x28] sm:$0xf] %vm2503_vm1, %v2428_v32  ;;  %v2438_v42 = vpop.permute.xlu0 %2437 }
 0x1e7   : > { %2519 = vst.msk [vmem:[#allocation3 + $0x3c] sm:$0xf] %vm2503_vm1, %v2438_v42  ;;  %v2883_v42 = vld [vmem:[#allocation2 + $0x4c] sm:$0xf] }
 0x1e9   : > { %2774 = vrot.lane.b32.xlu2 %v2687_v29, %s4881_s27  ;;  %v3092_v29 = vld [vmem:[#allocation2 + $0x7c] sm:$0xf] }
 0x1ea   : > { %v3317_v7 = vshll.u32 %v3092_v29, 16 }
 0x1eb   : > { %v2436_v46 = vpop.permute.xlu2 %2435  ;;  %2790 = vrot.lane.b32.xlu1 %v2715_v9, %s4881_s27  ;;  %v3321_v9 = vshrl.u32 %v3092_v29, 16  ;;  %v3080_v29 = vld [vmem:[#allocation2 + $0x4c] sm:$0xf] }
 0x1ec   : > { %2518 = vst.msk [vmem:[#allocation3 + $0x38] sm:$0xf] %vm2503_vm1, %v2436_v46  ;;  %2800 = vrot.lane.b32.xlu0 %v2733_v38, %s4881_s27  ;;  %v6358_v30 = vrot.slane %v3317_v7, 5  ;;  %v3093_v46 = vld [vmem:[#allocation2 + $0x80] sm:$0x1] }
 0x1ed   : > { %v2434_v48 = vpop.permute.xlu1 %2433  ;;  %v3323_v51 = vrot.slane %v3321_v9, 4  ;;  %v3327_v12 = vshll.u32 %v3093_v46, 16 }
 0x1ee   : > { %2517 = vst.msk [vmem:[#allocation3 + $0x34] sm:$0xf] %vm2503_vm1, %v2434_v48  ;;  %v2444_v44 = vpop.permute.xlu0 %2443 }
 0x1ef   : > { %2522 = vst.msk [vmem:[#allocation3 + $0x48] sm:$0xf] %vm2503_vm1, %v2444_v44  ;;  %v3324_v48 = vor.u32 %v3323_v51, %v6358_v30  ;;  %v3329_v63 = vrot.slane %v3327_v12, 5  ;;  %v3221_v51 = vshll.u32 %v3080_v29, 16 }
 0x1f1   : > { %2780 = vrot.lane.b32.xlu2 %v2698_v22, %s4881_s27  ;;  %v3325_v44 = vrot.slane %v3324_v48, 4 }
 0x1f3   : > { %v2442_v15 = vpop.permute.xlu2 %2441  ;;  %2796 = vrot.lane.b32.xlu1 %v2726_v50, %s4881_s27  ;;  %v3103_v50 = vld [vmem:[#allocation2 + $0xa8] sm:$0xf]  ;;  %v3330_v45 = vsel %vm4958_vm3, %v3325_v44, %v3329_v63  ;;  %v3223_v63 = vrot.slane %v3221_v51, 5 }
 0x1f4   : > { %2521 = vst.msk [vmem:[#allocation3 + $0x44] sm:$0xf] %vm2503_vm1, %v2442_v15  ;;  %2806 = vrot.lane.b32.xlu0 %v2743_v36, %s4881_s27  ;;  %v2881_v36 = vld [vmem:[#allocation2 + $0x40] sm:$0xf]  ;;  %v3404_v14 = vshrl.u32 %v3103_v50, 16  ;;  %v3407_v15 = vshll.u32 %v3103_v50, 16 }
 0x1f5   : > { %v2440_v58 = vpop.permute.xlu1 %2439  ;;  %v6405_v50 = vld [vmem:[#allocation2 + $0x1c] sm:$0xf] }
 0x1f6   : > { %2520 = vst.msk [vmem:[#allocation3 + $0x40] sm:$0xf] %vm2503_vm1, %v2440_v58  ;;  %v2450_v49 = vpop.permute.xlu0 %2449  ;;  %v3653_v58 = vld [vmem:[#allocation2 + $0x7c] sm:$0xf]  ;;  %v3409_v28 = vrot.slane %v3407_v15, 5 }
 0x1f7   : > { %2525 = vst.msk [vmem:[#allocation3 + $0x54] sm:$0xf] %vm2503_vm1, %v2450_v49  ;;  %v3406_v49 = vrot.slane %v3404_v14, 4  ;;  %v6408_v14 = vld [vmem:[#allocation2 + $0x1c] sm:$0xf] }
 0x1f9   : > { %2786 = vrot.lane.b32.xlu2 %v2708_v62, %s4881_s27 }
 0x1fb   : > { %v2448_v3 = vpop.permute.xlu2 %2447  ;;  %2802 = vrot.lane.b32.xlu1 %v2736_v54, %s4881_s27 }
 0x1fc   : > { %2524 = vst.msk [vmem:[#allocation3 + $0x50] sm:$0xf] %vm2503_vm1, %v2448_v3  ;;  %2942 = vrot.lane.b32.xlu0 %v2876_v60, %s4882_s28  ;;  %v2884_v60 = vld [vmem:[#allocation2 + $0x54] sm:$0xf]  ;;  %v3782_v3 = vrot.slane %v3653_v58, 5  ;;  %v3125_v58 = vshll.u32 %v6405_v50, 16 }
 0x1fd   : > { %v2446_v1 = vpop.permute.xlu1 %2445 }
 0x1fe   : > { %2523 = vst.msk [vmem:[#allocation3 + $0x4c] sm:$0xf] %vm2503_vm1, %v2446_v1  ;;  %v2456_v34 = vpop.permute.xlu0 %2455  ;;  %v6375_v1 = vld [vmem:[#allocation2 + $0xac] sm:$0xf]  ;;  %v3783_v23 = vsel %vm5621_vm13, %v4595_v39, %v3782_v3 }
 0x1ff   : > { %2528 = vst.msk [vmem:[#allocation3 + $0x60] sm:$0xf] %vm2503_vm1, %v2456_v34  ;;  %v6378_v34 = vld [vmem:[#allocation2 + $0xac] sm:$0xf]  ;;  %v3413_v11 = vshll.u32 %v6375_v1, 16 }
 0x201   : > { %2792 = vrot.lane.b32.xlu2 %v2719_v8, %s4881_s27 }
 0x203   : > { %v2454_v43 = vpop.permute.xlu2 %2453  ;;  %2938 = vrot.lane.b32.xlu1 %v2874_v25, %s4882_s28  ;;  %v2899_v25 = vld [vmem:[#allocation2 + $0xac] sm:$0xf] }
 0x204   : > { %2527 = vst.msk [vmem:[#allocation3 + $0x5c] sm:$0xf] %vm2503_vm1, %v2454_v43  ;;  %2948 = vrot.lane.b32.xlu0 %v2879_v59, %s4882_s28  ;;  %v3410_v59 = vor.u32 %v3409_v28, %v3406_v49  ;;  %v3810_v43 = vrot.slane %v6378_v34, 5  ;;  %v3726_v49 = vrot.slane %v6408_v14, 5  ;;  %v2901_v34 = vld [vmem:[#allocation2 + $0xb8] sm:$0xf] }
 0x205   : > { %v2452_v41 = vpop.permute.xlu1 %2451 }
 0x206   : > { %2526 = vst.msk [vmem:[#allocation3 + $0x58] sm:$0xf] %vm2503_vm1, %v2452_v41  ;;  %v2462_v13 = vpop.permute.xlu0 %2461  ;;  %v3212_v41 = vshrl.u32 %v3079_v47, 16  ;;  %v3411_v18 = vrot.slane %v3410_v59, 4  ;;  %v3728_v59 = vrot.slane %v3726_v49, 4 }
 0x207   : > { %2531 = vst.msk [vmem:[#allocation3 + $0x6c] sm:$0xf] %vm2503_vm1, %v2462_v13  ;;  %v3666_v13 = vld [vmem:[#allocation2 + $0xb0] sm:$0x1] }
 0x209   : > { %2798 = vrot.lane.b32.xlu2 %v2729_v6, %s4881_s27  ;;  %v3215_v6 = vshll.u32 %v3079_v47, 16 }
 0x20b   : > { %v2460_v4 = vpop.permute.xlu2 %2459  ;;  %2944 = vrot.lane.b32.xlu1 %v2877_v55, %s4882_s28  ;;  %v3091_v55 = vld [vmem:[#allocation2 + $0x78] sm:$0xf] }
 0x20c   : > { %2530 = vst.msk [vmem:[#allocation3 + $0x68] sm:$0xf] %vm2503_vm1, %v2460_v4  ;;  %2954 = vrot.lane.b32.xlu0 %v2882_v17, %s4882_s28  ;;  %v2887_v17 = vld [vmem:[#allocation2 + $0x64] sm:$0xf]  ;;  %v6389_v4 = vrot.slane %v3413_v11, 5 }
 0x20d   : > { %v2458_v33 = vpop.permute.xlu1 %2457 }
 0x20e   : > { %2529 = vst.msk [vmem:[#allocation3 + $0x64] sm:$0xf] %vm2503_vm1, %v2458_v33  ;;  %v2468_v56 = vpop.permute.xlu0 %2467 }
 0x20f   : > { %2534 = vst.msk [vmem:[#allocation3 + $0x78] sm:$0xf] %vm2503_vm1, %v2468_v56  ;;  %v3813_v56 = vrot.slane %v3666_v13, 5 }
 0x211   : > { %2804 = vrot.lane.b32.xlu2 %v2740_v61, %s4881_s27  ;;  %v3812_v61 = vrot.slane %v3810_v43, 4  ;;  %s6877_s27 = scalar_lea.vmem %s6989_s4, %s4703_s20 }
 0x213   : > { %v2466_v31 = vpop.permute.xlu2 %2465  ;;  %2950 = vrot.lane.b32.xlu1 %v2880_v52, %s4882_s28  ;;  %v3214_v52 = vrot.slane %v3212_v41, 4  ;;  %v3814_v9 = vsel %vm5621_vm13, %v3812_v61, %v3813_v56 }
 0x214   : > { %2533 = vst.msk [vmem:[#allocation3 + $0x74] sm:$0xf] %vm2503_vm1, %v2466_v31  ;;  %2960 = vrot.lane.b32.xlu0 %v2885_v53, %s4882_s28  ;;  %v3217_v53 = vrot.slane %v3215_v6, 5  ;;  %v3067_v31 = vld [vmem:[#allocation2 + $0x18] sm:$0xf] }
 0x215   : > { %v2464_v32 = vpop.permute.xlu1 %2463  ;;  %v3119_v7 = vshll.u32 %v3067_v31, 16 }
 0x216   : > { %2532 = vst.msk [vmem:[#allocation3 + $0x70] sm:$0xf] %vm2503_vm1, %v2464_v32  ;;  %v2747_v5 = vpop.permute.xlu0 %2746 }
 0x217   : > { %2842 = vst.msk [vmem:[#allocation3 + $0x4] sm:$0xf] %vm2840_vm2, %v2747_v5  ;;  %v3311_v5 = vshll.u32 %v3091_v55, 16  ;;  %v3121_v12 = vrot.slane %v3119_v7, 5  ;;  %v3640_v7 = vld [vmem:[#allocation2 + $0x48] sm:$0xe] }
 0x219   : > { %2940 = vrot.lane.b32.xlu2 %v2875_v40, %s4882_s28  ;;  %v3308_v40 = vshrl.u32 %v3091_v55, 16 }
 0x21b   : > { %v2745_v38 = vpop.permute.xlu2 %2744  ;;  %2956 = vrot.lane.b32.xlu1 %v2883_v42, %s4882_s28  ;;  %v3416_v42 = vsel %vm4958_vm3, %v3411_v18, %v6389_v4 }
 0x21c   : > { %2841 = vst.msk [vmem:[#allocation3] sm:$0xf] %vm2840_vm2, %v2745_v38  ;;  %2966 = vrot.lane.b32.xlu0 %v2888_v35, %s4882_s28  ;;  %v3116_v35 = vshrl.u32 %v3067_v31, 16  ;;  %v3654_v38 = vld [vmem:[#allocation2 + $0x80] sm:$0x1]  ;;  %v3129_v31 = vshrl.u32 %v6405_v50, 16 }
 0x21d   : > { %v2470_v0 = vpop.permute.xlu1 %2469 }
 0x21e   : > { %2535 = vst.msk [vmem:[#allocation3 + $0x7c] sm:$0xf] %vm2503_vm1, %v2470_v0  ;;  %v2753_v26 = vpop.permute.xlu0 %2752  ;;  %v3218_v0 = vor.u32 %v3217_v53, %v3214_v52  ;;  %v3118_v48 = vrot.slane %v3116_v35, 4  ;;  %v2892_v35 = vld [vmem:[#allocation2 + $0x84] sm:$0xf] }
 0x21f   : > { %2845 = vst.msk [vmem:[#allocation3 + $0x10] sm:$0xf] %vm2840_vm2, %v2753_v26  ;;  %v3313_v26 = vrot.slane %v3311_v5, 5  ;;  %v3106_v5 = vld [vmem:[#allocation2 + $0xb4] sm:$0xf] }
 0x220   : > { %v3219_v44 = vrot.slane %v3218_v0, 4  ;;  %v3122_v27 = vor.u32 %v3121_v12, %v3118_v48  ;;  %v3431_v0 = vshll.u32 %v3106_v5, 16 }
 0x221   : > { %2946 = vrot.lane.b32.xlu2 %v2878_v57, %s4882_s28  ;;  %v3310_v57 = vrot.slane %v3308_v40, 4 }
 0x223   : > { %v2751_v19 = vpop.permute.xlu2 %2750  ;;  %2962 = vrot.lane.b32.xlu1 %v2886_v2, %s4882_s28  ;;  %v3784_v2 = vrot.slane %v3782_v3, 4  ;;  %v3105_v3 = vld [vmem:[#allocation2 + $0xb0] sm:$0x1] }
 0x224   : > { %2844 = vst.msk [vmem:[#allocation3 + $0xc] sm:$0xf] %vm2840_vm2, %v2751_v19  ;;  %2986 = vrot.lane.b32.xlu0 %v2898_v16, %s4882_s28  ;;  %v3785_v16 = vrot.slane %v3654_v38, 5  ;;  %v3417_v19 = vshrl.u32 %v6375_v1, 16  ;;  %v3123_v1 = vrot.slane %v3122_v27, 4  ;;  %v3428_v38 = vshrl.u32 %v3106_v5, 16 }
 0x225   : > { %v2749_v22 = vpop.permute.xlu1 %2748  ;;  %v3108_v5 = vld [vmem:[#allocation2 + $0xbc] sm:$0x1] }
 0x226   : > { %2843 = vst.msk [vmem:[#allocation3 + $0x8] sm:$0xf] %vm2840_vm2, %v2749_v22  ;;  %v2759_v24 = vpop.permute.xlu0 %2758  ;;  %v3786_v15 = vsel %vm5621_vm13, %v3784_v2, %v3785_v16  ;;  %v4591_v2 = vrot.slane %v3640_v7, 9  ;;  %v3430_v12 = vrot.slane %v3428_v38, 4  ;;  %v3071_v38 = vld [vmem:[#allocation2 + $0x28] sm:$0xf] }
 0x227   : > { %2848 = vst.msk [vmem:[#allocation3 + $0x1c] sm:$0xf] %vm2840_vm2, %v2759_v24 }
 0x229   : > { %2952 = vrot.lane.b32.xlu2 %v2881_v36, %s4882_s28  ;;  %v2891_v36 = vld [vmem:[#allocation2 + $0x7c] sm:$0xf] }
 0x22b   : > { %v2757_v62 = vpop.permute.xlu2 %2756  ;;  %2970 = vrot.lane.b32.xlu1 %v2890_v37, %s4882_s28  ;;  %v3314_v37 = vor.u32 %v3313_v26, %v3310_v57  ;;  %v3131_v57 = vrot.slane %v3129_v31, 4 }
 0x22c   : > { %2847 = vst.msk [vmem:[#allocation3 + $0x18] sm:$0xf] %vm2840_vm2, %v2757_v62  ;;  %3533 = vrot.lane.b32.xlu0 %v3330_v45, %s4883_s29  ;;  %v3225_v45 = vshrl.u32 %v3080_v29, 16  ;;  %v3224_v62 = vsel %vm4958_vm3, %v3219_v44, %v3223_v63  ;;  %v3664_v29 = vld [vmem:[#allocation2 + $0xa8] sm:$0xe] }
 0x22d   : > { %v2755_v54 = vpop.permute.xlu1 %2754  ;;  %v3315_v28 = vrot.slane %v3314_v37, 4  ;;  %v4599_v51 = vrot.slane %v3664_v29, 9 }
 0x22e   : > { %2846 = vst.msk [vmem:[#allocation3 + $0x14] sm:$0xf] %vm2840_vm2, %v2755_v54  ;;  %v2765_v8 = vpop.permute.xlu0 %2764  ;;  %v3419_v54 = vrot.slane %v3417_v19, 4  ;;  %v3227_v47 = vrot.slane %v3225_v45, 4  ;;  %v3433_v19 = vrot.slane %v3431_v0, 5 }
 0x22f   : > { %2851 = vst.msk [vmem:[#allocation3 + $0x28] sm:$0xf] %vm2840_vm2, %v2765_v8  ;;  %v6421_v8 = vrot.slane %v3125_v58, 5  ;;  %v3320_v41 = vsel %vm4958_vm3, %v3315_v28, %v6358_v30  ;;  %v3811_v44 = vsel %vm5621_vm13, %v4599_v51, %v3810_v43  ;;  %v3083_v0 = vld [vmem:[#allocation2 + $0x58] sm:$0xf] }
 0x230   : > { %v3420_v13 = vor.u32 %v3419_v54, %v6389_v4  ;;  %v3434_v27 = vor.u32 %v3433_v19, %v3430_v12  ;;  %v6469_v54 = vld [vmem:[#allocation2 + $0x88] sm:$0xf]  ;;  %v3642_v51 = vld [vmem:[#allocation2 + $0x50] sm:$0x1]  ;;  %v3249_v12 = vshrl.u32 %v3083_v0, 16 }
 0x231   : > { %2958 = vrot.lane.b32.xlu2 %v2884_v60, %s4882_s28  ;;  %v3630_v60 = vld [vmem:[#allocation2 + $0x20] sm:$0x1]  ;;  %v3128_v55 = vsel %vm4958_vm3, %v3123_v1, %v6421_v8  ;;  %v3132_v50 = vor.u32 %v3131_v57, %v6421_v8 }
 0x232   : > { %v3729_v11 = vrot.slane %v3630_v60, 5  ;;  %v3421_v61 = vrot.slane %v3420_v13, 4  ;;  %v3435_v1 = vrot.slane %v3434_v27, 4  ;;  %v3084_v27 = vld [vmem:[#allocation2 + $0x5c] sm:$0x1] }
 0x233   : > { %v2763_v21 = vpop.permute.xlu2 %2762  ;;  %2988 = vrot.lane.b32.xlu1 %v2899_v25, %s4882_s28  ;;  %v3133_v43 = vrot.slane %v3132_v50, 4 }
 0x234   : > { %2850 = vst.msk [vmem:[#allocation3 + $0x24] sm:$0xf] %vm2840_vm2, %v2763_v21  ;;  %3868 = vrot.lane.b32.xlu0 %v3783_v23, %s4884_s30  ;;  %v3081_v23 = vld [vmem:[#allocation2 + $0x50] sm:$0x1]  ;;  %v3423_v21 = vshll.u32 %v3105_v3, 16 }
 0x235   : > { %v2761_v33 = vpop.permute.xlu1 %2760  ;;  %v3231_v18 = vshll.u32 %v3081_v23, 16  ;;  %v3628_v23 = vld [vmem:[#allocation2 + $0x18] sm:$0xe] }
 0x236   : > { %2849 = vst.msk [vmem:[#allocation3 + $0x20] sm:$0xf] %vm2840_vm2, %v2761_v33  ;;  %v2771_v32 = vpop.permute.xlu0 %2770  ;;  %v3730_v33 = vsel %vm5621_vm13, %v3728_v59, %v3729_v11  ;;  %v3425_v56 = vrot.slane %v3423_v21, 5  ;;  %v3070_v11 = vld [vmem:[#allocation2 + $0x24] sm:$0xf] }
 0x237   : > { %2854 = vst.msk [vmem:[#allocation3 + $0x34] sm:$0xf] %vm2840_vm2, %v2771_v32  ;;  %v3233_v52 = vrot.slane %v3231_v18, 5  ;;  %v3657_v18 = vld [vmem:[#allocation2 + $0x8c] sm:$0x1] }
 0x238   : > { %v3426_v32 = vsel %vm4958_vm3, %v3421_v61, %v3425_v56  ;;  %v3143_v61 = vshll.u32 %v3070_v11, 16  ;;  %v4587_v56 = vrot.slane %v3628_v23, 9  ;;  %v3792_v31 = vrot.slane %v3657_v18, 5 }
 0x239   : > { %2964 = vrot.lane.b32.xlu2 %v2887_v17, %s4882_s28  ;;  %v3228_v17 = vor.u32 %v3227_v47, %v3223_v63  ;;  %v6471_v47 = vld [vmem:[#allocation2 + $0x88] sm:$0xf] }
 0x23b   : > { %v2769_v46 = vpop.permute.xlu2 %2768  ;;  %3547 = vrot.lane.b32.xlu1 %v3416_v42, %s4883_s29  ;;  %v3229_v4 = vrot.slane %v3228_v17, 4 }
 0x23c   : > { %2853 = vst.msk [vmem:[#allocation3 + $0x30] sm:$0xf] %vm2840_vm2, %v2769_v46  ;;  %3886 = vrot.lane.b32.xlu0 %v3814_v9, %s4884_s30  ;;  %v6448_v9 = vld [vmem:[#allocation2 + $0x4c] sm:$0xf]  ;;  %v3069_v46 = vld [vmem:[#allocation2 + $0x20] sm:$0x1] }
 0x23d   : > { %v2767_v22 = vpop.permute.xlu1 %2766  ;;  %v3234_v42 = vsel %vm4958_vm3, %v3229_v4, %v3233_v52  ;;  %v3754_v16 = vrot.slane %v6448_v9, 5  ;;  %v3345_v9 = vshrl.u32 %v6469_v54, 16 }
 0x23e   : > { %2852 = vst.msk [vmem:[#allocation3 + $0x2c] sm:$0xf] %vm2840_vm2, %v2767_v22  ;;  %v2777_v24 = vpop.permute.xlu0 %2776  ;;  %v3094_v22 = vld [vmem:[#allocation2 + $0x84] sm:$0xf] }
 0x23f   : > { %2857 = vst.msk [vmem:[#allocation3 + $0x40] sm:$0xf] %vm2840_vm2, %v2777_v24  ;;  %v3107_v24 = vld [vmem:[#allocation2 + $0xb8] sm:$0xf]  ;;  %v3755_v37 = vsel %vm5621_vm13, %v4591_v2, %v3754_v16  ;;  %v3335_v45 = vshll.u32 %v3094_v22, 16  ;;  %v3447_v2 = vshll.u32 %v3108_v5, 16 }
 0x240   : > { %v3437_v58 = vshll.u32 %v3107_v24, 16  ;;  %v3441_v13 = vshrl.u32 %v3107_v24, 16  ;;  %v3756_v19 = vrot.slane %v3754_v16, 4 }
 0x241   : > { %2972 = vrot.lane.b32.xlu2 %v2891_v36, %s4882_s28  ;;  %v3135_v36 = vshll.u32 %v3069_v46, 16  ;;  %v3449_v50 = vrot.slane %v3447_v2, 5  ;;  %v3631_v2 = vld [vmem:[#allocation2 + $0x24] sm:$0xe] }
 0x242   : > { %v3439_v8 = vrot.slane %v3437_v58, 5 }
 0x243   : > { %v2775_v39 = vpop.permute.xlu2 %2774  ;;  %3870 = vrot.lane.b32.xlu1 %v3786_v15, %s4884_s30  ;;  %v3332_v15 = vshrl.u32 %v3094_v22, 16  ;;  %v3757_v22 = vrot.slane %v3642_v51, 5  ;;  %v3097_v51 = vld [vmem:[#allocation2 + $0x90] sm:$0xf] }
 0x244   : > { %2856 = vst.msk [vmem:[#allocation3 + $0x3c] sm:$0xf] %vm2840_vm2, %v2775_v39  ;;  %3515 = vrot.lane.b32.xlu0 %v3224_v62, %s4883_s29  ;;  %v3137_v62 = vrot.slane %v3135_v36, 5  ;;  %v3337_v39 = vrot.slane %v3335_v45, 5  ;;  %v3440_v17 = vsel %vm4958_vm3, %v3435_v1, %v3439_v8  ;;  %v3251_v45 = vrot.slane %v3249_v12, 4 }
 0x245   : > { %v2773_v25 = vpop.permute.xlu1 %2772  ;;  %v3334_v60 = vrot.slane %v3332_v15, 4  ;;  %v3758_v16 = vsel %vm5621_vm13, %v3756_v19, %v3757_v22  ;;  %v3082_v22 = vld [vmem:[#allocation2 + $0x54] sm:$0xf] }
 0x246   : > { %2855 = vst.msk [vmem:[#allocation3 + $0x38] sm:$0xf] %vm2840_vm2, %v2773_v25  ;;  %v2783_v6 = vpop.permute.xlu0 %2782  ;;  %v3138_v25 = vsel %vm4958_vm3, %v3133_v43, %v3137_v62  ;;  %v3153_v43 = vshrl.u32 %v3071_v38, 16 }
 0x247   : > { %2860 = vst.msk [vmem:[#allocation3 + $0x4c] sm:$0xf] %vm2840_vm2, %v2783_v6  ;;  %v2893_v6 = vld [vmem:[#allocation2 + $0x88] sm:$0xf]  ;;  %v3338_v21 = vor.u32 %v3337_v39, %v3334_v60  ;;  %v3255_v39 = vshll.u32 %v3084_v27, 16  ;;  %v3236_v27 = vshrl.u32 %v3082_v22, 16 }
 0x249   : > { %3531 = vrot.lane.b32.xlu2 %v3320_v41, %s4883_s29  ;;  %v3341_v41 = vshll.u32 %v6469_v54, 16  ;;  %v3339_v52 = vrot.slane %v3338_v21, 4  ;;  %v6518_v54 = vld [vmem:[#allocation2 + $0xb8] sm:$0xf]  ;;  %v2900_v21 = vld [vmem:[#allocation2 + $0xb4] sm:$0xf] }
 0x24b   : > { %v2781_v30 = vpop.permute.xlu2 %2780  ;;  %3499 = vrot.lane.b32.xlu1 %v3128_v55, %s4883_s29  ;;  %v3789_v55 = vrot.slane %v6471_v47, 5  ;;  %v6483_v4 = vrot.slane %v3341_v41, 5  ;;  %v3645_v47 = vld [vmem:[#allocation2 + $0x5c] sm:$0x1] }
 0x24c   : > { %2859 = vst.msk [vmem:[#allocation3 + $0x48] sm:$0xf] %vm2840_vm2, %v2781_v30  ;;  %3838 = vrot.lane.b32.xlu0 %v3730_v33, %s4884_s30  ;;  %v3140_v33 = vshrl.u32 %v3070_v11, 16  ;;  %v3155_v11 = vrot.slane %v3153_v43, 4  ;;  %v3110_v43 = vld [vmem:[#allocation2 + $0xc4] sm:$0xf] }
 0x24d   : > { %v2779_v53 = vpop.permute.xlu1 %2778  ;;  %v3344_v57 = vsel %vm4958_vm3, %v3339_v52, %v6483_v4 }
 0x24e   : > { %2858 = vst.msk [vmem:[#allocation3 + $0x44] sm:$0xf] %vm2840_vm2, %v2779_v53  ;;  %v2789_v40 = vpop.permute.xlu0 %2788  ;;  %v3791_v53 = vrot.slane %v3789_v55, 4  ;;  %v3142_v29 = vrot.slane %v3140_v33, 4 }
 0x24f   : > { %2863 = vst.msk [vmem:[#allocation3 + $0x58] sm:$0xf] %vm2840_vm2, %v2789_v40 }
 0x251   : > { %3549 = vrot.lane.b32.xlu2 %v3426_v32, %s4883_s29  ;;  %v3443_v32 = vrot.slane %v3441_v13, 4  ;;  %v3072_v13 = vld [vmem:[#allocation2 + $0x2c] sm:$0x1] }
 0x253   : > { %v2787_v26 = vpop.permute.xlu2 %2786  ;;  %3517 = vrot.lane.b32.xlu1 %v3234_v42, %s4883_s29  ;;  %v3145_v42 = vrot.slane %v3143_v61, 5  ;;  %v3444_v46 = vor.u32 %v3443_v32, %v3439_v8  ;;  %v3096_v8 = vld [vmem:[#allocation2 + $0x8c] sm:$0x1]  ;;  %v3643_v32 = vld [vmem:[#allocation2 + $0x54] sm:$0xe] }
 0x254   : > { %2862 = vst.msk [vmem:[#allocation3 + $0x54] sm:$0xf] %vm2840_vm2, %v2787_v26  ;;  %2974 = vrot.lane.b32.xlu0 %v2892_v35, %s4882_s28  ;;  %v3727_v35 = vsel %vm5621_vm13, %v4587_v56, %v3726_v49  ;;  %v3793_v26 = vsel %vm5621_vm13, %v3791_v53, %v3792_v31  ;;  %v3245_v49 = vshll.u32 %v3083_v0, 16  ;;  %v3351_v33 = vshll.u32 %v3096_v8, 16 }
 0x255   : > { %v2785_v48 = vpop.permute.xlu1 %2784  ;;  %v3146_v14 = vor.u32 %v3145_v42, %v3142_v29  ;;  %v3465_v8 = vshrl.u32 %v3110_v43, 16 }
 0x256   : > { %2861 = vst.msk [vmem:[#allocation3 + $0x50] sm:$0xf] %vm2840_vm2, %v2785_v48  ;;  %v2795_v63 = vpop.permute.xlu0 %2794  ;;  %v3149_v48 = vshll.u32 %v3071_v38, 16  ;;  %v6506_v15 = vrot.slane %v3245_v49, 5  ;;  %v3353_v31 = vrot.slane %v3351_v33, 5  ;;  %v3359_v49 = vshll.u32 %v3097_v51, 16 }
 0x257   : > { %2866 = vst.msk [vmem:[#allocation3 + $0x64] sm:$0xf] %vm2840_vm2, %v2795_v63  ;;  %v3445_v63 = vrot.slane %v3444_v46, 4  ;;  %v3147_v24 = vrot.slane %v3146_v14, 4  ;;  %v6550_v14 = vld [vmem:[#allocation2 + $0x28] sm:$0xf] }
 0x258   : > { %v3252_v60 = vor.u32 %v3251_v45, %v6506_v15  ;;  %v3361_v45 = vrot.slane %v3359_v49, 5  ;;  %v3074_v49 = vld [vmem:[#allocation2 + $0x34] sm:$0xf] }
 0x259   : > { %3884 = vrot.lane.b32.xlu2 %v3811_v44, %s4884_s30  ;;  %v3450_v58 = vsel %vm4958_vm3, %v3445_v63, %v3449_v50  ;;  %v3733_v63 = vrot.slane %v6550_v14, 5  ;;  %v4005_v50 = vld [vmem:[%s6986_s1 + $0x20] sm:$0xf] }
 0x25a   : > { %v3253_v41 = vrot.slane %v3252_v60, 4 }
 0x25b   : > { %v2793_v28 = vpop.permute.xlu2 %2792  ;;  %3852 = vrot.lane.b32.xlu1 %v3755_v37, %s4884_s30  ;;  %v3151_v37 = vrot.slane %v3149_v48, 5  ;;  %v3356_v48 = vshrl.u32 %v3097_v51, 16 }
 0x25c   : > { %2865 = vst.msk [vmem:[#allocation3 + $0x60] sm:$0xf] %vm2840_vm2, %v2793_v28  ;;  %2992 = vrot.lane.b32.xlu0 %v2901_v34, %s4882_s28  ;;  %v3667_v28 = vld [vmem:[#allocation2 + $0xb4] sm:$0xe] }
 0x25d   : > { %v2791_v3 = vpop.permute.xlu1 %2790  ;;  %v3152_v62 = vsel %vm4958_vm3, %v3147_v24, %v3151_v37  ;;  %v3156_v56 = vor.u32 %v3155_v11, %v3151_v37  ;;  %v6559_v24 = vld [vmem:[#allocation2 + $0x94] sm:$0xf]  ;;  %v3358_v37 = vrot.slane %v3356_v48, 4 }
 0x25e   : > { %2864 = vst.msk [vmem:[#allocation3 + $0x5c] sm:$0xf] %vm2840_vm2, %v2791_v3  ;;  %v2801_v59 = vpop.permute.xlu0 %2800  ;;  %v3347_v3 = vrot.slane %v3345_v9, 4  ;;  %v4107_v9 = vunpack.c.l.b16 %v4005_v50  ;;  %v4720_v50 = vld [vmem:[%s6986_s1] sm:$0xff] }
 0x25f   : > { %2869 = vst.msk [vmem:[#allocation3 + $0x70] sm:$0xf] %vm2840_vm2, %v2801_v59  ;;  %v3817_v59 = vrot.slane %v6518_v54, 5  ;;  %v3157_v5 = vrot.slane %v3156_v56, 4  ;;  %v4723_v54 = vld [vmem:[%s6986_s1 + $0x18] sm:$0xff]  ;;  %v3467_v56 = vrot.slane %v3465_v8, 4 }
 0x260   : > { %v3348_v18 = vor.u32 %v3347_v3, %v6483_v4  ;;  %v3365_v3 = vshll.u32 %v6559_v24, 16  ;;  %v6634_v8 = vld [vmem:[#allocation2 + $0x94] sm:$0xf] }
 0x261   : > { %3501 = vrot.lane.b32.xlu2 %v3138_v25, %s4883_s29  ;;  %v4600_v25 = vrot.slane %v3667_v28, 9  ;;  %v4112_v28 = vpack.c.b16 %v4107_v9, %v4107_v9  ;;  %v3819_v11 = vrot.slane %v3817_v59, 4  ;;  %v3670_v9 = vld [vmem:[#allocation2 + $0xc0] sm:$0xe] }
 0x262   : > { %v3349_v53 = vrot.slane %v3348_v18, 4  ;;  %v6581_v33 = vrot.slane %v3365_v3, 5  ;;  %v4601_v14 = vrot.slane %v3670_v9, 9  ;;  %v3075_v3 = vld [vmem:[#allocation2 + $0x38] sm:$0x1] }
 0x263   : > { %v2799_v30 = vpop.permute.xlu2 %2798  ;;  %2976 = vrot.lane.b32.xlu1 %v2893_v6, %s4882_s28  ;;  %v3257_v6 = vrot.slane %v3255_v39, 5  ;;  %v3818_v61 = vsel %vm5621_vm13, %v4600_v25, %v3817_v59  ;;  %v2895_v39 = vld [vmem:[#allocation2 + $0x94] sm:$0xf]  ;;  %v4168_v25 = vsel %vm4166_vm5, %v4112_v28, 0  ;;  %v3073_v9 = vld [vmem:[#allocation2 + $0x30] sm:$0xf] }
 0x264   : > { %2868 = vst.msk [vmem:[#allocation3 + $0x6c] sm:$0xf] %vm2840_vm2, %v2799_v30  ;;  %3551 = vrot.lane.b32.xlu0 %v3440_v17, %s4883_s29  ;;  %v3159_v30 = vshll.u32 %v3072_v13, 16  ;;  %v3354_v38 = vsel %vm4958_vm3, %v3349_v53, %v3353_v31  ;;  %4805 = vmatpush.bf16.msra.mxu3 %v4168_v25  ;;  %v3111_v31 = vld [vmem:[#allocation2 + $0xc8] sm:$0x1] }
 0x265   : > { %v2797_v40 = vpop.permute.xlu1 %2796  ;;  %v3258_v52 = vsel %vm4958_vm3, %v3253_v41, %v3257_v6  ;;  %v3238_v41 = vrot.slane %v3236_v27, 4  ;;  %4804 = vmatpush.bf16.msra.mxu2 %v4168_v25  ;;  %4173 = vmatpush.bf16.msra.mxu0 %v4168_v25 }
 0x266   : > { %2867 = vst.msk [vmem:[#allocation3 + $0x68] sm:$0xf] %vm2840_vm2, %v2797_v40  ;;  %v2807_v7 = vpop.permute.xlu0 %2806  ;;  %v6535_v40 = vld [vmem:[#allocation2 + $0x58] sm:$0xf]  ;;  %v3161_v29 = vrot.slane %v3159_v30, 5  ;;  %4803 = vmatpush.bf16.msra.mxu1 %v4168_v25 }
 0x267   : > { %2872 = vst.msk [vmem:[#allocation3 + $0x7c] sm:$0xf] %vm2840_vm2, %v2807_v7  ;;  %v3761_v7 = vrot.slane %v6535_v40, 5  ;;  %v3369_v40 = vshrl.u32 %v6559_v24, 16  ;;  %v3177_v24 = vshrl.u32 %v3074_v49, 16 }
 0x268   : > { %4808 = vmatpush.bf16.msra.mxu3 %v4723_v54 }
 0x269   : > { %3836 = vrot.lane.b32.xlu2 %v3727_v35, %s4884_s30  ;;  %v4592_v35 = vrot.slane %v3643_v32, 9  ;;  %4807 = vmatpush.bf16.msra.mxu2 %v4723_v54  ;;  %v3179_v28 = vrot.slane %v3177_v24, 4 }
 0x26a   : > { %4174 = vmatpush.bf16.msra.mxu0 %v4723_v54  ;;  %4806 = vmatpush.bf16.msra.mxu1 %v4723_v54 }
 0x26b   : > { %v2805_v44 = vpop.permute.xlu2 %2804  ;;  %3535 = vrot.lane.b32.xlu1 %v3344_v57, %s4883_s29  ;;  %v3655_v57 = vld [vmem:[#allocation2 + $0x84] sm:$0xe]  ;;  %v3762_v46 = vsel %vm5621_vm13, %v4592_v35, %v3761_v7 }
 0x26c   : > { %2871 = vst.msk [vmem:[#allocation3 + $0x78] sm:$0xf] %vm2840_vm2, %v2805_v44  ;;  %3874 = vrot.lane.b32.xlu0 %v3793_v26, %s4884_s30  ;;  %v3162_v26 = vsel %vm4958_vm3, %v3157_v5, %v3161_v29  ;;  %v4596_v12 = vrot.slane %v3655_v57, 9  ;;  %v4588_v44 = vrot.slane %v3631_v2, 9 }
 0x26d   : > { %v2803_v36 = vpop.permute.xlu1 %2802 }
 0x26e   : > { %2870 = vst.msk [vmem:[#allocation3 + $0x74] sm:$0xf] %vm2840_vm2, %v2803_v36  ;;  %v2943_v34 = vpop.permute.xlu0 %2942  ;;  %v3734_v60 = vsel %vm5621_vm13, %v4588_v44, %v3733_v63 }
 0x26f   : > { %3037 = vst.msk [vmem:[#allocation3 + $0x8] sm:$0xf] %vm3034_vm4, %v2943_v34 }
 0x271   : > { %3854 = vrot.lane.b32.xlu2 %v3758_v16, %s4884_s30  ;;  %v3790_v16 = vsel %vm5621_vm13, %v4596_v12, %v3789_v55  ;;  %v3362_v55 = vor.u32 %v3361_v45, %v3358_v37  ;;  %v3633_v12 = vld [vmem:[#allocation2 + $0x2c] sm:$0x1]  ;;  %v3735_v37 = vrot.slane %v3733_v63, 4 }
 0x272   : > { %v3736_v45 = vrot.slane %v3633_v12, 5 }
 0x273   : > { %v2941_v1 = vpop.permute.xlu2 %2940  ;;  %3553 = vrot.lane.b32.xlu1 %v3450_v58, %s4883_s29  ;;  %v3239_v58 = vshll.u32 %v3082_v22, 16  ;;  %v3363_v18 = vrot.slane %v3362_v55, 4 }
 0x274   : > { %3036 = vst.msk [vmem:[#allocation3 + $0x4] sm:$0xf] %vm3034_vm4, %v2941_v1  ;;  %3503 = vrot.lane.b32.xlu0 %v3152_v62, %s4883_s29  ;;  %v3669_v62 = vld [vmem:[#allocation2 + $0xbc] sm:$0x1]  ;;  %v3461_v1 = vshll.u32 %v3110_v43, 16 }
 0x275   : > { %v2939_v23 = vpop.permute.xlu1 %2938  ;;  %v3241_v6 = vrot.slane %v3239_v58, 5  ;;  %v3368_v5 = vsel %vm4958_vm3, %v3363_v18, %v6581_v33  ;;  %v2894_v18 = vld [vmem:[#allocation2 + $0x90] sm:$0xf] }
 0x276   : > { %3035 = vst.msk [vmem:[#allocation3] sm:$0xf] %vm3034_vm4, %v2939_v23  ;;  %v2949_v17 = vpop.permute.xlu0 %2948  ;;  %v3820_v23 = vrot.slane %v3669_v62, 5 }
 0x277   : > { %3040 = vst.msk [vmem:[#allocation3 + $0x14] sm:$0xf] %vm3034_vm4, %v2949_v17  ;;  %v3764_v17 = vrot.slane %v3645_v47, 5  ;;  %v3242_v53 = vor.u32 %v3241_v6, %v3238_v41  ;;  %v3109_v41 = vld [vmem:[#allocation2 + $0xc0] sm:$0xf] }
 0x278   : > { %v3821_v30 = vsel %vm5621_vm13, %v3819_v11, %v3820_v23  ;;  %v3183_v11 = vshll.u32 %v3075_v3, 16  ;;  %v3660_v3 = vld [vmem:[#allocation2 + $0x98] sm:$0x1] }
 0x279   : > { %2990 = vrot.lane.b32.xlu2 %v2900_v21, %s4882_s28  ;;  %v3763_v21 = vrot.slane %v3761_v7, 4  ;;  %v3243_v35 = vrot.slane %v3242_v53, 4 }
 0x27a   : > { %v3185_v54 = vrot.slane %v3183_v11, 5 }
 0x27b   : > { %v2947_v4 = vpop.permute.xlu2 %2946  ;;  %3888 = vrot.lane.b32.xlu1 %v3818_v61, %s4884_s30  ;;  %v6583_v61 = vrot.slane %v3461_v1, 5  ;;  %v3765_v32 = vsel %vm5621_vm13, %v3763_v21, %v3764_v17  ;;  %v3248_v2 = vsel %vm4958_vm3, %v3243_v35, %v6506_v15  ;;  %v3658_v1 = vld [vmem:[#allocation2 + $0x90] sm:$0xe] }
 0x27c   : > { %3039 = vst.msk [vmem:[#allocation3 + $0x10] sm:$0xf] %vm3034_vm4, %v2947_v4  ;;  %3521 = vrot.lane.b32.xlu0 %v3258_v52, %s4883_s29  ;;  %v4722_v4 = vld [vmem:[%s6986_s1 + $0x10] sm:$0xff]  ;;  %v4597_v6 = vrot.slane %v3658_v1, 9  ;;  %v3636_v1 = vld [vmem:[#allocation2 + $0x38] sm:$0x1] }
 0x27d   : > { %v2945_v42 = vpop.permute.xlu1 %2944  ;;  %v3468_v29 = vor.u32 %v3467_v56, %v6583_v61  ;;  %4811 = vmatpush.bf16.msra.mxu3 %v4722_v4  ;;  %4810 = vmatpush.bf16.msra.mxu2 %v4722_v4  ;;  %v3452_v56 = vshrl.u32 %v3109_v41, 16 }
 0x27e   : > { %3038 = vst.msk [vmem:[#allocation3 + $0xc] sm:$0xf] %vm3034_vm4, %v2945_v42  ;;  %v2955_v0 = vpop.permute.xlu0 %2954  ;;  %v3471_v42 = vshll.u32 %v3111_v31, 16  ;;  %4175 = vmatpush.bf16.msra.mxu0 %v4722_v4  ;;  %4809 = vmatpush.bf16.msra.mxu1 %v4722_v4 }
 0x27f   : > { %3043 = vst.msk [vmem:[#allocation3 + $0x20] sm:$0xf] %vm3034_vm4, %v2955_v0  ;;  %v4721_v0 = vld [vmem:[%s6986_s1 + $0x8] sm:$0xff]  ;;  %v3469_v57 = vrot.slane %v3468_v29, 4  ;;  %v3454_v4 = vrot.slane %v3452_v56, 4 }
 0x280   : > { %v3634_v29 = vld [vmem:[#allocation2 + $0x30] sm:$0xe] }
 0x281   : > { %3537 = vrot.lane.b32.xlu2 %v3354_v38, %s4883_s29  ;;  %v3371_v38 = vrot.slane %v3369_v40, 4  ;;  %4814 = vmatpush.bf16.msra.mxu3 %v4721_v0  ;;  %v3672_v40 = vld [vmem:[#allocation2 + $0xc8] sm:$0x1] }
 0x282   : > { %4813 = vmatpush.bf16.msra.mxu2 %v4721_v0  ;;  %4176 = vmatpush.bf16.msra.mxu0 %v4721_v0 }
 0x283   : > { %v2953_v19 = vpop.permute.xlu2 %2952  ;;  %3505 = vrot.lane.b32.xlu1 %v3162_v26, %s4883_s29  ;;  %v3473_v26 = vrot.slane %v3471_v42, 5  ;;  %v3372_v22 = vor.u32 %v3371_v38, %v6581_v33  ;;  %4812 = vmatpush.bf16.msra.mxu1 %v4721_v0  ;;  %v3635_v42 = vld [vmem:[#allocation2 + $0x34] sm:$0xf]  ;;  %v3827_v38 = vrot.slane %v3672_v40, 5  ;;  %v2904_v40 = vld [vmem:[#allocation2 + $0xcc] sm:$0xf] }
 0x284   : > { %3042 = vst.msk [vmem:[#allocation3 + $0x1c] sm:$0xf] %vm3034_vm4, %v2953_v19  ;;  %3856 = vrot.lane.b32.xlu0 %v3762_v46, %s4884_s30  ;;  %v3099_v46 = vld [vmem:[#allocation2 + $0x98] sm:$0x1]  ;;  %v2902_v19 = vld [vmem:[#allocation2 + $0xc0] sm:$0xf] }
 0x285   : > { %v2951_v36 = vpop.permute.xlu1 %2950  ;;  %v3375_v44 = vshll.u32 %v3099_v46, 16  ;;  %v3474_v15 = vsel %vm4958_vm3, %v3469_v57, %v3473_v26  ;;  %4817 = vmatpush.bf16.msra.mxu3 %v4720_v50  ;;  %v3373_v27 = vrot.slane %v3372_v22, 4  ;;  %v4589_v26 = vrot.slane %v3634_v29, 9 }
 0x286   : > { %3041 = vst.msk [vmem:[#allocation3 + $0x18] sm:$0xf] %vm3034_vm4, %v2951_v36  ;;  %v2961_v34 = vpop.permute.xlu0 %2960  ;;  %v3173_v36 = vshll.u32 %v3074_v49, 16  ;;  %4816 = vmatpush.bf16.msra.mxu2 %v4720_v50  ;;  %4177 = vmatpush.bf16.msra.mxu0 %v4720_v50  ;;  %v3740_v46 = vrot.slane %v3635_v42, 5 }
 0x287   : > { %3046 = vst.msk [vmem:[#allocation3 + $0x2c] sm:$0xf] %vm3034_vm4, %v2961_v34  ;;  %v3377_v58 = vrot.slane %v3375_v44, 5  ;;  %4815 = vmatpush.bf16.msra.mxu1 %v4720_v50 }
 0x288   : > { %v6623_v62 = vrot.slane %v3173_v36, 5 }
 0x289   : > { %3872 = vrot.lane.b32.xlu2 %v3790_v16, %s4884_s30  ;;  %v3671_v16 = vld [vmem:[#allocation2 + $0xc4] sm:$0xf]  ;;  %v3378_v47 = vsel %vm4958_vm3, %v3373_v27, %v3377_v58 }
 0x28a   : > { %v3824_v63 = vrot.slane %v3671_v16, 5  ;;  %v3180_v25 = vor.u32 %v3179_v28, %v6623_v62  ;;  %v3164_v28 = vshrl.u32 %v3073_v9, 16 }
 0x28b   : > { %v2959_v13 = vpop.permute.xlu2 %2958  ;;  %3840 = vrot.lane.b32.xlu1 %v3734_v60, %s4884_s30  ;;  %v3737_v60 = vsel %vm5621_vm13, %v3735_v37, %v3736_v45  ;;  %v3648_v37 = vld [vmem:[#allocation2 + $0x68] sm:$0x1] }
 0x28c   : > { %3045 = vst.msk [vmem:[#allocation3 + $0x28] sm:$0xf] %vm3034_vm4, %v2959_v13  ;;  %2980 = vrot.lane.b32.xlu0 %v2895_v39, %s4882_s28  ;;  %v3825_v55 = vsel %vm5621_vm13, %v4601_v14, %v3824_v63  ;;  %v3796_v13 = vrot.slane %v6634_v8, 5  ;;  %v3181_v17 = vrot.slane %v3180_v25, 4 }
 0x28d   : > { %v2957_v59 = vpop.permute.xlu1 %2956 }
 0x28e   : > { %3044 = vst.msk [vmem:[#allocation3 + $0x24] sm:$0xf] %vm3034_vm4, %v2957_v59  ;;  %v2967_v52 = vpop.permute.xlu0 %2966  ;;  %v3085_v59 = vld [vmem:[#allocation2 + $0x60] sm:$0xf]  ;;  %v3798_v11 = vrot.slane %v3796_v13, 4 }
 0x28f   : > { %3049 = vst.msk [vmem:[#allocation3 + $0x38] sm:$0xf] %vm3034_vm4, %v2967_v52  ;;  %v3797_v52 = vsel %vm5621_vm13, %v4597_v6, %v3796_v13  ;;  %v3260_v53 = vshrl.u32 %v3085_v59, 16  ;;  %v3263_v31 = vshll.u32 %v3085_v59, 16  ;;  %v3743_v59 = vrot.slane %v3636_v1, 5 }
 0x291   : > { %3890 = vrot.lane.b32.xlu2 %v3821_v30, %s4884_s30  ;;  %v3455_v30 = vshll.u32 %v3109_v41, 16  ;;  %v3262_v0 = vrot.slane %v3260_v53, 4  ;;  %v3166_v41 = vrot.slane %v3164_v28, 4  ;;  %v6726_v28 = vld [vmem:[#allocation2 + $0xd0] sm:$0xf] }
 0x293   : > { %v2965_v7 = vpop.permute.xlu2 %2964  ;;  %3858 = vrot.lane.b32.xlu1 %v3765_v32, %s4884_s30  ;;  %v3186_v32 = vsel %vm4958_vm3, %v3181_v17, %v3185_v54  ;;  %v3742_v54 = vrot.slane %v3740_v46, 4 }
 0x294   : > { %3048 = vst.msk [vmem:[#allocation3 + $0x34] sm:$0xf] %vm3034_vm4, %v2965_v7  ;;  %3539 = vrot.lane.b32.xlu0 %v3368_v5, %s4883_s29  ;;  %v3457_v5 = vrot.slane %v3455_v30, 5  ;;  %v3826_v7 = vrot.slane %v3824_v63, 4 }
 0x295   : > { %v2963_v51 = vpop.permute.xlu1 %2962 }
 0x296   : > { %3047 = vst.msk [vmem:[#allocation3 + $0x30] sm:$0xf] %vm3034_vm4, %v2963_v51  ;;  %v2987_v48 = vpop.permute.xlu0 %2986  ;;  %v3265_v51 = vrot.slane %v3263_v31, 5  ;;  %v3458_v12 = vor.u32 %v3457_v5, %v3454_v4  ;;  %v3828_v22 = vsel %vm5621_vm13, %v3826_v7, %v3827_v38  ;;  %v3102_v31 = vld [vmem:[#allocation2 + $0xa4] sm:$0x1] }
 0x297   : > { %3059 = vst.msk [vmem:[#allocation3 + $0x60] sm:$0xf] %vm3034_vm4, %v2987_v48  ;;  %v2903_v48 = vld [vmem:[#allocation2 + $0xc4] sm:$0xf]  ;;  %v3399_v5 = vshll.u32 %v3102_v31, 16 }
 0x298   : > { %v3266_v44 = vor.u32 %v3265_v51, %v3262_v0  ;;  %v3459_v24 = vrot.slane %v3458_v12, 4  ;;  %v3087_v7 = vld [vmem:[#allocation2 + $0x68] sm:$0x1] }
 0x299   : > { %3519 = vrot.lane.b32.xlu2 %v3248_v2, %s4883_s29  ;;  %v6653_v2 = vld [vmem:[#allocation2 + $0x64] sm:$0xf]  ;;  %v3401_v51 = vrot.slane %v3399_v5, 5 }
 0x29a   : > { %v3269_v50 = vshll.u32 %v6653_v2, 16  ;;  %v3267_v16 = vrot.slane %v3266_v44, 4  ;;  %v3464_v14 = vsel %vm4958_vm3, %v3459_v24, %v6583_v61  ;;  %v3273_v13 = vshrl.u32 %v6653_v2, 16  ;;  %v3661_v24 = vld [vmem:[#allocation2 + $0x9c] sm:$0xe] }
 0x29b   : > { %v2973_v34 = vpop.permute.xlu2 %2972  ;;  %2994 = vrot.lane.b32.xlu1 %v2902_v19, %s4882_s28  ;;  %v6656_v19 = vld [vmem:[#allocation2 + $0x64] sm:$0xf] }
 0x29c   : > { %3052 = vst.msk [vmem:[#allocation3 + $0x44] sm:$0xf] %vm3034_vm4, %v2973_v34  ;;  %3557 = vrot.lane.b32.xlu0 %v3474_v15, %s4883_s29  ;;  %v3741_v15 = vsel %vm5621_vm13, %v4589_v26, %v3740_v46  ;;  %v3768_v36 = vrot.slane %v6656_v19, 5  ;;  %v6669_v34 = vrot.slane %v3269_v50, 5  ;;  %v3275_v42 = vrot.slane %v3273_v13, 4 }
 0x29d   : > { %v2971_v43 = vpop.permute.xlu1 %2970  ;;  %v3663_v5 = vld [vmem:[#allocation2 + $0xa4] sm:$0x1] }
 0x29e   : > { %3051 = vst.msk [vmem:[#allocation3 + $0x40] sm:$0xf] %vm3034_vm4, %v2971_v43  ;;  %v3534_v39 = vpop.permute.xlu0 %3533  ;;  %v3770_v58 = vrot.slane %v3768_v36, 4  ;;  %v3771_v43 = vrot.slane %v3648_v37, 5  ;;  %v3276_v2 = vor.u32 %v3275_v42, %v6669_v34  ;;  %v6714_v37 = vld [vmem:[#allocation2 + $0xa0] sm:$0xf] }
 0x29f   : > { %3613 = vst.msk [vmem:[#allocation3 + $0x44] sm:$0xf] %vm3595_vm6, %v3534_v39  ;;  %v3101_v39 = vld [vmem:[#allocation2 + $0xa0] sm:$0xf] }
 0x2a0   : > { %v3389_v25 = vshll.u32 %v3101_v39, 16  ;;  %v3393_v61 = vshrl.u32 %v3101_v39, 16  ;;  %v3277_v50 = vrot.slane %v3276_v2, 4  ;;  %v3646_v39 = vld [vmem:[#allocation2 + $0x60] sm:$0xe] }
 0x2a1   : > { %3842 = vrot.lane.b32.xlu2 %v3737_v60, %s4884_s30  ;;  %v3167_v60 = vshll.u32 %v3073_v9, 16 }
 0x2a2   : > { %v6690_v56 = vrot.slane %v3389_v25, 5  ;;  %v3395_v8 = vrot.slane %v3393_v61, 4  ;;  %v3831_v25 = vrot.slane %v6726_v28, 5  ;;  %v3090_v28 = vld [vmem:[#allocation2 + $0x74] sm:$0x1] }
 0x2a3   : > { %v3532_v23 = vpop.permute.xlu2 %3531  ;;  %3541 = vrot.lane.b32.xlu1 %v3378_v47, %s4883_s29  ;;  %v3272_v47 = vsel %vm4958_vm3, %v3267_v16, %v6669_v34  ;;  %v3169_v6 = vrot.slane %v3167_v60, 5  ;;  %v3077_v60 = vld [vmem:[#allocation2 + $0x40] sm:$0xf] }
 0x2a4   : > { %3612 = vst.msk [vmem:[#allocation3 + $0x40] sm:$0xf] %vm3595_vm6, %v3532_v23  ;;  %3892 = vrot.lane.b32.xlu0 %v3825_v55, %s4884_s30  ;;  %v3772_v55 = vsel %vm5621_vm13, %v3770_v58, %v3771_v43  ;;  %v3799_v23 = vrot.slane %v3660_v3, 5  ;;  %v3396_v4 = vor.u32 %v3395_v8, %v6690_v56  ;;  %v3803_v58 = vrot.slane %v6714_v37, 5  ;;  %v6721_v43 = vld [vmem:[#allocation2 + $0xd0] sm:$0xf] }
 0x2a5   : > { %v2989_v21 = vpop.permute.xlu1 %2988  ;;  %v3170_v53 = vor.u32 %v3169_v6, %v3166_v41  ;;  %v2905_v3 = vld [vmem:[#allocation2 + $0xd0] sm:$0xf]  ;;  %v3197_v61 = vshll.u32 %v3077_v60, 16  ;;  %v3675_v41 = vld [vmem:[#allocation2 + $0xd4] sm:$0x1]  ;;  %v3489_v2 = vshrl.u32 %v6721_v43, 16 }
 0x2a6   : > { %3060 = vst.msk [vmem:[#allocation3 + $0x64] sm:$0xf] %vm3034_vm4, %v2989_v21  ;;  %v3869_v33 = vpop.permute.xlu0 %3868  ;;  %v3800_v30 = vsel %vm5621_vm13, %v3798_v11, %v3799_v23  ;;  %v3397_v0 = vrot.slane %v3396_v4, 4  ;;  %v3201_v11 = vshrl.u32 %v3077_v60, 16  ;;  %v4593_v23 = vrot.slane %v3646_v39, 9 }
 0x2a7   : > { %3949 = vst.msk [vmem:[#allocation3 + $0x40] sm:$0xf] %vm3932_vm7, %v3869_v33  ;;  %v3171_v29 = vrot.slane %v3170_v53, 4  ;;  %v3834_v8 = vrot.slane %v3675_v41, 5  ;;  %v6741_v13 = vrot.slane %v3197_v61, 5  ;;  %v3491_v37 = vrot.slane %v3489_v2, 4 }
 0x2a8   : > { %v3402_v44 = vsel %vm4958_vm3, %v3397_v0, %v3401_v51  ;;  %v3806_v0 = vrot.slane %v3663_v5, 5 }
 0x2a9   : > { %2978 = vrot.lane.b32.xlu2 %v2894_v18, %s4882_s28  ;;  %v3176_v26 = vsel %vm4958_vm3, %v3171_v29, %v6623_v62 }
 0x2ab   : > { %v3550_v35 = vpop.permute.xlu2 %3549  ;;  %3876 = vrot.lane.b32.xlu1 %v3797_v52, %s4884_s30 }
 0x2ac   : > { %3621 = vst.msk [vmem:[#allocation3 + $0x64] sm:$0xf] %vm3595_vm6, %v3550_v35  ;;  %3509 = vrot.lane.b32.xlu0 %v3186_v32, %s4883_s29  ;;  %v3744_v32 = vsel %vm5621_vm13, %v3742_v54, %v3743_v59 }
 0x2ad   : > { %v3548_v57 = vpop.permute.xlu1 %3547 }
 0x2ae   : > { %3620 = vst.msk [vmem:[#allocation3 + $0x60] sm:$0xf] %vm3595_vm6, %v3548_v57  ;;  %v3887_v49 = vpop.permute.xlu0 %3886  ;;  %v3112_v57 = vld [vmem:[#allocation2 + $0xcc] sm:$0xf] }
 0x2af   : > { %3958 = vst.msk [vmem:[#allocation3 + $0x64] sm:$0xf] %vm3932_vm7, %v3887_v49  ;;  %v2896_v49 = vld [vmem:[#allocation2 + $0x9c] sm:$0xf]  ;;  %v3476_v12 = vshrl.u32 %v3112_v57, 16 }
 0x2b1   : > { %2996 = vrot.lane.b32.xlu2 %v2903_v48, %s4882_s28  ;;  %v3279_v48 = vshll.u32 %v3087_v7, 16  ;;  %v3478_v9 = vrot.slane %v3476_v12, 4 }
 0x2b3   : > { %v3885_v45 = vpop.permute.xlu2 %3884  ;;  %3894 = vrot.lane.b32.xlu1 %v3828_v22, %s4884_s30  ;;  %v3479_v22 = vshll.u32 %v3112_v57, 16 }
 0x2b4   : > { %3957 = vst.msk [vmem:[#allocation3 + $0x60] sm:$0xf] %vm3932_vm7, %v3885_v45  ;;  %3844 = vrot.lane.b32.xlu0 %v3741_v15, %s4884_s30  ;;  %v3281_v15 = vrot.slane %v3279_v48, 5  ;;  %v2897_v48 = vld [vmem:[#allocation2 + $0xa0] sm:$0xf] }
 0x2b5   : > { %v3871_v27 = vpop.permute.xlu1 %3870  ;;  %v3481_v16 = vrot.slane %v3479_v22, 5 }
 0x2b6   : > { %3950 = vst.msk [vmem:[#allocation3 + $0x44] sm:$0xf] %vm3932_vm7, %v3871_v27  ;;  %v3516_v63 = vpop.permute.xlu0 %3515  ;;  %v4598_v27 = vrot.slane %v3661_v24, 9 }
 0x2b7   : > { %3604 = vst.msk [vmem:[#allocation3 + $0x20] sm:$0xf] %vm3595_vm6, %v3516_v63 }
 0x2b8   : > { %v3804_v1 = vsel %vm5621_vm13, %v4598_v27, %v3803_v58 }
 0x2b9   : > { %3555 = vrot.lane.b32.xlu2 %v3464_v14, %s4883_s29  ;;  %v3282_v14 = vsel %vm4958_vm3, %v3277_v50, %v3281_v15 }
 0x2bb   : > { %v3502_v21 = vpop.permute.xlu2 %3501  ;;  %3523 = vrot.lane.b32.xlu1 %v3272_v47, %s4883_s29  ;;  %v4716_v17 = vld [vmem:[#allocation3 + $0x60] sm:$0xff]  ;;  %v3482_v47 = vor.u32 %v3481_v16, %v3478_v9  ;;  %v3114_v16 = vld [vmem:[#allocation2 + $0xd4] sm:$0x1] }
 0x2bc   : > { %3597 = vst.msk [vmem:[#allocation3 + $0x4] sm:$0xf] %vm3595_vm6, %v3502_v21  ;;  %3862 = vrot.lane.b32.xlu0 %v3772_v55, %s4884_s30  ;;  %4695 = vmatmul.msk.bf16.vlgmr.msra.gmra.mxu3 %vm4117_vm8, %v4716_v17  ;;  %v3485_v55 = vshll.u32 %v6721_v43, 16  ;;  %v3100_v21 = vld [vmem:[#allocation2 + $0x9c] sm:$0xf] }
 0x2bd   : > { %v3500_v18 = vpop.permute.xlu1 %3499  ;;  %v4712_v33 = vld [vmem:[#allocation3 + $0x40] sm:$0xff]  ;;  %v3483_v17 = vrot.slane %v3482_v47, 4  ;;  %v3380_v31 = vshrl.u32 %v3100_v21, 16  ;;  %v3495_v47 = vshll.u32 %v3114_v16, 16 }
 0x2be   : > { %3596 = vst.msk [vmem:[#allocation3] sm:$0xf] %vm3595_vm6, %v3500_v18  ;;  %v3839_v52 = vpop.permute.xlu0 %3838  ;;  %4691 = vmatmul.msk.bf16.vlgmr.msra.gmra.mxu2 %vm4117_vm8, %v4712_v33  ;;  %v6737_v54 = vrot.slane %v3485_v55, 5  ;;  %v3833_v33 = vrot.slane %v3831_v25, 4  ;;  %v6776_v55 = vld [vmem:[#allocation2 + $0x70] sm:$0xf] }
 0x2bf   : > { %3934 = vst.msk [vmem:[#allocation3 + $0x4] sm:$0xf] %vm3932_vm7, %v3839_v52  ;;  %v3769_v52 = vsel %vm5621_vm13, %v4593_v23, %v3768_v36  ;;  %v3382_v42 = vrot.slane %v3380_v31, 4  ;;  %v3775_v41 = vrot.slane %v6776_v55, 5 }
 0x2c0   : > { %v3488_v4 = vsel %vm4958_vm3, %v3483_v17, %v6737_v54  ;;  %v3835_v19 = vsel %vm5621_vm13, %v3833_v33, %v3834_v8 }
 0x2c1   : > { %3878 = vrot.lane.b32.xlu2 %v3800_v30, %s4884_s30  ;;  %v3203_v30 = vrot.slane %v3201_v11, 4 }
 0x2c3   : > { %v3837_v35 = vpop.permute.xlu2 %3836  ;;  %3846 = vrot.lane.b32.xlu1 %v3744_v32, %s4884_s30  ;;  %v3383_v32 = vshll.u32 %v3100_v21, 16  ;;  %v3204_v36 = vor.u32 %v3203_v30, %v6741_v13  ;;  %v3651_v21 = vld [vmem:[#allocation2 + $0x74] sm:$0x1]  ;;  %v3777_v30 = vrot.slane %v3775_v41, 4 }
 0x2c4   : > { %3933 = vst.msk [vmem:[#allocation3] sm:$0xf] %vm3932_vm7, %v3837_v35  ;;  %2998 = vrot.lane.b32.xlu0 %v2904_v40, %s4882_s28  ;;  %v3078_v40 = vld [vmem:[#allocation2 + $0x44] sm:$0x1] }
 0x2c5   : > { %v3518_v38 = vpop.permute.xlu1 %3517  ;;  %v3207_v29 = vshll.u32 %v3078_v40, 16  ;;  %v3385_v35 = vrot.slane %v3383_v32, 5  ;;  %v3205_v57 = vrot.slane %v3204_v36, 4  ;;  %v3639_v36 = vld [vmem:[#allocation2 + $0x44] sm:$0x1] }
 0x2c6   : > { %3605 = vst.msk [vmem:[#allocation3 + $0x24] sm:$0xf] %vm3595_vm6, %v3518_v38  ;;  %v2975_v46 = vpop.permute.xlu0 %2974  ;;  %v3805_v38 = vrot.slane %v3803_v58, 4 }
 0x2c7   : > { %3053 = vst.msk [vmem:[#allocation3 + $0x48] sm:$0xf] %vm3034_vm4, %v2975_v46  ;;  %v3088_v46 = vld [vmem:[#allocation2 + $0x6c] sm:$0xf]  ;;  %v3386_v12 = vor.u32 %v3385_v35, %v3382_v42 }
 0x2c8   : > { %v3807_v22 = vsel %vm5621_vm13, %v3805_v38, %v3806_v0  ;;  %v3287_v50 = vshll.u32 %v3088_v46, 16  ;;  %v3750_v0 = vrot.slane %v3639_v36, 5 }
 0x2c9   : > { %3507 = vrot.lane.b32.xlu2 %v3176_v26, %s4883_s29  ;;  %v3209_v26 = vrot.slane %v3207_v29, 5  ;;  %v3387_v24 = vrot.slane %v3386_v12, 4 }
 0x2ca   : > { %v3289_v27 = vrot.slane %v3287_v50, 5 }
 0x2cb   : > { %v3855_v62 = vpop.permute.xlu2 %3854  ;;  %2982 = vrot.lane.b32.xlu1 %v2896_v49, %s4882_s28  ;;  %v4704_v45 = vld [vmem:[#allocation3] sm:$0xff]  ;;  %v3210_v15 = vsel %vm4958_vm3, %v3205_v57, %v3209_v26  ;;  %v3392_v60 = vsel %vm4958_vm3, %v3387_v24, %v6690_v56  ;;  %v3497_v56 = vrot.slane %v3495_v47, 5 }
 0x2cc   : > { %3942 = vst.msk [vmem:[#allocation3 + $0x24] sm:$0xf] %vm3932_vm7, %v3855_v62  ;;  %3545 = vrot.lane.b32.xlu0 %v3402_v44, %s4883_s29  ;;  %4683 = vmatmul.msk.bf16.vlgmr.msra.gmra.mxu0 %vm4117_vm8, %v4704_v45  ;;  %v3284_v44 = vshrl.u32 %v3088_v46, 16  ;;  %v3637_v62 = vld [vmem:[#allocation2 + $0x3c] sm:$0xe] }
 0x2cd   : > { %v3853_v34 = vpop.permute.xlu1 %3852  ;;  %v3638_v45 = vld [vmem:[#allocation2 + $0x40] sm:$0xf]  ;;  %v4590_v43 = vrot.slane %v3637_v62, 9 }
 0x2ce   : > { %3941 = vst.msk [vmem:[#allocation3 + $0x20] sm:$0xf] %vm3932_vm7, %v3853_v34  ;;  %v2993_v63 = vpop.permute.xlu0 %2992  ;;  %v3286_v34 = vrot.slane %v3284_v44, 4 }
 0x2cf   : > { %3062 = vst.msk [vmem:[#allocation3 + $0x6c] sm:$0xf] %vm3034_vm4, %v2993_v63  ;;  %v3089_v63 = vld [vmem:[#allocation2 + $0x70] sm:$0xf] }
 0x2d0   : > { %v3290_v61 = vor.u32 %v3289_v27, %v3286_v34  ;;  %v3293_v11 = vshll.u32 %v3089_v63, 16  ;;  %v3297_v26 = vshrl.u32 %v3089_v63, 16 }
 0x2d1   : > { %3525 = vrot.lane.b32.xlu2 %v3282_v14, %s4883_s29  ;;  %v3747_v14 = vrot.slane %v3638_v45, 5 }
 0x2d2   : > { %v3295_v33 = vrot.slane %v3293_v11, 5 }
 0x2d3   : > { %v2991_v6 = vpop.permute.xlu2 %2990  ;;  %3000 = vrot.lane.b32.xlu1 %v2905_v3, %s4882_s28  ;;  %v3492_v3 = vor.u32 %v3491_v37, %v6737_v54  ;;  %v3748_v23 = vsel %vm5621_vm13, %v4590_v43, %v3747_v14  ;;  %v3749_v38 = vrot.slane %v3747_v14, 4  ;;  %v3303_v37 = vshll.u32 %v3090_v28, 16 }
 0x2d4   : > { %3061 = vst.msk [vmem:[#allocation3 + $0x68] sm:$0xf] %vm3034_vm4, %v2991_v6  ;;  %3880 = vrot.lane.b32.xlu0 %v3804_v1, %s4884_s30  ;;  %v2889_v1 = vld [vmem:[#allocation2 + $0x70] sm:$0xf] }
 0x2d5   : > { %v2977_v59 = vpop.permute.xlu1 %2976  ;;  %v4708_v18 = vld [vmem:[#allocation3 + $0x20] sm:$0xff]  ;;  %v3493_v6 = vrot.slane %v3492_v3, 4  ;;  %v3305_v45 = vrot.slane %v3303_v37, 5 }
 0x2d6   : > { %3054 = vst.msk [vmem:[#allocation3 + $0x4c] sm:$0xf] %vm3034_vm4, %v2977_v59  ;;  %v3552_v53 = vpop.permute.xlu0 %3551  ;;  %4687 = vmatmul.msk.bf16.vlgmr.msra.gmra.mxu1 %vm4117_vm8, %v4708_v18  ;;  %v3076_v59 = vld [vmem:[#allocation2 + $0x3c] sm:$0xf]  ;;  %v3291_v18 = vrot.slane %v3290_v61, 4 }
 0x2d7   : > { %3622 = vst.msk [vmem:[#allocation3 + $0x68] sm:$0xf] %vm3595_vm6, %v3552_v53  ;;  %v3498_v53 = vsel %vm4958_vm3, %v3493_v6, %v3497_v56  ;;  %v3188_v32 = vshrl.u32 %v3076_v59, 16  ;;  %v3191_v40 = vshll.u32 %v3076_v59, 16 }
 0x2d9   : > { %3860 = vrot.lane.b32.xlu2 %v3769_v52, %s4884_s30  ;;  %v3778_v52 = vrot.slane %v3651_v21, 5  ;;  %v3190_v42 = vrot.slane %v3188_v32, 4  ;;  %v3193_v35 = vrot.slane %v3191_v40, 5 }
 0x2db   : > { %v3538_v7 = vpop.permute.xlu2 %3537  ;;  %3559 = vrot.lane.b32.xlu1 %v3488_v4, %s4883_s29  ;;  %v3673_v4 = vld [vmem:[#allocation2 + $0xcc] sm:$0xe]  ;;  %v3779_v5 = vsel %vm5621_vm13, %v3777_v30, %v3778_v52  ;;  %v4799_v52 = vld [vmem:[%s6857_s22 + $0x60] sm:$0xff]  }
 0x2dc   : > { %3615 = vst.msk [vmem:[#allocation3 + $0x4c] sm:$0xf] %vm3595_vm6, %v3538_v7  ;;  %3898 = vrot.lane.b32.xlu0 %v3835_v19, %s4884_s30  ;;  %v3296_v19 = vsel %vm4958_vm3, %v3291_v18, %v3295_v33  ;;  %v4602_v29 = vrot.slane %v3673_v4, 9  ;;  %v4795_v4 = vld [vmem:[%s6857_s22 + $0x40] sm:$0xff]  }
 0x2dd   : > { %v3536_v51 = vpop.permute.xlu1 %3535 }
 0x2de   : > { %3614 = vst.msk [vmem:[#allocation3 + $0x48] sm:$0xf] %vm3595_vm6, %v3536_v51  ;;  %v3875_v49 = vpop.permute.xlu0 %3874  ;;  %v3832_v46 = vsel %vm5621_vm13, %v4602_v29, %v3831_v25  ;;  %v4758_v29 = vunpack.c.l.bf16 %v4795_v4 }
 0x2df   : > { %3952 = vst.msk [vmem:[#allocation3 + $0x4c] sm:$0xf] %vm3932_vm7, %v3875_v49  ;;  %v3751_v49 = vsel %vm5621_vm13, %v3749_v38, %v3750_v0 }
 0x2e1   : > { %2984 = vrot.lane.b32.xlu2 %v2897_v48, %s4882_s28  ;;  %v3194_v48 = vor.u32 %v3193_v35, %v3190_v42 }
 0x2e3   : > { %v3873_v9 = vpop.permute.xlu2 %3872  ;;  %3882 = vrot.lane.b32.xlu1 %v3807_v22, %s4884_s30  ;;  %v3195_v12 = vrot.slane %v3194_v48, 4  ;;  %v3299_v22 = vrot.slane %v3297_v26, 4  ;;  %v4775_v48 = vunpack.c.h.bf16 %v4799_v52 }
 0x2e4   : > { %3951 = vst.msk [vmem:[#allocation3 + $0x48] sm:$0xf] %vm3932_vm7, %v3873_v9  ;;  %3513 = vrot.lane.b32.xlu0 %v3210_v15, %s4883_s29 }
 0x2e5   : > { %v3554_v58 = vpop.permute.xlu1 %3553  ;;  %v3200_v50 = vsel %vm4958_vm3, %v3195_v12, %v6741_v13  ;;  %v3300_v24 = vor.u32 %v3299_v22, %v3295_v33 }
 0x2e6   : > { %3623 = vst.msk [vmem:[#allocation3 + $0x6c] sm:$0xf] %vm3595_vm6, %v3554_v58  ;;  %v3504_v39 = vpop.permute.xlu0 %3503  ;;  %v3649_v58 = vld [vmem:[#allocation2 + $0x6c] sm:$0xe] }
 0x2e7   : > { %3598 = vst.msk [vmem:[#allocation3 + $0x8] sm:$0xf] %vm3595_vm6, %v3504_v39  ;;  %v3301_v62 = vrot.slane %v3300_v24, 4  ;;  %v4594_v43 = vrot.slane %v3649_v58, 9  ;;  %v4791_v58 = vld [vmem:[%s6857_s22 + $0x20] sm:$0xff]  }
 0x2e9   : > { %3543 = vrot.lane.b32.xlu2 %v3392_v60, %s4883_s29  ;;  %v3306_v27 = vsel %vm4958_vm3, %v3301_v62, %v3305_v45  ;;  %v3776_v10 = vsel %vm5621_vm13, %v4594_v43, %v3775_v41 }
 0x2eb   : > { %v3891_v17 = vpop.permute.xlu2 %3890  ;;  %2968 = vrot.lane.b32.xlu1 %v2889_v1, %s4882_s28  ;;  %v4713_v54 = vld [vmem:[#allocation3 + $0x48] sm:$0xff] }
 0x2ec   : > { %3960 = vst.msk [vmem:[#allocation3 + $0x6c] sm:$0xf] %vm3932_vm7, %v3891_v17  ;;  %3848 = vrot.lane.b32.xlu0 %v3748_v23, %s4884_s30  ;;  %4692 = vmatmul.msk.bf16.gmra.mxu2 %vm4117_vm8, %v4713_v54 }
 0x2ed   : > { %v3889_v8 = vpop.permute.xlu1 %3888 }
 0x2ee   : > { %3959 = vst.msk [vmem:[#allocation3 + $0x68] sm:$0xf] %vm3932_vm7, %v3889_v8  ;;  %v3522_v31 = vpop.permute.xlu0 %3521 }
 0x2ef   : > { %3607 = vst.msk [vmem:[#allocation3 + $0x2c] sm:$0xf] %vm3595_vm6, %v3522_v31  ;;  %v6865_v31 = vld [vmem:[%s6987_s2] ss:$0 sm:$0xff] }
 0x2f1   : > { %3561 = vrot.lane.b32.xlu2 %v3498_v53, %s4883_s29 }
 0x2f3   : > { %v3520_v7 = vpop.permute.xlu2 %3519  ;;  %3527 = vrot.lane.b32.xlu1 %v3296_v19, %s4883_s29  ;;  %v4774_v19 = vunpack.c.l.bf16 %v4799_v52 }
 0x2f4   : > { %3606 = vst.msk [vmem:[#allocation3 + $0x28] sm:$0xf] %vm3595_vm6, %v3520_v7  ;;  %3866 = vrot.lane.b32.xlu0 %v3779_v5, %s4884_s30 }
 0x2f5   : > { %v3506_v51 = vpop.permute.xlu1 %3505  ;;  %v4717_v57 = vld [vmem:[#allocation3 + $0x68] sm:$0xff] }
 0x2f6   : > { %3599 = vst.msk [vmem:[#allocation3 + $0xc] sm:$0xf] %vm3595_vm6, %v3506_v51  ;;  %v3857_v2 = vpop.permute.xlu0 %3856  ;;  %4696 = vmatmul.msk.bf16.gmra.mxu3 %vm4117_vm8, %v4717_v57 }
 0x2f7   : > { %3943 = vst.msk [vmem:[#allocation3 + $0x28] sm:$0xf] %vm3932_vm7, %v3857_v2 }
 0x2f9   : > { %3896 = vrot.lane.b32.xlu2 %v3832_v46, %s4884_s30  ;;  %v4725_v46 = vld [vmem:[%s6857_s22] sm:$0xff]  }
 0x2fa   : > { %v4726_v22 = vunpack.c.l.bf16 %v4725_v46  ;;  %v4727_v43 = vunpack.c.h.bf16 %v4725_v46 }
 0x2fb   : > { %v3843_v44 = vpop.permute.xlu2 %3842  ;;  %3850 = vrot.lane.b32.xlu1 %v3751_v49, %s4884_s30 }
 0x2fc   : > { %3936 = vst.msk [vmem:[#allocation3 + $0xc] sm:$0xf] %vm3932_vm7, %v3843_v44  ;;  %v4759_v44 = vunpack.c.h.bf16 %v4795_v4 }
 0x2fd   : > { %v3841_v25 = vpop.permute.xlu1 %3840 }
 0x2fe   : > { %3935 = vst.msk [vmem:[#allocation3 + $0x8] sm:$0xf] %vm3932_vm7, %v3841_v25  ;;  %v2981_v15 = vpop.permute.xlu0 %2980 }
 0x2ff   : > { %3056 = vst.msk [vmem:[#allocation3 + $0x54] sm:$0xf] %vm3034_vm4, %v2981_v15 }
 0x301   : > { %3511 = vrot.lane.b32.xlu2 %v3200_v50, %s4883_s29 }
 0x303   : > { %v2979_v9 = vpop.permute.xlu2 %2978 }
 0x304   : > { %3055 = vst.msk [vmem:[#allocation3 + $0x50] sm:$0xf] %vm3034_vm4, %v2979_v9 }
 0x305   : > { %v3859_v16 = vpop.permute.xlu1 %3858  ;;  %v4705_v34 = vld [vmem:[#allocation3 + $0x8] sm:$0xff] }
 0x306   : > { %3944 = vst.msk [vmem:[#allocation3 + $0x2c] sm:$0xf] %vm3932_vm7, %v3859_v16  ;;  %v3540_v13 = vpop.permute.xlu0 %3539  ;;  %4684 = vmatmul.msk.bf16.gmra.mxu0 %vm4117_vm8, %v4705_v34 }
 0x307   : > { %3616 = vst.msk [vmem:[#allocation3 + $0x50] sm:$0xf] %vm3595_vm6, %v3540_v13 }
 0x309   : > { %3529 = vrot.lane.b32.xlu2 %v3306_v27, %s4883_s29 }
 0x30b   : > { %v2997_v14 = vpop.permute.xlu2 %2996 }
 0x30c   : > { %3064 = vst.msk [vmem:[#allocation3 + $0x74] sm:$0xf] %vm3034_vm4, %v2997_v14 }
 0x30d   : > { %v2995_v63 = vpop.permute.xlu1 %2994  ;;  %v4709_v60 = vld [vmem:[#allocation3 + $0x28] sm:$0xff] }
 0x30e   : > { %3063 = vst.msk [vmem:[#allocation3 + $0x70] sm:$0xf] %vm3034_vm4, %v2995_v63  ;;  %v3558_v39 = vpop.permute.xlu0 %3557  ;;  %4688 = vmatmul.msk.bf16.gmra.mxu1 %vm4117_vm8, %v4709_v60 }
 0x30f   : > { %3625 = vst.msk [vmem:[#allocation3 + $0x74] sm:$0xf] %vm3595_vm6, %v3558_v39 }
 0x311   : > { %3864 = vrot.lane.b32.xlu2 %v3776_v10, %s4884_s30  ;;  %v4742_v10 = vunpack.c.l.bf16 %v4791_v58 }
 0x313   : > { %v3556_v3 = vpop.permute.xlu2 %3555 }
 0x314   : > { %3624 = vst.msk [vmem:[#allocation3 + $0x70] sm:$0xf] %vm3595_vm6, %v3556_v3 }
 0x315   : > { %v3542_v47 = vpop.permute.xlu1 %3541 }
 0x316   : > { %3617 = vst.msk [vmem:[#allocation3 + $0x54] sm:$0xf] %vm3595_vm6, %v3542_v47  ;;  %v3893_v1 = vpop.permute.xlu0 %3892 }
 0x317   : > { %3961 = vst.msk [vmem:[#allocation3 + $0x70] sm:$0xf] %vm3932_vm7, %v3893_v1 }
 0x31b   : > { %v3879_v55 = vpop.permute.xlu2 %3878 }
 0x31c   : > { %3954 = vst.msk [vmem:[#allocation3 + $0x54] sm:$0xf] %vm3932_vm7, %v3879_v55 }
 0x31d   : > { %v3877_v20 = vpop.permute.xlu1 %3876 }
 0x31e   : > { %3953 = vst.msk [vmem:[#allocation3 + $0x50] sm:$0xf] %vm3932_vm7, %v3877_v20  ;;  %v3510_v61 = vpop.permute.xlu0 %3509 }
 0x31f   : > { %3601 = vst.msk [vmem:[#allocation3 + $0x14] sm:$0xf] %vm3595_vm6, %v3510_v61 }
 0x323   : > { %v3508_v11 = vpop.permute.xlu2 %3507 }
 0x324   : > { %3600 = vst.msk [vmem:[#allocation3 + $0x10] sm:$0xf] %vm3595_vm6, %v3508_v11 }
 0x325   : > { %v3895_v23 = vpop.permute.xlu1 %3894  ;;  %v4714_v41 = vld [vmem:[#allocation3 + $0x50] sm:$0xff] }
 0x326   : > { %3962 = vst.msk [vmem:[#allocation3 + $0x74] sm:$0xf] %vm3932_vm7, %v3895_v23  ;;  %v3845_v6 = vpop.permute.xlu0 %3844  ;;  %4693 = vmatmul.msk.bf16.gmra.mxu2 %vm4117_vm8, %v4714_v41 }
 0x327   : > { %3937 = vst.msk [vmem:[#allocation3 + $0x10] sm:$0xf] %vm3932_vm7, %v3845_v6  ;;  %v4743_v6 = vunpack.c.h.bf16 %v4791_v58 }
 0x32b   : > { %v3526_v56 = vpop.permute.xlu2 %3525 }
 0x32c   : > { %3609 = vst.msk [vmem:[#allocation3 + $0x34] sm:$0xf] %vm3595_vm6, %v3526_v56 }
 0x32d   : > { %v3524_v21 = vpop.permute.xlu1 %3523  ;;  %v4718_v17 = vld [vmem:[#allocation3 + $0x70] sm:$0xff] }
 0x32e   : > { %3608 = vst.msk [vmem:[#allocation3 + $0x30] sm:$0xf] %vm3595_vm6, %v3524_v21  ;;  %v3863_v54 = vpop.permute.xlu0 %3862  ;;  %4697 = vmatmul.msk.bf16.gmra.mxu3 %vm4117_vm8, %v4718_v17 }
 0x32f   : > { %3946 = vst.msk [vmem:[#allocation3 + $0x34] sm:$0xf] %vm3932_vm7, %v3863_v54 }
 0x333   : > { %v3861_v59 = vpop.permute.xlu2 %3860 }
 0x334   : > { %3945 = vst.msk [vmem:[#allocation3 + $0x30] sm:$0xf] %vm3932_vm7, %v3861_v59 }
 0x335   : > { %v3847_v18 = vpop.permute.xlu1 %3846 }
 0x336   : > { %3938 = vst.msk [vmem:[#allocation3 + $0x14] sm:$0xf] %vm3932_vm7, %v3847_v18  ;;  %v2999_v33 = vpop.permute.xlu0 %2998 }
 0x337   : > { %3065 = vst.msk [vmem:[#allocation3 + $0x78] sm:$0xf] %vm3034_vm4, %v2999_v33 }
 0x33b   : > { %v2985_v8 = vpop.permute.xlu2 %2984  ;;  %v4710_v30 = vld [vmem:[#allocation3 + $0x30] sm:$0xff] }
 0x33c   : > { %3058 = vst.msk [vmem:[#allocation3 + $0x5c] sm:$0xf] %vm3034_vm4, %v2985_v8  ;;  %4689 = vmatmul.msk.bf16.gmra.mxu1 %vm4117_vm8, %v4710_v30 }
 0x33d   : > { %v2983_v53 = vpop.permute.xlu1 %2982  ;;  %v4706_v32 = vld [vmem:[#allocation3 + $0x10] sm:$0xff] }
 0x33e   : > { %3057 = vst.msk [vmem:[#allocation3 + $0x58] sm:$0xf] %vm3034_vm4, %v2983_v53  ;;  %v3546_v40 = vpop.permute.xlu0 %3545  ;;  %4685 = vmatmul.msk.bf16.gmra.mxu0 %vm4117_vm8, %v4706_v32  ;;  %v4796_v32 = vld [vmem:[%s6857_s22 + $0x48] sm:$0xff]  }
 0x33f   : > { %3619 = vst.msk [vmem:[#allocation3 + $0x5c] sm:$0xf] %vm3595_vm6, %v3546_v40  ;;  %v4239_v5 = vpop.f32.mrf.mxu3  ;;  %v4762_v4 = vunpack.c.l.bf16 %v4796_v32 }
 0x340   : > { %v4240_v36 = vadd.f32 %v6865_v31, %v4239_v5 }
 0x341   : > { %v4219_v42 = vpop.f32.mrf.mxu2 }
 0x342   : > { %v4347_v35 = vadd.f32 %v4774_v19, %v4240_v36  ;;  %v4220_v38 = vadd.f32 %v6865_v31, %v4219_v42 }
 0x343   : > { %v3544_v7 = vpop.permute.xlu2 %3543 }
 0x344   : > { %3618 = vst.msk [vmem:[#allocation3 + $0x58] sm:$0xf] %vm3595_vm6, %v3544_v7  ;;  %v4379_v0 = vmax.f32 %v4347_v35, 0.0  ;;  %v4339_v51 = vadd.f32 %v4758_v29, %v4220_v38  ;;  %v4800_v7 = vld [vmem:[%s6857_s22 + $0x68] sm:$0xff]   ;;  %v4763_v38 = vunpack.c.h.bf16 %v4796_v32 }
 0x345   : > { %v3001_v57 = vpop.permute.xlu1 %3000 }
 0x346   : > { %3066 = vst.msk [vmem:[#allocation3 + $0x7c] sm:$0xf] %vm3034_vm4, %v3001_v57  ;;  %v3881_v26 = vpop.permute.xlu0 %3880  ;;  %v4371_v2 = vmax.f32 %v4339_v51, 0.0  ;;  %v4778_v57 = vunpack.c.l.bf16 %v4800_v7 }
 0x347   : > { %4411 = vst [vmem:[%s6877_s27 + $0xc0] sm:$0xff] %v4379_v0  ;;  %v4241_v49 = vpop.f32.mrf.mxu3 }
 0x348   : > { %3955 = vst.msk [vmem:[#allocation3 + $0x58] sm:$0xf] %vm3932_vm7, %v3881_v26  ;;  %v4242_v12 = vadd.f32 %v6865_v31, %v4241_v49 }
 0x349   : > { %4403 = vst [vmem:[%s6877_s27 + $0x80] sm:$0xff] %v4371_v2  ;;  %v4179_v28 = vpop.f32.mrf.mxu0  ;;  %v4221_v25 = vpop.f32.mrf.mxu2 }
 0x34a   : > { %v4348_v50 = vadd.f32 %v4775_v48, %v4242_v12  ;;  %v4180_v24 = vadd.f32 %v6865_v31, %v4179_v28  ;;  %v4222_v37 = vadd.f32 %v6865_v31, %v4221_v25 }
 0x34b   : > { %v3562_v15 = vpop.permute.xlu2 %3561 }
 0x34c   : > { %3627 = vst.msk [vmem:[#allocation3 + $0x7c] sm:$0xf] %vm3595_vm6, %v3562_v15  ;;  %v4380_v62 = vmax.f32 %v4348_v50, 0.0  ;;  %v4323_v45 = vadd.f32 %v4726_v22, %v4180_v24  ;;  %v4340_v9 = vadd.f32 %v4759_v44, %v4222_v37  ;;  %v4788_v22 = vld [vmem:[%s6857_s22 + $0x8] sm:$0xff]   ;;  %v4779_v44 = vunpack.c.h.bf16 %v4800_v7 }
 0x34d   : > { %v3560_v16 = vpop.permute.xlu1 %3559  ;;  %v4730_v50 = vunpack.c.l.bf16 %v4788_v22 }
 0x34e   : > { %3626 = vst.msk [vmem:[#allocation3 + $0x78] sm:$0xf] %vm3595_vm6, %v3560_v16  ;;  %v3899_v34 = vpop.permute.xlu0 %3898  ;;  %v4355_v27 = vmax.f32 %v4323_v45, 0.0  ;;  %v4372_v13 = vmax.f32 %v4340_v9, 0.0  ;;  %v4792_v9 = vld [vmem:[%s6857_s22 + $0x28] sm:$0xff]  }
 0x34f   : > { %4412 = vst [vmem:[%s6877_s27 + $0xc8] sm:$0xff] %v4380_v62 }
 0x350   : > { %3964 = vst.msk [vmem:[#allocation3 + $0x7c] sm:$0xf] %vm3932_vm7, %v3899_v34  ;;  %v4731_v34 = vunpack.c.h.bf16 %v4788_v22 }
 0x351   : > { %4387 = vst [vmem:[%s6877_s27] sm:$0xff] %v4355_v27  ;;  %v4181_v14 = vpop.f32.mrf.mxu0  ;;  %v4746_v27 = vunpack.c.l.bf16 %v4792_v9 }
 0x352   : > { %4404 = vst [vmem:[%s6877_s27 + $0x88] sm:$0xff] %v4372_v13  ;;  %v4182_v60 = vadd.f32 %v6865_v31, %v4181_v14 }
 0x353   : > { %v3897_v63 = vpop.permute.xlu2 %3896  ;;  %v4199_v39 = vpop.f32.mrf.mxu1 }
 0x354   : > { %3963 = vst.msk [vmem:[#allocation3 + $0x78] sm:$0xf] %vm3932_vm7, %v3897_v63  ;;  %v4324_v3 = vadd.f32 %v4727_v43, %v4182_v60  ;;  %v4200_v47 = vadd.f32 %v6865_v31, %v4199_v39 }
 0x355   : > { %v3883_v1 = vpop.permute.xlu1 %3882 }
 0x356   : > { %3956 = vst.msk [vmem:[#allocation3 + $0x5c] sm:$0xf] %vm3932_vm7, %v3883_v1  ;;  %v3514_v55 = vpop.permute.xlu0 %3513  ;;  %v4356_v20 = vmax.f32 %v4324_v3, 0.0  ;;  %v4331_v61 = vadd.f32 %v4742_v10, %v4200_v47  ;;  %v4747_v3 = vunpack.c.h.bf16 %v4792_v9 }
 0x357   : > { %3603 = vst.msk [vmem:[#allocation3 + $0x1c] sm:$0xf] %vm3595_vm6, %v3514_v55 }
 0x358   : > { %4388 = vst [vmem:[%s6877_s27 + $0x8] sm:$0xff] %v4356_v20  ;;  %v4363_v11 = vmax.f32 %v4331_v61, 0.0  ;;  %v4797_v61 = vld [vmem:[%s6857_s22 + $0x50] sm:$0xff]  }
 0x35a   : > { %4395 = vst [vmem:[%s6877_s27 + $0x40] sm:$0xff] %v4363_v11  ;;  %v4766_v11 = vunpack.c.l.bf16 %v4797_v61 }
 0x35b   : > { %v3512_v23 = vpop.permute.xlu2 %3511  ;;  %v4719_v41 = vld [vmem:[#allocation3 + $0x78] sm:$0xff]  ;;  %v4201_v56 = vpop.f32.mrf.mxu1 }
 0x35c   : > { %3602 = vst.msk [vmem:[#allocation3 + $0x18] sm:$0xf] %vm3595_vm6, %v3512_v23  ;;  %4698 = vmatmul.msk.bf16.gmra.mxu3 %vm4117_vm8, %v4719_v41  ;;  %v4202_v21 = vadd.f32 %v6865_v31, %v4201_v56  ;;  %v4801_v56 = vld [vmem:[%s6857_s22 + $0x70] sm:$0xff]  }
 0x35d   : > { %v2969_v17 = vpop.permute.xlu1 %2968  ;;  %v4715_v54 = vld [vmem:[#allocation3 + $0x58] sm:$0xff] }
 0x35e   : > { %3050 = vst.msk [vmem:[#allocation3 + $0x3c] sm:$0xf] %vm3034_vm4, %v2969_v17  ;;  %v3849_v59 = vpop.permute.xlu0 %3848  ;;  %v4332_v18 = vadd.f32 %v4743_v6, %v4202_v21  ;;  %4694 = vmatmul.msk.bf16.gmra.mxu2 %vm4117_vm8, %v4715_v54  ;;  %v4767_v17 = vunpack.c.h.bf16 %v4797_v61  ;;  %v4782_v54 = vunpack.c.l.bf16 %v4801_v56 }
 0x35f   : > { %3939 = vst.msk [vmem:[#allocation3 + $0x18] sm:$0xf] %vm3932_vm7, %v3849_v59 }
 0x360   : > { %v4364_v33 = vmax.f32 %v4332_v18, 0.0 }
 0x362   : > { %4396 = vst [vmem:[%s6877_s27 + $0x48] sm:$0xff] %v4364_v33 }
 0x363   : > { %v3530_v8 = vpop.permute.xlu2 %3529 }
 0x364   : > { %3611 = vst.msk [vmem:[#allocation3 + $0x3c] sm:$0xf] %vm3595_vm6, %v3530_v8 }
 0x365   : > { %v3528_v30 = vpop.permute.xlu1 %3527 }
 0x366   : > { %3610 = vst.msk [vmem:[#allocation3 + $0x38] sm:$0xf] %vm3595_vm6, %v3528_v30  ;;  %v3867_v52 = vpop.permute.xlu0 %3866 }
 0x367   : > { %3948 = vst.msk [vmem:[#allocation3 + $0x3c] sm:$0xf] %vm3932_vm7, %v3867_v52 }
 0x36b   : > { %v3865_v53 = vpop.permute.xlu2 %3864 }
 0x36c   : > { %3947 = vst.msk [vmem:[#allocation3 + $0x38] sm:$0xf] %vm3932_vm7, %v3865_v53  ;;  %v4793_v53 = vld [vmem:[%s6857_s22 + $0x30] sm:$0xff]  }
 0x36d   : > { %v3851_v40 = vpop.permute.xlu1 %3850 }
 0x36e   : > { %3940 = vst.msk [vmem:[#allocation3 + $0x1c] sm:$0xf] %vm3932_vm7, %v3851_v40 }
 0x36f   : > { %v4224_v19 = vpop.f32.mrf.mxu2 }
 0x370   : > { %v4225_v5 = vadd.f32 %v6865_v31, %v4224_v19  ;;  %v4750_v19 = vunpack.c.l.bf16 %v4793_v53 }
 0x372   : > { %v4341_v36 = vadd.f32 %v4762_v4, %v4225_v5  ;;  %v4789_v4 = vld [vmem:[%s6857_s22 + $0x10] sm:$0xff]   ;;  %v4783_v5 = vunpack.c.h.bf16 %v4801_v56 }
 0x373   : > { %v4711_v29 = vld [vmem:[#allocation3 + $0x38] sm:$0xff]  ;;  %v4734_v7 = vunpack.c.l.bf16 %v4789_v4 }
 0x374   : > { %v4373_v42 = vmax.f32 %v4341_v36, 0.0  ;;  %4690 = vmatmul.msk.bf16.gmra.mxu1 %vm4117_vm8, %v4711_v29 }
 0x375   : > { %v4707_v35 = vld [vmem:[#allocation3 + $0x18] sm:$0xff] }
 0x376   : > { %4405 = vst [vmem:[%s6877_s27 + $0x90] sm:$0xff] %v4373_v42  ;;  %4686 = vmatmul.msk.bf16.gmra.mxu0 %vm4117_vm8, %v4707_v35 }
 0x377   : > { %v4226_v0 = vpop.f32.mrf.mxu2 }
 0x378   : > { %v4227_v51 = vadd.f32 %v6865_v31, %v4226_v0 }
 0x379   : > { %v4244_v26 = vpop.f32.mrf.mxu3 }
 0x37a   : > { %v4342_v46 = vadd.f32 %v4763_v38, %v4227_v51  ;;  %v4245_v2 = vadd.f32 %v6865_v31, %v4244_v26 }
 0x37c   : > { %v4374_v48 = vmax.f32 %v4342_v46, 0.0  ;;  %v4349_v49 = vadd.f32 %v4778_v57, %v4245_v2 }
 0x37e   : > { %4406 = vst [vmem:[%s6877_s27 + $0x98] sm:$0xff] %v4374_v48  ;;  %v4381_v12 = vmax.f32 %v4349_v49, 0.0  ;;  %v4751_v49 = vunpack.c.h.bf16 %v4793_v53 }
 0x380   : > { %4413 = vst [vmem:[%s6877_s27 + $0xd0] sm:$0xff] %v4381_v12 }
 0x381   : > { %v4246_v28 = vpop.f32.mrf.mxu3 }
 0x382   : > { %v4247_v25 = vadd.f32 %v6865_v31, %v4246_v28 }
 0x383   : > { %v4184_v15 = vpop.f32.mrf.mxu0 }
 0x384   : > { %v4350_v24 = vadd.f32 %v4779_v44, %v4247_v25  ;;  %v4185_v37 = vadd.f32 %v6865_v31, %v4184_v15  ;;  %v4735_v44 = vunpack.c.h.bf16 %v4789_v4 }
 0x386   : > { %v4382_v62 = vmax.f32 %v4350_v24, 0.0  ;;  %v4325_v45 = vadd.f32 %v4730_v50, %v4185_v37 }
 0x388   : > { %4414 = vst [vmem:[%s6877_s27 + $0xd8] sm:$0xff] %v4382_v62  ;;  %v4357_v16 = vmax.f32 %v4325_v45, 0.0  ;;  %v4802_v62 = vld [vmem:[%s6857_s22 + $0x78] sm:$0xff]  }
 0x389   : > { %v4798_v45 = vld [vmem:[%s6857_s22 + $0x58] sm:$0xff]   ;;  %v4786_v9 = vunpack.c.l.bf16 %v4802_v62 }
 0x38a   : > { %4389 = vst [vmem:[%s6877_s27 + $0x10] sm:$0xff] %v4357_v16 }
 0x38b   : > { %v4186_v13 = vpop.f32.mrf.mxu0  ;;  %v4204_v58 = vpop.f32.mrf.mxu1 }
 0x38c   : > { %v4187_v43 = vadd.f32 %v6865_v31, %v4186_v13  ;;  %v4205_v14 = vadd.f32 %v6865_v31, %v4204_v58 }
 0x38e   : > { %v4326_v63 = vadd.f32 %v4731_v34, %v4187_v43  ;;  %v4333_v60 = vadd.f32 %v4746_v27, %v4205_v14  ;;  %v4770_v27 = vunpack.c.l.bf16 %v4798_v45 }
 0x390   : > { %v4358_v10 = vmax.f32 %v4326_v63, 0.0  ;;  %v4365_v39 = vmax.f32 %v4333_v60, 0.0 }
 0x392   : > { %4390 = vst [vmem:[%s6877_s27 + $0x18] sm:$0xff] %v4358_v10  ;;  %v4787_v10 = vunpack.c.h.bf16 %v4802_v62 }
 0x393   : > { %4397 = vst [vmem:[%s6877_s27 + $0x50] sm:$0xff] %v4365_v39  ;;  %v4206_v47 = vpop.f32.mrf.mxu1 }
 0x394   : > { %v4207_v1 = vadd.f32 %v6865_v31, %v4206_v47  ;;  %v4771_v47 = vunpack.c.h.bf16 %v4798_v45 }
 0x396   : > { %v4334_v55 = vadd.f32 %v4747_v3, %v4207_v1 }
 0x398   : > { %v4366_v20 = vmax.f32 %v4334_v55, 0.0 }
 0x39a   : > { %4398 = vst [vmem:[%s6877_s27 + $0x58] sm:$0xff] %v4366_v20 }
 0x3a9   : > { %v4229_v23 = vpop.f32.mrf.mxu2 }
 0x3aa   : > { %v4230_v41 = vadd.f32 %v6865_v31, %v4229_v23  ;;  %v4794_v23 = vld [vmem:[%s6857_s22 + $0x38] sm:$0xff]  }
 0x3ab   : > { %v4754_v56 = vunpack.c.l.bf16 %v4794_v23  ;;  %v4755_v53 = vunpack.c.h.bf16 %v4794_v23 }
 0x3ac   : > { %v4343_v6 = vadd.f32 %v4766_v11, %v4230_v41 }
 0x3ae   : > { %v4375_v21 = vmax.f32 %v4343_v6, 0.0  ;;  %v4790_v6 = vld [vmem:[%s6857_s22 + $0x18] sm:$0xff]  }
 0x3af   : > { %v4739_v4 = vunpack.c.h.bf16 %v4790_v6 }
 0x3b0   : > { %4407 = vst [vmem:[%s6877_s27 + $0xa0] sm:$0xff] %v4375_v21 }
 0x3b1   : > { %v4231_v59 = vpop.f32.mrf.mxu2  ;;  %v4249_v18 = vpop.f32.mrf.mxu3 }
 0x3b2   : > { %v4232_v33 = vadd.f32 %v6865_v31, %v4231_v59  ;;  %v4250_v8 = vadd.f32 %v6865_v31, %v4249_v18 }
 0x3b4   : > { %v4344_v30 = vadd.f32 %v4767_v17, %v4232_v33  ;;  %v4351_v52 = vadd.f32 %v4782_v54, %v4250_v8  ;;  %v4738_v54 = vunpack.c.l.bf16 %v4790_v6 }
 0x3b6   : > { %v4376_v32 = vmax.f32 %v4344_v30, 0.0  ;;  %v4383_v40 = vmax.f32 %v4351_v52, 0.0 }
 0x3b8   : > { %4408 = vst [vmem:[%s6877_s27 + $0xa8] sm:$0xff] %v4376_v32 }
 0x3b9   : > { %4415 = vst [vmem:[%s6877_s27 + $0xe0] sm:$0xff] %v4383_v40  ;;  %v4209_v36 = vpop.f32.mrf.mxu1  ;;  %v4251_v29 = vpop.f32.mrf.mxu3 }
 0x3ba   : > { %v4210_v42 = vadd.f32 %v6865_v31, %v4209_v36  ;;  %v4252_v35 = vadd.f32 %v6865_v31, %v4251_v29 }
 0x3bb   : > { %v4189_v38 = vpop.f32.mrf.mxu0 }
 0x3bc   : > { %v4335_v0 = vadd.f32 %v4750_v19, %v4210_v42  ;;  %v4352_v51 = vadd.f32 %v4783_v5, %v4252_v35  ;;  %v4190_v57 = vadd.f32 %v6865_v31, %v4189_v38 }
 0x3be   : > { %v4367_v26 = vmax.f32 %v4335_v0, 0.0  ;;  %v4384_v46 = vmax.f32 %v4352_v51, 0.0  ;;  %v4327_v2 = vadd.f32 %v4734_v7, %v4190_v57 }
 0x3c0   : > { %4399 = vst [vmem:[%s6877_s27 + $0x60] sm:$0xff] %v4367_v26  ;;  %v4359_v48 = vmax.f32 %v4327_v2, 0.0 }
 0x3c1   : > { %4416 = vst [vmem:[%s6877_s27 + $0xe8] sm:$0xff] %v4384_v46  ;;  %v4211_v12 = vpop.f32.mrf.mxu1 }
 0x3c2   : > { %4391 = vst [vmem:[%s6877_s27 + $0x20] sm:$0xff] %v4359_v48  ;;  %v4212_v22 = vadd.f32 %v6865_v31, %v4211_v12 }
 0x3c3   : > { %v4191_v28 = vpop.f32.mrf.mxu0 }
 0x3c4   : > { %v4336_v25 = vadd.f32 %v4751_v49, %v4212_v22  ;;  %v4192_v50 = vadd.f32 %v6865_v31, %v4191_v28 }
 0x3c6   : > { %v4368_v15 = vmax.f32 %v4336_v25, 0.0  ;;  %v4328_v24 = vadd.f32 %v4735_v44, %v4192_v50 }
 0x3c8   : > { %4400 = vst [vmem:[%s6877_s27 + $0x68] sm:$0xff] %v4368_v15  ;;  %v4360_v37 = vmax.f32 %v4328_v24, 0.0 }
 0x3ca   : > { %4392 = vst [vmem:[%s6877_s27 + $0x28] sm:$0xff] %v4360_v37 }
 0x3df   : > { %v4254_v16 = vpop.f32.mrf.mxu3 }
 0x3e0   : > { %v4255_v34 = vadd.f32 %v6865_v31, %v4254_v16 }
 0x3e1   : > { %v4234_v13 = vpop.f32.mrf.mxu2 }
 0x3e2   : > { %v4353_v58 = vadd.f32 %v4786_v9, %v4255_v34  ;;  %v4235_v43 = vadd.f32 %v6865_v31, %v4234_v13 }
 0x3e4   : > { %v4385_v14 = vmax.f32 %v4353_v58, 0.0  ;;  %v4345_v63 = vadd.f32 %v4770_v27, %v4235_v43 }
 0x3e6   : > { %4417 = vst [vmem:[%s6877_s27 + $0xf0] sm:$0xff] %v4385_v14  ;;  %v4377_v60 = vmax.f32 %v4345_v63, 0.0 }
 0x3e7   : > { %v4256_v39 = vpop.f32.mrf.mxu3 }
 0x3e8   : > { %4409 = vst [vmem:[%s6877_s27 + $0xb0] sm:$0xff] %v4377_v60  ;;  %v4257_v3 = vadd.f32 %v6865_v31, %v4256_v39 }
 0x3e9   : > { %v4236_v1 = vpop.f32.mrf.mxu2 }
 0x3ea   : > { %v4354_v55 = vadd.f32 %v4787_v10, %v4257_v3  ;;  %v4237_v20 = vadd.f32 %v6865_v31, %v4236_v1 }
 0x3ec   : > { %v4386_v61 = vmax.f32 %v4354_v55, 0.0  ;;  %v4346_v11 = vadd.f32 %v4771_v47, %v4237_v20 }
 0x3ee   : > { %4418 = vst [vmem:[%s6877_s27 + $0xf8] sm:$0xff] %v4386_v61  ;;  %v4378_v41 = vmax.f32 %v4346_v11, 0.0 }
 0x3f0   : > { %4410 = vst [vmem:[%s6877_s27 + $0xb8] sm:$0xff] %v4378_v41 }
 0x3f1   : > { %v4214_v21 = vpop.f32.mrf.mxu1 }
 0x3f2   : > { %v4215_v17 = vadd.f32 %v6865_v31, %v4214_v21 }
 0x3f3   : > { %v4194_v59 = vpop.f32.mrf.mxu0 }
 0x3f4   : > { %v4337_v18 = vadd.f32 %v4754_v56, %v4215_v17  ;;  %v4195_v33 = vadd.f32 %v6865_v31, %v4194_v59 }
 0x3f6   : > { %v4369_v8 = vmax.f32 %v4337_v18, 0.0  ;;  %v4329_v30 = vadd.f32 %v4738_v54, %v4195_v33 }
 0x3f8   : > { %4401 = vst [vmem:[%s6877_s27 + $0x70] sm:$0xff] %v4369_v8  ;;  %v4361_v52 = vmax.f32 %v4329_v30, 0.0 }
 0x3f9   : > { %v4216_v32 = vpop.f32.mrf.mxu1 }
 0x3fa   : > { %4393 = vst [vmem:[%s6877_s27 + $0x30] sm:$0xff] %v4361_v52  ;;  %v4217_v40 = vadd.f32 %v6865_v31, %v4216_v32 }
 0x3fb   : > { %v4196_v19 = vpop.f32.mrf.mxu0 }
 0x3fc   : > { %v4338_v5 = vadd.f32 %v4755_v53, %v4217_v40  ;;  %v4197_v36 = vadd.f32 %v6865_v31, %v4196_v19 }
 0x3fe   : > { %v4370_v29 = vmax.f32 %v4338_v5, 0.0  ;;  %v4330_v42 = vadd.f32 %v4739_v4, %v4197_v36 }
 0x400   : > { %4402 = vst [vmem:[%s6877_s27 + $0x78] sm:$0xff] %v4370_v29  ;;  %v4362_v35 = vmax.f32 %v4330_v42, 0.0 }
 0x402   : > { %4394 = vst [vmem:[%s6877_s27 + $0x38] sm:$0xff] %v4362_v35 }
 0x403 PF: > { %s14_s17 = sadd.s32 1, %s4874_s17   ;;  %s7000_s15 = smov %s4870_s16 }
 0x404   : > { %p11_p5 = scmp.ge.s32.totalorder %s14_s17, 4   ;;  %s7001_s16 = smov %s7003_s18 }
 0x406   :  { %13 = sbr.rel (!%p11_p5) target bundleno = 2 (0x2), region = 81 }

</bundles_post_ra>
